<compile_context>
chip_gen: v6e
topology: v6e:2x2x1
jax: 0.10.0
libtpu: 0.0.40
codegen_flags: <defaults>
</compile_context>

<pallas_src>
import jax
import jax.numpy as jnp
import numpy as np
from jax.experimental import pallas as pl
from jax.experimental.pallas import tpu as pltpu


def relation_decoder_kernel(
    x_ref,        # (S, Bp, Dp)   encoder_output, time-major, zero-padded
    h0_ref,       # (2, Bp, Dp)   initial hidden state (layer 0, layer 1)
    c0_ref,       # (2, Bp, Dp)   initial cell state
    wih0_ref,     # (Dp, 4Dp)     layer-0 W_ih^T   (gate order i, f, g, o)
    whh0_ref,     # (Dp, 4Dp)     layer-0 W_hh^T
    b0_ref,       # (1, 4Dp)      layer-0 (b_ih + b_hh)
    w1_ref,       # (2Dp, 4Dp)    layer-1 stacked [W_ih^T ; W_hh^T]
    b1_ref,       # (1, 4Dp)      layer-1 (b_ih + b_hh)
    attw_ref,     # (Bp, Dp)      attention weight (squeezed (B,1,D), padded)
    lw_ref,       # (Dp, Tp)      state2prob_relation weight^T
    lb_ref,       # (1, Tp)       state2prob_relation bias
    out_ref,      # (Bp, Tp)      output logits (padded)
    xproj_ref,    # scratch (S, Bp, 4Dp)  hoisted layer-0 input projection
):
    S, Bp, Dp = x_ref.shape
    G = 4 * Dp

    # ---- Hoisted layer-0 input projection (+ folded bias): one big MXU GEMM,
    # ---- completely off the serial per-timestep dependence chain.
    x_flat = x_ref[...].reshape(S * Bp, Dp)
    xp = (jnp.dot(x_flat, wih0_ref[...], preferred_element_type=jnp.float32)
          + b0_ref[...])
    xproj_ref[...] = xp.reshape(S, Bp, G)

    # Loop-invariant operands, read once (weights stay VMEM-resident; the small
    # bias broadcast is materialized once, not per step).
    whh0 = whh0_ref[...]
    w1 = w1_ref[...]
    bias1 = jnp.broadcast_to(b1_ref[...], (Bp, G))
    attw = attw_ref[...]

    def gates_to_hc(gates, c_prev):
        # Lane-aligned gate slices (Dp is a multiple of 128).
        i = jax.nn.sigmoid(gates[:, 0 * Dp:1 * Dp])
        f = jax.nn.sigmoid(gates[:, 1 * Dp:2 * Dp])
        g = jnp.tanh(gates[:, 2 * Dp:3 * Dp])
        o = jax.nn.sigmoid(gates[:, 3 * Dp:4 * Dp])
        c = f * c_prev + i * g
        h = o * jnp.tanh(c)
        return h, c

    # TODO(synk): nn.Dropout / inter-layer LSTM dropout are identity (eval mode).
    def body(t, carry):
        h1, c1, h2, c2, m, l, acc = carry

        # Layer 0: single dot per step (input projection already hoisted).
        g0 = xproj_ref[t] + jnp.dot(h1, whh0, preferred_element_type=jnp.float32)
        h1n, c1n = gates_to_hc(g0, c1)

        # Layer 1: single fused dot on concat([x_t, h_prev]) with stacked weights.
        xh = jnp.concatenate([h1n, h2], axis=-1)                  # (Bp, 2Dp)
        g1 = jnp.dot(xh, w1, preferred_element_type=jnp.float32) + bias1
        h2n, c2n = gates_to_hc(g1, c2)

        # Online (flash-style) softmax attention over S — no lstm_out buffer,
        # no second pass over the sequence.
        s_t = jnp.sum(jnp.tanh(h2n) * attw, axis=-1, keepdims=True)   # (Bp, 1)
        m_new = jnp.maximum(m, s_t)
        alpha = jnp.exp(m - m_new)
        p = jnp.exp(s_t - m_new)
        l_new = alpha * l + p
        acc_new = alpha * acc + p * h2n
        return h1n, c1n, h2n, c2n, m_new, l_new, acc_new

    carry0 = (
        h0_ref[0], c0_ref[0], h0_ref[1], c0_ref[1],
        jnp.full((Bp, 1), -1e30, jnp.float32),    # running max
        jnp.zeros((Bp, 1), jnp.float32),          # running denominator
        jnp.zeros((Bp, Dp), jnp.float32),         # running weighted sum
    )
    # h/c and attention state live in vregs; short static trip count -> unrolled.
    _, _, _, _, _, l, acc = jax.lax.fori_loop(0, S, body, carry0, unroll=True)

    att = acc / l                                  # exact divide, once, off the loop
    sent = jnp.tanh(att)                           # (Bp, Dp)
    out_ref[...] = (jnp.dot(sent, lw_ref[...], preferred_element_type=jnp.float32)
                    + lb_ref[...])                 # (Bp, Tp) unmasked lane-dense store


# --------------------------- wrapper / padding ---------------------------

def _round_up(n, m):
    return ((n + m - 1) // m) * m


def _pad_axis(x, axis, target):
    pad = target - x.shape[axis]
    if pad <= 0:
        return x
    widths = [(0, 0)] * x.ndim
    widths[axis] = (0, pad)
    return jnp.pad(x, widths)


def _pad_lstm_weight(w, D, Dp):
    # w: (D, 4*D) with gate blocks [i|f|g|o]; pad each gate block and the input
    # dim to Dp so gate slices stay lane-aligned inside the kernel.
    w4 = w.reshape(w.shape[0], 4, D)
    w4 = _pad_axis(_pad_axis(w4, 0, Dp), 2, Dp)
    return w4.reshape(Dp, 4 * Dp)


def _pad_lstm_bias(b, D, Dp):
    b4 = b.reshape(1, 4, D)
    b4 = _pad_axis(b4, 2, Dp)
    return b4.reshape(1, 4 * Dp)


def relation_decoder_forward(encoder_output, h0, c0, params):
    """encoder_output: (B, S, D); h0, c0: (2, B, D). Returns (B, tag_size)."""
    B, S, D = encoder_output.shape
    T = params["lin_b"].shape[-1]

    Bp = _round_up(B, 8)       # sublane multiple
    Dp = _round_up(D, 128)     # lane multiple
    Tp = _round_up(T, 128)     # lane-dense output store

    # Zero-padding keeps the math inert: padded hidden/cell lanes stay exactly 0
    # through the LSTM (zero weights/bias), contribute 0 to attention scores and
    # to the final linear, and padded batch rows are sliced off below.
    x_tm = jnp.transpose(encoder_output, (1, 0, 2))          # time-major (S, B, D)
    x_tm = _pad_axis(_pad_axis(x_tm, 1, Bp), 2, Dp)
    h0p = _pad_axis(_pad_axis(h0, 1, Bp), 2, Dp)
    c0p = _pad_axis(_pad_axis(c0, 1, Bp), 2, Dp)

    wih0 = _pad_lstm_weight(params["wih0"], D, Dp)
    whh0 = _pad_lstm_weight(params["whh0"], D, Dp)
    b0 = _pad_lstm_bias(params["b0"], D, Dp)
    wih1 = _pad_lstm_weight(params["wih1"], D, Dp)
    whh1 = _pad_lstm_weight(params["whh1"], D, Dp)
    b1 = _pad_lstm_bias(params["b1"], D, Dp)
    w1 = jnp.concatenate([wih1, whh1], axis=0)               # (2Dp, 4Dp)

    attw = _pad_axis(_pad_axis(params["att_w"], 0, Bp), 1, Dp)
    lw = _pad_axis(_pad_axis(params["lin_w"], 0, Dp), 1, Tp)
    lb = _pad_axis(params["lin_b"], 1, Tp)

    inputs = (x_tm, h0p, c0p, wih0, whh0, b0, w1, b1, attw, lw, lb)

    # VMEM budget sized from the actual padded buffers (+ scratch + output),
    # with double-buffering headroom.
    total_bytes = sum(int(np.prod(a.shape)) * 4 for a in inputs)
    total_bytes += Bp * Tp * 4 + S * Bp * 4 * Dp * 4
    vmem_limit = int(min(2 * total_bytes + (4 << 20), 64 << 20))

    vmem = pl.BlockSpec(memory_space=pltpu.MemorySpace.VMEM)
    out_p = pl.pallas_call(
        relation_decoder_kernel,
        out_shape=jax.ShapeDtypeStruct((Bp, Tp), jnp.float32),
        in_specs=[vmem] * len(inputs),
        out_specs=vmem,
        scratch_shapes=[
            pltpu.VMEM((S, Bp, 4 * Dp), jnp.float32),   # hoisted input projection
        ],
        compiler_params=pltpu.CompilerParams(vmem_limit_bytes=vmem_limit),
    )(*inputs)

    return out_p[:B, :T]


# ----------------------------- reference ---------------------------------

def reference_forward(encoder_output, h0, c0, params):
    """Pure-JAX reference mirroring the PyTorch forward (eval mode)."""
    B, S, D = encoder_output.shape

    def cell(x_t, h_prev, c_prev, wih, whh, b):
        gates = x_t @ wih + h_prev @ whh + b
        i = jax.nn.sigmoid(gates[:, 0 * D:1 * D])
        f = jax.nn.sigmoid(gates[:, 1 * D:2 * D])
        g = jnp.tanh(gates[:, 2 * D:3 * D])
        o = jax.nn.sigmoid(gates[:, 3 * D:4 * D])
        c = f * c_prev + i * g
        return o * jnp.tanh(c), c

    h1, c1 = h0[0], c0[0]
    h2, c2 = h0[1], c0[1]
    outs = []
    for t in range(S):
        x_t = encoder_output[:, t, :]
        h1, c1 = cell(x_t, h1, c1, params["wih0"], params["whh0"], params["b0"])
        h2, c2 = cell(h1, h2, c2, params["wih1"], params["whh1"], params["b1"])
        outs.append(h2)
    lstm_out = jnp.stack(outs, axis=1)                     # (B, S, D)

    H = jnp.transpose(lstm_out, (0, 2, 1))                 # (B, D, S)
    M = jnp.tanh(H)
    att_w = params["att_w"][:, None, :]                    # (B, 1, D)
    scores = jnp.einsum("bod,bds->bos", att_w, M)          # (B, 1, S)
    a = jax.nn.softmax(scores, axis=2)
    att = jnp.einsum("bds,bos->bd", H, a)                  # (B, D)
    sent = jnp.tanh(att)
    return sent @ params["lin_w"] + params["lin_b"]        # (B, T)


def init_params(key, B, D, tag_size):
    ks = jax.random.split(key, 12)
    bound = 1.0 / np.sqrt(D)

    def u(k, shape):
        return jax.random.uniform(k, shape, jnp.float32, -bound, bound)

    # PyTorch LSTM weights are (4D, in); store transposed (in, 4D).
    wih0 = u(ks[0], (4 * D, D)).T
    whh0 = u(ks[1], (4 * D, D)).T
    b0 = (u(ks[2], (4 * D,)) + u(ks[3], (4 * D,))).reshape(1, 4 * D)
    wih1 = u(ks[4], (4 * D, D)).T
    whh1 = u(ks[5], (4 * D, D)).T
    b1 = (u(ks[6], (4 * D,)) + u(ks[7], (4 * D,))).reshape(1, 4 * D)

    att_w = jax.random.normal(ks[8], (B, D), jnp.float32)  # nn.Parameter(randn(B,1,D))

    bound_l = 1.0 / np.sqrt(D)
    lin_w = jax.random.uniform(ks[9], (tag_size, D), jnp.float32, -bound_l, bound_l).T
    lin_b = jax.random.uniform(ks[10], (1, tag_size), jnp.float32, -bound_l, bound_l)

    return dict(wih0=wih0, whh0=whh0, b0=b0, wih1=wih1, whh1=whh1, b1=b1,
                att_w=att_w, lin_w=lin_w, lin_b=lin_b)


if __name__ == "__main__":
    B, S, D = 2, 8, 32
    relation_count = 7
    tag_size = relation_count + 1

    key = jax.random.PRNGKey(0)
    k_x, k_h, k_c, k_p = jax.random.split(key, 4)

    encoder_output = jax.random.normal(k_x, (B, S, D), jnp.float32)
    h0 = jax.random.normal(k_h, (2, B, D), jnp.float32) * 0.1
    c0 = jax.random.normal(k_c, (2, B, D), jnp.float32) * 0.1
    params = init_params(k_p, B, D, tag_size)

    out = relation_decoder_forward(encoder_output, h0, c0, params)
    out = jax.block_until_ready(out)

    ref = reference_forward(encoder_output, h0, c0, params)
    np.testing.assert_allclose(np.asarray(out), np.asarray(ref),
                               rtol=1e-4, atol=1e-4)

    print("KERNEL_OK")
</pallas_src>

<mosaic_0001>
module attributes {stable_mosaic.version = 11 : i64} {
  func.func @relation_decoder_kernel(%arg0: memref<8x8x128xf32, #tpu.memory_space<vmem>>, %arg1: memref<2x8x128xf32, #tpu.memory_space<vmem>>, %arg2: memref<2x8x128xf32, #tpu.memory_space<vmem>>, %arg3: memref<128x512xf32, #tpu.memory_space<vmem>>, %arg4: memref<128x512xf32, #tpu.memory_space<vmem>>, %arg5: memref<1x512xf32, #tpu.memory_space<vmem>>, %arg6: memref<256x512xf32, #tpu.memory_space<vmem>>, %arg7: memref<1x512xf32, #tpu.memory_space<vmem>>, %arg8: memref<8x128xf32, #tpu.memory_space<vmem>>, %arg9: memref<128x128xf32, #tpu.memory_space<vmem>>, %arg10: memref<1x128xf32, #tpu.memory_space<vmem>>, %arg11: memref<8x128xf32, #tpu.memory_space<vmem>>, %arg12: memref<8x8x512xf32, #tpu.memory_space<vmem>>) attributes {dimension_semantics = [], scalar_prefetch = 0 : i64, scratch_operands = 1 : i64, tpu.core_type = #tpu.core_type<tc>} {
    %c0 = arith.constant 0 : index
    %c0_0 = arith.constant 0 : index
    %c0_1 = arith.constant 0 : index
    %0 = vector.load %arg0[%c0, %c0_0, %c0_1] : memref<8x8x128xf32, #tpu.memory_space<vmem>>, vector<8x8x128xf32>
    %1 = vector.shape_cast %0 : vector<8x8x128xf32> to vector<64x128xf32>
    %c0_2 = arith.constant 0 : index
    %c0_3 = arith.constant 0 : index
    %2 = vector.load %arg3[%c0_2, %c0_3] : memref<128x512xf32, #tpu.memory_space<vmem>>, vector<128x512xf32>
    %cst = arith.constant dense<0.000000e+00> : vector<64x512xf32>
    %3 = tpu.matmul %1, %2, %cst {dimension_numbers = #tpu.dot_dimension_numbers<[1], [0], [0], [1], [0, 0, 1, 1], [], []>} : vector<64x128xf32>, vector<128x512xf32>, vector<64x512xf32> -> vector<64x512xf32>
    %c0_4 = arith.constant 0 : index
    %c0_5 = arith.constant 0 : index
    %4 = vector.load %arg5[%c0_4, %c0_5] : memref<1x512xf32, #tpu.memory_space<vmem>>, vector<1x512xf32>
    %5 = vector.broadcast %4 : vector<1x512xf32> to vector<64x512xf32>
    %6 = arith.addf %3, %5 : vector<64x512xf32>
    %7 = vector.shape_cast %6 : vector<64x512xf32> to vector<8x8x512xf32>
    %c0_6 = arith.constant 0 : index
    %c0_7 = arith.constant 0 : index
    %c0_8 = arith.constant 0 : index
    %8 = vector.load %arg12[%c0_6, %c0_7, %c0_8] : memref<8x8x512xf32, #tpu.memory_space<vmem>>, vector<8x8x512xf32>
    tpu.vector_store %arg12[%c0_6, %c0_7, %c0_8], %7 {strides = array<i32>} : memref<8x8x512xf32, #tpu.memory_space<vmem>>, vector<8x8x512xf32>,
    %c0_9 = arith.constant 0 : index
    %c0_10 = arith.constant 0 : index
    %9 = vector.load %arg4[%c0_9, %c0_10] : memref<128x512xf32, #tpu.memory_space<vmem>>, vector<128x512xf32>
    %c0_11 = arith.constant 0 : index
    %c0_12 = arith.constant 0 : index
    %10 = vector.load %arg6[%c0_11, %c0_12] : memref<256x512xf32, #tpu.memory_space<vmem>>, vector<256x512xf32>
    %c0_13 = arith.constant 0 : index
    %c0_14 = arith.constant 0 : index
    %11 = vector.load %arg7[%c0_13, %c0_14] : memref<1x512xf32, #tpu.memory_space<vmem>>, vector<1x512xf32>
    %12 = vector.shape_cast %11 : vector<1x512xf32> to vector<1x512xf32>
    %13 = vector.broadcast %12 : vector<1x512xf32> to vector<8x512xf32>
    %c0_15 = arith.constant 0 : index
    %c0_16 = arith.constant 0 : index
    %14 = vector.load %arg8[%c0_15, %c0_16] : memref<8x128xf32, #tpu.memory_space<vmem>>, vector<8x128xf32>
    %c0_17 = arith.constant 0 : index
    %c0_18 = arith.constant 0 : index
    %c0_19 = arith.constant 0 : index
    %15 = vector.load %arg1[%c0_17, %c0_18, %c0_19] : memref<2x8x128xf32, #tpu.memory_space<vmem>>, vector<1x8x128xf32>
    %16 = vector.shape_cast %15 : vector<1x8x128xf32> to vector<8x128xf32>
    %c0_20 = arith.constant 0 : index
    %c0_21 = arith.constant 0 : index
    %c0_22 = arith.constant 0 : index
    %17 = vector.load %arg2[%c0_20, %c0_21, %c0_22] : memref<2x8x128xf32, #tpu.memory_space<vmem>>, vector<1x8x128xf32>
    %18 = vector.shape_cast %17 : vector<1x8x128xf32> to vector<8x128xf32>
    %c1 = arith.constant 1 : index
    %c0_23 = arith.constant 0 : index
    %c0_24 = arith.constant 0 : index
    %19 = vector.load %arg1[%c1, %c0_23, %c0_24] : memref<2x8x128xf32, #tpu.memory_space<vmem>>, vector<1x8x128xf32>
    %20 = vector.shape_cast %19 : vector<1x8x128xf32> to vector<8x128xf32>
    %c1_25 = arith.constant 1 : index
    %c0_26 = arith.constant 0 : index
    %c0_27 = arith.constant 0 : index
    %21 = vector.load %arg2[%c1_25, %c0_26, %c0_27] : memref<2x8x128xf32, #tpu.memory_space<vmem>>, vector<1x8x128xf32>
    %22 = vector.shape_cast %21 : vector<1x8x128xf32> to vector<8x128xf32>
    %cst_28 = arith.constant -1.000000e+30 : f32
    %23 = vector.broadcast %cst_28 : f32 to vector<8x1xf32>
    %cst_29 = arith.constant 0.000000e+00 : f32
    %24 = vector.broadcast %cst_29 : f32 to vector<8x1xf32>
    %cst_30 = arith.constant 0.000000e+00 : f32
    %25 = vector.broadcast %cst_30 : f32 to vector<8x128xf32>
    %c0_i32 = arith.constant 0 : i32
    %26 = arith.index_cast %c0_i32 : i32 to index
    %c0_31 = arith.constant 0 : index
    %c0_32 = arith.constant 0 : index
    %27 = vector.load %arg12[%26, %c0_31, %c0_32] : memref<8x8x512xf32, #tpu.memory_space<vmem>>, vector<1x8x512xf32>
    %28 = vector.shape_cast %27 : vector<1x8x512xf32> to vector<8x512xf32>
    %cst_33 = arith.constant dense<0.000000e+00> : vector<8x512xf32>
    %29 = tpu.matmul %16, %9, %cst_33 {dimension_numbers = #tpu.dot_dimension_numbers<[1], [0], [0], [1], [0, 0, 1, 1], [], []>} : vector<8x128xf32>, vector<128x512xf32>, vector<8x512xf32> -> vector<8x512xf32>
    %30 = arith.addf %28, %29 : vector<8x512xf32>
    %31 = vector.extract_strided_slice %30 {offsets = [0, 0], sizes = [8, 128], strides = [1, 1]} : vector<8x512xf32> to vector<8x128xf32>
    %32 = arith.negf %31 : vector<8x128xf32>
    %33 = math.exp %32 : vector<8x128xf32>
    %cst_34 = arith.constant 1.000000e+00 : f32
    %34 = vector.broadcast %cst_34 : f32 to vector<8x128xf32>
    %35 = arith.addf %34, %33 : vector<8x128xf32>
    %36 = arith.divf %34, %35 : vector<8x128xf32>
    %37 = vector.extract_strided_slice %30 {offsets = [0, 128], sizes = [8, 128], strides = [1, 1]} : vector<8x512xf32> to vector<8x128xf32>
    %38 = arith.negf %37 : vector<8x128xf32>
    %39 = math.exp %38 : vector<8x128xf32>
    %cst_35 = arith.constant 1.000000e+00 : f32
    %40 = vector.broadcast %cst_35 : f32 to vector<8x128xf32>
    %41 = arith.addf %40, %39 : vector<8x128xf32>
    %42 = arith.divf %40, %41 : vector<8x128xf32>
    %43 = vector.extract_strided_slice %30 {offsets = [0, 256], sizes = [8, 128], strides = [1, 1]} : vector<8x512xf32> to vector<8x128xf32>
    %44 = math.tanh %43 : vector<8x128xf32>
    %45 = vector.extract_strided_slice %30 {offsets = [0, 384], sizes = [8, 128], strides = [1, 1]} : vector<8x512xf32> to vector<8x128xf32>
    %46 = arith.negf %45 : vector<8x128xf32>
    %47 = math.exp %46 : vector<8x128xf32>
    %cst_36 = arith.constant 1.000000e+00 : f32
    %48 = vector.broadcast %cst_36 : f32 to vector<8x128xf32>
    %49 = arith.addf %48, %47 : vector<8x128xf32>
    %50 = arith.divf %48, %49 : vector<8x128xf32>
    %51 = arith.mulf %42, %18 : vector<8x128xf32>
    %52 = arith.mulf %36, %44 : vector<8x128xf32>
    %53 = arith.addf %51, %52 : vector<8x128xf32>
    %54 = math.tanh %53 : vector<8x128xf32>
    %55 = arith.mulf %50, %54 : vector<8x128xf32>
    %56 = tpu.concatenate %55, %20 in 1 : vector<8x128xf32>, vector<8x128xf32> -> vector<8x256xf32>
    %cst_37 = arith.constant dense<0.000000e+00> : vector<8x512xf32>
    %57 = tpu.matmul %56, %10, %cst_37 {dimension_numbers = #tpu.dot_dimension_numbers<[1], [0], [0], [1], [0, 0, 1, 1], [], []>} : vector<8x256xf32>, vector<256x512xf32>, vector<8x512xf32> -> vector<8x512xf32>
    %58 = arith.addf %57, %13 : vector<8x512xf32>
    %59 = vector.extract_strided_slice %58 {offsets = [0, 0], sizes = [8, 128], strides = [1, 1]} : vector<8x512xf32> to vector<8x128xf32>
    %60 = arith.negf %59 : vector<8x128xf32>
    %61 = math.exp %60 : vector<8x128xf32>
    %cst_38 = arith.constant 1.000000e+00 : f32
    %62 = vector.broadcast %cst_38 : f32 to vector<8x128xf32>
    %63 = arith.addf %62, %61 : vector<8x128xf32>
    %64 = arith.divf %62, %63 : vector<8x128xf32>
    %65 = vector.extract_strided_slice %58 {offsets = [0, 128], sizes = [8, 128], strides = [1, 1]} : vector<8x512xf32> to vector<8x128xf32>
    %66 = arith.negf %65 : vector<8x128xf32>
    %67 = math.exp %66 : vector<8x128xf32>
    %cst_39 = arith.constant 1.000000e+00 : f32
    %68 = vector.broadcast %cst_39 : f32 to vector<8x128xf32>
    %69 = arith.addf %68, %67 : vector<8x128xf32>
    %70 = arith.divf %68, %69 : vector<8x128xf32>
    %71 = vector.extract_strided_slice %58 {offsets = [0, 256], sizes = [8, 128], strides = [1, 1]} : vector<8x512xf32> to vector<8x128xf32>
    %72 = math.tanh %71 : vector<8x128xf32>
    %73 = vector.extract_strided_slice %58 {offsets = [0, 384], sizes = [8, 128], strides = [1, 1]} : vector<8x512xf32> to vector<8x128xf32>
    %74 = arith.negf %73 : vector<8x128xf32>
    %75 = math.exp %74 : vector<8x128xf32>
    %cst_40 = arith.constant 1.000000e+00 : f32
    %76 = vector.broadcast %cst_40 : f32 to vector<8x128xf32>
    %77 = arith.addf %76, %75 : vector<8x128xf32>
    %78 = arith.divf %76, %77 : vector<8x128xf32>
    %79 = arith.mulf %70, %22 : vector<8x128xf32>
    %80 = arith.mulf %64, %72 : vector<8x128xf32>
    %81 = arith.addf %79, %80 : vector<8x128xf32>
    %82 = math.tanh %81 : vector<8x128xf32>
    %83 = arith.mulf %78, %82 : vector<8x128xf32>
    %84 = math.tanh %83 : vector<8x128xf32>
    %85 = arith.mulf %84, %14 : vector<8x128xf32>
    %cst_41 = arith.constant dense<0.000000e+00> : vector<8xf32>
    %86 = vector.multi_reduction <add>, %85, %cst_41 [1] : vector<8x128xf32> to vector<8xf32>
    %87 = vector.shape_cast %86 : vector<8xf32> to vector<8x1xf32>
    %88 = arith.maximumf %23, %87 : vector<8x1xf32>
    %89 = arith.subf %23, %88 : vector<8x1xf32>
    %90 = math.exp %89 : vector<8x1xf32>
    %91 = arith.subf %87, %88 : vector<8x1xf32>
    %92 = math.exp %91 : vector<8x1xf32>
    %93 = arith.mulf %90, %24 : vector<8x1xf32>
    %94 = arith.addf %93, %92 : vector<8x1xf32>
    %95 = vector.broadcast %90 : vector<8x1xf32> to vector<8x128xf32>
    %96 = arith.mulf %95, %25 : vector<8x128xf32>
    %97 = vector.broadcast %92 : vector<8x1xf32> to vector<8x128xf32>
    %98 = arith.mulf %97, %83 : vector<8x128xf32>
    %99 = arith.addf %96, %98 : vector<8x128xf32>
    %c1_i32 = arith.constant 1 : i32
    %100 = arith.index_cast %c1_i32 : i32 to index
    %c0_42 = arith.constant 0 : index
    %c0_43 = arith.constant 0 : index
    %101 = vector.load %arg12[%100, %c0_42, %c0_43] : memref<8x8x512xf32, #tpu.memory_space<vmem>>, vector<1x8x512xf32>
    %102 = vector.shape_cast %101 : vector<1x8x512xf32> to vector<8x512xf32>
    %cst_44 = arith.constant dense<0.000000e+00> : vector<8x512xf32>
    %103 = tpu.matmul %55, %9, %cst_44 {dimension_numbers = #tpu.dot_dimension_numbers<[1], [0], [0], [1], [0, 0, 1, 1], [], []>} : vector<8x128xf32>, vector<128x512xf32>, vector<8x512xf32> -> vector<8x512xf32>
    %104 = arith.addf %102, %103 : vector<8x512xf32>
    %105 = vector.extract_strided_slice %104 {offsets = [0, 0], sizes = [8, 128], strides = [1, 1]} : vector<8x512xf32> to vector<8x128xf32>
    %106 = arith.negf %105 : vector<8x128xf32>
    %107 = math.exp %106 : vector<8x128xf32>
    %cst_45 = arith.constant 1.000000e+00 : f32
    %108 = vector.broadcast %cst_45 : f32 to vector<8x128xf32>
    %109 = arith.addf %108, %107 : vector<8x128xf32>
    %110 = arith.divf %108, %109 : vector<8x128xf32>
    %111 = vector.extract_strided_slice %104 {offsets = [0, 128], sizes = [8, 128], strides = [1, 1]} : vector<8x512xf32> to vector<8x128xf32>
    %112 = arith.negf %111 : vector<8x128xf32>
    %113 = math.exp %112 : vector<8x128xf32>
    %cst_46 = arith.constant 1.000000e+00 : f32
    %114 = vector.broadcast %cst_46 : f32 to vector<8x128xf32>
    %115 = arith.addf %114, %113 : vector<8x128xf32>
    %116 = arith.divf %114, %115 : vector<8x128xf32>
    %117 = vector.extract_strided_slice %104 {offsets = [0, 256], sizes = [8, 128], strides = [1, 1]} : vector<8x512xf32> to vector<8x128xf32>
    %118 = math.tanh %117 : vector<8x128xf32>
    %119 = vector.extract_strided_slice %104 {offsets = [0, 384], sizes = [8, 128], strides = [1, 1]} : vector<8x512xf32> to vector<8x128xf32>
    %120 = arith.negf %119 : vector<8x128xf32>
    %121 = math.exp %120 : vector<8x128xf32>
    %cst_47 = arith.constant 1.000000e+00 : f32
    %122 = vector.broadcast %cst_47 : f32 to vector<8x128xf32>
    %123 = arith.addf %122, %121 : vector<8x128xf32>
    %124 = arith.divf %122, %123 : vector<8x128xf32>
    %125 = arith.mulf %116, %53 : vector<8x128xf32>
    %126 = arith.mulf %110, %118 : vector<8x128xf32>
    %127 = arith.addf %125, %126 : vector<8x128xf32>
    %128 = math.tanh %127 : vector<8x128xf32>
    %129 = arith.mulf %124, %128 : vector<8x128xf32>
    %130 = tpu.concatenate %129, %83 in 1 : vector<8x128xf32>, vector<8x128xf32> -> vector<8x256xf32>
    %cst_48 = arith.constant dense<0.000000e+00> : vector<8x512xf32>
    %131 = tpu.matmul %130, %10, %cst_48 {dimension_numbers = #tpu.dot_dimension_numbers<[1], [0], [0], [1], [0, 0, 1, 1], [], []>} : vector<8x256xf32>, vector<256x512xf32>, vector<8x512xf32> -> vector<8x512xf32>
    %132 = arith.addf %131, %13 : vector<8x512xf32>
    %133 = vector.extract_strided_slice %132 {offsets = [0, 0], sizes = [8, 128], strides = [1, 1]} : vector<8x512xf32> to vector<8x128xf32>
    %134 = arith.negf %133 : vector<8x128xf32>
    %135 = math.exp %134 : vector<8x128xf32>
    %cst_49 = arith.constant 1.000000e+00 : f32
    %136 = vector.broadcast %cst_49 : f32 to vector<8x128xf32>
    %137 = arith.addf %136, %135 : vector<8x128xf32>
    %138 = arith.divf %136, %137 : vector<8x128xf32>
    %139 = vector.extract_strided_slice %132 {offsets = [0, 128], sizes = [8, 128], strides = [1, 1]} : vector<8x512xf32> to vector<8x128xf32>
    %140 = arith.negf %139 : vector<8x128xf32>
    %141 = math.exp %140 : vector<8x128xf32>
    %cst_50 = arith.constant 1.000000e+00 : f32
    %142 = vector.broadcast %cst_50 : f32 to vector<8x128xf32>
    %143 = arith.addf %142, %141 : vector<8x128xf32>
    %144 = arith.divf %142, %143 : vector<8x128xf32>
    %145 = vector.extract_strided_slice %132 {offsets = [0, 256], sizes = [8, 128], strides = [1, 1]} : vector<8x512xf32> to vector<8x128xf32>
    %146 = math.tanh %145 : vector<8x128xf32>
    %147 = vector.extract_strided_slice %132 {offsets = [0, 384], sizes = [8, 128], strides = [1, 1]} : vector<8x512xf32> to vector<8x128xf32>
    %148 = arith.negf %147 : vector<8x128xf32>
    %149 = math.exp %148 : vector<8x128xf32>
    %cst_51 = arith.constant 1.000000e+00 : f32
    %150 = vector.broadcast %cst_51 : f32 to vector<8x128xf32>
    %151 = arith.addf %150, %149 : vector<8x128xf32>
    %152 = arith.divf %150, %151 : vector<8x128xf32>
    %153 = arith.mulf %144, %81 : vector<8x128xf32>
    %154 = arith.mulf %138, %146 : vector<8x128xf32>
    %155 = arith.addf %153, %154 : vector<8x128xf32>
    %156 = math.tanh %155 : vector<8x128xf32>
    %157 = arith.mulf %152, %156 : vector<8x128xf32>
    %158 = math.tanh %157 : vector<8x128xf32>
    %159 = arith.mulf %158, %14 : vector<8x128xf32>
    %cst_52 = arith.constant dense<0.000000e+00> : vector<8xf32>
    %160 = vector.multi_reduction <add>, %159, %cst_52 [1] : vector<8x128xf32> to vector<8xf32>
    %161 = vector.shape_cast %160 : vector<8xf32> to vector<8x1xf32>
    %162 = arith.maximumf %88, %161 : vector<8x1xf32>
    %163 = arith.subf %88, %162 : vector<8x1xf32>
    %164 = math.exp %163 : vector<8x1xf32>
    %165 = arith.subf %161, %162 : vector<8x1xf32>
    %166 = math.exp %165 : vector<8x1xf32>
    %167 = arith.mulf %164, %94 : vector<8x1xf32>
    %168 = arith.addf %167, %166 : vector<8x1xf32>
    %169 = vector.broadcast %164 : vector<8x1xf32> to vector<8x128xf32>
    %170 = arith.mulf %169, %99 : vector<8x128xf32>
    %171 = vector.broadcast %166 : vector<8x1xf32> to vector<8x128xf32>
    %172 = arith.mulf %171, %157 : vector<8x128xf32>
    %173 = arith.addf %170, %172 : vector<8x128xf32>
    %c2_i32 = arith.constant 2 : i32
    %174 = arith.index_cast %c2_i32 : i32 to index
    %c0_53 = arith.constant 0 : index
    %c0_54 = arith.constant 0 : index
    %175 = vector.load %arg12[%174, %c0_53, %c0_54] : memref<8x8x512xf32, #tpu.memory_space<vmem>>, vector<1x8x512xf32>
    %176 = vector.shape_cast %175 : vector<1x8x512xf32> to vector<8x512xf32>
    %cst_55 = arith.constant dense<0.000000e+00> : vector<8x512xf32>
    %177 = tpu.matmul %129, %9, %cst_55 {dimension_numbers = #tpu.dot_dimension_numbers<[1], [0], [0], [1], [0, 0, 1, 1], [], []>} : vector<8x128xf32>, vector<128x512xf32>, vector<8x512xf32> -> vector<8x512xf32>
    %178 = arith.addf %176, %177 : vector<8x512xf32>
    %179 = vector.extract_strided_slice %178 {offsets = [0, 0], sizes = [8, 128], strides = [1, 1]} : vector<8x512xf32> to vector<8x128xf32>
    %180 = arith.negf %179 : vector<8x128xf32>
    %181 = math.exp %180 : vector<8x128xf32>
    %cst_56 = arith.constant 1.000000e+00 : f32
    %182 = vector.broadcast %cst_56 : f32 to vector<8x128xf32>
    %183 = arith.addf %182, %181 : vector<8x128xf32>
    %184 = arith.divf %182, %183 : vector<8x128xf32>
    %185 = vector.extract_strided_slice %178 {offsets = [0, 128], sizes = [8, 128], strides = [1, 1]} : vector<8x512xf32> to vector<8x128xf32>
    %186 = arith.negf %185 : vector<8x128xf32>
    %187 = math.exp %186 : vector<8x128xf32>
    %cst_57 = arith.constant 1.000000e+00 : f32
    %188 = vector.broadcast %cst_57 : f32 to vector<8x128xf32>
    %189 = arith.addf %188, %187 : vector<8x128xf32>
    %190 = arith.divf %188, %189 : vector<8x128xf32>
    %191 = vector.extract_strided_slice %178 {offsets = [0, 256], sizes = [8, 128], strides = [1, 1]} : vector<8x512xf32> to vector<8x128xf32>
    %192 = math.tanh %191 : vector<8x128xf32>
    %193 = vector.extract_strided_slice %178 {offsets = [0, 384], sizes = [8, 128], strides = [1, 1]} : vector<8x512xf32> to vector<8x128xf32>
    %194 = arith.negf %193 : vector<8x128xf32>
    %195 = math.exp %194 : vector<8x128xf32>
    %cst_58 = arith.constant 1.000000e+00 : f32
    %196 = vector.broadcast %cst_58 : f32 to vector<8x128xf32>
    %197 = arith.addf %196, %195 : vector<8x128xf32>
    %198 = arith.divf %196, %197 : vector<8x128xf32>
    %199 = arith.mulf %190, %127 : vector<8x128xf32>
    %200 = arith.mulf %184, %192 : vector<8x128xf32>
    %201 = arith.addf %199, %200 : vector<8x128xf32>
    %202 = math.tanh %201 : vector<8x128xf32>
    %203 = arith.mulf %198, %202 : vector<8x128xf32>
    %204 = tpu.concatenate %203, %157 in 1 : vector<8x128xf32>, vector<8x128xf32> -> vector<8x256xf32>
    %cst_59 = arith.constant dense<0.000000e+00> : vector<8x512xf32>
    %205 = tpu.matmul %204, %10, %cst_59 {dimension_numbers = #tpu.dot_dimension_numbers<[1], [0], [0], [1], [0, 0, 1, 1], [], []>} : vector<8x256xf32>, vector<256x512xf32>, vector<8x512xf32> -> vector<8x512xf32>
    %206 = arith.addf %205, %13 : vector<8x512xf32>
    %207 = vector.extract_strided_slice %206 {offsets = [0, 0], sizes = [8, 128], strides = [1, 1]} : vector<8x512xf32> to vector<8x128xf32>
    %208 = arith.negf %207 : vector<8x128xf32>
    %209 = math.exp %208 : vector<8x128xf32>
    %cst_60 = arith.constant 1.000000e+00 : f32
    %210 = vector.broadcast %cst_60 : f32 to vector<8x128xf32>
    %211 = arith.addf %210, %209 : vector<8x128xf32>
    %212 = arith.divf %210, %211 : vector<8x128xf32>
    %213 = vector.extract_strided_slice %206 {offsets = [0, 128], sizes = [8, 128], strides = [1, 1]} : vector<8x512xf32> to vector<8x128xf32>
    %214 = arith.negf %213 : vector<8x128xf32>
    %215 = math.exp %214 : vector<8x128xf32>
    %cst_61 = arith.constant 1.000000e+00 : f32
    %216 = vector.broadcast %cst_61 : f32 to vector<8x128xf32>
    %217 = arith.addf %216, %215 : vector<8x128xf32>
    %218 = arith.divf %216, %217 : vector<8x128xf32>
    %219 = vector.extract_strided_slice %206 {offsets = [0, 256], sizes = [8, 128], strides = [1, 1]} : vector<8x512xf32> to vector<8x128xf32>
    %220 = math.tanh %219 : vector<8x128xf32>
    %221 = vector.extract_strided_slice %206 {offsets = [0, 384], sizes = [8, 128], strides = [1, 1]} : vector<8x512xf32> to vector<8x128xf32>
    %222 = arith.negf %221 : vector<8x128xf32>
    %223 = math.exp %222 : vector<8x128xf32>
    %cst_62 = arith.constant 1.000000e+00 : f32
    %224 = vector.broadcast %cst_62 : f32 to vector<8x128xf32>
    %225 = arith.addf %224, %223 : vector<8x128xf32>
    %226 = arith.divf %224, %225 : vector<8x128xf32>
    %227 = arith.mulf %218, %155 : vector<8x128xf32>
    %228 = arith.mulf %212, %220 : vector<8x128xf32>
    %229 = arith.addf %227, %228 : vector<8x128xf32>
    %230 = math.tanh %229 : vector<8x128xf32>
    %231 = arith.mulf %226, %230 : vector<8x128xf32>
    %232 = math.tanh %231 : vector<8x128xf32>
    %233 = arith.mulf %232, %14 : vector<8x128xf32>
    %cst_63 = arith.constant dense<0.000000e+00> : vector<8xf32>
    %234 = vector.multi_reduction <add>, %233, %cst_63 [1] : vector<8x128xf32> to vector<8xf32>
    %235 = vector.shape_cast %234 : vector<8xf32> to vector<8x1xf32>
    %236 = arith.maximumf %162, %235 : vector<8x1xf32>
    %237 = arith.subf %162, %236 : vector<8x1xf32>
    %238 = math.exp %237 : vector<8x1xf32>
    %239 = arith.subf %235, %236 : vector<8x1xf32>
    %240 = math.exp %239 : vector<8x1xf32>
    %241 = arith.mulf %238, %168 : vector<8x1xf32>
    %242 = arith.addf %241, %240 : vector<8x1xf32>
    %243 = vector.broadcast %238 : vector<8x1xf32> to vector<8x128xf32>
    %244 = arith.mulf %243, %173 : vector<8x128xf32>
    %245 = vector.broadcast %240 : vector<8x1xf32> to vector<8x128xf32>
    %246 = arith.mulf %245, %231 : vector<8x128xf32>
    %247 = arith.addf %244, %246 : vector<8x128xf32>
    %c3_i32 = arith.constant 3 : i32
    %248 = arith.index_cast %c3_i32 : i32 to index
    %c0_64 = arith.constant 0 : index
    %c0_65 = arith.constant 0 : index
    %249 = vector.load %arg12[%248, %c0_64, %c0_65] : memref<8x8x512xf32, #tpu.memory_space<vmem>>, vector<1x8x512xf32>
    %250 = vector.shape_cast %249 : vector<1x8x512xf32> to vector<8x512xf32>
    %cst_66 = arith.constant dense<0.000000e+00> : vector<8x512xf32>
    %251 = tpu.matmul %203, %9, %cst_66 {dimension_numbers = #tpu.dot_dimension_numbers<[1], [0], [0], [1], [0, 0, 1, 1], [], []>} : vector<8x128xf32>, vector<128x512xf32>, vector<8x512xf32> -> vector<8x512xf32>
    %252 = arith.addf %250, %251 : vector<8x512xf32>
    %253 = vector.extract_strided_slice %252 {offsets = [0, 0], sizes = [8, 128], strides = [1, 1]} : vector<8x512xf32> to vector<8x128xf32>
    %254 = arith.negf %253 : vector<8x128xf32>
    %255 = math.exp %254 : vector<8x128xf32>
    %cst_67 = arith.constant 1.000000e+00 : f32
    %256 = vector.broadcast %cst_67 : f32 to vector<8x128xf32>
    %257 = arith.addf %256, %255 : vector<8x128xf32>
    %258 = arith.divf %256, %257 : vector<8x128xf32>
    %259 = vector.extract_strided_slice %252 {offsets = [0, 128], sizes = [8, 128], strides = [1, 1]} : vector<8x512xf32> to vector<8x128xf32>
    %260 = arith.negf %259 : vector<8x128xf32>
    %261 = math.exp %260 : vector<8x128xf32>
    %cst_68 = arith.constant 1.000000e+00 : f32
    %262 = vector.broadcast %cst_68 : f32 to vector<8x128xf32>
    %263 = arith.addf %262, %261 : vector<8x128xf32>
    %264 = arith.divf %262, %263 : vector<8x128xf32>
    %265 = vector.extract_strided_slice %252 {offsets = [0, 256], sizes = [8, 128], strides = [1, 1]} : vector<8x512xf32> to vector<8x128xf32>
    %266 = math.tanh %265 : vector<8x128xf32>
    %267 = vector.extract_strided_slice %252 {offsets = [0, 384], sizes = [8, 128], strides = [1, 1]} : vector<8x512xf32> to vector<8x128xf32>
    %268 = arith.negf %267 : vector<8x128xf32>
    %269 = math.exp %268 : vector<8x128xf32>
    %cst_69 = arith.constant 1.000000e+00 : f32
    %270 = vector.broadcast %cst_69 : f32 to vector<8x128xf32>
    %271 = arith.addf %270, %269 : vector<8x128xf32>
    %272 = arith.divf %270, %271 : vector<8x128xf32>
    %273 = arith.mulf %264, %201 : vector<8x128xf32>
    %274 = arith.mulf %258, %266 : vector<8x128xf32>
    %275 = arith.addf %273, %274 : vector<8x128xf32>
    %276 = math.tanh %275 : vector<8x128xf32>
    %277 = arith.mulf %272, %276 : vector<8x128xf32>
    %278 = tpu.concatenate %277, %231 in 1 : vector<8x128xf32>, vector<8x128xf32> -> vector<8x256xf32>
    %cst_70 = arith.constant dense<0.000000e+00> : vector<8x512xf32>
    %279 = tpu.matmul %278, %10, %cst_70 {dimension_numbers = #tpu.dot_dimension_numbers<[1], [0], [0], [1], [0, 0, 1, 1], [], []>} : vector<8x256xf32>, vector<256x512xf32>, vector<8x512xf32> -> vector<8x512xf32>
    %280 = arith.addf %279, %13 : vector<8x512xf32>
    %281 = vector.extract_strided_slice %280 {offsets = [0, 0], sizes = [8, 128], strides = [1, 1]} : vector<8x512xf32> to vector<8x128xf32>
    %282 = arith.negf %281 : vector<8x128xf32>
    %283 = math.exp %282 : vector<8x128xf32>
    %cst_71 = arith.constant 1.000000e+00 : f32
    %284 = vector.broadcast %cst_71 : f32 to vector<8x128xf32>
    %285 = arith.addf %284, %283 : vector<8x128xf32>
    %286 = arith.divf %284, %285 : vector<8x128xf32>
    %287 = vector.extract_strided_slice %280 {offsets = [0, 128], sizes = [8, 128], strides = [1, 1]} : vector<8x512xf32> to vector<8x128xf32>
    %288 = arith.negf %287 : vector<8x128xf32>
    %289 = math.exp %288 : vector<8x128xf32>
    %cst_72 = arith.constant 1.000000e+00 : f32
    %290 = vector.broadcast %cst_72 : f32 to vector<8x128xf32>
    %291 = arith.addf %290, %289 : vector<8x128xf32>
    %292 = arith.divf %290, %291 : vector<8x128xf32>
    %293 = vector.extract_strided_slice %280 {offsets = [0, 256], sizes = [8, 128], strides = [1, 1]} : vector<8x512xf32> to vector<8x128xf32>
    %294 = math.tanh %293 : vector<8x128xf32>
    %295 = vector.extract_strided_slice %280 {offsets = [0, 384], sizes = [8, 128], strides = [1, 1]} : vector<8x512xf32> to vector<8x128xf32>
    %296 = arith.negf %295 : vector<8x128xf32>
    %297 = math.exp %296 : vector<8x128xf32>
    %cst_73 = arith.constant 1.000000e+00 : f32
    %298 = vector.broadcast %cst_73 : f32 to vector<8x128xf32>
    %299 = arith.addf %298, %297 : vector<8x128xf32>
    %300 = arith.divf %298, %299 : vector<8x128xf32>
    %301 = arith.mulf %292, %229 : vector<8x128xf32>
    %302 = arith.mulf %286, %294 : vector<8x128xf32>
    %303 = arith.addf %301, %302 : vector<8x128xf32>
    %304 = math.tanh %303 : vector<8x128xf32>
    %305 = arith.mulf %300, %304 : vector<8x128xf32>
    %306 = math.tanh %305 : vector<8x128xf32>
    %307 = arith.mulf %306, %14 : vector<8x128xf32>
    %cst_74 = arith.constant dense<0.000000e+00> : vector<8xf32>
    %308 = vector.multi_reduction <add>, %307, %cst_74 [1] : vector<8x128xf32> to vector<8xf32>
    %309 = vector.shape_cast %308 : vector<8xf32> to vector<8x1xf32>
    %310 = arith.maximumf %236, %309 : vector<8x1xf32>
    %311 = arith.subf %236, %310 : vector<8x1xf32>
    %312 = math.exp %311 : vector<8x1xf32>
    %313 = arith.subf %309, %310 : vector<8x1xf32>
    %314 = math.exp %313 : vector<8x1xf32>
    %315 = arith.mulf %312, %242 : vector<8x1xf32>
    %316 = arith.addf %315, %314 : vector<8x1xf32>
    %317 = vector.broadcast %312 : vector<8x1xf32> to vector<8x128xf32>
    %318 = arith.mulf %317, %247 : vector<8x128xf32>
    %319 = vector.broadcast %314 : vector<8x1xf32> to vector<8x128xf32>
    %320 = arith.mulf %319, %305 : vector<8x128xf32>
    %321 = arith.addf %318, %320 : vector<8x128xf32>
    %c4_i32 = arith.constant 4 : i32
    %322 = arith.index_cast %c4_i32 : i32 to index
    %c0_75 = arith.constant 0 : index
    %c0_76 = arith.constant 0 : index
    %323 = vector.load %arg12[%322, %c0_75, %c0_76] : memref<8x8x512xf32, #tpu.memory_space<vmem>>, vector<1x8x512xf32>
    %324 = vector.shape_cast %323 : vector<1x8x512xf32> to vector<8x512xf32>
    %cst_77 = arith.constant dense<0.000000e+00> : vector<8x512xf32>
    %325 = tpu.matmul %277, %9, %cst_77 {dimension_numbers = #tpu.dot_dimension_numbers<[1], [0], [0], [1], [0, 0, 1, 1], [], []>} : vector<8x128xf32>, vector<128x512xf32>, vector<8x512xf32> -> vector<8x512xf32>
    %326 = arith.addf %324, %325 : vector<8x512xf32>
    %327 = vector.extract_strided_slice %326 {offsets = [0, 0], sizes = [8, 128], strides = [1, 1]} : vector<8x512xf32> to vector<8x128xf32>
    %328 = arith.negf %327 : vector<8x128xf32>
    %329 = math.exp %328 : vector<8x128xf32>
    %cst_78 = arith.constant 1.000000e+00 : f32
    %330 = vector.broadcast %cst_78 : f32 to vector<8x128xf32>
    %331 = arith.addf %330, %329 : vector<8x128xf32>
    %332 = arith.divf %330, %331 : vector<8x128xf32>
    %333 = vector.extract_strided_slice %326 {offsets = [0, 128], sizes = [8, 128], strides = [1, 1]} : vector<8x512xf32> to vector<8x128xf32>
    %334 = arith.negf %333 : vector<8x128xf32>
    %335 = math.exp %334 : vector<8x128xf32>
    %cst_79 = arith.constant 1.000000e+00 : f32
    %336 = vector.broadcast %cst_79 : f32 to vector<8x128xf32>
    %337 = arith.addf %336, %335 : vector<8x128xf32>
    %338 = arith.divf %336, %337 : vector<8x128xf32>
    %339 = vector.extract_strided_slice %326 {offsets = [0, 256], sizes = [8, 128], strides = [1, 1]} : vector<8x512xf32> to vector<8x128xf32>
    %340 = math.tanh %339 : vector<8x128xf32>
    %341 = vector.extract_strided_slice %326 {offsets = [0, 384], sizes = [8, 128], strides = [1, 1]} : vector<8x512xf32> to vector<8x128xf32>
    %342 = arith.negf %341 : vector<8x128xf32>
    %343 = math.exp %342 : vector<8x128xf32>
    %cst_80 = arith.constant 1.000000e+00 : f32
    %344 = vector.broadcast %cst_80 : f32 to vector<8x128xf32>
    %345 = arith.addf %344, %343 : vector<8x128xf32>
    %346 = arith.divf %344, %345 : vector<8x128xf32>
    %347 = arith.mulf %338, %275 : vector<8x128xf32>
    %348 = arith.mulf %332, %340 : vector<8x128xf32>
    %349 = arith.addf %347, %348 : vector<8x128xf32>
    %350 = math.tanh %349 : vector<8x128xf32>
    %351 = arith.mulf %346, %350 : vector<8x128xf32>
    %352 = tpu.concatenate %351, %305 in 1 : vector<8x128xf32>, vector<8x128xf32> -> vector<8x256xf32>
    %cst_81 = arith.constant dense<0.000000e+00> : vector<8x512xf32>
    %353 = tpu.matmul %352, %10, %cst_81 {dimension_numbers = #tpu.dot_dimension_numbers<[1], [0], [0], [1], [0, 0, 1, 1], [], []>} : vector<8x256xf32>, vector<256x512xf32>, vector<8x512xf32> -> vector<8x512xf32>
    %354 = arith.addf %353, %13 : vector<8x512xf32>
    %355 = vector.extract_strided_slice %354 {offsets = [0, 0], sizes = [8, 128], strides = [1, 1]} : vector<8x512xf32> to vector<8x128xf32>
    %356 = arith.negf %355 : vector<8x128xf32>
    %357 = math.exp %356 : vector<8x128xf32>
    %cst_82 = arith.constant 1.000000e+00 : f32
    %358 = vector.broadcast %cst_82 : f32 to vector<8x128xf32>
    %359 = arith.addf %358, %357 : vector<8x128xf32>
    %360 = arith.divf %358, %359 : vector<8x128xf32>
    %361 = vector.extract_strided_slice %354 {offsets = [0, 128], sizes = [8, 128], strides = [1, 1]} : vector<8x512xf32> to vector<8x128xf32>
    %362 = arith.negf %361 : vector<8x128xf32>
    %363 = math.exp %362 : vector<8x128xf32>
    %cst_83 = arith.constant 1.000000e+00 : f32
    %364 = vector.broadcast %cst_83 : f32 to vector<8x128xf32>
    %365 = arith.addf %364, %363 : vector<8x128xf32>
    %366 = arith.divf %364, %365 : vector<8x128xf32>
    %367 = vector.extract_strided_slice %354 {offsets = [0, 256], sizes = [8, 128], strides = [1, 1]} : vector<8x512xf32> to vector<8x128xf32>
    %368 = math.tanh %367 : vector<8x128xf32>
    %369 = vector.extract_strided_slice %354 {offsets = [0, 384], sizes = [8, 128], strides = [1, 1]} : vector<8x512xf32> to vector<8x128xf32>
    %370 = arith.negf %369 : vector<8x128xf32>
    %371 = math.exp %370 : vector<8x128xf32>
    %cst_84 = arith.constant 1.000000e+00 : f32
    %372 = vector.broadcast %cst_84 : f32 to vector<8x128xf32>
    %373 = arith.addf %372, %371 : vector<8x128xf32>
    %374 = arith.divf %372, %373 : vector<8x128xf32>
    %375 = arith.mulf %366, %303 : vector<8x128xf32>
    %376 = arith.mulf %360, %368 : vector<8x128xf32>
    %377 = arith.addf %375, %376 : vector<8x128xf32>
    %378 = math.tanh %377 : vector<8x128xf32>
    %379 = arith.mulf %374, %378 : vector<8x128xf32>
    %380 = math.tanh %379 : vector<8x128xf32>
    %381 = arith.mulf %380, %14 : vector<8x128xf32>
    %cst_85 = arith.constant dense<0.000000e+00> : vector<8xf32>
    %382 = vector.multi_reduction <add>, %381, %cst_85 [1] : vector<8x128xf32> to vector<8xf32>
    %383 = vector.shape_cast %382 : vector<8xf32> to vector<8x1xf32>
    %384 = arith.maximumf %310, %383 : vector<8x1xf32>
    %385 = arith.subf %310, %384 : vector<8x1xf32>
    %386 = math.exp %385 : vector<8x1xf32>
    %387 = arith.subf %383, %384 : vector<8x1xf32>
    %388 = math.exp %387 : vector<8x1xf32>
    %389 = arith.mulf %386, %316 : vector<8x1xf32>
    %390 = arith.addf %389, %388 : vector<8x1xf32>
    %391 = vector.broadcast %386 : vector<8x1xf32> to vector<8x128xf32>
    %392 = arith.mulf %391, %321 : vector<8x128xf32>
    %393 = vector.broadcast %388 : vector<8x1xf32> to vector<8x128xf32>
    %394 = arith.mulf %393, %379 : vector<8x128xf32>
    %395 = arith.addf %392, %394 : vector<8x128xf32>
    %c5_i32 = arith.constant 5 : i32
    %396 = arith.index_cast %c5_i32 : i32 to index
    %c0_86 = arith.constant 0 : index
    %c0_87 = arith.constant 0 : index
    %397 = vector.load %arg12[%396, %c0_86, %c0_87] : memref<8x8x512xf32, #tpu.memory_space<vmem>>, vector<1x8x512xf32>
    %398 = vector.shape_cast %397 : vector<1x8x512xf32> to vector<8x512xf32>
    %cst_88 = arith.constant dense<0.000000e+00> : vector<8x512xf32>
    %399 = tpu.matmul %351, %9, %cst_88 {dimension_numbers = #tpu.dot_dimension_numbers<[1], [0], [0], [1], [0, 0, 1, 1], [], []>} : vector<8x128xf32>, vector<128x512xf32>, vector<8x512xf32> -> vector<8x512xf32>
    %400 = arith.addf %398, %399 : vector<8x512xf32>
    %401 = vector.extract_strided_slice %400 {offsets = [0, 0], sizes = [8, 128], strides = [1, 1]} : vector<8x512xf32> to vector<8x128xf32>
    %402 = arith.negf %401 : vector<8x128xf32>
    %403 = math.exp %402 : vector<8x128xf32>
    %cst_89 = arith.constant 1.000000e+00 : f32
    %404 = vector.broadcast %cst_89 : f32 to vector<8x128xf32>
    %405 = arith.addf %404, %403 : vector<8x128xf32>
    %406 = arith.divf %404, %405 : vector<8x128xf32>
    %407 = vector.extract_strided_slice %400 {offsets = [0, 128], sizes = [8, 128], strides = [1, 1]} : vector<8x512xf32> to vector<8x128xf32>
    %408 = arith.negf %407 : vector<8x128xf32>
    %409 = math.exp %408 : vector<8x128xf32>
    %cst_90 = arith.constant 1.000000e+00 : f32
    %410 = vector.broadcast %cst_90 : f32 to vector<8x128xf32>
    %411 = arith.addf %410, %409 : vector<8x128xf32>
    %412 = arith.divf %410, %411 : vector<8x128xf32>
    %413 = vector.extract_strided_slice %400 {offsets = [0, 256], sizes = [8, 128], strides = [1, 1]} : vector<8x512xf32> to vector<8x128xf32>
    %414 = math.tanh %413 : vector<8x128xf32>
    %415 = vector.extract_strided_slice %400 {offsets = [0, 384], sizes = [8, 128], strides = [1, 1]} : vector<8x512xf32> to vector<8x128xf32>
    %416 = arith.negf %415 : vector<8x128xf32>
    %417 = math.exp %416 : vector<8x128xf32>
    %cst_91 = arith.constant 1.000000e+00 : f32
    %418 = vector.broadcast %cst_91 : f32 to vector<8x128xf32>
    %419 = arith.addf %418, %417 : vector<8x128xf32>
    %420 = arith.divf %418, %419 : vector<8x128xf32>
    %421 = arith.mulf %412, %349 : vector<8x128xf32>
    %422 = arith.mulf %406, %414 : vector<8x128xf32>
    %423 = arith.addf %421, %422 : vector<8x128xf32>
    %424 = math.tanh %423 : vector<8x128xf32>
    %425 = arith.mulf %420, %424 : vector<8x128xf32>
    %426 = tpu.concatenate %425, %379 in 1 : vector<8x128xf32>, vector<8x128xf32> -> vector<8x256xf32>
    %cst_92 = arith.constant dense<0.000000e+00> : vector<8x512xf32>
    %427 = tpu.matmul %426, %10, %cst_92 {dimension_numbers = #tpu.dot_dimension_numbers<[1], [0], [0], [1], [0, 0, 1, 1], [], []>} : vector<8x256xf32>, vector<256x512xf32>, vector<8x512xf32> -> vector<8x512xf32>
    %428 = arith.addf %427, %13 : vector<8x512xf32>
    %429 = vector.extract_strided_slice %428 {offsets = [0, 0], sizes = [8, 128], strides = [1, 1]} : vector<8x512xf32> to vector<8x128xf32>
    %430 = arith.negf %429 : vector<8x128xf32>
    %431 = math.exp %430 : vector<8x128xf32>
    %cst_93 = arith.constant 1.000000e+00 : f32
    %432 = vector.broadcast %cst_93 : f32 to vector<8x128xf32>
    %433 = arith.addf %432, %431 : vector<8x128xf32>
    %434 = arith.divf %432, %433 : vector<8x128xf32>
    %435 = vector.extract_strided_slice %428 {offsets = [0, 128], sizes = [8, 128], strides = [1, 1]} : vector<8x512xf32> to vector<8x128xf32>
    %436 = arith.negf %435 : vector<8x128xf32>
    %437 = math.exp %436 : vector<8x128xf32>
    %cst_94 = arith.constant 1.000000e+00 : f32
    %438 = vector.broadcast %cst_94 : f32 to vector<8x128xf32>
    %439 = arith.addf %438, %437 : vector<8x128xf32>
    %440 = arith.divf %438, %439 : vector<8x128xf32>
    %441 = vector.extract_strided_slice %428 {offsets = [0, 256], sizes = [8, 128], strides = [1, 1]} : vector<8x512xf32> to vector<8x128xf32>
    %442 = math.tanh %441 : vector<8x128xf32>
    %443 = vector.extract_strided_slice %428 {offsets = [0, 384], sizes = [8, 128], strides = [1, 1]} : vector<8x512xf32> to vector<8x128xf32>
    %444 = arith.negf %443 : vector<8x128xf32>
    %445 = math.exp %444 : vector<8x128xf32>
    %cst_95 = arith.constant 1.000000e+00 : f32
    %446 = vector.broadcast %cst_95 : f32 to vector<8x128xf32>
    %447 = arith.addf %446, %445 : vector<8x128xf32>
    %448 = arith.divf %446, %447 : vector<8x128xf32>
    %449 = arith.mulf %440, %377 : vector<8x128xf32>
    %450 = arith.mulf %434, %442 : vector<8x128xf32>
    %451 = arith.addf %449, %450 : vector<8x128xf32>
    %452 = math.tanh %451 : vector<8x128xf32>
    %453 = arith.mulf %448, %452 : vector<8x128xf32>
    %454 = math.tanh %453 : vector<8x128xf32>
    %455 = arith.mulf %454, %14 : vector<8x128xf32>
    %cst_96 = arith.constant dense<0.000000e+00> : vector<8xf32>
    %456 = vector.multi_reduction <add>, %455, %cst_96 [1] : vector<8x128xf32> to vector<8xf32>
    %457 = vector.shape_cast %456 : vector<8xf32> to vector<8x1xf32>
    %458 = arith.maximumf %384, %457 : vector<8x1xf32>
    %459 = arith.subf %384, %458 : vector<8x1xf32>
    %460 = math.exp %459 : vector<8x1xf32>
    %461 = arith.subf %457, %458 : vector<8x1xf32>
    %462 = math.exp %461 : vector<8x1xf32>
    %463 = arith.mulf %460, %390 : vector<8x1xf32>
    %464 = arith.addf %463, %462 : vector<8x1xf32>
    %465 = vector.broadcast %460 : vector<8x1xf32> to vector<8x128xf32>
    %466 = arith.mulf %465, %395 : vector<8x128xf32>
    %467 = vector.broadcast %462 : vector<8x1xf32> to vector<8x128xf32>
    %468 = arith.mulf %467, %453 : vector<8x128xf32>
    %469 = arith.addf %466, %468 : vector<8x128xf32>
    %c6_i32 = arith.constant 6 : i32
    %470 = arith.index_cast %c6_i32 : i32 to index
    %c0_97 = arith.constant 0 : index
    %c0_98 = arith.constant 0 : index
    %471 = vector.load %arg12[%470, %c0_97, %c0_98] : memref<8x8x512xf32, #tpu.memory_space<vmem>>, vector<1x8x512xf32>
    %472 = vector.shape_cast %471 : vector<1x8x512xf32> to vector<8x512xf32>
    %cst_99 = arith.constant dense<0.000000e+00> : vector<8x512xf32>
    %473 = tpu.matmul %425, %9, %cst_99 {dimension_numbers = #tpu.dot_dimension_numbers<[1], [0], [0], [1], [0, 0, 1, 1], [], []>} : vector<8x128xf32>, vector<128x512xf32>, vector<8x512xf32> -> vector<8x512xf32>
    %474 = arith.addf %472, %473 : vector<8x512xf32>
    %475 = vector.extract_strided_slice %474 {offsets = [0, 0], sizes = [8, 128], strides = [1, 1]} : vector<8x512xf32> to vector<8x128xf32>
    %476 = arith.negf %475 : vector<8x128xf32>
    %477 = math.exp %476 : vector<8x128xf32>
    %cst_100 = arith.constant 1.000000e+00 : f32
    %478 = vector.broadcast %cst_100 : f32 to vector<8x128xf32>
    %479 = arith.addf %478, %477 : vector<8x128xf32>
    %480 = arith.divf %478, %479 : vector<8x128xf32>
    %481 = vector.extract_strided_slice %474 {offsets = [0, 128], sizes = [8, 128], strides = [1, 1]} : vector<8x512xf32> to vector<8x128xf32>
    %482 = arith.negf %481 : vector<8x128xf32>
    %483 = math.exp %482 : vector<8x128xf32>
    %cst_101 = arith.constant 1.000000e+00 : f32
    %484 = vector.broadcast %cst_101 : f32 to vector<8x128xf32>
    %485 = arith.addf %484, %483 : vector<8x128xf32>
    %486 = arith.divf %484, %485 : vector<8x128xf32>
    %487 = vector.extract_strided_slice %474 {offsets = [0, 256], sizes = [8, 128], strides = [1, 1]} : vector<8x512xf32> to vector<8x128xf32>
    %488 = math.tanh %487 : vector<8x128xf32>
    %489 = vector.extract_strided_slice %474 {offsets = [0, 384], sizes = [8, 128], strides = [1, 1]} : vector<8x512xf32> to vector<8x128xf32>
    %490 = arith.negf %489 : vector<8x128xf32>
    %491 = math.exp %490 : vector<8x128xf32>
    %cst_102 = arith.constant 1.000000e+00 : f32
    %492 = vector.broadcast %cst_102 : f32 to vector<8x128xf32>
    %493 = arith.addf %492, %491 : vector<8x128xf32>
    %494 = arith.divf %492, %493 : vector<8x128xf32>
    %495 = arith.mulf %486, %423 : vector<8x128xf32>
    %496 = arith.mulf %480, %488 : vector<8x128xf32>
    %497 = arith.addf %495, %496 : vector<8x128xf32>
    %498 = math.tanh %497 : vector<8x128xf32>
    %499 = arith.mulf %494, %498 : vector<8x128xf32>
    %500 = tpu.concatenate %499, %453 in 1 : vector<8x128xf32>, vector<8x128xf32> -> vector<8x256xf32>
    %cst_103 = arith.constant dense<0.000000e+00> : vector<8x512xf32>
    %501 = tpu.matmul %500, %10, %cst_103 {dimension_numbers = #tpu.dot_dimension_numbers<[1], [0], [0], [1], [0, 0, 1, 1], [], []>} : vector<8x256xf32>, vector<256x512xf32>, vector<8x512xf32> -> vector<8x512xf32>
    %502 = arith.addf %501, %13 : vector<8x512xf32>
    %503 = vector.extract_strided_slice %502 {offsets = [0, 0], sizes = [8, 128], strides = [1, 1]} : vector<8x512xf32> to vector<8x128xf32>
    %504 = arith.negf %503 : vector<8x128xf32>
    %505 = math.exp %504 : vector<8x128xf32>
    %cst_104 = arith.constant 1.000000e+00 : f32
    %506 = vector.broadcast %cst_104 : f32 to vector<8x128xf32>
    %507 = arith.addf %506, %505 : vector<8x128xf32>
    %508 = arith.divf %506, %507 : vector<8x128xf32>
    %509 = vector.extract_strided_slice %502 {offsets = [0, 128], sizes = [8, 128], strides = [1, 1]} : vector<8x512xf32> to vector<8x128xf32>
    %510 = arith.negf %509 : vector<8x128xf32>
    %511 = math.exp %510 : vector<8x128xf32>
    %cst_105 = arith.constant 1.000000e+00 : f32
    %512 = vector.broadcast %cst_105 : f32 to vector<8x128xf32>
    %513 = arith.addf %512, %511 : vector<8x128xf32>
    %514 = arith.divf %512, %513 : vector<8x128xf32>
    %515 = vector.extract_strided_slice %502 {offsets = [0, 256], sizes = [8, 128], strides = [1, 1]} : vector<8x512xf32> to vector<8x128xf32>
    %516 = math.tanh %515 : vector<8x128xf32>
    %517 = vector.extract_strided_slice %502 {offsets = [0, 384], sizes = [8, 128], strides = [1, 1]} : vector<8x512xf32> to vector<8x128xf32>
    %518 = arith.negf %517 : vector<8x128xf32>
    %519 = math.exp %518 : vector<8x128xf32>
    %cst_106 = arith.constant 1.000000e+00 : f32
    %520 = vector.broadcast %cst_106 : f32 to vector<8x128xf32>
    %521 = arith.addf %520, %519 : vector<8x128xf32>
    %522 = arith.divf %520, %521 : vector<8x128xf32>
    %523 = arith.mulf %514, %451 : vector<8x128xf32>
    %524 = arith.mulf %508, %516 : vector<8x128xf32>
    %525 = arith.addf %523, %524 : vector<8x128xf32>
    %526 = math.tanh %525 : vector<8x128xf32>
    %527 = arith.mulf %522, %526 : vector<8x128xf32>
    %528 = math.tanh %527 : vector<8x128xf32>
    %529 = arith.mulf %528, %14 : vector<8x128xf32>
    %cst_107 = arith.constant dense<0.000000e+00> : vector<8xf32>
    %530 = vector.multi_reduction <add>, %529, %cst_107 [1] : vector<8x128xf32> to vector<8xf32>
    %531 = vector.shape_cast %530 : vector<8xf32> to vector<8x1xf32>
    %532 = arith.maximumf %458, %531 : vector<8x1xf32>
    %533 = arith.subf %458, %532 : vector<8x1xf32>
    %534 = math.exp %533 : vector<8x1xf32>
    %535 = arith.subf %531, %532 : vector<8x1xf32>
    %536 = math.exp %535 : vector<8x1xf32>
    %537 = arith.mulf %534, %464 : vector<8x1xf32>
    %538 = arith.addf %537, %536 : vector<8x1xf32>
    %539 = vector.broadcast %534 : vector<8x1xf32> to vector<8x128xf32>
    %540 = arith.mulf %539, %469 : vector<8x128xf32>
    %541 = vector.broadcast %536 : vector<8x1xf32> to vector<8x128xf32>
    %542 = arith.mulf %541, %527 : vector<8x128xf32>
    %543 = arith.addf %540, %542 : vector<8x128xf32>
    %c7_i32 = arith.constant 7 : i32
    %544 = arith.index_cast %c7_i32 : i32 to index
    %c0_108 = arith.constant 0 : index
    %c0_109 = arith.constant 0 : index
    %545 = vector.load %arg12[%544, %c0_108, %c0_109] : memref<8x8x512xf32, #tpu.memory_space<vmem>>, vector<1x8x512xf32>
    %546 = vector.shape_cast %545 : vector<1x8x512xf32> to vector<8x512xf32>
    %cst_110 = arith.constant dense<0.000000e+00> : vector<8x512xf32>
    %547 = tpu.matmul %499, %9, %cst_110 {dimension_numbers = #tpu.dot_dimension_numbers<[1], [0], [0], [1], [0, 0, 1, 1], [], []>} : vector<8x128xf32>, vector<128x512xf32>, vector<8x512xf32> -> vector<8x512xf32>
    %548 = arith.addf %546, %547 : vector<8x512xf32>
    %549 = vector.extract_strided_slice %548 {offsets = [0, 0], sizes = [8, 128], strides = [1, 1]} : vector<8x512xf32> to vector<8x128xf32>
    %550 = arith.negf %549 : vector<8x128xf32>
    %551 = math.exp %550 : vector<8x128xf32>
    %cst_111 = arith.constant 1.000000e+00 : f32
    %552 = vector.broadcast %cst_111 : f32 to vector<8x128xf32>
    %553 = arith.addf %552, %551 : vector<8x128xf32>
    %554 = arith.divf %552, %553 : vector<8x128xf32>
    %555 = vector.extract_strided_slice %548 {offsets = [0, 128], sizes = [8, 128], strides = [1, 1]} : vector<8x512xf32> to vector<8x128xf32>
    %556 = arith.negf %555 : vector<8x128xf32>
    %557 = math.exp %556 : vector<8x128xf32>
    %cst_112 = arith.constant 1.000000e+00 : f32
    %558 = vector.broadcast %cst_112 : f32 to vector<8x128xf32>
    %559 = arith.addf %558, %557 : vector<8x128xf32>
    %560 = arith.divf %558, %559 : vector<8x128xf32>
    %561 = vector.extract_strided_slice %548 {offsets = [0, 256], sizes = [8, 128], strides = [1, 1]} : vector<8x512xf32> to vector<8x128xf32>
    %562 = math.tanh %561 : vector<8x128xf32>
    %563 = vector.extract_strided_slice %548 {offsets = [0, 384], sizes = [8, 128], strides = [1, 1]} : vector<8x512xf32> to vector<8x128xf32>
    %564 = arith.negf %563 : vector<8x128xf32>
    %565 = math.exp %564 : vector<8x128xf32>
    %cst_113 = arith.constant 1.000000e+00 : f32
    %566 = vector.broadcast %cst_113 : f32 to vector<8x128xf32>
    %567 = arith.addf %566, %565 : vector<8x128xf32>
    %568 = arith.divf %566, %567 : vector<8x128xf32>
    %569 = arith.mulf %560, %497 : vector<8x128xf32>
    %570 = arith.mulf %554, %562 : vector<8x128xf32>
    %571 = arith.addf %569, %570 : vector<8x128xf32>
    %572 = math.tanh %571 : vector<8x128xf32>
    %573 = arith.mulf %568, %572 : vector<8x128xf32>
    %574 = tpu.concatenate %573, %527 in 1 : vector<8x128xf32>, vector<8x128xf32> -> vector<8x256xf32>
    %cst_114 = arith.constant dense<0.000000e+00> : vector<8x512xf32>
    %575 = tpu.matmul %574, %10, %cst_114 {dimension_numbers = #tpu.dot_dimension_numbers<[1], [0], [0], [1], [0, 0, 1, 1], [], []>} : vector<8x256xf32>, vector<256x512xf32>, vector<8x512xf32> -> vector<8x512xf32>
    %576 = arith.addf %575, %13 : vector<8x512xf32>
    %577 = vector.extract_strided_slice %576 {offsets = [0, 0], sizes = [8, 128], strides = [1, 1]} : vector<8x512xf32> to vector<8x128xf32>
    %578 = arith.negf %577 : vector<8x128xf32>
    %579 = math.exp %578 : vector<8x128xf32>
    %cst_115 = arith.constant 1.000000e+00 : f32
    %580 = vector.broadcast %cst_115 : f32 to vector<8x128xf32>
    %581 = arith.addf %580, %579 : vector<8x128xf32>
    %582 = arith.divf %580, %581 : vector<8x128xf32>
    %583 = vector.extract_strided_slice %576 {offsets = [0, 128], sizes = [8, 128], strides = [1, 1]} : vector<8x512xf32> to vector<8x128xf32>
    %584 = arith.negf %583 : vector<8x128xf32>
    %585 = math.exp %584 : vector<8x128xf32>
    %cst_116 = arith.constant 1.000000e+00 : f32
    %586 = vector.broadcast %cst_116 : f32 to vector<8x128xf32>
    %587 = arith.addf %586, %585 : vector<8x128xf32>
    %588 = arith.divf %586, %587 : vector<8x128xf32>
    %589 = vector.extract_strided_slice %576 {offsets = [0, 256], sizes = [8, 128], strides = [1, 1]} : vector<8x512xf32> to vector<8x128xf32>
    %590 = math.tanh %589 : vector<8x128xf32>
    %591 = vector.extract_strided_slice %576 {offsets = [0, 384], sizes = [8, 128], strides = [1, 1]} : vector<8x512xf32> to vector<8x128xf32>
    %592 = arith.negf %591 : vector<8x128xf32>
    %593 = math.exp %592 : vector<8x128xf32>
    %cst_117 = arith.constant 1.000000e+00 : f32
    %594 = vector.broadcast %cst_117 : f32 to vector<8x128xf32>
    %595 = arith.addf %594, %593 : vector<8x128xf32>
    %596 = arith.divf %594, %595 : vector<8x128xf32>
    %597 = arith.mulf %588, %525 : vector<8x128xf32>
    %598 = arith.mulf %582, %590 : vector<8x128xf32>
    %599 = arith.addf %597, %598 : vector<8x128xf32>
    %600 = math.tanh %599 : vector<8x128xf32>
    %601 = arith.mulf %596, %600 : vector<8x128xf32>
    %602 = math.tanh %601 : vector<8x128xf32>
    %603 = arith.mulf %602, %14 : vector<8x128xf32>
    %cst_118 = arith.constant dense<0.000000e+00> : vector<8xf32>
    %604 = vector.multi_reduction <add>, %603, %cst_118 [1] : vector<8x128xf32> to vector<8xf32>
    %605 = vector.shape_cast %604 : vector<8xf32> to vector<8x1xf32>
    %606 = arith.maximumf %532, %605 : vector<8x1xf32>
    %607 = arith.subf %532, %606 : vector<8x1xf32>
    %608 = math.exp %607 : vector<8x1xf32>
    %609 = arith.subf %605, %606 : vector<8x1xf32>
    %610 = math.exp %609 : vector<8x1xf32>
    %611 = arith.mulf %608, %538 : vector<8x1xf32>
    %612 = arith.addf %611, %610 : vector<8x1xf32>
    %613 = vector.broadcast %608 : vector<8x1xf32> to vector<8x128xf32>
    %614 = arith.mulf %613, %543 : vector<8x128xf32>
    %615 = vector.broadcast %610 : vector<8x1xf32> to vector<8x128xf32>
    %616 = arith.mulf %615, %601 : vector<8x128xf32>
    %617 = arith.addf %614, %616 : vector<8x128xf32>
    %c8_i32 = arith.constant 8 : i32
    %618 = vector.broadcast %612 : vector<8x1xf32> to vector<8x128xf32>
    %619 = arith.divf %617, %618 : vector<8x128xf32>
    %620 = math.tanh %619 : vector<8x128xf32>
    %c0_119 = arith.constant 0 : index
    %c0_120 = arith.constant 0 : index
    %621 = vector.load %arg9[%c0_119, %c0_120] : memref<128x128xf32, #tpu.memory_space<vmem>>, vector<128x128xf32>
    %cst_121 = arith.constant dense<0.000000e+00> : vector<8x128xf32>
    %622 = tpu.matmul %620, %621, %cst_121 {dimension_numbers = #tpu.dot_dimension_numbers<[1], [0], [0], [1], [0, 0, 1, 1], [], []>} : vector<8x128xf32>, vector<128x128xf32>, vector<8x128xf32> -> vector<8x128xf32>
    %c0_122 = arith.constant 0 : index
    %c0_123 = arith.constant 0 : index
    %623 = vector.load %arg10[%c0_122, %c0_123] : memref<1x128xf32, #tpu.memory_space<vmem>>, vector<1x128xf32>
    %624 = vector.broadcast %623 : vector<1x128xf32> to vector<8x128xf32>
    %625 = arith.addf %622, %624 : vector<8x128xf32>
    %c0_124 = arith.constant 0 : index
    %c0_125 = arith.constant 0 : index
    %626 = vector.load %arg11[%c0_124, %c0_125] : memref<8x128xf32, #tpu.memory_space<vmem>>, vector<8x128xf32>
    tpu.vector_store %arg11[%c0_124, %c0_125], %625 {strides = array<i32>} : memref<8x128xf32, #tpu.memory_space<vmem>>, vector<8x128xf32>,
    return
  }
}

</mosaic_0001>

<bundles_post_ra>
// kernel: tpu_custom_call.1
= control target key start
LH: loop header
LB: loop body
LE: loop exit
PB: predicated region body
PF: predicated region fallthrough
CT: control target
= control target key end

     0   :  { %16 = vsyncpa [#allocation4], 0  ;;  %s8420_s0 = inlined_call_operand.hbm [shape: f32[8,8,128], index: 0, kind: input, shape index: {}]   ;;  %s8421_s1 = inlined_call_operand.hbm [shape: f32[2,8,128], index: 1, kind: input, shape index: {}]   ;;  %s8422_s2 = inlined_call_operand.hbm [shape: f32[2,8,128], index: 2, kind: input, shape index: {}]   ;;  %s8423_s3 = inlined_call_operand.hbm [shape: f32[128,512], index: 3, kind: input, shape index: {}]   ;;  %s8424_s4 = inlined_call_operand.hbm [shape: f32[128,512], index: 4, kind: input, shape index: {}]   ;;  %s8425_s5 = inlined_call_operand.vmem [shape: f32[1,512], index: 5, kind: input, shape index: {}]   ;;  %s8426_s6 = inlined_call_operand.hbm [shape: f32[256,512], index: 6, kind: input, shape index: {}]   ;;  %s8427_s7 = inlined_call_operand.hbm [shape: f32[1,512], index: 7, kind: input, shape index: {}]   ;;  %s8428_s8 = inlined_call_operand.vmem [shape: f32[8,128], index: 8, kind: input, shape index: {}]   ;;  %s8429_s9 = inlined_call_operand.hbm [shape: f32[128,128], index: 9, kind: input, shape index: {}]   ;;  %s8430_s10 = inlined_call_operand.vmem [shape: f32[1,128], index: 10, kind: input, shape index: {}]   ;;  %s8431_s11 = inlined_call_operand.hbm [shape: f32[8,128], index: 11, kind: output, shape index: {}]  }
   0x1   :  { %17 = vsyncpa [#allocation7], 0 }
   0x2   :  { %18 = vsyncpa [#allocation10], 0 }
   0x3   :  { %19 = vsyncpa [#allocation13], 0 }
   0x4   :  { %20 = vsyncpa [#allocation16], 0 }
   0x5   :  { %21 = vsyncpa [#allocation5], 0  ;;  %s4904_s17 = smov [#allocation6]   ;;  %s4905_s19 = smov [#allocation9]  }
   0x6   :  { %s39_s18 = sshll.u32 %s4904_s17, 4  ;;  %s63_s20 = sshll.u32 %s4905_s19, 4  ;;  %s40_s18 = int_to_ptr.vmem [resolvable:$true] %s39_s18  ;;  %s64_s20 = int_to_ptr.vmem [resolvable:$true] %s63_s20 }
   0x7   :  { %s4720_s21 = scalar_lea.vmem %s40_s18, 256  ;;  %p4725_p1 = scmp.lt.s32.totalorder %s40_s18, %s40_s18 }
   0x8   :  { %p4721_p0 = scmp.ne.s32.totalorder %s40_s18, %s4720_s21  ;;  %p4726_p2 = scmp.lt.s32.totalorder %s4720_s21, %s4720_s21 }
   0xa   :  { %p4727_p3 = por %p4726_p2, %p4725_p1 }
   0xc   :  { %p4728_p4 = pnand %p4727_p3, %p4721_p0 }
   0xe   :  { %4731 = shalt.err (!%p4728_p4)
}
   0xf   :  { %s4906_s22 = smov 128   ;;  %s4907_s23 = smov 8  }
  0x10   :  { %45 = dma.hbm_to_vmem [thread:$0]  %s8421_s1, 256, %s40_s18, [#allocation7], %s4906_s22, %s4906_s22, %s4907_s23  }
  0x11   :  { %s4740_s26 = scalar_lea.vmem %s64_s20, 8192  ;;  %p4745_p6 = scmp.lt.s32.totalorder %s64_s20, %s64_s20 }
  0x12   :  { %p4741_p5 = scmp.ne.s32.totalorder %s64_s20, %s4740_s26  ;;  %p4746_p7 = scmp.lt.s32.totalorder %s4740_s26, %s4740_s26 }
  0x14   :  { %p4747_p8 = por %p4746_p7, %p4745_p6 }
  0x16   :  { %p4748_p9 = pnand %p4747_p8, %p4741_p5 }
  0x18   :  { %4751 = shalt.err (!%p4748_p9)
}
  0x19   :  { %s4908_s27 = smov 512   ;;  %s4909_s28 = smov 32  }
  0x1a   :  { %69 = dma.hbm_to_vmem [thread:$0]  %s8423_s3, 8192, %s64_s20, [#allocation10], %s4908_s27, %s4908_s27, %s4909_s28  }
  0x1b   :  { %s4910_s12 = smov [#allocation12]   ;;  %s4911_s14 = smov [#allocation3]  }
  0x1c   :  { %s89_s13 = sshll.u32 %s4910_s12, 4  ;;  %s27_s1 = sshll.u32 %s4911_s14, 4  ;;  %s90_s13 = int_to_ptr.vmem [resolvable:$true] %s89_s13  ;;  %s28_s1 = int_to_ptr.vmem [resolvable:$true] %s27_s1 }
  0x1d   :  { %s4760_s15 = scalar_lea.vmem %s90_s13, 16384  ;;  %p4765_p11 = scmp.lt.s32.totalorder %s90_s13, %s90_s13 }
  0x1e   :  { %p4761_p10 = scmp.ne.s32.totalorder %s90_s13, %s4760_s15  ;;  %p4766_p12 = scmp.lt.s32.totalorder %s4760_s15, %s4760_s15 }
  0x20   :  { %p4767_p13 = por %p4766_p12, %p4765_p11 }
  0x22   :  { %p4768_p0 = pnand %p4767_p13, %p4761_p10 }
  0x24   :  { %4771 = shalt.err (!%p4768_p0)
}
  0x25   :  { %95 = dma.hbm_to_vmem [thread:$0]  %s8426_s6, 16384, %s90_s13, [#allocation13], %s4908_s27, %s4908_s27, %s4909_s28  }
  0x26   :  { %s4780_s3 = scalar_lea.vmem %s28_s1, 1024  ;;  %p4785_p2 = scmp.lt.s32.totalorder %s28_s1, %s28_s1 }
  0x27   :  { %p4781_p1 = scmp.ne.s32.totalorder %s28_s1, %s4780_s3  ;;  %p4786_p3 = scmp.lt.s32.totalorder %s4780_s3, %s4780_s3 }
  0x29   :  { %p4787_p4 = por %p4786_p3, %p4785_p2 }
  0x2b   :  { %p4788_p5 = pnand %p4787_p4, %p4781_p1 }
  0x2d   :  { %4791 = shalt.err (!%p4788_p5)
}
  0x2e   :  { %33 = dma.hbm_to_vmem [thread:$0]  %s8420_s0, 1024, %s28_s1, [#allocation4], %s4906_s22, %s4906_s22, %s4907_s23  }
  0x2f   :  { %s4912_s20 = smov [#allocation8]   ;;  %s4913_s24 = smov [#allocation11]  }
  0x30   :  { %s51_s21 = sshll.u32 %s4912_s20, 4  ;;  %s75_s25 = sshll.u32 %s4913_s24, 4  ;;  %s52_s21 = int_to_ptr.vmem [resolvable:$true] %s51_s21  ;;  %s76_s25 = int_to_ptr.vmem [resolvable:$true] %s75_s25 }
  0x31   :  { %s4800_s6 = scalar_lea.vmem %s52_s21, 256  ;;  %p4805_p7 = scmp.lt.s32.totalorder %s52_s21, %s52_s21 }
  0x32   :  { %p4801_p6 = scmp.ne.s32.totalorder %s52_s21, %s4800_s6  ;;  %p4806_p8 = scmp.lt.s32.totalorder %s4800_s6, %s4800_s6 }
  0x34   :  { %p4807_p9 = por %p4806_p8, %p4805_p7 }
  0x36   :  { %p4808_p10 = pnand %p4807_p9, %p4801_p6 }
  0x38   :  { %4811 = shalt.err (!%p4808_p10)
}
  0x39   :  { %57 = dma.hbm_to_vmem [thread:$0]  %s8422_s2, 256, %s52_s21, [#allocation7], %s4906_s22, %s4906_s22, %s4907_s23  }
  0x3a   :  { %s4820_s0 = scalar_lea.vmem %s76_s25, 8192  ;;  %p4825_p12 = scmp.lt.s32.totalorder %s76_s25, %s76_s25 }
  0x3b   :  { %p4821_p11 = scmp.ne.s32.totalorder %s76_s25, %s4820_s0  ;;  %p4826_p13 = scmp.lt.s32.totalorder %s4820_s0, %s4820_s0 }
  0x3d   :  { %p4827_p0 = por %p4826_p13, %p4825_p12 }
  0x3f   :  { %p4828_p1 = pnand %p4827_p0, %p4821_p11 }
  0x41   :  { %4831 = shalt.err (!%p4828_p1)
}
  0x42   :  { %81 = dma.hbm_to_vmem [thread:$0]  %s8424_s4, 8192, %s76_s25, [#allocation10], %s4908_s27, %s4908_s27, %s4909_s28  }
  0x43   :  { %s4914_s13 = smov [#allocation14]   ;;  %s4915_s1 = smov [#allocation15]  }
  0x44   :  { %s102_s14 = sshll.u32 %s4914_s13, 4  ;;  %s113_s15 = sshll.u32 %s4915_s1, 4  ;;  %s103_s14 = int_to_ptr.vmem [resolvable:$true] %s102_s14  ;;  %s114_s15 = int_to_ptr.vmem [resolvable:$true] %s113_s15 }
  0x45   :  { %s4840_s2 = scalar_lea.vmem %s103_s14, 64  ;;  %p4845_p3 = scmp.lt.s32.totalorder %s103_s14, %s103_s14 }
  0x46   :  { %p4841_p2 = scmp.ne.s32.totalorder %s103_s14, %s4840_s2  ;;  %p4846_p4 = scmp.lt.s32.totalorder %s4840_s2, %s4840_s2 }
  0x48   :  { %p4847_p5 = por %p4846_p4, %p4845_p3 }
  0x4a   :  { %p4848_p6 = pnand %p4847_p5, %p4841_p2 }
  0x4c   :  { %4851 = shalt.err (!%p4848_p6)
}
  0x4d   :  { %105 = dma.hbm_to_vmem [thread:$0]  %s8427_s7, 64, %s103_s14, [#allocation13]  }
  0x4e   :  { %s4860_s3 = scalar_lea.vmem %s114_s15, 2048  ;;  %p4865_p8 = scmp.lt.s32.totalorder %s114_s15, %s114_s15 }
  0x4f   :  { %p4861_p7 = scmp.ne.s32.totalorder %s114_s15, %s4860_s3  ;;  %p4866_p9 = scmp.lt.s32.totalorder %s4860_s3, %s4860_s3 }
  0x51   :  { %p4867_p10 = por %p4866_p9, %p4865_p8 }
  0x53   :  { %p4868_p11 = pnand %p4867_p10, %p4861_p7 }
  0x55   :  { %4871 = shalt.err (!%p4868_p11)
}
  0x56   :  { %119 = dma.hbm_to_vmem [thread:$0]  %s8429_s9, 2048, %s114_s15, [#allocation16], %s4906_s22, %s4906_s22, %s4907_s23  }
  0x57   :  { %4892 = dma.done.wait [#allocation4], 1024  }
  0x58   :  { %4893 = vsyncadd [#allocation4], 4294966272 }
  0x59   :  { %4894 = dma.done.wait [#allocation7], 512  }
  0x5a   :  { %4895 = vsyncadd [#allocation7], 4294966784 }
  0x5b   :  { %4896 = dma.done.wait [#allocation10], 16384  }
  0x5c   :  { %4897 = vsyncadd [#allocation10], 4294950912 }
  0x5d   :  { %4898 = dma.done.wait [#allocation13], 16448  }
  0x5e   :  { %4899 = vsyncadd [#allocation13], 4294950848 }
  0x5f   :  { %4900 = dma.done.wait [#allocation16], 2048  }
  0x60   :  { %4901 = vsyncadd [#allocation16], 4294965248  ;;  %v8432_v0 = vmov 0.0   ;;  %v215_v1 = vld [vmem:[#allocation9 + $0x1e8] sm:$0xff]  ;;  %v217_v2 = vld [vmem:[#allocation9 + $0x1f8] sm:$0xff]  ;;  %vm4917_vm0 = vmmov 0  }
  0x61   :  { %304 = vmatprep.mubr.f32.mxu0 %v8432_v0  ;;  %417 = vmatprep.mubr.f32.mxu1 %v8432_v0  ;;  %v214_v3 = vld [vmem:[#allocation9 + $0x1e0] sm:$0xff]  ;;  %v216_v4 = vld [vmem:[#allocation9 + $0x1f0] sm:$0xff]  ;;  %v211_v5 = vld [vmem:[#allocation9 + $0x1c8] sm:$0xff]  ;;  %s4918_s25 = smov [#allocation17]  }
  0x62   :  { %240 = vmatprep.subr.mxu0 %v215_v1  ;;  %353 = vmatprep.subr.mxu1 %v217_v2  ;;  %v213_v6 = vld [vmem:[#allocation9 + $0x1d8] sm:$0xff]  ;;  %v210_v7 = vld [vmem:[#allocation9 + $0x1c0] sm:$0xff]  ;;  %v212_v8 = vld [vmem:[#allocation9 + $0x1d0] sm:$0xff]  ;;  %s3676_s6 = sshll.u32 %s4918_s25, 4  ;;  %s3677_s6 = int_to_ptr.vmem [resolvable:$true] %s3676_s6 }
  0x63   :  { %241 = vmatpush1.msra.mxu0 %v214_v3  ;;  %354 = vmatpush1.msra.mxu1 %v216_v4  ;;  %v207_v9 = vld [vmem:[#allocation9 + $0x1a8] sm:$0xff]  ;;  %v209_v10 = vld [vmem:[#allocation9 + $0x1b8] sm:$0xff]  ;;  %v206_v11 = vld [vmem:[#allocation9 + $0x1a0] sm:$0xff]  ;;  %s4872_s26 = scalar_lea.vmem %s3677_s6, 128  ;;  %p4877_p13 = scmp.lt.s32.totalorder %s3677_s6, %s3677_s6 }
  0x64   :  { %242 = vmatprep.subr.mxu0 %v211_v5  ;;  %355 = vmatprep.subr.mxu1 %v213_v6  ;;  %v208_v12 = vld [vmem:[#allocation9 + $0x1b0] sm:$0xff]  ;;  %v203_v13 = vld [vmem:[#allocation9 + $0x188] sm:$0xff]  ;;  %v205_v14 = vld [vmem:[#allocation9 + $0x198] sm:$0xff]  ;;  %p4873_p12 = scmp.ne.s32.totalorder %s3677_s6, %s4872_s26  ;;  %p4878_p0 = scmp.lt.s32.totalorder %s4872_s26, %s4872_s26 }
  0x65   :  { %243 = vmatpush1.msra.mxu0 %v210_v7  ;;  %356 = vmatpush1.msra.mxu1 %v212_v8  ;;  %v202_v15 = vld [vmem:[#allocation9 + $0x180] sm:$0xff]  ;;  %v204_v16 = vld [vmem:[#allocation9 + $0x190] sm:$0xff]  ;;  %v199_v17 = vld [vmem:[#allocation9 + $0x168] sm:$0xff] }
  0x66   :  { %244 = vmatprep.subr.mxu0 %v207_v9  ;;  %357 = vmatprep.subr.mxu1 %v209_v10  ;;  %v201_v18 = vld [vmem:[#allocation9 + $0x178] sm:$0xff]  ;;  %v198_v19 = vld [vmem:[#allocation9 + $0x160] sm:$0xff]  ;;  %v200_v20 = vld [vmem:[#allocation9 + $0x170] sm:$0xff]  ;;  %p4879_p1 = por %p4878_p0, %p4877_p13 }
  0x67   :  { %245 = vmatpush1.msra.mxu0 %v206_v11  ;;  %358 = vmatpush1.msra.mxu1 %v208_v12  ;;  %v195_v21 = vld [vmem:[#allocation9 + $0x148] sm:$0xff]  ;;  %v197_v22 = vld [vmem:[#allocation9 + $0x158] sm:$0xff]  ;;  %v194_v23 = vld [vmem:[#allocation9 + $0x140] sm:$0xff] }
  0x68   :  { %246 = vmatprep.subr.mxu0 %v203_v13  ;;  %359 = vmatprep.subr.mxu1 %v205_v14  ;;  %v196_v24 = vld [vmem:[#allocation9 + $0x150] sm:$0xff]  ;;  %v191_v25 = vld [vmem:[#allocation9 + $0x128] sm:$0xff]  ;;  %v193_v26 = vld [vmem:[#allocation9 + $0x138] sm:$0xff]  ;;  %p4880_p2 = pnand %p4879_p1, %p4873_p12 }
  0x69   :  { %247 = vmatpush1.msra.mxu0 %v202_v15  ;;  %360 = vmatpush1.msra.mxu1 %v204_v16  ;;  %v190_v27 = vld [vmem:[#allocation9 + $0x120] sm:$0xff]  ;;  %v192_v28 = vld [vmem:[#allocation9 + $0x130] sm:$0xff]  ;;  %v187_v29 = vld [vmem:[#allocation9 + $0x108] sm:$0xff] }
  0x6a   :  { %248 = vmatprep.subr.mxu0 %v199_v17  ;;  %361 = vmatprep.subr.mxu1 %v201_v18  ;;  %v189_v30 = vld [vmem:[#allocation9 + $0x118] sm:$0xff]  ;;  %v186_v31 = vld [vmem:[#allocation9 + $0x100] sm:$0xff]  ;;  %v188_v32 = vld [vmem:[#allocation9 + $0x110] sm:$0xff] }
  0x6b   :  { %249 = vmatpush1.msra.mxu0 %v198_v19  ;;  %362 = vmatpush1.msra.mxu1 %v200_v20  ;;  %v183_v33 = vld [vmem:[#allocation9 + $0xe8] sm:$0xff]  ;;  %v185_v34 = vld [vmem:[#allocation9 + $0xf8] sm:$0xff]  ;;  %v182_v35 = vld [vmem:[#allocation9 + $0xe0] sm:$0xff] }
  0x6c   :  { %250 = vmatprep.subr.mxu0 %v195_v21  ;;  %363 = vmatprep.subr.mxu1 %v197_v22  ;;  %v184_v36 = vld [vmem:[#allocation9 + $0xf0] sm:$0xff]  ;;  %v179_v37 = vld [vmem:[#allocation9 + $0xc8] sm:$0xff]  ;;  %v181_v38 = vld [vmem:[#allocation9 + $0xd8] sm:$0xff] }
  0x6d   :  { %251 = vmatpush1.msra.mxu0 %v194_v23  ;;  %364 = vmatpush1.msra.mxu1 %v196_v24  ;;  %v178_v39 = vld [vmem:[#allocation9 + $0xc0] sm:$0xff]  ;;  %v180_v40 = vld [vmem:[#allocation9 + $0xd0] sm:$0xff]  ;;  %v175_v41 = vld [vmem:[#allocation9 + $0xa8] sm:$0xff] }
  0x6e   :  { %252 = vmatprep.subr.mxu0 %v191_v25  ;;  %365 = vmatprep.subr.mxu1 %v193_v26  ;;  %v177_v42 = vld [vmem:[#allocation9 + $0xb8] sm:$0xff]  ;;  %v174_v43 = vld [vmem:[#allocation9 + $0xa0] sm:$0xff]  ;;  %v176_v44 = vld [vmem:[#allocation9 + $0xb0] sm:$0xff] }
  0x6f   :  { %253 = vmatpush1.msra.mxu0 %v190_v27  ;;  %366 = vmatpush1.msra.mxu1 %v192_v28  ;;  %v171_v45 = vld [vmem:[#allocation9 + $0x88] sm:$0xff]  ;;  %v173_v46 = vld [vmem:[#allocation9 + $0x98] sm:$0xff]  ;;  %v170_v47 = vld [vmem:[#allocation9 + $0x80] sm:$0xff] }
  0x70   :  { %254 = vmatprep.subr.mxu0 %v187_v29  ;;  %367 = vmatprep.subr.mxu1 %v189_v30  ;;  %v172_v48 = vld [vmem:[#allocation9 + $0x90] sm:$0xff]  ;;  %v167_v49 = vld [vmem:[#allocation9 + $0x68] sm:$0xff]  ;;  %v169_v50 = vld [vmem:[#allocation9 + $0x78] sm:$0xff] }
  0x71   :  { %255 = vmatpush1.msra.mxu0 %v186_v31  ;;  %368 = vmatpush1.msra.mxu1 %v188_v32  ;;  %v166_v51 = vld [vmem:[#allocation9 + $0x60] sm:$0xff]  ;;  %v168_v52 = vld [vmem:[#allocation9 + $0x70] sm:$0xff]  ;;  %v163_v53 = vld [vmem:[#allocation9 + $0x48] sm:$0xff] }
  0x72   :  { %256 = vmatprep.subr.mxu0 %v183_v33  ;;  %369 = vmatprep.subr.mxu1 %v185_v34  ;;  %v165_v54 = vld [vmem:[#allocation9 + $0x58] sm:$0xff]  ;;  %v162_v55 = vld [vmem:[#allocation9 + $0x40] sm:$0xff]  ;;  %v164_v56 = vld [vmem:[#allocation9 + $0x50] sm:$0xff] }
  0x73   :  { %257 = vmatpush1.msra.mxu0 %v182_v35  ;;  %370 = vmatpush1.msra.mxu1 %v184_v36  ;;  %v159_v57 = vld [vmem:[#allocation9 + $0x28] sm:$0xff]  ;;  %v161_v58 = vld [vmem:[#allocation9 + $0x38] sm:$0xff]  ;;  %v158_v59 = vld [vmem:[#allocation9 + $0x20] sm:$0xff] }
  0x74   :  { %258 = vmatprep.subr.mxu0 %v179_v37  ;;  %371 = vmatprep.subr.mxu1 %v181_v38  ;;  %v160_v60 = vld [vmem:[#allocation9 + $0x30] sm:$0xff]  ;;  %v155_v61 = vld [vmem:[#allocation9 + $0x8] sm:$0xff]  ;;  %v157_v62 = vld [vmem:[#allocation9 + $0x18] sm:$0xff] }
  0x75   :  { %259 = vmatpush1.msra.mxu0 %v178_v39  ;;  %372 = vmatpush1.msra.mxu1 %v180_v40  ;;  %v154_v63 = vld [vmem:[#allocation9] sm:$0xff]  ;;  %v156_v1 = vld [vmem:[#allocation9 + $0x10] sm:$0xff]  ;;  %v5026_v3 = vld [vmem:[#allocation11 + $0x1e8] sm:$0xff] }
  0x76   :  { %260 = vmatprep.subr.mxu0 %v175_v41  ;;  %373 = vmatprep.subr.mxu1 %v177_v42  ;;  %v146_v2 = vld [vmem:[#allocation3] sm:$0xff]  ;;  %v5028_v4 = vld [vmem:[#allocation11 + $0x1f8] sm:$0xff]  ;;  %v560_v6 = vld [vmem:[#allocation11 + $0x1f0] sm:$0xff] }
  0x77   :  { %261 = vmatpush1.msra.mxu0 %v174_v43  ;;  %374 = vmatpush1.msra.mxu1 %v176_v44  ;;  %v558_v5 = vld [vmem:[#allocation11 + $0x1e0] sm:$0xff]  ;;  %v555_v7 = vld [vmem:[#allocation11 + $0x1c8] sm:$0xff]  ;;  %v557_v8 = vld [vmem:[#allocation11 + $0x1d8] sm:$0xff] }
  0x78   :  { %262 = vmatprep.subr.mxu0 %v171_v45  ;;  %375 = vmatprep.subr.mxu1 %v173_v46  ;;  %v554_v9 = vld [vmem:[#allocation11 + $0x1c0] sm:$0xff]  ;;  %v556_v10 = vld [vmem:[#allocation11 + $0x1d0] sm:$0xff]  ;;  %v147_v11 = vld [vmem:[#allocation3 + $0x8] sm:$0xff] }
  0x79   :  { %263 = vmatpush1.msra.mxu0 %v170_v47  ;;  %376 = vmatpush1.msra.mxu1 %v172_v48  ;;  %v551_v12 = vld [vmem:[#allocation11 + $0x1a8] sm:$0xff]  ;;  %v553_v13 = vld [vmem:[#allocation11 + $0x1b8] sm:$0xff]  ;;  %v550_v14 = vld [vmem:[#allocation11 + $0x1a0] sm:$0xff] }
  0x7a   :  { %264 = vmatprep.subr.mxu0 %v167_v49  ;;  %377 = vmatprep.subr.mxu1 %v169_v50  ;;  %v552_v15 = vld [vmem:[#allocation11 + $0x1b0] sm:$0xff]  ;;  %v547_v16 = vld [vmem:[#allocation11 + $0x188] sm:$0xff]  ;;  %v549_v17 = vld [vmem:[#allocation11 + $0x198] sm:$0xff] }
  0x7b   :  { %265 = vmatpush1.msra.mxu0 %v166_v51  ;;  %378 = vmatpush1.msra.mxu1 %v168_v52  ;;  %v546_v18 = vld [vmem:[#allocation11 + $0x180] sm:$0xff]  ;;  %v548_v19 = vld [vmem:[#allocation11 + $0x190] sm:$0xff]  ;;  %v543_v21 = vld [vmem:[#allocation11 + $0x168] sm:$0xff] }
  0x7c   :  { %266 = vmatprep.subr.mxu0 %v163_v53  ;;  %379 = vmatprep.subr.mxu1 %v165_v54  ;;  %v148_v20 = vld [vmem:[#allocation3 + $0x10] sm:$0xff]  ;;  %v545_v22 = vld [vmem:[#allocation11 + $0x178] sm:$0xff]  ;;  %v542_v23 = vld [vmem:[#allocation11 + $0x160] sm:$0xff] }
  0x7d   :  { %267 = vmatpush1.msra.mxu0 %v162_v55  ;;  %380 = vmatpush1.msra.mxu1 %v164_v56  ;;  %v544_v24 = vld [vmem:[#allocation11 + $0x170] sm:$0xff]  ;;  %v539_v25 = vld [vmem:[#allocation11 + $0x148] sm:$0xff]  ;;  %v541_v26 = vld [vmem:[#allocation11 + $0x158] sm:$0xff] }
  0x7e   :  { %268 = vmatprep.subr.mxu0 %v159_v57  ;;  %381 = vmatprep.subr.mxu1 %v161_v58  ;;  %v5036_v27 = vld [vmem:[#allocation11 + $0x140] sm:$0xff]  ;;  %v5038_v28 = vld [vmem:[#allocation11 + $0x150] sm:$0xff]  ;;  %v149_v29 = vld [vmem:[#allocation3 + $0x18] sm:$0xff] }
  0x7f   :  { %269 = vmatpush1.msra.mxu0 %v158_v59  ;;  %382 = vmatpush1.msra.mxu1 %v160_v60  ;;  %v5042_v30 = vld [vmem:[#allocation11 + $0x128] sm:$0xff]  ;;  %v5044_v31 = vld [vmem:[#allocation11 + $0x138] sm:$0xff]  ;;  %v5048_v32 = vld [vmem:[#allocation11 + $0x120] sm:$0xff] }
  0x80   :  { %270 = vmatprep.subr.mxu0 %v155_v61  ;;  %383 = vmatprep.subr.mxu1 %v157_v62  ;;  %v5050_v33 = vld [vmem:[#allocation11 + $0x130] sm:$0xff]  ;;  %v5052_v34 = vld [vmem:[#allocation11 + $0x108] sm:$0xff]  ;;  %v5054_v35 = vld [vmem:[#allocation11 + $0x118] sm:$0xff] }
  0x81   :  { %271 = vmatpush1.msra.mxu0 %v154_v63  ;;  %384 = vmatpush1.msra.mxu1 %v156_v1  ;;  %v5060_v36 = vld [vmem:[#allocation11 + $0x100] sm:$0xff]  ;;  %v5062_v37 = vld [vmem:[#allocation11 + $0x110] sm:$0xff]  ;;  %v5068_v39 = vld [vmem:[#allocation11 + $0xe8] sm:$0xff] }
  0x82   :  { %305 = vmatmul.mubr.f32.vlgmr.msra.gmra.mxu0 %v146_v2  ;;  %418 = vmatmul.mubr.f32.vlgmr.msra.gmra.mxu1 %v146_v2  ;;  %v150_v38 = vld [vmem:[#allocation3 + $0x20] sm:$0xff]  ;;  %v5070_v40 = vld [vmem:[#allocation11 + $0xf8] sm:$0xff]  ;;  %v5076_v42 = vld [vmem:[#allocation11 + $0xf0] sm:$0xff] }
  0x83   :  { %723 = vmatprep.subr.mxu0 %v5026_v3  ;;  %794 = vmatprep.subr.mxu1 %v5028_v4  ;;  %v5074_v41 = vld [vmem:[#allocation11 + $0xe0] sm:$0xff]  ;;  %v5078_v43 = vld [vmem:[#allocation11 + $0xc8] sm:$0xff]  ;;  %v5080_v44 = vld [vmem:[#allocation11 + $0xd8] sm:$0xff] }
  0x84   :  { %724 = vmatpush1.msra.mxu0 %v558_v5  ;;  %795 = vmatpush1.msra.mxu1 %v560_v6  ;;  %v5086_v45 = vld [vmem:[#allocation11 + $0xc0] sm:$0xff]  ;;  %v5088_v46 = vld [vmem:[#allocation11 + $0xd0] sm:$0xff]  ;;  %v151_v47 = vld [vmem:[#allocation3 + $0x28] sm:$0xff] }
  0x85   :  { %725 = vmatprep.subr.mxu0 %v555_v7  ;;  %796 = vmatprep.subr.mxu1 %v557_v8  ;;  %v5094_v48 = vld [vmem:[#allocation11 + $0xa8] sm:$0xff]  ;;  %v5096_v49 = vld [vmem:[#allocation11 + $0xb8] sm:$0xff]  ;;  %v5100_v50 = vld [vmem:[#allocation11 + $0xa0] sm:$0xff] }
  0x86   :  { %310 = vmatprep.mubr.f32.mxu0 %v8432_v0  ;;  %423 = vmatprep.mubr.f32.mxu1 %v8432_v0  ;;  %v5102_v51 = vld [vmem:[#allocation11 + $0xb0] sm:$0xff]  ;;  %v5104_v52 = vld [vmem:[#allocation11 + $0x88] sm:$0xff]  ;;  %v5106_v53 = vld [vmem:[#allocation11 + $0x98] sm:$0xff] }
  0x87   :  { %726 = vmatpush1.msra.mxu0 %v554_v9  ;;  %797 = vmatpush1.msra.mxu1 %v556_v10  ;;  %v5112_v54 = vld [vmem:[#allocation11 + $0x80] sm:$0xff]  ;;  %v5114_v55 = vld [vmem:[#allocation11 + $0x90] sm:$0xff]  ;;  %v5120_v57 = vld [vmem:[#allocation11 + $0x68] sm:$0xff] }
  0x88   :  { %311 = vmatmul.mubr.f32.gmra.mxu0 %v147_v11  ;;  %424 = vmatmul.mubr.f32.gmra.mxu1 %v147_v11  ;;  %v152_v56 = vld [vmem:[#allocation3 + $0x30] sm:$0xff]  ;;  %v5122_v58 = vld [vmem:[#allocation11 + $0x78] sm:$0xff]  ;;  %v5126_v59 = vld [vmem:[#allocation11 + $0x60] sm:$0xff] }
  0x89   :  { %727 = vmatprep.subr.mxu0 %v551_v12  ;;  %798 = vmatprep.subr.mxu1 %v553_v13  ;;  %v5128_v60 = vld [vmem:[#allocation11 + $0x70] sm:$0xff]  ;;  %v5130_v61 = vld [vmem:[#allocation11 + $0x48] sm:$0xff]  ;;  %v5132_v62 = vld [vmem:[#allocation11 + $0x58] sm:$0xff] }
  0x8a   :  { %728 = vmatpush1.msra.mxu0 %v550_v14  ;;  %799 = vmatpush1.msra.mxu1 %v552_v15  ;;  %v5138_v63 = vld [vmem:[#allocation11 + $0x40] sm:$0xff]  ;;  %v5140_v1 = vld [vmem:[#allocation11 + $0x50] sm:$0xff]  ;;  %v153_v2 = vld [vmem:[#allocation3 + $0x38] sm:$0xff] }
  0x8b   :  { %729 = vmatprep.subr.mxu0 %v547_v16  ;;  %800 = vmatprep.subr.mxu1 %v549_v17  ;;  %v5146_v5 = vld [vmem:[#allocation11 + $0x28] sm:$0xff]  ;;  %v5148_v6 = vld [vmem:[#allocation11 + $0x38] sm:$0xff]  ;;  %v5152_v7 = vld [vmem:[#allocation11 + $0x20] sm:$0xff] }
  0x8c   :  { %316 = vmatprep.mubr.f32.mxu0 %v8432_v0  ;;  %429 = vmatprep.mubr.f32.mxu1 %v8432_v0  ;;  %v5154_v8 = vld [vmem:[#allocation11 + $0x30] sm:$0xff]  ;;  %v5156_v9 = vld [vmem:[#allocation11 + $0x8] sm:$0xff]  ;;  %v5158_v10 = vld [vmem:[#allocation11 + $0x18] sm:$0xff] }
  0x8d   :  { %730 = vmatpush1.msra.mxu0 %v546_v18  ;;  %801 = vmatpush1.msra.mxu1 %v548_v19  ;;  %v5162_v11 = vld [vmem:[#allocation11] sm:$0xff]  ;;  %v5166_v12 = vld [vmem:[#allocation11 + $0x10] sm:$0xff]  ;;  %v5174_v14 = vld [vmem:[#allocation12 + $0x1e8] sm:$0xff] }
  0x8e   :  { %317 = vmatmul.mubr.f32.gmra.mxu0 %v148_v20  ;;  %430 = vmatmul.mubr.f32.gmra.mxu1 %v148_v20  ;;  %8978 = vst [vmem:[#allocation24_spill] sm:$0xff] %v5166_v12  ;;  %v713_v13 = vld [vmem:[#allocation6] sm:$0xff]  ;;  %8979 = vst [vmem:[#allocation25_spill] sm:$0xff] %v5174_v14  ;;  %v5176_v15 = vld [vmem:[#allocation12 + $0x1f8] sm:$0xff] }
  0x8f   :  { %731 = vmatprep.subr.mxu0 %v543_v21  ;;  %802 = vmatprep.subr.mxu1 %v545_v22  ;;  %8980 = vst [vmem:[#allocation26_spill] sm:$0xff] %v5176_v15  ;;  %v5178_v16 = vld [vmem:[#allocation12 + $0x1e0] sm:$0xff]  ;;  %v5182_v17 = vld [vmem:[#allocation12 + $0x1f0] sm:$0xff]  ;;  %v5186_v18 = vld [vmem:[#allocation12 + $0x1c8] sm:$0xff] }
  0x90   :  { %732 = vmatpush1.msra.mxu0 %v542_v23  ;;  %803 = vmatpush1.msra.mxu1 %v544_v24  ;;  %8981 = vst [vmem:[#allocation27_spill] sm:$0xff] %v5178_v16  ;;  %8982 = vst [vmem:[#allocation28_spill] sm:$0xff] %v5182_v17  ;;  %v5188_v19 = vld [vmem:[#allocation12 + $0x1d8] sm:$0xff]  ;;  %v5190_v20 = vld [vmem:[#allocation12 + $0x1c0] sm:$0xff] }
  0x91   :  { %733 = vmatprep.subr.mxu0 %v539_v25  ;;  %804 = vmatprep.subr.mxu1 %v541_v26  ;;  %8983 = vst [vmem:[#allocation29_spill] sm:$0xff] %v5186_v18  ;;  %8984 = vst [vmem:[#allocation30_spill] sm:$0xff] %v5188_v19  ;;  %v5194_v21 = vld [vmem:[#allocation12 + $0x1d0] sm:$0xff]  ;;  %v5198_v22 = vld [vmem:[#allocation12 + $0x1a8] sm:$0xff] }
  0x92   :  { %322 = vmatprep.mubr.f32.mxu0 %v8432_v0  ;;  %435 = vmatprep.mubr.f32.mxu1 %v8432_v0  ;;  %8985 = vst [vmem:[#allocation31_spill] sm:$0xff] %v5190_v20  ;;  %8986 = vst [vmem:[#allocation32_spill] sm:$0xff] %v5194_v21  ;;  %v5200_v23 = vld [vmem:[#allocation12 + $0x1b8] sm:$0xff]  ;;  %v5202_v24 = vld [vmem:[#allocation12 + $0x1a0] sm:$0xff] }
  0x93   :  { %734 = vmatpush1.msra.mxu0 %v5036_v27  ;;  %805 = vmatpush1.msra.mxu1 %v5038_v28  ;;  %8987 = vst [vmem:[#allocation33_spill] sm:$0xff] %v5198_v22  ;;  %8988 = vst [vmem:[#allocation34_spill] sm:$0xff] %v5200_v23  ;;  %v5206_v25 = vld [vmem:[#allocation12 + $0x1b0] sm:$0xff]  ;;  %v5210_v26 = vld [vmem:[#allocation12 + $0x188] sm:$0xff] }
  0x94   :  { %323 = vmatmul.mubr.f32.gmra.mxu0 %v149_v29  ;;  %436 = vmatmul.mubr.f32.gmra.mxu1 %v149_v29  ;;  %8989 = vst [vmem:[#allocation35_spill] sm:$0xff] %v5202_v24  ;;  %8990 = vst [vmem:[#allocation36_spill] sm:$0xff] %v5206_v25  ;;  %v5212_v29 = vld [vmem:[#allocation12 + $0x198] sm:$0xff] }
  0x95   :  { %735 = vmatprep.subr.mxu0 %v5042_v30  ;;  %806 = vmatprep.subr.mxu1 %v5044_v31  ;;  %8991 = vst [vmem:[#allocation37_spill] sm:$0xff] %v5210_v26  ;;  %8992 = vst [vmem:[#allocation38_spill] sm:$0xff] %v5212_v29 }
  0x96   :  { %736 = vmatpush1.msra.mxu0 %v5048_v32  ;;  %807 = vmatpush1.msra.mxu1 %v5050_v33 }
  0x97   :  { %737 = vmatprep.subr.mxu0 %v5052_v34  ;;  %808 = vmatprep.subr.mxu1 %v5054_v35 }
  0x98   :  { %328 = vmatprep.mubr.f32.mxu0 %v8432_v0  ;;  %441 = vmatprep.mubr.f32.mxu1 %v8432_v0 }
  0x99   :  { %738 = vmatpush1.msra.mxu0 %v5060_v36  ;;  %809 = vmatpush1.msra.mxu1 %v5062_v37 }
  0x9a   :  { %329 = vmatmul.mubr.f32.gmra.mxu0 %v150_v38  ;;  %442 = vmatmul.mubr.f32.gmra.mxu1 %v150_v38  ;;  %v5214_v38 = vld [vmem:[#allocation12 + $0x180] sm:$0xff] }
  0x9b   :  { %739 = vmatprep.subr.mxu0 %v5068_v39  ;;  %810 = vmatprep.subr.mxu1 %v5070_v40  ;;  %8993 = vst [vmem:[#allocation39_spill] sm:$0xff] %v5214_v38 }
  0x9c   :  { %740 = vmatpush1.msra.mxu0 %v5074_v41  ;;  %811 = vmatpush1.msra.mxu1 %v5076_v42 }
  0x9d   :  { %741 = vmatprep.subr.mxu0 %v5078_v43  ;;  %812 = vmatprep.subr.mxu1 %v5080_v44 }
  0x9e   :  { %334 = vmatprep.mubr.f32.mxu0 %v8432_v0  ;;  %447 = vmatprep.mubr.f32.mxu1 %v8432_v0 }
  0x9f   :  { %742 = vmatpush1.msra.mxu0 %v5086_v45  ;;  %813 = vmatpush1.msra.mxu1 %v5088_v46 }
  0xa0   :  { %335 = vmatmul.mubr.f32.gmra.mxu0 %v151_v47  ;;  %448 = vmatmul.mubr.f32.gmra.mxu1 %v151_v47  ;;  %v5218_v47 = vld [vmem:[#allocation12 + $0x190] sm:$0xff] }
  0xa1   :  { %743 = vmatprep.subr.mxu0 %v5094_v48  ;;  %814 = vmatprep.subr.mxu1 %v5096_v49  ;;  %8994 = vst [vmem:[#allocation40_spill] sm:$0xff] %v5218_v47 }
  0xa2   :  { %744 = vmatpush1.msra.mxu0 %v5100_v50  ;;  %815 = vmatpush1.msra.mxu1 %v5102_v51 }
  0xa3   :  { %745 = vmatprep.subr.mxu0 %v5104_v52  ;;  %816 = vmatprep.subr.mxu1 %v5106_v53 }
  0xa4   :  { %340 = vmatprep.mubr.f32.mxu0 %v8432_v0  ;;  %453 = vmatprep.mubr.f32.mxu1 %v8432_v0 }
  0xa5   :  { %746 = vmatpush1.msra.mxu0 %v5112_v54  ;;  %817 = vmatpush1.msra.mxu1 %v5114_v55 }
  0xa6   :  { %341 = vmatmul.mubr.f32.gmra.mxu0 %v152_v56  ;;  %454 = vmatmul.mubr.f32.gmra.mxu1 %v152_v56  ;;  %v5222_v56 = vld [vmem:[#allocation12 + $0x168] sm:$0xff] }
  0xa7   :  { %747 = vmatprep.subr.mxu0 %v5120_v57  ;;  %818 = vmatprep.subr.mxu1 %v5122_v58  ;;  %8995 = vst [vmem:[#allocation41_spill] sm:$0xff] %v5222_v56 }
  0xa8   :  { %748 = vmatpush1.msra.mxu0 %v5126_v59  ;;  %819 = vmatpush1.msra.mxu1 %v5128_v60 }
  0xa9   :  { %749 = vmatprep.subr.mxu0 %v5130_v61  ;;  %820 = vmatprep.subr.mxu1 %v5132_v62 }
  0xaa   :  { %346 = vmatprep.mubr.f32.mxu0 %v8432_v0  ;;  %459 = vmatprep.mubr.f32.mxu1 %v8432_v0 }
  0xab   :  { %750 = vmatpush1.msra.mxu0 %v5138_v63  ;;  %821 = vmatpush1.msra.mxu1 %v5140_v1 }
  0xac   :  { %347 = vmatmul.mubr.f32.gmra.mxu0 %v153_v2  ;;  %460 = vmatmul.mubr.f32.gmra.mxu1 %v153_v2  ;;  %v5224_v2 = vld [vmem:[#allocation12 + $0x178] sm:$0xff] }
  0xad   :  { %751 = vmatprep.subr.mxu0 %v5146_v5  ;;  %822 = vmatprep.subr.mxu1 %v5148_v6  ;;  %8996 = vst [vmem:[#allocation42_spill] sm:$0xff] %v5224_v2 }
  0xae   :  { %752 = vmatpush1.msra.mxu0 %v5152_v7  ;;  %823 = vmatpush1.msra.mxu1 %v5154_v8 }
  0xaf   :  { %753 = vmatprep.subr.mxu0 %v5156_v9  ;;  %824 = vmatprep.subr.mxu1 %v5158_v10 }
  0xb0   :  { %754 = vmatpush1.msra.mxu0 %v5162_v11  ;;  %787 = vmatprep.mubr.f32.mxu0 %v8432_v0 }
  0xb1   :  { %825 = vmatpush1.msra.mxu1 %v5166_v12  ;;  %858 = vmatprep.mubr.f32.mxu1 %v8432_v0  ;;  %v5230_v0 = vld [vmem:[#allocation12 + $0x170] sm:$0xff] }
  0xb2   :  { %788 = vmatmul.mubr.f32.vlgmr.msra.gmra.mxu0 %v713_v13  ;;  %859 = vmatmul.mubr.f32.vlgmr.msra.gmra.mxu1 %v713_v13  ;;  %v5228_v13 = vld [vmem:[#allocation12 + $0x160] sm:$0xff]  ;;  %8998 = vst [vmem:[#allocation44_spill] sm:$0xff] %v5230_v0 }
  0xb3   :  { %893 = vmatprep.subr.mxu0 %v5174_v14  ;;  %964 = vmatprep.subr.mxu1 %v5176_v15  ;;  %8997 = vst [vmem:[#allocation43_spill] sm:$0xff] %v5228_v13 }
  0xb4   :  { %894 = vmatpush1.msra.mxu0 %v5178_v16  ;;  %965 = vmatpush1.msra.mxu1 %v5182_v17 }
  0xb5   :  { %895 = vmatprep.subr.mxu0 %v5186_v18  ;;  %966 = vmatprep.subr.mxu1 %v5188_v19 }
  0xb6   :  { %896 = vmatpush1.msra.mxu0 %v5190_v20  ;;  %967 = vmatpush1.msra.mxu1 %v5194_v21 }
  0xb7   :  { %897 = vmatprep.subr.mxu0 %v5198_v22  ;;  %968 = vmatprep.subr.mxu1 %v5200_v23  ;;  %v5500_v23 = vld [vmem:[#allocation12 + $0x280] sm:$0xff] }
  0xb8   :  { %898 = vmatpush1.msra.mxu0 %v5202_v24  ;;  %969 = vmatpush1.msra.mxu1 %v5206_v25  ;;  %v5476_v25 = vld [vmem:[#allocation12 + $0x2c0] sm:$0xff]  ;;  %v5484_v24 = vld [vmem:[#allocation12 + $0x2b8] sm:$0xff]  ;;  %9089 = vst [vmem:[#allocation135_spill] sm:$0xff] %v5500_v23 }
  0xb9   :  { %899 = vmatprep.subr.mxu0 %v5210_v26  ;;  %970 = vmatprep.subr.mxu1 %v5212_v29  ;;  %v5234_v29 = vld [vmem:[#allocation12 + $0x148] sm:$0xff]  ;;  %v5468_v26 = vld [vmem:[#allocation12 + $0x2f0] sm:$0xff]  ;;  %9081 = vst [vmem:[#allocation127_spill] sm:$0xff] %v5476_v25  ;;  %9084 = vst [vmem:[#allocation130_spill] sm:$0xff] %v5484_v24 }
  0xba   :  { %900 = vmatpush1.msra.mxu0 %v5214_v38  ;;  %971 = vmatpush1.msra.mxu1 %v5218_v47  ;;  %8999 = vst [vmem:[#allocation45_spill] sm:$0xff] %v5234_v29  ;;  %v5236_v38 = vld [vmem:[#allocation12 + $0x158] sm:$0xff]  ;;  %v5240_v47 = vld [vmem:[#allocation12 + $0x140] sm:$0xff]  ;;  %9078 = vst [vmem:[#allocation124_spill] sm:$0xff] %v5468_v26 }
  0xbb   :  { %901 = vmatprep.subr.mxu0 %v5222_v56  ;;  %972 = vmatprep.subr.mxu1 %v5224_v2  ;;  %9000 = vst [vmem:[#allocation46_spill] sm:$0xff] %v5236_v38  ;;  %9001 = vst [vmem:[#allocation47_spill] sm:$0xff] %v5240_v47  ;;  %v5242_v56 = vld [vmem:[#allocation12 + $0x150] sm:$0xff]  ;;  %v5246_v2 = vld [vmem:[#allocation12 + $0x128] sm:$0xff] }
  0xbc   :  { %902 = vmatpush1.msra.mxu0 %v5228_v13  ;;  %973 = vmatpush1.msra.mxu1 %v5230_v0  ;;  %9002 = vst [vmem:[#allocation48_spill] sm:$0xff] %v5242_v56  ;;  %9003 = vst [vmem:[#allocation49_spill] sm:$0xff] %v5246_v2  ;;  %v5248_v13 = vld [vmem:[#allocation12 + $0x138] sm:$0xff]  ;;  %v5252_v0 = vld [vmem:[#allocation12 + $0x120] sm:$0xff] }
  0xbd   :  { %903 = vmatprep.subr.mxu0 %v5234_v29  ;;  %974 = vmatprep.subr.mxu1 %v5236_v38  ;;  %9004 = vst [vmem:[#allocation50_spill] sm:$0xff] %v5248_v13  ;;  %9005 = vst [vmem:[#allocation51_spill] sm:$0xff] %v5252_v0  ;;  %v5254_v29 = vld [vmem:[#allocation12 + $0x130] sm:$0xff]  ;;  %v5258_v38 = vld [vmem:[#allocation12 + $0x108] sm:$0xff] }
  0xbe   :  { %904 = vmatpush1.msra.mxu0 %v5240_v47  ;;  %975 = vmatpush1.msra.mxu1 %v5242_v56  ;;  %9006 = vst [vmem:[#allocation52_spill] sm:$0xff] %v5254_v29  ;;  %9007 = vst [vmem:[#allocation53_spill] sm:$0xff] %v5258_v38  ;;  %v5260_v47 = vld [vmem:[#allocation12 + $0x118] sm:$0xff]  ;;  %v5264_v56 = vld [vmem:[#allocation12 + $0x100] sm:$0xff] }
  0xbf   :  { %905 = vmatprep.subr.mxu0 %v5246_v2  ;;  %976 = vmatprep.subr.mxu1 %v5248_v13  ;;  %9008 = vst [vmem:[#allocation54_spill] sm:$0xff] %v5260_v47  ;;  %9009 = vst [vmem:[#allocation55_spill] sm:$0xff] %v5264_v56  ;;  %v5266_v2 = vld [vmem:[#allocation12 + $0x110] sm:$0xff]  ;;  %v5270_v13 = vld [vmem:[#allocation12 + $0xe8] sm:$0xff] }
  0xc0   :  { %906 = vmatpush1.msra.mxu0 %v5252_v0  ;;  %977 = vmatpush1.msra.mxu1 %v5254_v29  ;;  %9010 = vst [vmem:[#allocation56_spill] sm:$0xff] %v5266_v2  ;;  %9011 = vst [vmem:[#allocation57_spill] sm:$0xff] %v5270_v13  ;;  %v5272_v0 = vld [vmem:[#allocation12 + $0xf8] sm:$0xff]  ;;  %v5276_v29 = vld [vmem:[#allocation12 + $0xe0] sm:$0xff] }
  0xc1   :  { %907 = vmatprep.subr.mxu0 %v5258_v38  ;;  %978 = vmatprep.subr.mxu1 %v5260_v47  ;;  %9012 = vst [vmem:[#allocation58_spill] sm:$0xff] %v5272_v0  ;;  %9013 = vst [vmem:[#allocation59_spill] sm:$0xff] %v5276_v29  ;;  %v5278_v38 = vld [vmem:[#allocation12 + $0xf0] sm:$0xff]  ;;  %v5282_v47 = vld [vmem:[#allocation12 + $0xc8] sm:$0xff] }
  0xc2   :  { %908 = vmatpush1.msra.mxu0 %v5264_v56  ;;  %979 = vmatpush1.msra.mxu1 %v5266_v2  ;;  %9014 = vst [vmem:[#allocation60_spill] sm:$0xff] %v5278_v38  ;;  %9015 = vst [vmem:[#allocation61_spill] sm:$0xff] %v5282_v47  ;;  %v5284_v56 = vld [vmem:[#allocation12 + $0xd8] sm:$0xff]  ;;  %v5288_v2 = vld [vmem:[#allocation12 + $0xc0] sm:$0xff] }
  0xc3   :  { %909 = vmatprep.subr.mxu0 %v5270_v13  ;;  %980 = vmatprep.subr.mxu1 %v5272_v0  ;;  %9016 = vst [vmem:[#allocation62_spill] sm:$0xff] %v5284_v56  ;;  %9017 = vst [vmem:[#allocation63_spill] sm:$0xff] %v5288_v2  ;;  %v5290_v13 = vld [vmem:[#allocation12 + $0xd0] sm:$0xff]  ;;  %v5294_v0 = vld [vmem:[#allocation12 + $0xa8] sm:$0xff] }
  0xc4   :  { %910 = vmatpush1.msra.mxu0 %v5276_v29  ;;  %981 = vmatpush1.msra.mxu1 %v5278_v38  ;;  %9018 = vst [vmem:[#allocation64_spill] sm:$0xff] %v5290_v13  ;;  %9019 = vst [vmem:[#allocation65_spill] sm:$0xff] %v5294_v0  ;;  %v5296_v29 = vld [vmem:[#allocation12 + $0xb8] sm:$0xff]  ;;  %v5300_v38 = vld [vmem:[#allocation12 + $0xa0] sm:$0xff] }
  0xc5   :  { %911 = vmatprep.subr.mxu0 %v5282_v47  ;;  %982 = vmatprep.subr.mxu1 %v5284_v56  ;;  %9020 = vst [vmem:[#allocation66_spill] sm:$0xff] %v5296_v29  ;;  %9021 = vst [vmem:[#allocation67_spill] sm:$0xff] %v5300_v38  ;;  %v5302_v47 = vld [vmem:[#allocation12 + $0xb0] sm:$0xff]  ;;  %v5306_v56 = vld [vmem:[#allocation12 + $0x88] sm:$0xff] }
  0xc6   :  { %912 = vmatpush1.msra.mxu0 %v5288_v2  ;;  %983 = vmatpush1.msra.mxu1 %v5290_v13  ;;  %9022 = vst [vmem:[#allocation68_spill] sm:$0xff] %v5302_v47  ;;  %9023 = vst [vmem:[#allocation69_spill] sm:$0xff] %v5306_v56  ;;  %v5308_v2 = vld [vmem:[#allocation12 + $0x98] sm:$0xff]  ;;  %v5312_v13 = vld [vmem:[#allocation12 + $0x80] sm:$0xff] }
  0xc7   :  { %913 = vmatprep.subr.mxu0 %v5294_v0  ;;  %984 = vmatprep.subr.mxu1 %v5296_v29  ;;  %9024 = vst [vmem:[#allocation70_spill] sm:$0xff] %v5308_v2  ;;  %9025 = vst [vmem:[#allocation71_spill] sm:$0xff] %v5312_v13  ;;  %v5314_v0 = vld [vmem:[#allocation12 + $0x90] sm:$0xff]  ;;  %v5318_v29 = vld [vmem:[#allocation12 + $0x68] sm:$0xff] }
  0xc8   :  { %914 = vmatpush1.msra.mxu0 %v5300_v38  ;;  %985 = vmatpush1.msra.mxu1 %v5302_v47  ;;  %9026 = vst [vmem:[#allocation72_spill] sm:$0xff] %v5314_v0  ;;  %9027 = vst [vmem:[#allocation73_spill] sm:$0xff] %v5318_v29  ;;  %v5320_v38 = vld [vmem:[#allocation12 + $0x78] sm:$0xff]  ;;  %v5324_v47 = vld [vmem:[#allocation12 + $0x60] sm:$0xff] }
  0xc9   :  { %915 = vmatprep.subr.mxu0 %v5306_v56  ;;  %986 = vmatprep.subr.mxu1 %v5308_v2  ;;  %9028 = vst [vmem:[#allocation74_spill] sm:$0xff] %v5320_v38  ;;  %9029 = vst [vmem:[#allocation75_spill] sm:$0xff] %v5324_v47  ;;  %v5326_v56 = vld [vmem:[#allocation12 + $0x70] sm:$0xff]  ;;  %v5330_v2 = vld [vmem:[#allocation12 + $0x48] sm:$0xff] }
  0xca   :  { %916 = vmatpush1.msra.mxu0 %v5312_v13  ;;  %987 = vmatpush1.msra.mxu1 %v5314_v0  ;;  %9030 = vst [vmem:[#allocation76_spill] sm:$0xff] %v5326_v56  ;;  %9031 = vst [vmem:[#allocation77_spill] sm:$0xff] %v5330_v2  ;;  %v5332_v13 = vld [vmem:[#allocation12 + $0x58] sm:$0xff]  ;;  %v5336_v0 = vld [vmem:[#allocation12 + $0x40] sm:$0xff] }
  0xcb   :  { %917 = vmatprep.subr.mxu0 %v5318_v29  ;;  %988 = vmatprep.subr.mxu1 %v5320_v38  ;;  %9032 = vst [vmem:[#allocation78_spill] sm:$0xff] %v5332_v13  ;;  %9033 = vst [vmem:[#allocation79_spill] sm:$0xff] %v5336_v0  ;;  %v5338_v29 = vld [vmem:[#allocation12 + $0x50] sm:$0xff]  ;;  %v5342_v38 = vld [vmem:[#allocation12 + $0x28] sm:$0xff] }
  0xcc   :  { %918 = vmatpush1.msra.mxu0 %v5324_v47  ;;  %989 = vmatpush1.msra.mxu1 %v5326_v56  ;;  %9034 = vst [vmem:[#allocation80_spill] sm:$0xff] %v5338_v29  ;;  %9035 = vst [vmem:[#allocation81_spill] sm:$0xff] %v5342_v38  ;;  %v5344_v47 = vld [vmem:[#allocation12 + $0x38] sm:$0xff]  ;;  %v5348_v56 = vld [vmem:[#allocation12 + $0x20] sm:$0xff] }
  0xcd   :  { %919 = vmatprep.subr.mxu0 %v5330_v2  ;;  %990 = vmatprep.subr.mxu1 %v5332_v13  ;;  %9036 = vst [vmem:[#allocation82_spill] sm:$0xff] %v5344_v47  ;;  %9037 = vst [vmem:[#allocation83_spill] sm:$0xff] %v5348_v56  ;;  %v5350_v2 = vld [vmem:[#allocation12 + $0x30] sm:$0xff]  ;;  %v5354_v13 = vld [vmem:[#allocation12 + $0x8] sm:$0xff] }
  0xce   :  { %920 = vmatpush1.msra.mxu0 %v5336_v0  ;;  %991 = vmatpush1.msra.mxu1 %v5338_v29  ;;  %9038 = vst [vmem:[#allocation84_spill] sm:$0xff] %v5350_v2  ;;  %9039 = vst [vmem:[#allocation85_spill] sm:$0xff] %v5354_v13  ;;  %v5356_v0 = vld [vmem:[#allocation12 + $0x18] sm:$0xff]  ;;  %v5360_v29 = vld [vmem:[#allocation12] sm:$0xff] }
  0xcf   :  { %921 = vmatprep.subr.mxu0 %v5342_v38  ;;  %992 = vmatprep.subr.mxu1 %v5344_v47  ;;  %9040 = vst [vmem:[#allocation86_spill] sm:$0xff] %v5356_v0  ;;  %9041 = vst [vmem:[#allocation87_spill] sm:$0xff] %v5360_v29  ;;  %v5362_v38 = vld [vmem:[#allocation12 + $0x10] sm:$0xff]  ;;  %v5366_v47 = vld [vmem:[#allocation12 + $0x3e8] sm:$0xff] }
  0xd0   :  { %922 = vmatpush1.msra.mxu0 %v5348_v56  ;;  %993 = vmatpush1.msra.mxu1 %v5350_v2  ;;  %9042 = vst [vmem:[#allocation88_spill] sm:$0xff] %v5362_v38  ;;  %9043 = vst [vmem:[#allocation89_spill] sm:$0xff] %v5366_v47  ;;  %v5368_v56 = vld [vmem:[#allocation12 + $0x3f8] sm:$0xff]  ;;  %v5372_v2 = vld [vmem:[#allocation12 + $0x3e0] sm:$0xff] }
  0xd1   :  { %923 = vmatprep.subr.mxu0 %v5354_v13  ;;  %994 = vmatprep.subr.mxu1 %v5356_v0  ;;  %9044 = vst [vmem:[#allocation90_spill] sm:$0xff] %v5368_v56  ;;  %9045 = vst [vmem:[#allocation91_spill] sm:$0xff] %v5372_v2  ;;  %v5374_v13 = vld [vmem:[#allocation12 + $0x3f0] sm:$0xff]  ;;  %v5378_v0 = vld [vmem:[#allocation12 + $0x3c8] sm:$0xff] }
  0xd2   :  { %924 = vmatpush1.msra.mxu0 %v5360_v29  ;;  %995 = vmatpush1.msra.mxu1 %v5362_v38  ;;  %9046 = vst [vmem:[#allocation92_spill] sm:$0xff] %v5374_v13  ;;  %9047 = vst [vmem:[#allocation93_spill] sm:$0xff] %v5378_v0  ;;  %v5380_v29 = vld [vmem:[#allocation12 + $0x3d8] sm:$0xff]  ;;  %v5384_v38 = vld [vmem:[#allocation12 + $0x3c0] sm:$0xff] }
  0xd3   :  { %925 = vmatprep.subr.mxu0 %v5366_v47  ;;  %996 = vmatprep.subr.mxu1 %v5368_v56  ;;  %9048 = vst [vmem:[#allocation94_spill] sm:$0xff] %v5380_v29  ;;  %9049 = vst [vmem:[#allocation95_spill] sm:$0xff] %v5384_v38  ;;  %v5386_v47 = vld [vmem:[#allocation12 + $0x3d0] sm:$0xff]  ;;  %v5390_v56 = vld [vmem:[#allocation12 + $0x3a8] sm:$0xff] }
  0xd4   :  { %926 = vmatpush2.msra.mxu0 %v5372_v2  ;;  %997 = vmatpush2.msra.mxu1 %v5374_v13  ;;  %9050 = vst [vmem:[#allocation96_spill] sm:$0xff] %v5386_v47  ;;  %9051 = vst [vmem:[#allocation97_spill] sm:$0xff] %v5390_v56  ;;  %v5392_v2 = vld [vmem:[#allocation12 + $0x3b8] sm:$0xff]  ;;  %v5396_v13 = vld [vmem:[#allocation12 + $0x3a0] sm:$0xff] }
  0xd5   :  { %927 = vmatprep.subr.mxu0 %v5378_v0  ;;  %998 = vmatprep.subr.mxu1 %v5380_v29  ;;  %9052 = vst [vmem:[#allocation98_spill] sm:$0xff] %v5392_v2  ;;  %9053 = vst [vmem:[#allocation99_spill] sm:$0xff] %v5396_v13  ;;  %v5398_v0 = vld [vmem:[#allocation12 + $0x3b0] sm:$0xff]  ;;  %v5402_v29 = vld [vmem:[#allocation12 + $0x388] sm:$0xff] }
  0xd6   :  { %928 = vmatpush2.msra.mxu0 %v5384_v38  ;;  %999 = vmatpush2.msra.mxu1 %v5386_v47  ;;  %9054 = vst [vmem:[#allocation100_spill] sm:$0xff] %v5398_v0  ;;  %9055 = vst [vmem:[#allocation101_spill] sm:$0xff] %v5402_v29  ;;  %v5404_v38 = vld [vmem:[#allocation12 + $0x398] sm:$0xff]  ;;  %v5408_v47 = vld [vmem:[#allocation12 + $0x380] sm:$0xff] }
  0xd7   :  { %929 = vmatprep.subr.mxu0 %v5390_v56  ;;  %1000 = vmatprep.subr.mxu1 %v5392_v2  ;;  %9056 = vst [vmem:[#allocation102_spill] sm:$0xff] %v5404_v38  ;;  %9057 = vst [vmem:[#allocation103_spill] sm:$0xff] %v5408_v47  ;;  %v5410_v56 = vld [vmem:[#allocation12 + $0x390] sm:$0xff]  ;;  %v5414_v2 = vld [vmem:[#allocation12 + $0x368] sm:$0xff] }
  0xd8   :  { %930 = vmatpush2.msra.mxu0 %v5396_v13  ;;  %1001 = vmatpush2.msra.mxu1 %v5398_v0  ;;  %9058 = vst [vmem:[#allocation104_spill] sm:$0xff] %v5410_v56  ;;  %9059 = vst [vmem:[#allocation105_spill] sm:$0xff] %v5414_v2  ;;  %v5416_v13 = vld [vmem:[#allocation12 + $0x378] sm:$0xff]  ;;  %v5420_v0 = vld [vmem:[#allocation12 + $0x360] sm:$0xff] }
  0xd9   :  { %931 = vmatprep.subr.mxu0 %v5402_v29  ;;  %1002 = vmatprep.subr.mxu1 %v5404_v38  ;;  %9060 = vst [vmem:[#allocation106_spill] sm:$0xff] %v5416_v13  ;;  %9061 = vst [vmem:[#allocation107_spill] sm:$0xff] %v5420_v0  ;;  %v5422_v29 = vld [vmem:[#allocation12 + $0x370] sm:$0xff]  ;;  %v5426_v38 = vld [vmem:[#allocation12 + $0x348] sm:$0xff] }
  0xda   :  { %932 = vmatpush2.msra.mxu0 %v5408_v47  ;;  %1003 = vmatpush2.msra.mxu1 %v5410_v56  ;;  %9062 = vst [vmem:[#allocation108_spill] sm:$0xff] %v5422_v29  ;;  %9063 = vst [vmem:[#allocation109_spill] sm:$0xff] %v5426_v38  ;;  %v5428_v47 = vld [vmem:[#allocation12 + $0x358] sm:$0xff]  ;;  %v5432_v56 = vld [vmem:[#allocation12 + $0x340] sm:$0xff] }
  0xdb   :  { %933 = vmatprep.subr.mxu0 %v5414_v2  ;;  %1004 = vmatprep.subr.mxu1 %v5416_v13  ;;  %9064 = vst [vmem:[#allocation110_spill] sm:$0xff] %v5428_v47  ;;  %9065 = vst [vmem:[#allocation111_spill] sm:$0xff] %v5432_v56  ;;  %v5434_v2 = vld [vmem:[#allocation12 + $0x350] sm:$0xff]  ;;  %v5438_v13 = vld [vmem:[#allocation12 + $0x328] sm:$0xff] }
  0xdc   :  { %934 = vmatpush2.msra.mxu0 %v5420_v0  ;;  %1005 = vmatpush2.msra.mxu1 %v5422_v29  ;;  %9066 = vst [vmem:[#allocation112_spill] sm:$0xff] %v5434_v2  ;;  %9067 = vst [vmem:[#allocation113_spill] sm:$0xff] %v5438_v13  ;;  %v5440_v0 = vld [vmem:[#allocation12 + $0x338] sm:$0xff]  ;;  %v5444_v29 = vld [vmem:[#allocation12 + $0x320] sm:$0xff] }
  0xdd   :  { %935 = vmatprep.subr.mxu0 %v5426_v38  ;;  %1006 = vmatprep.subr.mxu1 %v5428_v47  ;;  %9068 = vst [vmem:[#allocation114_spill] sm:$0xff] %v5440_v0  ;;  %9069 = vst [vmem:[#allocation115_spill] sm:$0xff] %v5444_v29  ;;  %v5446_v38 = vld [vmem:[#allocation12 + $0x330] sm:$0xff]  ;;  %v5450_v47 = vld [vmem:[#allocation12 + $0x308] sm:$0xff] }
  0xde   :  { %936 = vmatpush2.msra.mxu0 %v5432_v56  ;;  %1007 = vmatpush2.msra.mxu1 %v5434_v2  ;;  %9070 = vst [vmem:[#allocation116_spill] sm:$0xff] %v5446_v38  ;;  %9071 = vst [vmem:[#allocation117_spill] sm:$0xff] %v5450_v47  ;;  %v5452_v56 = vld [vmem:[#allocation12 + $0x318] sm:$0xff]  ;;  %v5456_v2 = vld [vmem:[#allocation12 + $0x300] sm:$0xff] }
  0xdf   :  { %937 = vmatprep.subr.mxu0 %v5438_v13  ;;  %1008 = vmatprep.subr.mxu1 %v5440_v0  ;;  %9072 = vst [vmem:[#allocation118_spill] sm:$0xff] %v5452_v56  ;;  %9073 = vst [vmem:[#allocation119_spill] sm:$0xff] %v5456_v2  ;;  %v5458_v13 = vld [vmem:[#allocation12 + $0x310] sm:$0xff]  ;;  %v5460_v0 = vld [vmem:[#allocation12 + $0x2e8] sm:$0xff] }
  0xe0   :  { %938 = vmatpush2.msra.mxu0 %v5444_v29  ;;  %1009 = vmatpush2.msra.mxu1 %v5446_v38  ;;  %9074 = vst [vmem:[#allocation120_spill] sm:$0xff] %v5458_v13  ;;  %9075 = vst [vmem:[#allocation121_spill] sm:$0xff] %v5460_v0  ;;  %v5464_v29 = vld [vmem:[#allocation12 + $0x2f8] sm:$0xff]  ;;  %v5466_v38 = vld [vmem:[#allocation12 + $0x2e0] sm:$0xff] }
  0xe1   :  { %939 = vmatprep.subr.mxu0 %v5450_v47  ;;  %1010 = vmatprep.subr.mxu1 %v5452_v56  ;;  %9076 = vst [vmem:[#allocation122_spill] sm:$0xff] %v5464_v29  ;;  %9077 = vst [vmem:[#allocation123_spill] sm:$0xff] %v5466_v38  ;;  %v5472_v56 = vld [vmem:[#allocation12 + $0x2c8] sm:$0xff]  ;;  %v5474_v47 = vld [vmem:[#allocation12 + $0x2d8] sm:$0xff] }
  0xe2   :  { %940 = vmatpush2.msra.mxu0 %v5456_v2  ;;  %1011 = vmatpush2.msra.mxu1 %v5458_v13  ;;  %9079 = vst [vmem:[#allocation125_spill] sm:$0xff] %v5472_v56  ;;  %9080 = vst [vmem:[#allocation126_spill] sm:$0xff] %v5474_v47  ;;  %v5480_v13 = vld [vmem:[#allocation12 + $0x2d0] sm:$0xff]  ;;  %v5482_v2 = vld [vmem:[#allocation12 + $0x2a8] sm:$0xff] }
  0xe3   :  { %941 = vmatprep.subr.mxu0 %v5460_v0  ;;  %1012 = vmatprep.subr.mxu1 %v5464_v29  ;;  %9082 = vst [vmem:[#allocation128_spill] sm:$0xff] %v5480_v13  ;;  %9083 = vst [vmem:[#allocation129_spill] sm:$0xff] %v5482_v2  ;;  %v5488_v29 = vld [vmem:[#allocation12 + $0x2a0] sm:$0xff]  ;;  %v5490_v0 = vld [vmem:[#allocation12 + $0x2b0] sm:$0xff] }
  0xe4   :  { %942 = vmatpush2.msra.mxu0 %v5466_v38  ;;  %1013 = vmatpush2.msra.mxu1 %v5468_v26  ;;  %9085 = vst [vmem:[#allocation131_spill] sm:$0xff] %v5488_v29  ;;  %9086 = vst [vmem:[#allocation132_spill] sm:$0xff] %v5490_v0  ;;  %v5494_v38 = vld [vmem:[#allocation12 + $0x288] sm:$0xff]  ;;  %v5496_v26 = vld [vmem:[#allocation12 + $0x298] sm:$0xff] }
  0xe5   :  { %943 = vmatprep.subr.mxu0 %v5472_v56  ;;  %1014 = vmatprep.subr.mxu1 %v5474_v47  ;;  %9087 = vst [vmem:[#allocation133_spill] sm:$0xff] %v5494_v38  ;;  %9088 = vst [vmem:[#allocation134_spill] sm:$0xff] %v5496_v26  ;;  %v5502_v56 = vld [vmem:[#allocation12 + $0x290] sm:$0xff]  ;;  %v5506_v47 = vld [vmem:[#allocation12 + $0x268] sm:$0xff] }
  0xe6   :  { %944 = vmatpush2.msra.mxu0 %v5476_v25  ;;  %1015 = vmatpush2.msra.mxu1 %v5480_v13  ;;  %9090 = vst [vmem:[#allocation136_spill] sm:$0xff] %v5502_v56  ;;  %9091 = vst [vmem:[#allocation137_spill] sm:$0xff] %v5506_v47  ;;  %v5508_v25 = vld [vmem:[#allocation12 + $0x278] sm:$0xff]  ;;  %v5512_v13 = vld [vmem:[#allocation12 + $0x260] sm:$0xff] }
  0xe7   :  { %945 = vmatprep.subr.mxu0 %v5482_v2  ;;  %1016 = vmatprep.subr.mxu1 %v5484_v24  ;;  %9092 = vst [vmem:[#allocation138_spill] sm:$0xff] %v5508_v25  ;;  %9093 = vst [vmem:[#allocation139_spill] sm:$0xff] %v5512_v13  ;;  %v5514_v2 = vld [vmem:[#allocation12 + $0x270] sm:$0xff]  ;;  %v5518_v24 = vld [vmem:[#allocation12 + $0x248] sm:$0xff] }
  0xe8   :  { %946 = vmatpush2.msra.mxu0 %v5488_v29  ;;  %1017 = vmatpush2.msra.mxu1 %v5490_v0  ;;  %9094 = vst [vmem:[#allocation140_spill] sm:$0xff] %v5514_v2  ;;  %9095 = vst [vmem:[#allocation141_spill] sm:$0xff] %v5518_v24  ;;  %v5520_v29 = vld [vmem:[#allocation12 + $0x258] sm:$0xff]  ;;  %v5524_v0 = vld [vmem:[#allocation12 + $0x240] sm:$0xff] }
  0xe9   :  { %947 = vmatprep.subr.mxu0 %v5494_v38  ;;  %1018 = vmatprep.subr.mxu1 %v5496_v26  ;;  %9096 = vst [vmem:[#allocation142_spill] sm:$0xff] %v5520_v29  ;;  %9097 = vst [vmem:[#allocation143_spill] sm:$0xff] %v5524_v0  ;;  %v5526_v38 = vld [vmem:[#allocation12 + $0x250] sm:$0xff]  ;;  %v5530_v26 = vld [vmem:[#allocation12 + $0x228] sm:$0xff] }
  0xea   :  { %948 = vmatpush2.msra.mxu0 %v5500_v23  ;;  %1019 = vmatpush2.msra.mxu1 %v5502_v56  ;;  %9098 = vst [vmem:[#allocation144_spill] sm:$0xff] %v5526_v38  ;;  %9099 = vst [vmem:[#allocation145_spill] sm:$0xff] %v5530_v26  ;;  %v5532_v23 = vld [vmem:[#allocation12 + $0x238] sm:$0xff]  ;;  %v5536_v56 = vld [vmem:[#allocation12 + $0x220] sm:$0xff] }
  0xeb   :  { %949 = vmatprep.subr.mxu0 %v5506_v47  ;;  %1020 = vmatprep.subr.mxu1 %v5508_v25  ;;  %9100 = vst [vmem:[#allocation146_spill] sm:$0xff] %v5532_v23  ;;  %9101 = vst [vmem:[#allocation147_spill] sm:$0xff] %v5536_v56  ;;  %v5538_v47 = vld [vmem:[#allocation12 + $0x230] sm:$0xff]  ;;  %v5542_v25 = vld [vmem:[#allocation12 + $0x208] sm:$0xff] }
  0xec   :  { %950 = vmatpush2.msra.mxu0 %v5512_v13  ;;  %1021 = vmatpush2.msra.mxu1 %v5514_v2  ;;  %9102 = vst [vmem:[#allocation148_spill] sm:$0xff] %v5538_v47  ;;  %9103 = vst [vmem:[#allocation149_spill] sm:$0xff] %v5542_v25  ;;  %v5544_v13 = vld [vmem:[#allocation12 + $0x218] sm:$0xff]  ;;  %v5548_v2 = vld [vmem:[#allocation12 + $0x200] sm:$0xff] }
  0xed   :  { %951 = vmatprep.subr.mxu0 %v5518_v24  ;;  %1022 = vmatprep.subr.mxu1 %v5520_v29  ;;  %9104 = vst [vmem:[#allocation150_spill] sm:$0xff] %v5544_v13  ;;  %9105 = vst [vmem:[#allocation151_spill] sm:$0xff] %v5548_v2  ;;  %v5550_v24 = vld [vmem:[#allocation12 + $0x210] sm:$0xff]  ;;  %v716_v29 = vld [vmem:[#allocation6 + $0x8] sm:$0xff] }
  0xee   :  { %952 = vmatpush2.msra.mxu0 %v5524_v0  ;;  %1023 = vmatpush2.msra.mxu1 %v5526_v38  ;;  %9106 = vst [vmem:[#allocation152_spill] sm:$0xff] %v5550_v24 }
  0xef   :  { %953 = vmatprep.subr.mxu0 %v5530_v26  ;;  %1024 = vmatprep.subr.mxu1 %v5532_v23  ;;  %v220_v23 = vlaneseq }
  0xf0   :  { %954 = vmatpush2.msra.mxu0 %v5536_v56  ;;  %1025 = vmatpush2.msra.mxu1 %v5538_v47 }
  0xf1   :  { %955 = vmatprep.subr.mxu0 %v5542_v25  ;;  %1026 = vmatprep.subr.mxu1 %v5544_v13  ;;  %v5560_v26 = vshrl.u32 %v220_v23, 7 }
  0xf2   :  { %956 = vmatpush2.msra.mxu0 %v5548_v2  ;;  %1027 = vmatpush2.msra.mxu1 %v5550_v24  ;;  %v218_v24 = vld [vmem:[%s8425_s5] sm:$0xf] }
  0xf3   :  { %957 = vmatprep.mubr.f32.mxu0 %v716_v29  ;;  %1028 = vmatprep.mubr.f32.mxu1 %v716_v29  ;;  %v8559_v25 = vsub.s32 0, %v5560_v26  ;;  %v8561_v13 = vsub.s32 2, %v5560_v26  ;;  %v8566_v23 = vsub.s32 3, %v5560_v26 }
  0xf4   :  { %1079 = vmatprep.subr.mxu0 %v5026_v3  ;;  %1150 = vmatprep.subr.mxu1 %v5028_v4  ;;  %v8565_v4 = vsub.s32 1, %v5560_v26 }
  0xf5   :  { %v223_v2 = vrot.slane %v218_v24, %v8559_v25  ;;  %v5581_v38 = vrot.slane %v218_v24, %v8561_v13  ;;  %v5587_v20 = vrot.slane %v218_v24, %v8566_v23 }
  0xf6   :  { %v227_v21 = vrot.slane %v218_v24, %v8565_v4 }
 0x142   :  { %v5562_v56 = vpop.f32.mrf.mxu0  ;;  %v5564_v47 = vpop.f32.mrf.mxu1 }
 0x144   :  { %v5571_v29 = vpop.f32.mrf.mxu0  ;;  %v5573_v3 = vpop.f32.mrf.mxu1 }
 0x148   :  { %v312_v0 = vpop.f32.mrf.mxu0  ;;  %v425_v22 = vpop.f32.mrf.mxu1 }
 0x149   :  { %v5589_v19 = vadd.f32 %v312_v0, %v223_v2  ;;  %v5592_v18 = vadd.f32 %v425_v22, %v5581_v38 }
 0x14a   :  { %v314_v17 = vpop.f32.mrf.mxu0  ;;  %v427_v25 = vpop.f32.mrf.mxu1 }
 0x14b   :  { %9107 = vst [vmem:[#allocation153_spill] sm:$0xff] %v5589_v19  ;;  %9108 = vst [vmem:[#allocation154_spill] sm:$0xff] %v5592_v18  ;;  %v5594_v16 = vadd.f32 %v314_v17, %v227_v21  ;;  %v5597_v13 = vadd.f32 %v427_v25, %v5587_v20 }
 0x14d   :  { %9109 = vst [vmem:[#allocation155_spill] sm:$0xff] %v5594_v16  ;;  %9110 = vst [vmem:[#allocation156_spill] sm:$0xff] %v5597_v13 }
 0x14e   :  { %v318_v15 = vpop.f32.mrf.mxu0  ;;  %v431_v14 = vpop.f32.mrf.mxu1 }
 0x14f   :  { %v5599_v12 = vadd.f32 %v318_v15, %v223_v2  ;;  %v5602_v4 = vadd.f32 %v431_v14, %v5581_v38 }
 0x150   :  { %v320_v24 = vpop.f32.mrf.mxu0  ;;  %v433_v0 = vpop.f32.mrf.mxu1 }
 0x151   :  { %9111 = vst [vmem:[#allocation157_spill] sm:$0xff] %v5599_v12  ;;  %9112 = vst [vmem:[#allocation158_spill] sm:$0xff] %v5602_v4  ;;  %v5604_v23 = vadd.f32 %v320_v24, %v227_v21  ;;  %v5607_v22 = vadd.f32 %v433_v0, %v5587_v20 }
 0x153   :  { %9113 = vst [vmem:[#allocation159_spill] sm:$0xff] %v5604_v23  ;;  %9114 = vst [vmem:[#allocation160_spill] sm:$0xff] %v5607_v22 }
 0x154   :  { %v324_v18 = vpop.f32.mrf.mxu0  ;;  %v437_v17 = vpop.f32.mrf.mxu1 }
 0x155   :  { %v5609_v16 = vadd.f32 %v324_v18, %v223_v2  ;;  %v5612_v25 = vadd.f32 %v437_v17, %v5581_v38 }
 0x156   :  { %v326_v13 = vpop.f32.mrf.mxu0  ;;  %v439_v15 = vpop.f32.mrf.mxu1 }
 0x157   :  { %9115 = vst [vmem:[#allocation161_spill] sm:$0xff] %v5609_v16  ;;  %9116 = vst [vmem:[#allocation162_spill] sm:$0xff] %v5612_v25  ;;  %v5614_v12 = vadd.f32 %v326_v13, %v227_v21  ;;  %v5617_v14 = vadd.f32 %v439_v15, %v5587_v20 }
 0x159   :  { %9117 = vst [vmem:[#allocation163_spill] sm:$0xff] %v5614_v12  ;;  %9118 = vst [vmem:[#allocation164_spill] sm:$0xff] %v5617_v14 }
 0x15a   :  { %v330_v4 = vpop.f32.mrf.mxu0  ;;  %v443_v24 = vpop.f32.mrf.mxu1 }
 0x15b   :  { %v5619_v23 = vadd.f32 %v330_v4, %v223_v2  ;;  %v5622_v0 = vadd.f32 %v443_v24, %v5581_v38 }
 0x15c   :  { %v332_v22 = vpop.f32.mrf.mxu0  ;;  %v445_v18 = vpop.f32.mrf.mxu1 }
 0x15d   :  { %9119 = vst [vmem:[#allocation165_spill] sm:$0xff] %v5619_v23  ;;  %9120 = vst [vmem:[#allocation166_spill] sm:$0xff] %v5622_v0  ;;  %v5624_v16 = vadd.f32 %v332_v22, %v227_v21  ;;  %v5627_v17 = vadd.f32 %v445_v18, %v5587_v20 }
 0x15f   :  { %9121 = vst [vmem:[#allocation167_spill] sm:$0xff] %v5624_v16  ;;  %9122 = vst [vmem:[#allocation168_spill] sm:$0xff] %v5627_v17 }
 0x160   :  { %v336_v25 = vpop.f32.mrf.mxu0  ;;  %v449_v13 = vpop.f32.mrf.mxu1 }
 0x161   :  { %v5629_v12 = vadd.f32 %v336_v25, %v223_v2  ;;  %v5632_v15 = vadd.f32 %v449_v13, %v5581_v38 }
 0x162   :  { %v338_v14 = vpop.f32.mrf.mxu0  ;;  %v451_v4 = vpop.f32.mrf.mxu1 }
 0x163   :  { %9123 = vst [vmem:[#allocation169_spill] sm:$0xff] %v5629_v12  ;;  %9124 = vst [vmem:[#allocation170_spill] sm:$0xff] %v5632_v15  ;;  %v5634_v23 = vadd.f32 %v338_v14, %v227_v21  ;;  %v5637_v24 = vadd.f32 %v451_v4, %v5587_v20 }
 0x165   :  { %9125 = vst [vmem:[#allocation171_spill] sm:$0xff] %v5634_v23  ;;  %9126 = vst [vmem:[#allocation172_spill] sm:$0xff] %v5637_v24 }
 0x166   :  { %v342_v0 = vpop.f32.mrf.mxu0  ;;  %v455_v22 = vpop.f32.mrf.mxu1 }
 0x167   :  { %v5639_v16 = vadd.f32 %v342_v0, %v223_v2  ;;  %v5642_v18 = vadd.f32 %v455_v22, %v5581_v38 }
 0x168   :  { %v344_v17 = vpop.f32.mrf.mxu0  ;;  %v457_v25 = vpop.f32.mrf.mxu1 }
 0x169   :  { %9127 = vst [vmem:[#allocation173_spill] sm:$0xff] %v5639_v16  ;;  %9128 = vst [vmem:[#allocation174_spill] sm:$0xff] %v5642_v18  ;;  %v5644_v12 = vadd.f32 %v344_v17, %v227_v21  ;;  %v5647_v13 = vadd.f32 %v457_v25, %v5587_v20  ;;  %v307_v17 = vadd.f32 %v5562_v56, %v223_v2 }
 0x16a   :  { %v309_v25 = vadd.f32 %v5571_v29, %v227_v21 }
 0x16b   :  { %9129 = vst [vmem:[#allocation175_spill] sm:$0xff] %v5644_v12  ;;  %9130 = vst [vmem:[#allocation176_spill] sm:$0xff] %v5647_v13 }
 0x16c   :  { %v348_v15 = vpop.f32.mrf.mxu0  ;;  %v461_v14 = vpop.f32.mrf.mxu1 }
 0x16d   :  { %v5649_v23 = vadd.f32 %v348_v15, %v223_v2  ;;  %v5652_v4 = vadd.f32 %v461_v14, %v5581_v38 }
 0x16e   :  { %v350_v24 = vpop.f32.mrf.mxu0  ;;  %v463_v0 = vpop.f32.mrf.mxu1 }
 0x16f   :  { %9131 = vst [vmem:[#allocation177_spill] sm:$0xff] %v5649_v23  ;;  %9132 = vst [vmem:[#allocation178_spill] sm:$0xff] %v5652_v4  ;;  %v5654_v16 = vadd.f32 %v350_v24, %v227_v21  ;;  %v5657_v22 = vadd.f32 %v463_v0, %v5587_v20  ;;  %v422_v24 = vadd.f32 %v5573_v3, %v5587_v20 }
 0x170   :  { %v420_v0 = vadd.f32 %v5564_v47, %v5581_v38 }
 0x171   :  { %9133 = vst [vmem:[#allocation179_spill] sm:$0xff] %v5654_v16  ;;  %9134 = vst [vmem:[#allocation180_spill] sm:$0xff] %v5657_v22 }
 0x172   :  { %v789_v18 = vpop.f32.mrf.mxu0  ;;  %v860_v23 = vpop.f32.mrf.mxu1 }
 0x173   :  { %v865_v13 = vadd.f32 %v789_v18, %v307_v17  ;;  %v867_v22 = vadd.f32 %v860_v23, %v420_v0  ;;  %v5672_v23 = vld [vmem:[#allocation11 + $0x1e0] sm:$0xff] }
 0x174   :  { %v791_v12 = vpop.f32.mrf.mxu0  ;;  %v862_v4 = vpop.f32.mrf.mxu1  ;;  %v5684_v0 = vld [vmem:[#allocation11 + $0x1c0] sm:$0xff] }
 0x175   :  { %v3689_v19 = vmul.f32 -1.442695, %v865_v13  ;;  %v866_v15 = vadd.f32 %v791_v12, %v309_v25  ;;  %v868_v16 = vadd.f32 %v862_v4, %v422_v24  ;;  %v714_v13 = vld [vmem:[#allocation8] sm:$0xff]  ;;  %v5681_v24 = vld [vmem:[#allocation11 + $0x1d8] sm:$0xff] }
 0x177   :  { %3805 = vpow2.f32 %v3689_v19  ;;  %v3690_v14 = vmul.f32 -1.442695, %v866_v15  ;;  %v3691_v56 = vmul.f32 -1.442695, %v868_v16 }
 0x179   :  { %3807 = vpow2.f32 %v3690_v14  ;;  %v5678_v14 = vld [vmem:[#allocation11 + $0x1c8] sm:$0xff] }
 0x17a   :  { %3809 = vpow2.f32 %v3691_v56  ;;  %v5687_v56 = vld [vmem:[#allocation11 + $0x1d0] sm:$0xff] }
 0x184   :  { %v3806_v2 = vpop.eup %3805 }
 0x185   :  { %v872_v21 = vadd.f32 1.0, %v3806_v2  ;;  %v5690_v2 = vld [vmem:[#allocation11 + $0x1a8] sm:$0xff] }
 0x186   :  { %v3808_v29 = vpop.eup %3807 }
 0x187   :  { %3811 = vrcp.f32 %v872_v21  ;;  %v878_v12 = vadd.f32 1.0, %v3808_v29  ;;  %v3810_v19 = vpop.eup %3809  ;;  %v5693_v21 = vld [vmem:[#allocation11 + $0x1b8] sm:$0xff]  ;;  %v5696_v29 = vld [vmem:[#allocation11 + $0x1a0] sm:$0xff] }
 0x188   :  { %3813 = vtanh.f32 %v867_v22  ;;  %v885_v20 = vadd.f32 1.0, %v3810_v19  ;;  %v5675_v22 = vld [vmem:[#allocation11 + $0x1f0] sm:$0xff]  ;;  %v5702_v19 = vld [vmem:[#allocation11 + $0x188] sm:$0xff] }
 0x189   :  { %3815 = vrcp.f32 %v878_v12  ;;  %v5699_v12 = vld [vmem:[#allocation11 + $0x1b0] sm:$0xff] }
 0x18a   :  { %3817 = vrcp.f32 %v885_v20  ;;  %v5717_v20 = vld [vmem:[#allocation11 + $0x178] sm:$0xff] }
 0x194   :  { %v3812_v18 = vpop.eup %3811 }
 0x195   :  { %v3814_v17 = vpop.eup %3813 }
 0x196   :  { %v3816_v25 = vpop.eup %3815  ;;  %v889_v3 = vmul.f32 %v3814_v17, %v3812_v18  ;;  %v5705_v18 = vld [vmem:[#allocation11 + $0x198] sm:$0xff]  ;;  %v5711_v17 = vld [vmem:[#allocation11 + $0x190] sm:$0xff] }
 0x197   :  { %v888_v4 = vmul.f32 %v3816_v25, %v714_v13  ;;  %v3818_v16 = vpop.eup %3817  ;;  %v5708_v13 = vld [vmem:[#allocation11 + $0x180] sm:$0xff]  ;;  %v5714_v25 = vld [vmem:[#allocation11 + $0x168] sm:$0xff] }
 0x199   :  { %v5665_v15 = vadd.f32 %v889_v3, %v888_v4  ;;  %v5720_v3 = vld [vmem:[#allocation11 + $0x160] sm:$0xff]  ;;  %v5723_v4 = vld [vmem:[#allocation11 + $0x170] sm:$0xff] }
 0x19b   :  { %3819 = vtanh.f32 %v5665_v15 }
 0x1a8   :  { %v3820_v38 = vpop.eup %3819 }
 0x1a9   :  { %v5668_v47 = vmul.f32 %v3820_v38, %v3818_v16  ;;  %v5726_v16 = vld [vmem:[#allocation11 + $0x148] sm:$0xff]  ;;  %v5729_v38 = vld [vmem:[#allocation11 + $0x158] sm:$0xff] }
 0x1ab   :  { %958 = vmatmul.mubr.f32.vlgmr.msra.gmra.mxu0 %v5668_v47  ;;  %1029 = vmatmul.mubr.f32.vlgmr.msra.gmra.mxu1 %v5668_v47 }
 0x1ac   :  { %1080 = vmatpush1.msra.mxu0 %v5672_v23  ;;  %1151 = vmatpush1.msra.mxu1 %v5675_v22 }
 0x1ad   :  { %1081 = vmatprep.subr.mxu0 %v5678_v14  ;;  %1152 = vmatprep.subr.mxu1 %v5681_v24 }
 0x1ae   :  { %1082 = vmatpush1.msra.mxu0 %v5684_v0  ;;  %1153 = vmatpush1.msra.mxu1 %v5687_v56 }
 0x1af   :  { %1083 = vmatprep.subr.mxu0 %v5690_v2  ;;  %1154 = vmatprep.subr.mxu1 %v5693_v21 }
 0x1b0   :  { %1084 = vmatpush1.msra.mxu0 %v5696_v29  ;;  %1155 = vmatpush1.msra.mxu1 %v5699_v12 }
 0x1b1   :  { %1085 = vmatprep.subr.mxu0 %v5702_v19  ;;  %1156 = vmatprep.subr.mxu1 %v5705_v18 }
 0x1b2   :  { %1086 = vmatpush1.msra.mxu0 %v5708_v13  ;;  %1157 = vmatpush1.msra.mxu1 %v5711_v17 }
 0x1b3   :  { %1087 = vmatprep.subr.mxu0 %v5714_v25  ;;  %1158 = vmatprep.subr.mxu1 %v5717_v20 }
 0x1b4   :  { %1088 = vmatpush1.msra.mxu0 %v5720_v3  ;;  %1159 = vmatpush1.msra.mxu1 %v5723_v4 }
 0x1b5   :  { %1089 = vmatprep.subr.mxu0 %v5726_v16  ;;  %1160 = vmatprep.subr.mxu1 %v5729_v38 }
 0x1b6   :  { %1090 = vmatpush1.msra.mxu0 %v5036_v27  ;;  %1161 = vmatpush1.msra.mxu1 %v5038_v28  ;;  %v9135_v27 = vmov 0.0   ;;  %v9136_v28 = vld [vmem:[#allocation24_spill] sm:$0xff] }
 0x1b7   :  { %1091 = vmatprep.subr.mxu0 %v5042_v30  ;;  %1162 = vmatprep.subr.mxu1 %v5044_v31  ;;  %v9137_v30 = vld [vmem:[#allocation25_spill] sm:$0xff]  ;;  %v9138_v31 = vld [vmem:[#allocation26_spill] sm:$0xff] }
 0x1b8   :  { %1092 = vmatpush1.msra.mxu0 %v5048_v32  ;;  %1163 = vmatpush1.msra.mxu1 %v5050_v33  ;;  %v9139_v32 = vld [vmem:[#allocation27_spill] sm:$0xff]  ;;  %v9140_v33 = vld [vmem:[#allocation28_spill] sm:$0xff] }
 0x1b9   :  { %1093 = vmatprep.subr.mxu0 %v5052_v34  ;;  %1164 = vmatprep.subr.mxu1 %v5054_v35  ;;  %v9141_v34 = vld [vmem:[#allocation29_spill] sm:$0xff]  ;;  %v9142_v35 = vld [vmem:[#allocation30_spill] sm:$0xff] }
 0x1ba   :  { %1094 = vmatpush1.msra.mxu0 %v5060_v36  ;;  %1165 = vmatpush1.msra.mxu1 %v5062_v37  ;;  %v9143_v36 = vld [vmem:[#allocation31_spill] sm:$0xff]  ;;  %v9144_v37 = vld [vmem:[#allocation32_spill] sm:$0xff] }
 0x1bb   :  { %1095 = vmatprep.subr.mxu0 %v5068_v39  ;;  %1166 = vmatprep.subr.mxu1 %v5070_v40  ;;  %v9145_v39 = vld [vmem:[#allocation33_spill] sm:$0xff]  ;;  %v9146_v40 = vld [vmem:[#allocation34_spill] sm:$0xff] }
 0x1bc   :  { %1096 = vmatpush1.msra.mxu0 %v5074_v41  ;;  %1167 = vmatpush1.msra.mxu1 %v5076_v42  ;;  %v9147_v41 = vld [vmem:[#allocation35_spill] sm:$0xff]  ;;  %v9148_v42 = vld [vmem:[#allocation36_spill] sm:$0xff] }
 0x1bd   :  { %1097 = vmatprep.subr.mxu0 %v5078_v43  ;;  %1168 = vmatprep.subr.mxu1 %v5080_v44  ;;  %v9149_v43 = vld [vmem:[#allocation37_spill] sm:$0xff]  ;;  %v9150_v44 = vld [vmem:[#allocation38_spill] sm:$0xff] }
 0x1be   :  { %1098 = vmatpush1.msra.mxu0 %v5086_v45  ;;  %1169 = vmatpush1.msra.mxu1 %v5088_v46  ;;  %v9151_v45 = vld [vmem:[#allocation39_spill] sm:$0xff]  ;;  %v9152_v46 = vld [vmem:[#allocation40_spill] sm:$0xff] }
 0x1bf   :  { %1099 = vmatprep.subr.mxu0 %v5094_v48  ;;  %1170 = vmatprep.subr.mxu1 %v5096_v49  ;;  %v9153_v48 = vld [vmem:[#allocation41_spill] sm:$0xff]  ;;  %v9154_v49 = vld [vmem:[#allocation42_spill] sm:$0xff] }
 0x1c0   :  { %1100 = vmatpush1.msra.mxu0 %v5100_v50  ;;  %1171 = vmatpush1.msra.mxu1 %v5102_v51  ;;  %v9155_v50 = vld [vmem:[#allocation43_spill] sm:$0xff]  ;;  %v9156_v51 = vld [vmem:[#allocation44_spill] sm:$0xff] }
 0x1c1   :  { %1101 = vmatprep.subr.mxu0 %v5104_v52  ;;  %1172 = vmatprep.subr.mxu1 %v5106_v53  ;;  %v9157_v52 = vld [vmem:[#allocation45_spill] sm:$0xff]  ;;  %v9158_v53 = vld [vmem:[#allocation46_spill] sm:$0xff] }
 0x1c2   :  { %1102 = vmatpush1.msra.mxu0 %v5112_v54  ;;  %1173 = vmatpush1.msra.mxu1 %v5114_v55  ;;  %v9159_v54 = vld [vmem:[#allocation47_spill] sm:$0xff]  ;;  %v9160_v55 = vld [vmem:[#allocation48_spill] sm:$0xff] }
 0x1c3   :  { %1103 = vmatprep.subr.mxu0 %v5120_v57  ;;  %1174 = vmatprep.subr.mxu1 %v5122_v58  ;;  %v9161_v57 = vld [vmem:[#allocation49_spill] sm:$0xff]  ;;  %v9162_v58 = vld [vmem:[#allocation50_spill] sm:$0xff] }
 0x1c4   :  { %1104 = vmatpush1.msra.mxu0 %v5126_v59  ;;  %1175 = vmatpush1.msra.mxu1 %v5128_v60  ;;  %v9163_v59 = vld [vmem:[#allocation51_spill] sm:$0xff]  ;;  %v9164_v60 = vld [vmem:[#allocation52_spill] sm:$0xff] }
 0x1c5   :  { %1105 = vmatprep.subr.mxu0 %v5130_v61  ;;  %1176 = vmatprep.subr.mxu1 %v5132_v62  ;;  %v9165_v61 = vld [vmem:[#allocation53_spill] sm:$0xff]  ;;  %v9166_v62 = vld [vmem:[#allocation54_spill] sm:$0xff] }
 0x1c6   :  { %1106 = vmatpush1.msra.mxu0 %v5138_v63  ;;  %1177 = vmatpush1.msra.mxu1 %v5140_v1  ;;  %v9167_v63 = vld [vmem:[#allocation55_spill] sm:$0xff]  ;;  %v9168_v1 = vld [vmem:[#allocation56_spill] sm:$0xff] }
 0x1c7   :  { %1107 = vmatprep.subr.mxu0 %v5146_v5  ;;  %1178 = vmatprep.subr.mxu1 %v5148_v6  ;;  %v9169_v5 = vld [vmem:[#allocation57_spill] sm:$0xff]  ;;  %v9170_v6 = vld [vmem:[#allocation58_spill] sm:$0xff] }
 0x1c8   :  { %1108 = vmatpush1.msra.mxu0 %v5152_v7  ;;  %1179 = vmatpush1.msra.mxu1 %v5154_v8  ;;  %v9171_v7 = vld [vmem:[#allocation59_spill] sm:$0xff]  ;;  %v9172_v8 = vld [vmem:[#allocation60_spill] sm:$0xff] }
 0x1c9   :  { %1109 = vmatprep.subr.mxu0 %v5156_v9  ;;  %1180 = vmatprep.subr.mxu1 %v5158_v10  ;;  %v9173_v9 = vld [vmem:[#allocation61_spill] sm:$0xff]  ;;  %v9174_v10 = vld [vmem:[#allocation62_spill] sm:$0xff] }
 0x1ca   :  { %1110 = vmatpush1.msra.mxu0 %v5162_v11  ;;  %1143 = vmatprep.mubr.f32.mxu0 %v9135_v27  ;;  %v9175_v11 = vld [vmem:[#allocation63_spill] sm:$0xff] }
 0x1cb   :  { %1181 = vmatpush1.msra.mxu1 %v9136_v28  ;;  %1214 = vmatprep.mubr.f32.mxu1 %v9135_v27  ;;  %v9177_v28 = vld [vmem:[#allocation65_spill] sm:$0xff] }
 0x1cc   :  { %1144 = vmatmul.mubr.f32.vlgmr.msra.gmra.mxu0 %v5668_v47  ;;  %1215 = vmatmul.mubr.f32.vlgmr.msra.gmra.mxu1 %v5668_v47  ;;  %v9176_v47 = vld [vmem:[#allocation64_spill] sm:$0xff] }
 0x1cd   :  { %1249 = vmatprep.subr.mxu0 %v9137_v30  ;;  %1320 = vmatprep.subr.mxu1 %v9138_v31  ;;  %v9178_v30 = vld [vmem:[#allocation66_spill] sm:$0xff]  ;;  %v9179_v31 = vld [vmem:[#allocation67_spill] sm:$0xff] }
 0x1ce   :  { %1250 = vmatpush1.msra.mxu0 %v9139_v32  ;;  %1321 = vmatpush1.msra.mxu1 %v9140_v33  ;;  %v9180_v32 = vld [vmem:[#allocation68_spill] sm:$0xff]  ;;  %v9181_v33 = vld [vmem:[#allocation69_spill] sm:$0xff] }
 0x1cf   :  { %1251 = vmatprep.subr.mxu0 %v9141_v34  ;;  %1322 = vmatprep.subr.mxu1 %v9142_v35  ;;  %v9182_v34 = vld [vmem:[#allocation70_spill] sm:$0xff]  ;;  %v9183_v35 = vld [vmem:[#allocation71_spill] sm:$0xff] }
 0x1d0   :  { %1252 = vmatpush1.msra.mxu0 %v9143_v36  ;;  %1323 = vmatpush1.msra.mxu1 %v9144_v37  ;;  %v9184_v36 = vld [vmem:[#allocation72_spill] sm:$0xff]  ;;  %v9185_v37 = vld [vmem:[#allocation73_spill] sm:$0xff] }
 0x1d1   :  { %1253 = vmatprep.subr.mxu0 %v9145_v39  ;;  %1324 = vmatprep.subr.mxu1 %v9146_v40  ;;  %v9186_v39 = vld [vmem:[#allocation74_spill] sm:$0xff]  ;;  %v9187_v40 = vld [vmem:[#allocation75_spill] sm:$0xff] }
 0x1d2   :  { %1254 = vmatpush1.msra.mxu0 %v9147_v41  ;;  %1325 = vmatpush1.msra.mxu1 %v9148_v42  ;;  %v9188_v41 = vld [vmem:[#allocation76_spill] sm:$0xff]  ;;  %v9189_v42 = vld [vmem:[#allocation77_spill] sm:$0xff] }
 0x1d3   :  { %1255 = vmatprep.subr.mxu0 %v9149_v43  ;;  %1326 = vmatprep.subr.mxu1 %v9150_v44  ;;  %v9190_v43 = vld [vmem:[#allocation78_spill] sm:$0xff]  ;;  %v9191_v44 = vld [vmem:[#allocation79_spill] sm:$0xff] }
 0x1d4   :  { %1256 = vmatpush1.msra.mxu0 %v9151_v45  ;;  %1327 = vmatpush1.msra.mxu1 %v9152_v46  ;;  %v9192_v45 = vld [vmem:[#allocation80_spill] sm:$0xff]  ;;  %v9193_v46 = vld [vmem:[#allocation81_spill] sm:$0xff] }
 0x1d5   :  { %1257 = vmatprep.subr.mxu0 %v9153_v48  ;;  %1328 = vmatprep.subr.mxu1 %v9154_v49  ;;  %v9194_v48 = vld [vmem:[#allocation82_spill] sm:$0xff]  ;;  %v9195_v49 = vld [vmem:[#allocation83_spill] sm:$0xff] }
 0x1d6   :  { %1258 = vmatpush1.msra.mxu0 %v9155_v50  ;;  %1329 = vmatpush1.msra.mxu1 %v9156_v51  ;;  %v9196_v50 = vld [vmem:[#allocation84_spill] sm:$0xff]  ;;  %v9197_v51 = vld [vmem:[#allocation85_spill] sm:$0xff] }
 0x1d7   :  { %1259 = vmatprep.subr.mxu0 %v9157_v52  ;;  %1330 = vmatprep.subr.mxu1 %v9158_v53  ;;  %v9198_v52 = vld [vmem:[#allocation86_spill] sm:$0xff]  ;;  %v9199_v53 = vld [vmem:[#allocation87_spill] sm:$0xff] }
 0x1d8   :  { %1260 = vmatpush1.msra.mxu0 %v9159_v54  ;;  %1331 = vmatpush1.msra.mxu1 %v9160_v55  ;;  %v9200_v54 = vld [vmem:[#allocation88_spill] sm:$0xff]  ;;  %v9201_v55 = vld [vmem:[#allocation89_spill] sm:$0xff] }
 0x1d9   :  { %1261 = vmatprep.subr.mxu0 %v9161_v57  ;;  %1332 = vmatprep.subr.mxu1 %v9162_v58  ;;  %v9202_v57 = vld [vmem:[#allocation90_spill] sm:$0xff]  ;;  %v9203_v58 = vld [vmem:[#allocation91_spill] sm:$0xff] }
 0x1da   :  { %1262 = vmatpush1.msra.mxu0 %v9163_v59  ;;  %1333 = vmatpush1.msra.mxu1 %v9164_v60  ;;  %v9204_v59 = vld [vmem:[#allocation92_spill] sm:$0xff]  ;;  %v9205_v60 = vld [vmem:[#allocation93_spill] sm:$0xff] }
 0x1db   :  { %1263 = vmatprep.subr.mxu0 %v9165_v61  ;;  %1334 = vmatprep.subr.mxu1 %v9166_v62  ;;  %v9206_v61 = vld [vmem:[#allocation94_spill] sm:$0xff]  ;;  %v9207_v62 = vld [vmem:[#allocation95_spill] sm:$0xff] }
 0x1dc   :  { %1264 = vmatpush1.msra.mxu0 %v9167_v63  ;;  %1335 = vmatpush1.msra.mxu1 %v9168_v1  ;;  %v9208_v63 = vld [vmem:[#allocation96_spill] sm:$0xff]  ;;  %v9209_v1 = vld [vmem:[#allocation97_spill] sm:$0xff] }
 0x1dd   :  { %1265 = vmatprep.subr.mxu0 %v9169_v5  ;;  %1336 = vmatprep.subr.mxu1 %v9170_v6  ;;  %v9210_v5 = vld [vmem:[#allocation98_spill] sm:$0xff]  ;;  %v9211_v6 = vld [vmem:[#allocation99_spill] sm:$0xff] }
 0x1de   :  { %1266 = vmatpush1.msra.mxu0 %v9171_v7  ;;  %1337 = vmatpush1.msra.mxu1 %v9172_v8  ;;  %v9212_v7 = vld [vmem:[#allocation100_spill] sm:$0xff]  ;;  %v9213_v8 = vld [vmem:[#allocation101_spill] sm:$0xff] }
 0x1df   :  { %1267 = vmatprep.subr.mxu0 %v9173_v9  ;;  %1338 = vmatprep.subr.mxu1 %v9174_v10  ;;  %v9214_v9 = vld [vmem:[#allocation102_spill] sm:$0xff]  ;;  %v9215_v10 = vld [vmem:[#allocation103_spill] sm:$0xff] }
 0x1e0   :  { %1268 = vmatpush1.msra.mxu0 %v9175_v11  ;;  %1339 = vmatpush1.msra.mxu1 %v9176_v47  ;;  %v9216_v11 = vld [vmem:[#allocation104_spill] sm:$0xff]  ;;  %v9217_v47 = vld [vmem:[#allocation105_spill] sm:$0xff] }
 0x1e1   :  { %1269 = vmatprep.subr.mxu0 %v9177_v28  ;;  %1340 = vmatprep.subr.mxu1 %v9178_v30  ;;  %v9218_v28 = vld [vmem:[#allocation106_spill] sm:$0xff]  ;;  %v9219_v30 = vld [vmem:[#allocation107_spill] sm:$0xff] }
 0x1e2   :  { %1270 = vmatpush1.msra.mxu0 %v9179_v31  ;;  %1341 = vmatpush1.msra.mxu1 %v9180_v32  ;;  %v9220_v31 = vld [vmem:[#allocation108_spill] sm:$0xff]  ;;  %v9221_v32 = vld [vmem:[#allocation109_spill] sm:$0xff] }
 0x1e3   :  { %1271 = vmatprep.subr.mxu0 %v9181_v33  ;;  %1342 = vmatprep.subr.mxu1 %v9182_v34  ;;  %v9222_v33 = vld [vmem:[#allocation110_spill] sm:$0xff]  ;;  %v9223_v34 = vld [vmem:[#allocation111_spill] sm:$0xff] }
 0x1e4   :  { %1272 = vmatpush1.msra.mxu0 %v9183_v35  ;;  %1343 = vmatpush1.msra.mxu1 %v9184_v36  ;;  %v9224_v35 = vld [vmem:[#allocation112_spill] sm:$0xff]  ;;  %v9225_v36 = vld [vmem:[#allocation113_spill] sm:$0xff] }
 0x1e5   :  { %1273 = vmatprep.subr.mxu0 %v9185_v37  ;;  %1344 = vmatprep.subr.mxu1 %v9186_v39  ;;  %v9226_v37 = vld [vmem:[#allocation114_spill] sm:$0xff]  ;;  %v9227_v39 = vld [vmem:[#allocation115_spill] sm:$0xff] }
 0x1e6   :  { %1274 = vmatpush1.msra.mxu0 %v9187_v40  ;;  %1345 = vmatpush1.msra.mxu1 %v9188_v41  ;;  %v9228_v40 = vld [vmem:[#allocation116_spill] sm:$0xff]  ;;  %v9229_v41 = vld [vmem:[#allocation117_spill] sm:$0xff] }
 0x1e7   :  { %1275 = vmatprep.subr.mxu0 %v9189_v42  ;;  %1346 = vmatprep.subr.mxu1 %v9190_v43  ;;  %v9230_v42 = vld [vmem:[#allocation118_spill] sm:$0xff]  ;;  %v9231_v43 = vld [vmem:[#allocation119_spill] sm:$0xff] }
 0x1e8   :  { %1276 = vmatpush1.msra.mxu0 %v9191_v44  ;;  %1347 = vmatpush1.msra.mxu1 %v9192_v45  ;;  %v9232_v44 = vld [vmem:[#allocation120_spill] sm:$0xff]  ;;  %v9233_v45 = vld [vmem:[#allocation121_spill] sm:$0xff] }
 0x1e9   :  { %1277 = vmatprep.subr.mxu0 %v9193_v46  ;;  %1348 = vmatprep.subr.mxu1 %v9194_v48  ;;  %v9234_v46 = vld [vmem:[#allocation122_spill] sm:$0xff]  ;;  %v9235_v48 = vld [vmem:[#allocation123_spill] sm:$0xff] }
 0x1ea   :  { %1278 = vmatpush1.msra.mxu0 %v9195_v49  ;;  %1349 = vmatpush1.msra.mxu1 %v9196_v50  ;;  %v9236_v49 = vld [vmem:[#allocation124_spill] sm:$0xff]  ;;  %v9237_v50 = vld [vmem:[#allocation125_spill] sm:$0xff] }
 0x1eb   :  { %1279 = vmatprep.subr.mxu0 %v9197_v51  ;;  %1350 = vmatprep.subr.mxu1 %v9198_v52  ;;  %v9238_v51 = vld [vmem:[#allocation126_spill] sm:$0xff]  ;;  %v9239_v52 = vld [vmem:[#allocation127_spill] sm:$0xff] }
 0x1ec   :  { %1280 = vmatpush1.msra.mxu0 %v9199_v53  ;;  %1351 = vmatpush1.msra.mxu1 %v9200_v54  ;;  %v9240_v53 = vld [vmem:[#allocation128_spill] sm:$0xff]  ;;  %v9241_v54 = vld [vmem:[#allocation129_spill] sm:$0xff] }
 0x1ed   :  { %1281 = vmatprep.subr.mxu0 %v9201_v55  ;;  %1352 = vmatprep.subr.mxu1 %v9202_v57  ;;  %v9242_v55 = vld [vmem:[#allocation130_spill] sm:$0xff]  ;;  %v9243_v57 = vld [vmem:[#allocation131_spill] sm:$0xff] }
 0x1ee   :  { %1282 = vmatpush2.msra.mxu0 %v9203_v58  ;;  %1353 = vmatpush2.msra.mxu1 %v9204_v59  ;;  %v9244_v58 = vld [vmem:[#allocation132_spill] sm:$0xff]  ;;  %v9245_v59 = vld [vmem:[#allocation133_spill] sm:$0xff] }
 0x1ef   :  { %1283 = vmatprep.subr.mxu0 %v9205_v60  ;;  %1354 = vmatprep.subr.mxu1 %v9206_v61  ;;  %v9246_v60 = vld [vmem:[#allocation134_spill] sm:$0xff]  ;;  %v9247_v61 = vld [vmem:[#allocation135_spill] sm:$0xff] }
 0x1f0   :  { %1284 = vmatpush2.msra.mxu0 %v9207_v62  ;;  %1355 = vmatpush2.msra.mxu1 %v9208_v63  ;;  %v9248_v62 = vld [vmem:[#allocation136_spill] sm:$0xff]  ;;  %v9249_v63 = vld [vmem:[#allocation137_spill] sm:$0xff] }
 0x1f1   :  { %1285 = vmatprep.subr.mxu0 %v9209_v1  ;;  %1356 = vmatprep.subr.mxu1 %v9210_v5  ;;  %v9250_v1 = vld [vmem:[#allocation138_spill] sm:$0xff]  ;;  %v9251_v5 = vld [vmem:[#allocation139_spill] sm:$0xff] }
 0x1f2   :  { %1286 = vmatpush2.msra.mxu0 %v9211_v6  ;;  %1357 = vmatpush2.msra.mxu1 %v9212_v7  ;;  %v9252_v6 = vld [vmem:[#allocation140_spill] sm:$0xff]  ;;  %v9253_v7 = vld [vmem:[#allocation141_spill] sm:$0xff] }
 0x1f3   :  { %1287 = vmatprep.subr.mxu0 %v9213_v8  ;;  %1358 = vmatprep.subr.mxu1 %v9214_v9  ;;  %v9254_v8 = vld [vmem:[#allocation142_spill] sm:$0xff]  ;;  %v9255_v9 = vld [vmem:[#allocation143_spill] sm:$0xff] }
 0x1f4   :  { %1288 = vmatpush2.msra.mxu0 %v9215_v10  ;;  %1359 = vmatpush2.msra.mxu1 %v9216_v11  ;;  %v9256_v10 = vld [vmem:[#allocation144_spill] sm:$0xff]  ;;  %v9257_v11 = vld [vmem:[#allocation145_spill] sm:$0xff] }
 0x1f5   :  { %1289 = vmatprep.subr.mxu0 %v9217_v47  ;;  %1360 = vmatprep.subr.mxu1 %v9218_v28  ;;  %v9258_v47 = vld [vmem:[#allocation146_spill] sm:$0xff]  ;;  %v9259_v28 = vld [vmem:[#allocation147_spill] sm:$0xff] }
 0x1f6   :  { %1290 = vmatpush2.msra.mxu0 %v9219_v30  ;;  %1361 = vmatpush2.msra.mxu1 %v9220_v31  ;;  %v9260_v30 = vld [vmem:[#allocation148_spill] sm:$0xff]  ;;  %v9261_v31 = vld [vmem:[#allocation149_spill] sm:$0xff] }
 0x1f7   :  { %1291 = vmatprep.subr.mxu0 %v9221_v32  ;;  %1362 = vmatprep.subr.mxu1 %v9222_v33  ;;  %v9262_v32 = vld [vmem:[#allocation150_spill] sm:$0xff]  ;;  %v9263_v33 = vld [vmem:[#allocation151_spill] sm:$0xff] }
 0x1f8   :  { %1292 = vmatpush2.msra.mxu0 %v9223_v34  ;;  %1363 = vmatpush2.msra.mxu1 %v9224_v35  ;;  %v9264_v34 = vld [vmem:[#allocation152_spill] sm:$0xff] }
 0x1f9   :  { %1293 = vmatprep.subr.mxu0 %v9225_v36  ;;  %1364 = vmatprep.subr.mxu1 %v9226_v37  ;;  %v5906_v35 = vld [vmem:[#allocation11 + $0x1e8] sm:$0xff]  ;;  %v5909_v36 = vld [vmem:[#allocation11 + $0x1f8] sm:$0xff]  ;;  %v690_v37 = vld [vmem:[#allocation14] sm:$0xf] }
 0x1fa   :  { %1294 = vmatpush2.msra.mxu0 %v9227_v39  ;;  %1365 = vmatpush2.msra.mxu1 %v9228_v40  ;;  %v9265_v39 = vsub.s32 0, %v5560_v26 }
 0x1fb   :  { %1295 = vmatprep.subr.mxu0 %v9229_v41  ;;  %1366 = vmatprep.subr.mxu1 %v9230_v42  ;;  %v9267_v41 = vsub.s32 1, %v5560_v26 }
 0x1fc   :  { %1296 = vmatpush2.msra.mxu0 %v9231_v43  ;;  %1367 = vmatpush2.msra.mxu1 %v9232_v44  ;;  %v5914_v40 = vrot.slane %v690_v37, %v9265_v39 }
 0x1fd   :  { %1297 = vmatprep.subr.mxu0 %v9233_v45  ;;  %1368 = vmatprep.subr.mxu1 %v9234_v46  ;;  %v5918_v42 = vrot.slane %v690_v37, %v9267_v41 }
 0x1fe   :  { %1298 = vmatpush2.msra.mxu0 %v9235_v48  ;;  %1369 = vmatpush2.msra.mxu1 %v9236_v49  ;;  %9266 = vst [vmem:[#allocation24_spill] sm:$0xff] %v5914_v40 }
 0x1ff   :  { %1299 = vmatprep.subr.mxu0 %v9237_v50  ;;  %1370 = vmatprep.subr.mxu1 %v9238_v51  ;;  %9268 = vst [vmem:[#allocation25_spill] sm:$0xff] %v5918_v42  ;;  %v9269_v51 = vsub.s32 3, %v5560_v26 }
 0x200   :  { %1300 = vmatpush2.msra.mxu0 %v9239_v52  ;;  %1371 = vmatpush2.msra.mxu1 %v9240_v53 }
 0x201   :  { %1301 = vmatprep.subr.mxu0 %v9241_v54  ;;  %1372 = vmatprep.subr.mxu1 %v9242_v55  ;;  %v5924_v52 = vrot.slane %v690_v37, %v9269_v51  ;;  %v9271_v55 = vsub.s32 2, %v5560_v26 }
 0x202   :  { %1302 = vmatpush2.msra.mxu0 %v9243_v57  ;;  %1373 = vmatpush2.msra.mxu1 %v9244_v58 }
 0x203   :  { %1303 = vmatprep.subr.mxu0 %v9245_v59  ;;  %1374 = vmatprep.subr.mxu1 %v9246_v60  ;;  %9270 = vst [vmem:[#allocation26_spill] sm:$0xff] %v5924_v52  ;;  %v5929_v57 = vrot.slane %v690_v37, %v9271_v55 }
 0x204   :  { %1304 = vmatpush2.msra.mxu0 %v9247_v61  ;;  %1375 = vmatpush2.msra.mxu1 %v9248_v62 }
 0x205   :  { %1305 = vmatprep.subr.mxu0 %v9249_v63  ;;  %1376 = vmatprep.subr.mxu1 %v9250_v1  ;;  %9272 = vst [vmem:[#allocation27_spill] sm:$0xff] %v5929_v57 }
 0x206   :  { %1306 = vmatpush2.msra.mxu0 %v9251_v5  ;;  %1377 = vmatpush2.msra.mxu1 %v9252_v6 }
 0x207   :  { %1307 = vmatprep.subr.mxu0 %v9253_v7  ;;  %1378 = vmatprep.subr.mxu1 %v9254_v8  ;;  %v718_v7 = vld [vmem:[#allocation8 + $0x8] sm:$0xff] }
 0x208   :  { %1308 = vmatpush2.msra.mxu0 %v9255_v9  ;;  %1379 = vmatpush2.msra.mxu1 %v9256_v10  ;;  %v9273_v8 = vld [vmem:[#allocation153_spill] sm:$0xff] }
 0x209   :  { %1309 = vmatprep.subr.mxu0 %v9257_v11  ;;  %1380 = vmatprep.subr.mxu1 %v9258_v47 }
 0x20a   :  { %1310 = vmatpush2.msra.mxu0 %v9259_v28  ;;  %1381 = vmatpush2.msra.mxu1 %v9260_v30  ;;  %v9274_v28 = vld [vmem:[#allocation155_spill] sm:$0xff] }
 0x20b   :  { %1311 = vmatprep.subr.mxu0 %v9261_v31  ;;  %1382 = vmatprep.subr.mxu1 %v9262_v32 }
 0x20c   :  { %1312 = vmatpush2.msra.mxu0 %v9263_v33  ;;  %1383 = vmatpush2.msra.mxu1 %v9264_v34 }
 0x20d   :  { %1436 = vmatprep.subr.mxu0 %v5906_v35  ;;  %1507 = vmatprep.subr.mxu1 %v5909_v36 }
 0x26b   :  { %v959_v43 = vpop.f32.mrf.mxu0  ;;  %v1030_v49 = vpop.f32.mrf.mxu1 }
 0x26c   :  { %v960_v44 = vadd.f32 %v959_v43, %v5914_v40  ;;  %v1031_v60 = vadd.f32 %v1030_v49, %v5929_v57  ;;  %v9275_v43 = vld [vmem:[#allocation156_spill] sm:$0xff] }
 0x26d   :  { %v961_v45 = vpop.f32.mrf.mxu0  ;;  %v1032_v53 = vpop.f32.mrf.mxu1 }
 0x26e   :  { %v3692_v46 = vmul.f32 -1.442695, %v960_v44  ;;  %v962_v48 = vadd.f32 %v961_v45, %v5918_v42  ;;  %v1033_v54 = vadd.f32 %v1032_v53, %v5924_v52  ;;  %v9276_v45 = vld [vmem:[#allocation154_spill] sm:$0xff] }
 0x270   :  { %3821 = vpow2.f32 %v3692_v46  ;;  %v3693_v50 = vmul.f32 -1.442695, %v962_v48  ;;  %v3694_v58 = vmul.f32 -1.442695, %v1033_v54 }
 0x272   :  { %3823 = vpow2.f32 %v3693_v50 }
 0x273   :  { %3825 = vpow2.f32 %v3694_v58 }
 0x27d   :  { %v3822_v59 = vpop.eup %3821 }
 0x27e   :  { %v1038_v61 = vadd.f32 1.0, %v3822_v59 }
 0x27f   :  { %v3824_v62 = vpop.eup %3823 }
 0x280   :  { %3827 = vrcp.f32 %v1038_v61  ;;  %v1044_v63 = vadd.f32 1.0, %v3824_v62  ;;  %v3826_v1 = vpop.eup %3825 }
 0x281   :  { %3829 = vtanh.f32 %v1031_v60  ;;  %v1051_v33 = vadd.f32 1.0, %v3826_v1 }
 0x282   :  { %3831 = vrcp.f32 %v1044_v63 }
 0x28c   :  { %v1145_v5 = vpop.f32.mrf.mxu0  ;;  %v1216_v34 = vpop.f32.mrf.mxu1 }
 0x28d   :  { %v3828_v6 = vpop.eup %3827  ;;  %v1221_v9 = vadd.f32 %v1145_v5, %v9273_v8  ;;  %v1223_v46 = vadd.f32 %v1216_v34, %v9276_v45  ;;  %v5947_v5 = vld [vmem:[%s8428_s8] sm:$0xff]  ;;  %v6059_v34 = vld [vmem:[#allocation11 + $0x78] sm:$0xff] }
 0x28e   :  { %v3830_v26 = vpop.eup %3829  ;;  %v1147_v10 = vpop.f32.mrf.mxu0  ;;  %v6074_v45 = vld [vmem:[#allocation11 + $0x40] sm:$0xff] }
 0x28f   :  { %v3832_v11 = vpop.eup %3831  ;;  %v3695_v47 = vmul.f32 -1.442695, %v1221_v9  ;;  %v1222_v30 = vadd.f32 %v1147_v10, %v9274_v28  ;;  %v1055_v31 = vmul.f32 %v3830_v26, %v3828_v6  ;;  %v1218_v41 = vpop.f32.mrf.mxu1  ;;  %v6044_v28 = vld [vmem:[#allocation11 + $0x88] sm:$0xff] }
 0x290   :  { %v1054_v32 = vmul.f32 %v3832_v11, %v718_v7  ;;  %v1224_v44 = vadd.f32 %v1218_v41, %v9275_v43  ;;  %v6065_v41 = vld [vmem:[#allocation11 + $0x70] sm:$0xff]  ;;  %v6068_v43 = vld [vmem:[#allocation11 + $0x48] sm:$0xff] }
 0x291   :  { %3833 = vpow2.f32 %v3695_v47  ;;  %v3696_v37 = vmul.f32 -1.442695, %v1222_v30  ;;  %v6041_v47 = vld [vmem:[#allocation11 + $0xb0] sm:$0xff]  ;;  %v6047_v30 = vld [vmem:[#allocation11 + $0x98] sm:$0xff] }
 0x292   :  { %v5934_v39 = vadd.f32 %v1055_v31, %v1054_v32  ;;  %v3697_v48 = vmul.f32 -1.442695, %v1224_v44  ;;  %v6050_v31 = vld [vmem:[#allocation11 + $0x80] sm:$0xff]  ;;  %v6053_v32 = vld [vmem:[#allocation11 + $0x90] sm:$0xff]  ;;  %v6071_v44 = vld [vmem:[#allocation11 + $0x58] sm:$0xff] }
 0x293   :  { %3835 = vpow2.f32 %v3696_v37  ;;  %v6062_v37 = vld [vmem:[#allocation11 + $0x60] sm:$0xff] }
 0x294   :  { %3837 = vrcp.f32 %v1051_v33  ;;  %v6056_v33 = vld [vmem:[#allocation11 + $0x68] sm:$0xff] }
 0x295   :  { %3839 = vtanh.f32 %v5934_v39 }
 0x296   :  { %3841 = vtanh.f32 %v1223_v46  ;;  %v6077_v46 = vld [vmem:[#allocation11 + $0x50] sm:$0xff] }
 0x297   :  { %3843 = vpow2.f32 %v3697_v48  ;;  %v6080_v48 = vld [vmem:[#allocation11 + $0x28] sm:$0xff] }
 0x29e   :  { %v3834_v49 = vpop.eup %3833 }
 0x29f   :  { %v1228_v50 = vadd.f32 1.0, %v3834_v49  ;;  %v6083_v49 = vld [vmem:[#allocation11 + $0x38] sm:$0xff] }
 0x2a0   :  { %v3836_v51 = vpop.eup %3835 }
 0x2a1   :  { %v3838_v53 = vpop.eup %3837  ;;  %3845 = vrcp.f32 %v1228_v50  ;;  %v1234_v54 = vadd.f32 1.0, %v3836_v51  ;;  %v6086_v50 = vld [vmem:[#allocation11 + $0x20] sm:$0xff]  ;;  %v6089_v51 = vld [vmem:[#allocation11 + $0x30] sm:$0xff] }
 0x2a2   :  { %v3840_v55 = vpop.eup %3839 }
 0x2a3   :  { %3847 = vrcp.f32 %v1234_v54  ;;  %v5939_v58 = vmul.f32 %v3840_v55, %v3838_v53  ;;  %v3842_v59 = vpop.eup %3841  ;;  %v6092_v53 = vld [vmem:[#allocation11 + $0x8] sm:$0xff]  ;;  %v6095_v54 = vld [vmem:[#allocation11 + $0x18] sm:$0xff]  ;;  %v6098_v55 = vld [vmem:[#allocation11] sm:$0xff] }
 0x2a4   :  { %v3844_v60 = vpop.eup %3843 }
 0x2a5   :  { %9277 = vst [vmem:[#allocation28_spill] sm:$0xff] %v5939_v58  ;;  %1313 = vmatprep.mubr.f32.mxu0 %v5939_v58  ;;  %1384 = vmatprep.mubr.f32.mxu1 %v5939_v58  ;;  %3849 = vtanh.f32 %v5939_v58  ;;  %v1241_v1 = vadd.f32 1.0, %v3844_v60  ;;  %v6108_v60 = vld [vmem:[#allocation12 + $0x1e8] sm:$0xff]  ;;  %v6141_v58 = vld [vmem:[#allocation12 + $0x1b0] sm:$0xff] }
 0x2a6   :  { %9279 = vst [vmem:[#allocation30_spill] sm:$0xff] %v6108_v60  ;;  %9290 = vst [vmem:[#allocation41_spill] sm:$0xff] %v6141_v58 }
 0x2a7   :  { %3851 = vrcp.f32 %v1241_v1  ;;  %v6120_v1 = vld [vmem:[#allocation12 + $0x1c8] sm:$0xff] }
 0x2a8   :  { %9283 = vst [vmem:[#allocation34_spill] sm:$0xff] %v6120_v1 }
 0x2ae   :  { %v3846_v61 = vpop.eup %3845 }
 0x2af   :  { %v1245_v62 = vmul.f32 %v3846_v61, %v3842_v59  ;;  %v6102_v59 = vld [vmem:[#allocation11 + $0x10] sm:$0xff]  ;;  %v6111_v61 = vld [vmem:[#allocation12 + $0x1f8] sm:$0xff] }
 0x2b0   :  { %v3848_v63 = vpop.eup %3847  ;;  %9278 = vst [vmem:[#allocation29_spill] sm:$0xff] %v6102_v59  ;;  %9280 = vst [vmem:[#allocation31_spill] sm:$0xff] %v6111_v61 }
 0x2b1   :  { %v1244_v6 = vmul.f32 %v3848_v63, %v5665_v15  ;;  %v5978_v15 = vld [vmem:[#allocation11 + $0x140] sm:$0xff]  ;;  %v6117_v63 = vld [vmem:[#allocation12 + $0x1f0] sm:$0xff] }
 0x2b2   :  { %v3850_v7 = vpop.eup %3849  ;;  %9282 = vst [vmem:[#allocation33_spill] sm:$0xff] %v6117_v63 }
 0x2b3   :  { %v5950_v8 = vadd.f32 %v1245_v62, %v1244_v6  ;;  %v1060_v9 = vmul.f32 %v3850_v7, %v5947_v5  ;;  %v6114_v62 = vld [vmem:[#allocation12 + $0x1e0] sm:$0xff]  ;;  %v6123_v6 = vld [vmem:[#allocation12 + $0x1d8] sm:$0xff] }
 0x2b4   :  { %v3852_v26 = vpop.eup %3851  ;;  %9281 = vst [vmem:[#allocation32_spill] sm:$0xff] %v6114_v62  ;;  %9284 = vst [vmem:[#allocation35_spill] sm:$0xff] %v6123_v6  ;;  %v6126_v7 = vld [vmem:[#allocation12 + $0x1c0] sm:$0xff] }
 0x2b5   :  { %1061 = vadd.xlane.f32.xlu0 %v1060_v9  ;;  %3853 = vtanh.f32 %v5950_v8  ;;  %9285 = vst [vmem:[#allocation36_spill] sm:$0xff] %v6126_v7  ;;  %v6129_v9 = vld [vmem:[#allocation12 + $0x1d0] sm:$0xff] }
 0x2b6   :  { %9286 = vst [vmem:[#allocation37_spill] sm:$0xff] %v6129_v9 }
 0x2c2   :  { %v3854_v10 = vpop.eup %3853 }
 0x2c3   :  { %v5954_v11 = vmul.f32 %v3854_v10, %v3852_v26  ;;  %v6132_v26 = vld [vmem:[#allocation12 + $0x1a8] sm:$0xff]  ;;  %v6135_v10 = vld [vmem:[#allocation12 + $0x1b8] sm:$0xff] }
 0x2c4   :  { %9287 = vst [vmem:[#allocation38_spill] sm:$0xff] %v6132_v26  ;;  %9288 = vst [vmem:[#allocation39_spill] sm:$0xff] %v6135_v10 }
 0x2c5   :  { %1314 = vmatmul.mubr.f32.vlgmr.msra.gmra.mxu0 %v5954_v11  ;;  %1385 = vmatmul.mubr.f32.vlgmr.msra.gmra.mxu1 %v5954_v11 }
 0x2c6   :  { %1437 = vmatpush1.msra.mxu0 %v5672_v23  ;;  %1508 = vmatpush1.msra.mxu1 %v5675_v22  ;;  %v5981_v23 = vld [vmem:[#allocation11 + $0x150] sm:$0xff]  ;;  %v5984_v22 = vld [vmem:[#allocation11 + $0x128] sm:$0xff] }
 0x2c7   :  { %1438 = vmatprep.subr.mxu0 %v5678_v14  ;;  %1509 = vmatprep.subr.mxu1 %v5681_v24  ;;  %v5987_v14 = vld [vmem:[#allocation11 + $0x138] sm:$0xff]  ;;  %v5990_v24 = vld [vmem:[#allocation11 + $0x120] sm:$0xff] }
 0x2c8   :  { %1439 = vmatpush1.msra.mxu0 %v5684_v0  ;;  %1510 = vmatpush1.msra.mxu1 %v5687_v56  ;;  %v5993_v0 = vld [vmem:[#allocation11 + $0x130] sm:$0xff]  ;;  %v5996_v56 = vld [vmem:[#allocation11 + $0x108] sm:$0xff] }
 0x2c9   :  { %1440 = vmatprep.subr.mxu0 %v5690_v2  ;;  %1511 = vmatprep.subr.mxu1 %v5693_v21  ;;  %v5999_v2 = vld [vmem:[#allocation11 + $0x118] sm:$0xff]  ;;  %v6002_v21 = vld [vmem:[#allocation11 + $0x100] sm:$0xff] }
 0x2ca   :  { %1441 = vmatpush1.msra.mxu0 %v5696_v29  ;;  %1512 = vmatpush1.msra.mxu1 %v5699_v12  ;;  %v6005_v29 = vld [vmem:[#allocation11 + $0x110] sm:$0xff]  ;;  %v6008_v12 = vld [vmem:[#allocation11 + $0xe8] sm:$0xff] }
 0x2cb   :  { %1442 = vmatprep.subr.mxu0 %v5702_v19  ;;  %1513 = vmatprep.subr.mxu1 %v5705_v18  ;;  %v6011_v19 = vld [vmem:[#allocation11 + $0xf8] sm:$0xff]  ;;  %v6014_v18 = vld [vmem:[#allocation11 + $0xe0] sm:$0xff] }
 0x2cc   :  { %1443 = vmatpush1.msra.mxu0 %v5708_v13  ;;  %1514 = vmatpush1.msra.mxu1 %v5711_v17  ;;  %v6017_v13 = vld [vmem:[#allocation11 + $0xf0] sm:$0xff]  ;;  %v6020_v17 = vld [vmem:[#allocation11 + $0xc8] sm:$0xff] }
 0x2cd   :  { %1444 = vmatprep.subr.mxu0 %v5714_v25  ;;  %1515 = vmatprep.subr.mxu1 %v5717_v20  ;;  %v6023_v25 = vld [vmem:[#allocation11 + $0xd8] sm:$0xff]  ;;  %v6026_v20 = vld [vmem:[#allocation11 + $0xc0] sm:$0xff] }
 0x2ce   :  { %1445 = vmatpush1.msra.mxu0 %v5720_v3  ;;  %1516 = vmatpush1.msra.mxu1 %v5723_v4  ;;  %v6029_v3 = vld [vmem:[#allocation11 + $0xd0] sm:$0xff]  ;;  %v6032_v4 = vld [vmem:[#allocation11 + $0xa8] sm:$0xff] }
 0x2cf   :  { %1446 = vmatprep.subr.mxu0 %v5726_v16  ;;  %1517 = vmatprep.subr.mxu1 %v5729_v38  ;;  %v6035_v16 = vld [vmem:[#allocation11 + $0xb8] sm:$0xff]  ;;  %v6038_v38 = vld [vmem:[#allocation11 + $0xa0] sm:$0xff] }
 0x2d0   :  { %1447 = vmatpush1.msra.mxu0 %v5978_v15  ;;  %1518 = vmatpush1.msra.mxu1 %v5981_v23 }
 0x2d1   :  { %1448 = vmatprep.subr.mxu0 %v5984_v22  ;;  %1519 = vmatprep.subr.mxu1 %v5987_v14 }
 0x2d2   :  { %1449 = vmatpush1.msra.mxu0 %v5990_v24  ;;  %1520 = vmatpush1.msra.mxu1 %v5993_v0 }
 0x2d3   :  { %1450 = vmatprep.subr.mxu0 %v5996_v56  ;;  %1521 = vmatprep.subr.mxu1 %v5999_v2 }
 0x2d4   :  { %1451 = vmatpush1.msra.mxu0 %v6002_v21  ;;  %1522 = vmatpush1.msra.mxu1 %v6005_v29 }
 0x2d5   :  { %1452 = vmatprep.subr.mxu0 %v6008_v12  ;;  %1523 = vmatprep.subr.mxu1 %v6011_v19 }
 0x2d6   :  { %1453 = vmatpush1.msra.mxu0 %v6014_v18  ;;  %1524 = vmatpush1.msra.mxu1 %v6017_v13 }
 0x2d7   :  { %1454 = vmatprep.subr.mxu0 %v6020_v17  ;;  %1525 = vmatprep.subr.mxu1 %v6023_v25 }
 0x2d8   :  { %1455 = vmatpush1.msra.mxu0 %v6026_v20  ;;  %1526 = vmatpush1.msra.mxu1 %v6029_v3 }
 0x2d9   :  { %1456 = vmatprep.subr.mxu0 %v6032_v4  ;;  %1527 = vmatprep.subr.mxu1 %v6035_v16 }
 0x2da   :  { %1457 = vmatpush1.msra.mxu0 %v6038_v38  ;;  %1528 = vmatpush1.msra.mxu1 %v6041_v47 }
 0x2db   :  { %1458 = vmatprep.subr.mxu0 %v6044_v28  ;;  %1529 = vmatprep.subr.mxu1 %v6047_v30 }
 0x2dc   :  { %1459 = vmatpush1.msra.mxu0 %v6050_v31  ;;  %1530 = vmatpush1.msra.mxu1 %v6053_v32 }
 0x2dd   :  { %1460 = vmatprep.subr.mxu0 %v6056_v33  ;;  %1531 = vmatprep.subr.mxu1 %v6059_v34 }
 0x2de   :  { %1461 = vmatpush1.msra.mxu0 %v6062_v37  ;;  %1532 = vmatpush1.msra.mxu1 %v6065_v41 }
 0x2df   :  { %1462 = vmatprep.subr.mxu0 %v6068_v43  ;;  %1533 = vmatprep.subr.mxu1 %v6071_v44 }
 0x2e0   :  { %1463 = vmatpush1.msra.mxu0 %v6074_v45  ;;  %1534 = vmatpush1.msra.mxu1 %v6077_v46 }
 0x2e1   :  { %1464 = vmatprep.subr.mxu0 %v6080_v48  ;;  %1535 = vmatprep.subr.mxu1 %v6083_v49 }
 0x2e2   :  { %1465 = vmatpush1.msra.mxu0 %v6086_v50  ;;  %1536 = vmatpush1.msra.mxu1 %v6089_v51 }
 0x2e3   :  { %1466 = vmatprep.subr.mxu0 %v6092_v53  ;;  %1537 = vmatprep.subr.mxu1 %v6095_v54 }
 0x2e4   :  { %1467 = vmatpush1.msra.mxu0 %v6098_v55  ;;  %1500 = vmatprep.mubr.f32.mxu0 %v9135_v27 }
 0x2e5   :  { %1538 = vmatpush1.msra.mxu1 %v6102_v59  ;;  %1571 = vmatprep.mubr.f32.mxu1 %v9135_v27 }
 0x2e6   :  { %1501 = vmatmul.mubr.f32.vlgmr.msra.gmra.mxu0 %v5954_v11  ;;  %1572 = vmatmul.mubr.f32.vlgmr.msra.gmra.mxu1 %v5954_v11  ;;  %v6138_v11 = vld [vmem:[#allocation12 + $0x1a0] sm:$0xff] }
 0x2e7   :  { %1606 = vmatprep.subr.mxu0 %v6108_v60  ;;  %1677 = vmatprep.subr.mxu1 %v6111_v61  ;;  %9289 = vst [vmem:[#allocation40_spill] sm:$0xff] %v6138_v11 }
 0x2e8   :  { %1607 = vmatpush1.msra.mxu0 %v6114_v62  ;;  %1678 = vmatpush1.msra.mxu1 %v6117_v63 }
 0x2e9   :  { %1608 = vmatprep.subr.mxu0 %v6120_v1  ;;  %1679 = vmatprep.subr.mxu1 %v6123_v6 }
 0x2ea   :  { %1609 = vmatpush1.msra.mxu0 %v6126_v7  ;;  %1680 = vmatpush1.msra.mxu1 %v6129_v9  ;;  %v6144_v7 = vld [vmem:[#allocation12 + $0x188] sm:$0xff]  ;;  %v6147_v9 = vld [vmem:[#allocation12 + $0x198] sm:$0xff] }
 0x2eb   :  { %1610 = vmatprep.subr.mxu0 %v6132_v26  ;;  %1681 = vmatprep.subr.mxu1 %v6135_v10  ;;  %9291 = vst [vmem:[#allocation42_spill] sm:$0xff] %v6144_v7  ;;  %9292 = vst [vmem:[#allocation43_spill] sm:$0xff] %v6147_v9  ;;  %v6150_v26 = vld [vmem:[#allocation12 + $0x180] sm:$0xff]  ;;  %v6153_v10 = vld [vmem:[#allocation12 + $0x190] sm:$0xff] }
 0x2ec   :  { %1611 = vmatpush1.msra.mxu0 %v6138_v11  ;;  %1682 = vmatpush1.msra.mxu1 %v6141_v58  ;;  %9293 = vst [vmem:[#allocation44_spill] sm:$0xff] %v6150_v26  ;;  %9294 = vst [vmem:[#allocation45_spill] sm:$0xff] %v6153_v10  ;;  %v6156_v11 = vld [vmem:[#allocation12 + $0x168] sm:$0xff]  ;;  %v6159_v58 = vld [vmem:[#allocation12 + $0x178] sm:$0xff] }
 0x2ed   :  { %1612 = vmatprep.subr.mxu0 %v6144_v7  ;;  %1683 = vmatprep.subr.mxu1 %v6147_v9  ;;  %9295 = vst [vmem:[#allocation46_spill] sm:$0xff] %v6156_v11  ;;  %9296 = vst [vmem:[#allocation47_spill] sm:$0xff] %v6159_v58  ;;  %v6162_v7 = vld [vmem:[#allocation12 + $0x160] sm:$0xff]  ;;  %v6165_v9 = vld [vmem:[#allocation12 + $0x170] sm:$0xff] }
 0x2ee   :  { %1613 = vmatpush1.msra.mxu0 %v6150_v26  ;;  %1684 = vmatpush1.msra.mxu1 %v6153_v10  ;;  %9297 = vst [vmem:[#allocation48_spill] sm:$0xff] %v6162_v7  ;;  %9298 = vst [vmem:[#allocation49_spill] sm:$0xff] %v6165_v9  ;;  %v6168_v26 = vld [vmem:[#allocation12 + $0x148] sm:$0xff]  ;;  %v6171_v10 = vld [vmem:[#allocation12 + $0x158] sm:$0xff] }
 0x2ef   :  { %1614 = vmatprep.subr.mxu0 %v6156_v11  ;;  %1685 = vmatprep.subr.mxu1 %v6159_v58  ;;  %9299 = vst [vmem:[#allocation50_spill] sm:$0xff] %v6168_v26  ;;  %9300 = vst [vmem:[#allocation51_spill] sm:$0xff] %v6171_v10  ;;  %v6174_v11 = vld [vmem:[#allocation12 + $0x140] sm:$0xff]  ;;  %v6177_v58 = vld [vmem:[#allocation12 + $0x150] sm:$0xff] }
 0x2f0   :  { %1615 = vmatpush1.msra.mxu0 %v6162_v7  ;;  %1686 = vmatpush1.msra.mxu1 %v6165_v9  ;;  %9301 = vst [vmem:[#allocation52_spill] sm:$0xff] %v6174_v11  ;;  %9302 = vst [vmem:[#allocation53_spill] sm:$0xff] %v6177_v58  ;;  %v6180_v7 = vld [vmem:[#allocation12 + $0x128] sm:$0xff]  ;;  %v6183_v9 = vld [vmem:[#allocation12 + $0x138] sm:$0xff] }
 0x2f1   :  { %1616 = vmatprep.subr.mxu0 %v6168_v26  ;;  %1687 = vmatprep.subr.mxu1 %v6171_v10  ;;  %9303 = vst [vmem:[#allocation54_spill] sm:$0xff] %v6180_v7  ;;  %9304 = vst [vmem:[#allocation55_spill] sm:$0xff] %v6183_v9  ;;  %v6186_v26 = vld [vmem:[#allocation12 + $0x120] sm:$0xff]  ;;  %v6189_v10 = vld [vmem:[#allocation12 + $0x130] sm:$0xff] }
 0x2f2   :  { %1617 = vmatpush1.msra.mxu0 %v6174_v11  ;;  %1688 = vmatpush1.msra.mxu1 %v6177_v58  ;;  %9305 = vst [vmem:[#allocation56_spill] sm:$0xff] %v6186_v26  ;;  %9306 = vst [vmem:[#allocation57_spill] sm:$0xff] %v6189_v10  ;;  %v6192_v11 = vld [vmem:[#allocation12 + $0x108] sm:$0xff]  ;;  %v6195_v58 = vld [vmem:[#allocation12 + $0x118] sm:$0xff] }
 0x2f3   :  { %1618 = vmatprep.subr.mxu0 %v6180_v7  ;;  %1689 = vmatprep.subr.mxu1 %v6183_v9  ;;  %9307 = vst [vmem:[#allocation58_spill] sm:$0xff] %v6192_v11  ;;  %9308 = vst [vmem:[#allocation59_spill] sm:$0xff] %v6195_v58  ;;  %v6198_v7 = vld [vmem:[#allocation12 + $0x100] sm:$0xff]  ;;  %v6201_v9 = vld [vmem:[#allocation12 + $0x110] sm:$0xff] }
 0x2f4   :  { %1619 = vmatpush1.msra.mxu0 %v6186_v26  ;;  %1690 = vmatpush1.msra.mxu1 %v6189_v10  ;;  %9309 = vst [vmem:[#allocation60_spill] sm:$0xff] %v6198_v7  ;;  %9310 = vst [vmem:[#allocation61_spill] sm:$0xff] %v6201_v9  ;;  %v6204_v26 = vld [vmem:[#allocation12 + $0xe8] sm:$0xff]  ;;  %v6207_v10 = vld [vmem:[#allocation12 + $0xf8] sm:$0xff] }
 0x2f5   :  { %1620 = vmatprep.subr.mxu0 %v6192_v11  ;;  %1691 = vmatprep.subr.mxu1 %v6195_v58  ;;  %9311 = vst [vmem:[#allocation62_spill] sm:$0xff] %v6204_v26  ;;  %9312 = vst [vmem:[#allocation63_spill] sm:$0xff] %v6207_v10  ;;  %v6210_v11 = vld [vmem:[#allocation12 + $0xe0] sm:$0xff]  ;;  %v6213_v58 = vld [vmem:[#allocation12 + $0xf0] sm:$0xff] }
 0x2f6   :  { %1621 = vmatpush1.msra.mxu0 %v6198_v7  ;;  %1692 = vmatpush1.msra.mxu1 %v6201_v9  ;;  %9313 = vst [vmem:[#allocation64_spill] sm:$0xff] %v6210_v11  ;;  %9314 = vst [vmem:[#allocation65_spill] sm:$0xff] %v6213_v58  ;;  %v6216_v7 = vld [vmem:[#allocation12 + $0xc8] sm:$0xff]  ;;  %v6219_v9 = vld [vmem:[#allocation12 + $0xd8] sm:$0xff] }
 0x2f7   :  { %1622 = vmatprep.subr.mxu0 %v6204_v26  ;;  %1693 = vmatprep.subr.mxu1 %v6207_v10  ;;  %9315 = vst [vmem:[#allocation66_spill] sm:$0xff] %v6216_v7  ;;  %9316 = vst [vmem:[#allocation67_spill] sm:$0xff] %v6219_v9  ;;  %v6222_v26 = vld [vmem:[#allocation12 + $0xc0] sm:$0xff]  ;;  %v6225_v10 = vld [vmem:[#allocation12 + $0xd0] sm:$0xff] }
 0x2f8   :  { %1623 = vmatpush1.msra.mxu0 %v6210_v11  ;;  %1694 = vmatpush1.msra.mxu1 %v6213_v58  ;;  %9317 = vst [vmem:[#allocation68_spill] sm:$0xff] %v6222_v26  ;;  %9318 = vst [vmem:[#allocation69_spill] sm:$0xff] %v6225_v10  ;;  %v6228_v11 = vld [vmem:[#allocation12 + $0xa8] sm:$0xff]  ;;  %v6231_v58 = vld [vmem:[#allocation12 + $0xb8] sm:$0xff] }
 0x2f9   :  { %1624 = vmatprep.subr.mxu0 %v6216_v7  ;;  %1695 = vmatprep.subr.mxu1 %v6219_v9  ;;  %9319 = vst [vmem:[#allocation70_spill] sm:$0xff] %v6228_v11  ;;  %9320 = vst [vmem:[#allocation71_spill] sm:$0xff] %v6231_v58  ;;  %v6234_v7 = vld [vmem:[#allocation12 + $0xa0] sm:$0xff]  ;;  %v6237_v9 = vld [vmem:[#allocation12 + $0xb0] sm:$0xff] }
 0x2fa   :  { %1625 = vmatpush1.msra.mxu0 %v6222_v26  ;;  %1696 = vmatpush1.msra.mxu1 %v6225_v10  ;;  %9321 = vst [vmem:[#allocation72_spill] sm:$0xff] %v6234_v7  ;;  %9322 = vst [vmem:[#allocation73_spill] sm:$0xff] %v6237_v9  ;;  %v6240_v26 = vld [vmem:[#allocation12 + $0x88] sm:$0xff]  ;;  %v6243_v10 = vld [vmem:[#allocation12 + $0x98] sm:$0xff] }
 0x2fb   :  { %1626 = vmatprep.subr.mxu0 %v6228_v11  ;;  %1697 = vmatprep.subr.mxu1 %v6231_v58  ;;  %9323 = vst [vmem:[#allocation74_spill] sm:$0xff] %v6240_v26  ;;  %9324 = vst [vmem:[#allocation75_spill] sm:$0xff] %v6243_v10  ;;  %v6246_v11 = vld [vmem:[#allocation12 + $0x80] sm:$0xff]  ;;  %v6249_v58 = vld [vmem:[#allocation12 + $0x90] sm:$0xff] }
 0x2fc   :  { %1627 = vmatpush1.msra.mxu0 %v6234_v7  ;;  %1698 = vmatpush1.msra.mxu1 %v6237_v9  ;;  %9325 = vst [vmem:[#allocation76_spill] sm:$0xff] %v6246_v11  ;;  %9326 = vst [vmem:[#allocation77_spill] sm:$0xff] %v6249_v58  ;;  %v6252_v7 = vld [vmem:[#allocation12 + $0x68] sm:$0xff]  ;;  %v6255_v9 = vld [vmem:[#allocation12 + $0x78] sm:$0xff] }
 0x2fd   :  { %1628 = vmatprep.subr.mxu0 %v6240_v26  ;;  %1699 = vmatprep.subr.mxu1 %v6243_v10  ;;  %9327 = vst [vmem:[#allocation78_spill] sm:$0xff] %v6252_v7  ;;  %9328 = vst [vmem:[#allocation79_spill] sm:$0xff] %v6255_v9  ;;  %v6258_v26 = vld [vmem:[#allocation12 + $0x60] sm:$0xff]  ;;  %v6261_v10 = vld [vmem:[#allocation12 + $0x70] sm:$0xff] }
 0x2fe   :  { %1629 = vmatpush1.msra.mxu0 %v6246_v11  ;;  %1700 = vmatpush1.msra.mxu1 %v6249_v58  ;;  %9329 = vst [vmem:[#allocation80_spill] sm:$0xff] %v6258_v26  ;;  %9330 = vst [vmem:[#allocation81_spill] sm:$0xff] %v6261_v10  ;;  %v6264_v11 = vld [vmem:[#allocation12 + $0x48] sm:$0xff]  ;;  %v6267_v58 = vld [vmem:[#allocation12 + $0x58] sm:$0xff] }
 0x2ff   :  { %1630 = vmatprep.subr.mxu0 %v6252_v7  ;;  %1701 = vmatprep.subr.mxu1 %v6255_v9  ;;  %9331 = vst [vmem:[#allocation82_spill] sm:$0xff] %v6264_v11  ;;  %9332 = vst [vmem:[#allocation83_spill] sm:$0xff] %v6267_v58  ;;  %v6270_v7 = vld [vmem:[#allocation12 + $0x40] sm:$0xff]  ;;  %v6273_v9 = vld [vmem:[#allocation12 + $0x50] sm:$0xff] }
 0x300   :  { %1631 = vmatpush1.msra.mxu0 %v6258_v26  ;;  %1702 = vmatpush1.msra.mxu1 %v6261_v10  ;;  %9333 = vst [vmem:[#allocation84_spill] sm:$0xff] %v6270_v7  ;;  %9334 = vst [vmem:[#allocation85_spill] sm:$0xff] %v6273_v9  ;;  %v6276_v26 = vld [vmem:[#allocation12 + $0x28] sm:$0xff]  ;;  %v6279_v10 = vld [vmem:[#allocation12 + $0x38] sm:$0xff] }
 0x301   :  { %1632 = vmatprep.subr.mxu0 %v6264_v11  ;;  %1703 = vmatprep.subr.mxu1 %v6267_v58  ;;  %9335 = vst [vmem:[#allocation86_spill] sm:$0xff] %v6276_v26  ;;  %9336 = vst [vmem:[#allocation87_spill] sm:$0xff] %v6279_v10  ;;  %v6282_v11 = vld [vmem:[#allocation12 + $0x20] sm:$0xff]  ;;  %v6285_v58 = vld [vmem:[#allocation12 + $0x30] sm:$0xff] }
 0x302   :  { %1633 = vmatpush1.msra.mxu0 %v6270_v7  ;;  %1704 = vmatpush1.msra.mxu1 %v6273_v9  ;;  %9337 = vst [vmem:[#allocation88_spill] sm:$0xff] %v6282_v11  ;;  %9338 = vst [vmem:[#allocation89_spill] sm:$0xff] %v6285_v58  ;;  %v6288_v7 = vld [vmem:[#allocation12 + $0x8] sm:$0xff]  ;;  %v6291_v9 = vld [vmem:[#allocation12 + $0x18] sm:$0xff] }
 0x303   :  { %1634 = vmatprep.subr.mxu0 %v6276_v26  ;;  %1705 = vmatprep.subr.mxu1 %v6279_v10  ;;  %9339 = vst [vmem:[#allocation90_spill] sm:$0xff] %v6288_v7  ;;  %9340 = vst [vmem:[#allocation91_spill] sm:$0xff] %v6291_v9  ;;  %v6294_v26 = vld [vmem:[#allocation12] sm:$0xff]  ;;  %v6297_v10 = vld [vmem:[#allocation12 + $0x10] sm:$0xff] }
 0x304   :  { %1635 = vmatpush1.msra.mxu0 %v6282_v11  ;;  %1706 = vmatpush1.msra.mxu1 %v6285_v58  ;;  %9341 = vst [vmem:[#allocation92_spill] sm:$0xff] %v6294_v26  ;;  %9342 = vst [vmem:[#allocation93_spill] sm:$0xff] %v6297_v10  ;;  %v6300_v11 = vld [vmem:[#allocation12 + $0x3e8] sm:$0xff]  ;;  %v6303_v58 = vld [vmem:[#allocation12 + $0x3f8] sm:$0xff] }
 0x305   :  { %1636 = vmatprep.subr.mxu0 %v6288_v7  ;;  %1707 = vmatprep.subr.mxu1 %v6291_v9  ;;  %9343 = vst [vmem:[#allocation94_spill] sm:$0xff] %v6300_v11  ;;  %9344 = vst [vmem:[#allocation95_spill] sm:$0xff] %v6303_v58  ;;  %v6306_v7 = vld [vmem:[#allocation12 + $0x3e0] sm:$0xff]  ;;  %v6309_v9 = vld [vmem:[#allocation12 + $0x3f0] sm:$0xff] }
 0x306   :  { %1637 = vmatpush1.msra.mxu0 %v6294_v26  ;;  %1708 = vmatpush1.msra.mxu1 %v6297_v10  ;;  %9345 = vst [vmem:[#allocation96_spill] sm:$0xff] %v6306_v7  ;;  %9346 = vst [vmem:[#allocation97_spill] sm:$0xff] %v6309_v9  ;;  %v6312_v26 = vld [vmem:[#allocation12 + $0x3c8] sm:$0xff]  ;;  %v6315_v10 = vld [vmem:[#allocation12 + $0x3d8] sm:$0xff] }
 0x307   :  { %1638 = vmatprep.subr.mxu0 %v6300_v11  ;;  %1709 = vmatprep.subr.mxu1 %v6303_v58  ;;  %9347 = vst [vmem:[#allocation98_spill] sm:$0xff] %v6312_v26  ;;  %9348 = vst [vmem:[#allocation99_spill] sm:$0xff] %v6315_v10  ;;  %v6318_v11 = vld [vmem:[#allocation12 + $0x3c0] sm:$0xff]  ;;  %v6321_v58 = vld [vmem:[#allocation12 + $0x3d0] sm:$0xff] }
 0x308   :  { %1639 = vmatpush2.msra.mxu0 %v6306_v7  ;;  %1710 = vmatpush2.msra.mxu1 %v6309_v9  ;;  %9349 = vst [vmem:[#allocation100_spill] sm:$0xff] %v6318_v11  ;;  %9350 = vst [vmem:[#allocation101_spill] sm:$0xff] %v6321_v58  ;;  %v6324_v7 = vld [vmem:[#allocation12 + $0x3a8] sm:$0xff]  ;;  %v6327_v9 = vld [vmem:[#allocation12 + $0x3b8] sm:$0xff] }
 0x309   :  { %1640 = vmatprep.subr.mxu0 %v6312_v26  ;;  %1711 = vmatprep.subr.mxu1 %v6315_v10  ;;  %9351 = vst [vmem:[#allocation102_spill] sm:$0xff] %v6324_v7  ;;  %9352 = vst [vmem:[#allocation103_spill] sm:$0xff] %v6327_v9  ;;  %v6330_v26 = vld [vmem:[#allocation12 + $0x3a0] sm:$0xff]  ;;  %v6333_v10 = vld [vmem:[#allocation12 + $0x3b0] sm:$0xff] }
 0x30a   :  { %1641 = vmatpush2.msra.mxu0 %v6318_v11  ;;  %1712 = vmatpush2.msra.mxu1 %v6321_v58  ;;  %9353 = vst [vmem:[#allocation104_spill] sm:$0xff] %v6330_v26  ;;  %9354 = vst [vmem:[#allocation105_spill] sm:$0xff] %v6333_v10  ;;  %v6336_v11 = vld [vmem:[#allocation12 + $0x388] sm:$0xff]  ;;  %v6339_v58 = vld [vmem:[#allocation12 + $0x398] sm:$0xff] }
 0x30b   :  { %1642 = vmatprep.subr.mxu0 %v6324_v7  ;;  %1713 = vmatprep.subr.mxu1 %v6327_v9  ;;  %9355 = vst [vmem:[#allocation106_spill] sm:$0xff] %v6336_v11  ;;  %9356 = vst [vmem:[#allocation107_spill] sm:$0xff] %v6339_v58  ;;  %v6342_v7 = vld [vmem:[#allocation12 + $0x380] sm:$0xff]  ;;  %v6345_v9 = vld [vmem:[#allocation12 + $0x390] sm:$0xff] }
 0x30c   :  { %1643 = vmatpush2.msra.mxu0 %v6330_v26  ;;  %1714 = vmatpush2.msra.mxu1 %v6333_v10  ;;  %9357 = vst [vmem:[#allocation108_spill] sm:$0xff] %v6342_v7  ;;  %9358 = vst [vmem:[#allocation109_spill] sm:$0xff] %v6345_v9  ;;  %v6348_v26 = vld [vmem:[#allocation12 + $0x368] sm:$0xff]  ;;  %v6351_v10 = vld [vmem:[#allocation12 + $0x378] sm:$0xff] }
 0x30d   :  { %1644 = vmatprep.subr.mxu0 %v6336_v11  ;;  %1715 = vmatprep.subr.mxu1 %v6339_v58  ;;  %9359 = vst [vmem:[#allocation110_spill] sm:$0xff] %v6348_v26  ;;  %9360 = vst [vmem:[#allocation111_spill] sm:$0xff] %v6351_v10  ;;  %v6354_v11 = vld [vmem:[#allocation12 + $0x360] sm:$0xff]  ;;  %v6357_v58 = vld [vmem:[#allocation12 + $0x370] sm:$0xff] }
 0x30e   :  { %1645 = vmatpush2.msra.mxu0 %v6342_v7  ;;  %1716 = vmatpush2.msra.mxu1 %v6345_v9  ;;  %9361 = vst [vmem:[#allocation112_spill] sm:$0xff] %v6354_v11  ;;  %9362 = vst [vmem:[#allocation113_spill] sm:$0xff] %v6357_v58  ;;  %v6360_v7 = vld [vmem:[#allocation12 + $0x348] sm:$0xff]  ;;  %v6363_v9 = vld [vmem:[#allocation12 + $0x358] sm:$0xff] }
 0x30f   :  { %1646 = vmatprep.subr.mxu0 %v6348_v26  ;;  %1717 = vmatprep.subr.mxu1 %v6351_v10  ;;  %9363 = vst [vmem:[#allocation114_spill] sm:$0xff] %v6360_v7  ;;  %9364 = vst [vmem:[#allocation115_spill] sm:$0xff] %v6363_v9  ;;  %v6366_v26 = vld [vmem:[#allocation12 + $0x340] sm:$0xff]  ;;  %v6369_v10 = vld [vmem:[#allocation12 + $0x350] sm:$0xff] }
 0x310   :  { %1647 = vmatpush2.msra.mxu0 %v6354_v11  ;;  %1718 = vmatpush2.msra.mxu1 %v6357_v58  ;;  %9365 = vst [vmem:[#allocation116_spill] sm:$0xff] %v6366_v26  ;;  %9366 = vst [vmem:[#allocation117_spill] sm:$0xff] %v6369_v10  ;;  %v6372_v11 = vld [vmem:[#allocation12 + $0x328] sm:$0xff]  ;;  %v6375_v58 = vld [vmem:[#allocation12 + $0x338] sm:$0xff] }
 0x311   :  { %1648 = vmatprep.subr.mxu0 %v6360_v7  ;;  %1719 = vmatprep.subr.mxu1 %v6363_v9  ;;  %9367 = vst [vmem:[#allocation118_spill] sm:$0xff] %v6372_v11  ;;  %9368 = vst [vmem:[#allocation119_spill] sm:$0xff] %v6375_v58  ;;  %v6378_v7 = vld [vmem:[#allocation12 + $0x320] sm:$0xff]  ;;  %v6381_v9 = vld [vmem:[#allocation12 + $0x330] sm:$0xff] }
 0x312   :  { %1649 = vmatpush2.msra.mxu0 %v6366_v26  ;;  %1720 = vmatpush2.msra.mxu1 %v6369_v10  ;;  %9369 = vst [vmem:[#allocation120_spill] sm:$0xff] %v6378_v7  ;;  %9370 = vst [vmem:[#allocation121_spill] sm:$0xff] %v6381_v9  ;;  %v6384_v26 = vld [vmem:[#allocation12 + $0x308] sm:$0xff]  ;;  %v6387_v10 = vld [vmem:[#allocation12 + $0x318] sm:$0xff] }
 0x313   :  { %1650 = vmatprep.subr.mxu0 %v6372_v11  ;;  %1721 = vmatprep.subr.mxu1 %v6375_v58  ;;  %9371 = vst [vmem:[#allocation122_spill] sm:$0xff] %v6384_v26  ;;  %9372 = vst [vmem:[#allocation123_spill] sm:$0xff] %v6387_v10  ;;  %v6390_v11 = vld [vmem:[#allocation12 + $0x300] sm:$0xff]  ;;  %v6393_v58 = vld [vmem:[#allocation12 + $0x310] sm:$0xff] }
 0x314   :  { %1651 = vmatpush2.msra.mxu0 %v6378_v7  ;;  %1722 = vmatpush2.msra.mxu1 %v6381_v9  ;;  %9373 = vst [vmem:[#allocation124_spill] sm:$0xff] %v6390_v11  ;;  %9374 = vst [vmem:[#allocation125_spill] sm:$0xff] %v6393_v58  ;;  %v6396_v7 = vld [vmem:[#allocation12 + $0x2e8] sm:$0xff]  ;;  %v6399_v9 = vld [vmem:[#allocation12 + $0x2f8] sm:$0xff] }
 0x315   :  { %1652 = vmatprep.subr.mxu0 %v6384_v26  ;;  %1723 = vmatprep.subr.mxu1 %v6387_v10  ;;  %9375 = vst [vmem:[#allocation126_spill] sm:$0xff] %v6396_v7  ;;  %9376 = vst [vmem:[#allocation127_spill] sm:$0xff] %v6399_v9  ;;  %v6402_v26 = vld [vmem:[#allocation12 + $0x2e0] sm:$0xff]  ;;  %v6405_v10 = vld [vmem:[#allocation12 + $0x2f0] sm:$0xff] }
 0x316   :  { %1653 = vmatpush2.msra.mxu0 %v6390_v11  ;;  %1724 = vmatpush2.msra.mxu1 %v6393_v58  ;;  %9377 = vst [vmem:[#allocation128_spill] sm:$0xff] %v6402_v26  ;;  %9378 = vst [vmem:[#allocation129_spill] sm:$0xff] %v6405_v10  ;;  %v6408_v11 = vld [vmem:[#allocation12 + $0x2c8] sm:$0xff]  ;;  %v6411_v58 = vld [vmem:[#allocation12 + $0x2d8] sm:$0xff] }
 0x317   :  { %1654 = vmatprep.subr.mxu0 %v6396_v7  ;;  %1725 = vmatprep.subr.mxu1 %v6399_v9  ;;  %9379 = vst [vmem:[#allocation130_spill] sm:$0xff] %v6408_v11  ;;  %9380 = vst [vmem:[#allocation131_spill] sm:$0xff] %v6411_v58  ;;  %v6414_v7 = vld [vmem:[#allocation12 + $0x2c0] sm:$0xff]  ;;  %v6417_v9 = vld [vmem:[#allocation12 + $0x2d0] sm:$0xff] }
 0x318   :  { %1655 = vmatpush2.msra.mxu0 %v6402_v26  ;;  %1726 = vmatpush2.msra.mxu1 %v6405_v10  ;;  %9381 = vst [vmem:[#allocation132_spill] sm:$0xff] %v6414_v7  ;;  %9382 = vst [vmem:[#allocation133_spill] sm:$0xff] %v6417_v9  ;;  %v6420_v26 = vld [vmem:[#allocation12 + $0x2a8] sm:$0xff]  ;;  %v6423_v10 = vld [vmem:[#allocation12 + $0x2b8] sm:$0xff] }
 0x319   :  { %1656 = vmatprep.subr.mxu0 %v6408_v11  ;;  %1727 = vmatprep.subr.mxu1 %v6411_v58  ;;  %9383 = vst [vmem:[#allocation134_spill] sm:$0xff] %v6420_v26  ;;  %9384 = vst [vmem:[#allocation135_spill] sm:$0xff] %v6423_v10  ;;  %v6426_v11 = vld [vmem:[#allocation12 + $0x2a0] sm:$0xff]  ;;  %v6429_v58 = vld [vmem:[#allocation12 + $0x2b0] sm:$0xff] }
 0x31a   :  { %1657 = vmatpush2.msra.mxu0 %v6414_v7  ;;  %1728 = vmatpush2.msra.mxu1 %v6417_v9  ;;  %9385 = vst [vmem:[#allocation136_spill] sm:$0xff] %v6426_v11  ;;  %9386 = vst [vmem:[#allocation137_spill] sm:$0xff] %v6429_v58  ;;  %v6432_v7 = vld [vmem:[#allocation12 + $0x288] sm:$0xff]  ;;  %v6435_v9 = vld [vmem:[#allocation12 + $0x298] sm:$0xff] }
 0x31b   :  { %1658 = vmatprep.subr.mxu0 %v6420_v26  ;;  %1729 = vmatprep.subr.mxu1 %v6423_v10  ;;  %9387 = vst [vmem:[#allocation138_spill] sm:$0xff] %v6432_v7  ;;  %9388 = vst [vmem:[#allocation139_spill] sm:$0xff] %v6435_v9  ;;  %v6438_v26 = vld [vmem:[#allocation12 + $0x280] sm:$0xff]  ;;  %v6441_v10 = vld [vmem:[#allocation12 + $0x290] sm:$0xff] }
 0x31c   :  { %1659 = vmatpush2.msra.mxu0 %v6426_v11  ;;  %1730 = vmatpush2.msra.mxu1 %v6429_v58  ;;  %9389 = vst [vmem:[#allocation140_spill] sm:$0xff] %v6438_v26  ;;  %9390 = vst [vmem:[#allocation141_spill] sm:$0xff] %v6441_v10  ;;  %v6444_v11 = vld [vmem:[#allocation12 + $0x268] sm:$0xff]  ;;  %v6447_v58 = vld [vmem:[#allocation12 + $0x278] sm:$0xff] }
 0x31d   :  { %1660 = vmatprep.subr.mxu0 %v6432_v7  ;;  %1731 = vmatprep.subr.mxu1 %v6435_v9  ;;  %9391 = vst [vmem:[#allocation142_spill] sm:$0xff] %v6444_v11  ;;  %9392 = vst [vmem:[#allocation143_spill] sm:$0xff] %v6447_v58  ;;  %v6450_v7 = vld [vmem:[#allocation12 + $0x260] sm:$0xff]  ;;  %v6453_v9 = vld [vmem:[#allocation12 + $0x270] sm:$0xff] }
 0x31e   :  { %1661 = vmatpush2.msra.mxu0 %v6438_v26  ;;  %1732 = vmatpush2.msra.mxu1 %v6441_v10  ;;  %9393 = vst [vmem:[#allocation144_spill] sm:$0xff] %v6450_v7  ;;  %9394 = vst [vmem:[#allocation145_spill] sm:$0xff] %v6453_v9  ;;  %v6456_v26 = vld [vmem:[#allocation12 + $0x248] sm:$0xff]  ;;  %v6459_v10 = vld [vmem:[#allocation12 + $0x258] sm:$0xff] }
 0x31f   :  { %1662 = vmatprep.subr.mxu0 %v6444_v11  ;;  %1733 = vmatprep.subr.mxu1 %v6447_v58  ;;  %9395 = vst [vmem:[#allocation146_spill] sm:$0xff] %v6456_v26  ;;  %9396 = vst [vmem:[#allocation147_spill] sm:$0xff] %v6459_v10  ;;  %v6462_v11 = vld [vmem:[#allocation12 + $0x240] sm:$0xff]  ;;  %v6465_v58 = vld [vmem:[#allocation12 + $0x250] sm:$0xff] }
 0x320   :  { %1663 = vmatpush2.msra.mxu0 %v6450_v7  ;;  %1734 = vmatpush2.msra.mxu1 %v6453_v9  ;;  %9397 = vst [vmem:[#allocation148_spill] sm:$0xff] %v6462_v11  ;;  %9398 = vst [vmem:[#allocation149_spill] sm:$0xff] %v6465_v58  ;;  %v6468_v7 = vld [vmem:[#allocation12 + $0x228] sm:$0xff]  ;;  %v6471_v9 = vld [vmem:[#allocation12 + $0x238] sm:$0xff] }
 0x321   :  { %1664 = vmatprep.subr.mxu0 %v6456_v26  ;;  %1735 = vmatprep.subr.mxu1 %v6459_v10  ;;  %9399 = vst [vmem:[#allocation150_spill] sm:$0xff] %v6468_v7  ;;  %9400 = vst [vmem:[#allocation151_spill] sm:$0xff] %v6471_v9  ;;  %v6474_v26 = vld [vmem:[#allocation12 + $0x220] sm:$0xff]  ;;  %v6477_v10 = vld [vmem:[#allocation12 + $0x230] sm:$0xff] }
 0x322   :  { %1665 = vmatpush2.msra.mxu0 %v6462_v11  ;;  %1736 = vmatpush2.msra.mxu1 %v6465_v58  ;;  %9401 = vst [vmem:[#allocation152_spill] sm:$0xff] %v6474_v26  ;;  %9402 = vst [vmem:[#allocation153_spill] sm:$0xff] %v6477_v10  ;;  %v6480_v11 = vld [vmem:[#allocation12 + $0x208] sm:$0xff]  ;;  %v6483_v58 = vld [vmem:[#allocation12 + $0x218] sm:$0xff] }
 0x323   :  { %1666 = vmatprep.subr.mxu0 %v6468_v7  ;;  %1737 = vmatprep.subr.mxu1 %v6471_v9  ;;  %9403 = vst [vmem:[#allocation155_spill] sm:$0xff] %v6480_v11  ;;  %9404 = vst [vmem:[#allocation156_spill] sm:$0xff] %v6483_v58  ;;  %v6486_v7 = vld [vmem:[#allocation12 + $0x200] sm:$0xff]  ;;  %v6489_v9 = vld [vmem:[#allocation12 + $0x210] sm:$0xff] }
 0x324   :  { %1667 = vmatpush2.msra.mxu0 %v6474_v26  ;;  %1738 = vmatpush2.msra.mxu1 %v6477_v10  ;;  %9405 = vst [vmem:[#allocation154_spill] sm:$0xff] %v6486_v7  ;;  %9406 = vst [vmem:[#allocation181_spill] sm:$0xff] %v6489_v9 }
 0x325   :  { %1668 = vmatprep.subr.mxu0 %v6480_v11  ;;  %1739 = vmatprep.subr.mxu1 %v6483_v58 }
 0x326   :  { %1669 = vmatpush2.msra.mxu0 %v6486_v7  ;;  %1740 = vmatpush2.msra.mxu1 %v6489_v9 }
 0x327   :  { %1793 = vmatprep.subr.mxu0 %v5906_v35  ;;  %1864 = vmatprep.subr.mxu1 %v5909_v36 }
 0x385   :  { %v1315_v10 = vpop.f32.mrf.mxu0  ;;  %v1386_v58 = vpop.f32.mrf.mxu1 }
 0x386   :  { %v1316_v26 = vadd.f32 %v1315_v10, %v5914_v40  ;;  %v1387_v35 = vadd.f32 %v1386_v58, %v5929_v57 }
 0x387   :  { %v1317_v11 = vpop.f32.mrf.mxu0  ;;  %v1388_v7 = vpop.f32.mrf.mxu1 }
 0x388   :  { %v3698_v6 = vmul.f32 -1.442695, %v1316_v26  ;;  %v1318_v1 = vadd.f32 %v1317_v11, %v5918_v42  ;;  %v1389_v62 = vadd.f32 %v1388_v7, %v5924_v52  ;;  %v9407_v42 = vld [vmem:[#allocation157_spill] sm:$0xff] }
 0x38a   :  { %3855 = vpow2.f32 %v3698_v6  ;;  %v3699_v63 = vmul.f32 -1.442695, %v1318_v1  ;;  %v3700_v61 = vmul.f32 -1.442695, %v1389_v62  ;;  %v9408_v62 = vld [vmem:[#allocation159_spill] sm:$0xff] }
 0x38c   :  { %3857 = vpow2.f32 %v3699_v63 }
 0x38d   :  { %3859 = vpow2.f32 %v3700_v61 }
 0x397   :  { %v3856_v9 = vpop.eup %3855 }
 0x398   :  { %v1394_v60 = vadd.f32 1.0, %v3856_v9 }
 0x399   :  { %v3858_v36 = vpop.eup %3857 }
 0x39a   :  { %3861 = vrcp.f32 %v1394_v60  ;;  %v1400_v10 = vadd.f32 1.0, %v3858_v36  ;;  %v3860_v26 = vpop.eup %3859 }
 0x39b   :  { %3863 = vtanh.f32 %v1387_v35  ;;  %v1407_v9 = vadd.f32 1.0, %v3860_v26 }
 0x39c   :  { %3865 = vrcp.f32 %v1400_v10 }
 0x3a6   :  { %v1502_v11 = vpop.f32.mrf.mxu0  ;;  %v1573_v60 = vpop.f32.mrf.mxu1 }
 0x3a7   :  { %v3862_v6 = vpop.eup %3861  ;;  %v1578_v1 = vadd.f32 %v1502_v11, %v9407_v42  ;;  %v9409_v42 = vld [vmem:[#allocation160_spill] sm:$0xff]  ;;  %v9410_v11 = vld [vmem:[#allocation158_spill] sm:$0xff] }
 0x3a8   :  { %v3864_v63 = vpop.eup %3863  ;;  %v1504_v40 = vpop.f32.mrf.mxu0 }
 0x3a9   :  { %v3866_v59 = vpop.eup %3865  ;;  %v3701_v7 = vmul.f32 -1.442695, %v1578_v1  ;;  %v1579_v52 = vadd.f32 %v1504_v40, %v9408_v62  ;;  %v1411_v27 = vmul.f32 %v3864_v63, %v3862_v6  ;;  %v1575_v36 = vpop.f32.mrf.mxu1  ;;  %v1580_v1 = vadd.f32 %v1573_v60, %v9410_v11 }
 0x3aa   :  { %v1410_v58 = vmul.f32 %v3866_v59, %v5934_v39  ;;  %v1581_v10 = vadd.f32 %v1575_v36, %v9409_v42 }
 0x3ab   :  { %3867 = vpow2.f32 %v3701_v7  ;;  %v3702_v61 = vmul.f32 -1.442695, %v1579_v52 }
 0x3ac   :  { %v6501_v35 = vadd.f32 %v1411_v27, %v1410_v58  ;;  %v3703_v57 = vmul.f32 -1.442695, %v1581_v10 }
 0x3ad   :  { %3869 = vpow2.f32 %v3702_v61 }
 0x3ae   :  { %3871 = vrcp.f32 %v1407_v9 }
 0x3af   :  { %3873 = vtanh.f32 %v6501_v35 }
 0x3b0   :  { %3875 = vtanh.f32 %v1580_v1 }
 0x3b1   :  { %3877 = vpow2.f32 %v3703_v57 }
 0x3b8   :  { %v3868_v40 = vpop.eup %3867 }
 0x3b9   :  { %v1585_v6 = vadd.f32 1.0, %v3868_v40  ;;  %v6520_v40 = vld [vmem:[#allocation11 + $0x1e0] sm:$0xff] }
 0x3ba   :  { %v3870_v39 = vpop.eup %3869 }
 0x3bb   :  { %v3872_v59 = vpop.eup %3871  ;;  %3879 = vrcp.f32 %v1585_v6  ;;  %v1591_v52 = vadd.f32 1.0, %v3870_v39  ;;  %v6529_v6 = vld [vmem:[#allocation11 + $0x1d8] sm:$0xff]  ;;  %v6532_v39 = vld [vmem:[#allocation11 + $0x1c0] sm:$0xff] }
 0x3bc   :  { %v3874_v27 = vpop.eup %3873 }
 0x3bd   :  { %3881 = vrcp.f32 %v1591_v52  ;;  %v6506_v26 = vmul.f32 %v3874_v27, %v3872_v59  ;;  %v3876_v63 = vpop.eup %3875  ;;  %v6535_v59 = vld [vmem:[#allocation11 + $0x1d0] sm:$0xff]  ;;  %v6538_v52 = vld [vmem:[#allocation11 + $0x1a8] sm:$0xff]  ;;  %v6541_v27 = vld [vmem:[#allocation11 + $0x1b8] sm:$0xff] }
 0x3be   :  { %v3878_v7 = vpop.eup %3877 }
 0x3bf   :  { %9411 = vst [vmem:[#allocation157_spill] sm:$0xff] %v6506_v26  ;;  %1670 = vmatprep.mubr.f32.mxu0 %v6506_v26  ;;  %1741 = vmatprep.mubr.f32.mxu1 %v6506_v26  ;;  %3883 = vtanh.f32 %v6506_v26  ;;  %v1598_v60 = vadd.f32 1.0, %v3878_v7  ;;  %v6547_v7 = vld [vmem:[#allocation11 + $0x1b0] sm:$0xff]  ;;  %v6577_v26 = vld [vmem:[#allocation11 + $0x158] sm:$0xff] }
 0x3c1   :  { %3885 = vrcp.f32 %v1598_v60  ;;  %v6559_v60 = vld [vmem:[#allocation11 + $0x190] sm:$0xff] }
 0x3c8   :  { %v3880_v62 = vpop.eup %3879 }
 0x3c9   :  { %v1602_v58 = vmul.f32 %v3880_v62, %v3876_v63  ;;  %v6544_v63 = vld [vmem:[#allocation11 + $0x1a0] sm:$0xff]  ;;  %v6550_v62 = vld [vmem:[#allocation11 + $0x188] sm:$0xff] }
 0x3ca   :  { %v3882_v9 = vpop.eup %3881 }
 0x3cb   :  { %v1601_v57 = vmul.f32 %v3882_v9, %v5950_v8  ;;  %v6523_v8 = vld [vmem:[#allocation11 + $0x1f0] sm:$0xff]  ;;  %v6556_v9 = vld [vmem:[#allocation11 + $0x180] sm:$0xff] }
 0x3cc   :  { %v3884_v61 = vpop.eup %3883 }
 0x3cd   :  { %v6512_v36 = vadd.f32 %v1602_v58, %v1601_v57  ;;  %v1416_v42 = vmul.f32 %v3884_v61, %v5947_v5  ;;  %v6526_v5 = vld [vmem:[#allocation11 + $0x1c8] sm:$0xff]  ;;  %v6553_v58 = vld [vmem:[#allocation11 + $0x198] sm:$0xff] }
 0x3ce   :  { %v3886_v10 = vpop.eup %3885  ;;  %v6562_v57 = vld [vmem:[#allocation11 + $0x168] sm:$0xff]  ;;  %v6565_v61 = vld [vmem:[#allocation11 + $0x178] sm:$0xff] }
 0x3cf   :  { %1417 = vadd.xlane.f32.xlu0 %v1416_v42  ;;  %3887 = vtanh.f32 %v6512_v36  ;;  %v6568_v42 = vld [vmem:[#allocation11 + $0x160] sm:$0xff] }
 0x3dc   :  { %v3888_v11 = vpop.eup %3887 }
 0x3dd   :  { %v6516_v1 = vmul.f32 %v3888_v11, %v3886_v10  ;;  %v6571_v10 = vld [vmem:[#allocation11 + $0x170] sm:$0xff]  ;;  %v6574_v11 = vld [vmem:[#allocation11 + $0x148] sm:$0xff] }
 0x3df   :  { %1671 = vmatmul.mubr.f32.vlgmr.msra.gmra.mxu0 %v6516_v1  ;;  %1742 = vmatmul.mubr.f32.vlgmr.msra.gmra.mxu1 %v6516_v1 }
 0x3e0   :  { %1794 = vmatpush1.msra.mxu0 %v6520_v40  ;;  %1865 = vmatpush1.msra.mxu1 %v6523_v8 }
 0x3e1   :  { %1795 = vmatprep.subr.mxu0 %v6526_v5  ;;  %1866 = vmatprep.subr.mxu1 %v6529_v6 }
 0x3e2   :  { %1796 = vmatpush1.msra.mxu0 %v6532_v39  ;;  %1867 = vmatpush1.msra.mxu1 %v6535_v59 }
 0x3e3   :  { %1797 = vmatprep.subr.mxu0 %v6538_v52  ;;  %1868 = vmatprep.subr.mxu1 %v6541_v27 }
 0x3e4   :  { %1798 = vmatpush1.msra.mxu0 %v6544_v63  ;;  %1869 = vmatpush1.msra.mxu1 %v6547_v7 }
 0x3e5   :  { %1799 = vmatprep.subr.mxu0 %v6550_v62  ;;  %1870 = vmatprep.subr.mxu1 %v6553_v58 }
 0x3e6   :  { %1800 = vmatpush1.msra.mxu0 %v6556_v9  ;;  %1871 = vmatpush1.msra.mxu1 %v6559_v60 }
 0x3e7   :  { %1801 = vmatprep.subr.mxu0 %v6562_v57  ;;  %1872 = vmatprep.subr.mxu1 %v6565_v61 }
 0x3e8   :  { %1802 = vmatpush1.msra.mxu0 %v6568_v42  ;;  %1873 = vmatpush1.msra.mxu1 %v6571_v10 }
 0x3e9   :  { %1803 = vmatprep.subr.mxu0 %v6574_v11  ;;  %1874 = vmatprep.subr.mxu1 %v6577_v26 }
 0x3ea   :  { %1804 = vmatpush1.msra.mxu0 %v5978_v15  ;;  %1875 = vmatpush1.msra.mxu1 %v5981_v23  ;;  %v9412_v15 = vmov 0.0   ;;  %v9413_v23 = vld [vmem:[#allocation29_spill] sm:$0xff] }
 0x3eb   :  { %1805 = vmatprep.subr.mxu0 %v5984_v22  ;;  %1876 = vmatprep.subr.mxu1 %v5987_v14  ;;  %v9414_v22 = vld [vmem:[#allocation30_spill] sm:$0xff]  ;;  %v9415_v14 = vld [vmem:[#allocation31_spill] sm:$0xff] }
 0x3ec   :  { %1806 = vmatpush1.msra.mxu0 %v5990_v24  ;;  %1877 = vmatpush1.msra.mxu1 %v5993_v0  ;;  %v9416_v24 = vld [vmem:[#allocation32_spill] sm:$0xff]  ;;  %v9417_v0 = vld [vmem:[#allocation33_spill] sm:$0xff] }
 0x3ed   :  { %1807 = vmatprep.subr.mxu0 %v5996_v56  ;;  %1878 = vmatprep.subr.mxu1 %v5999_v2  ;;  %v9418_v56 = vld [vmem:[#allocation34_spill] sm:$0xff]  ;;  %v9419_v2 = vld [vmem:[#allocation35_spill] sm:$0xff] }
 0x3ee   :  { %1808 = vmatpush1.msra.mxu0 %v6002_v21  ;;  %1879 = vmatpush1.msra.mxu1 %v6005_v29  ;;  %v9420_v21 = vld [vmem:[#allocation36_spill] sm:$0xff]  ;;  %v9421_v29 = vld [vmem:[#allocation37_spill] sm:$0xff] }
 0x3ef   :  { %1809 = vmatprep.subr.mxu0 %v6008_v12  ;;  %1880 = vmatprep.subr.mxu1 %v6011_v19  ;;  %v9422_v12 = vld [vmem:[#allocation38_spill] sm:$0xff]  ;;  %v9423_v19 = vld [vmem:[#allocation39_spill] sm:$0xff] }
 0x3f0   :  { %1810 = vmatpush1.msra.mxu0 %v6014_v18  ;;  %1881 = vmatpush1.msra.mxu1 %v6017_v13  ;;  %v9424_v18 = vld [vmem:[#allocation40_spill] sm:$0xff]  ;;  %v9425_v13 = vld [vmem:[#allocation41_spill] sm:$0xff] }
 0x3f1   :  { %1811 = vmatprep.subr.mxu0 %v6020_v17  ;;  %1882 = vmatprep.subr.mxu1 %v6023_v25  ;;  %v9426_v17 = vld [vmem:[#allocation42_spill] sm:$0xff]  ;;  %v9427_v25 = vld [vmem:[#allocation43_spill] sm:$0xff] }
 0x3f2   :  { %1812 = vmatpush1.msra.mxu0 %v6026_v20  ;;  %1883 = vmatpush1.msra.mxu1 %v6029_v3  ;;  %v9428_v20 = vld [vmem:[#allocation44_spill] sm:$0xff]  ;;  %v9429_v3 = vld [vmem:[#allocation45_spill] sm:$0xff] }
 0x3f3   :  { %1813 = vmatprep.subr.mxu0 %v6032_v4  ;;  %1884 = vmatprep.subr.mxu1 %v6035_v16  ;;  %v9430_v4 = vld [vmem:[#allocation46_spill] sm:$0xff]  ;;  %v9431_v16 = vld [vmem:[#allocation47_spill] sm:$0xff] }
 0x3f4   :  { %1814 = vmatpush1.msra.mxu0 %v6038_v38  ;;  %1885 = vmatpush1.msra.mxu1 %v6041_v47  ;;  %v9432_v38 = vld [vmem:[#allocation48_spill] sm:$0xff]  ;;  %v9433_v47 = vld [vmem:[#allocation49_spill] sm:$0xff] }
 0x3f5   :  { %1815 = vmatprep.subr.mxu0 %v6044_v28  ;;  %1886 = vmatprep.subr.mxu1 %v6047_v30  ;;  %v9434_v28 = vld [vmem:[#allocation50_spill] sm:$0xff]  ;;  %v9435_v30 = vld [vmem:[#allocation51_spill] sm:$0xff] }
 0x3f6   :  { %1816 = vmatpush1.msra.mxu0 %v6050_v31  ;;  %1887 = vmatpush1.msra.mxu1 %v6053_v32  ;;  %v9436_v31 = vld [vmem:[#allocation52_spill] sm:$0xff]  ;;  %v9437_v32 = vld [vmem:[#allocation53_spill] sm:$0xff] }
 0x3f7   :  { %1817 = vmatprep.subr.mxu0 %v6056_v33  ;;  %1888 = vmatprep.subr.mxu1 %v6059_v34  ;;  %v9438_v33 = vld [vmem:[#allocation54_spill] sm:$0xff]  ;;  %v9439_v34 = vld [vmem:[#allocation55_spill] sm:$0xff] }
 0x3f8   :  { %1818 = vmatpush1.msra.mxu0 %v6062_v37  ;;  %1889 = vmatpush1.msra.mxu1 %v6065_v41  ;;  %v9440_v37 = vld [vmem:[#allocation56_spill] sm:$0xff]  ;;  %v9441_v41 = vld [vmem:[#allocation57_spill] sm:$0xff] }
 0x3f9   :  { %1819 = vmatprep.subr.mxu0 %v6068_v43  ;;  %1890 = vmatprep.subr.mxu1 %v6071_v44  ;;  %v9442_v43 = vld [vmem:[#allocation58_spill] sm:$0xff]  ;;  %v9443_v44 = vld [vmem:[#allocation59_spill] sm:$0xff] }
 0x3fa   :  { %1820 = vmatpush1.msra.mxu0 %v6074_v45  ;;  %1891 = vmatpush1.msra.mxu1 %v6077_v46  ;;  %v9444_v45 = vld [vmem:[#allocation60_spill] sm:$0xff]  ;;  %v9445_v46 = vld [vmem:[#allocation61_spill] sm:$0xff] }
 0x3fb   :  { %1821 = vmatprep.subr.mxu0 %v6080_v48  ;;  %1892 = vmatprep.subr.mxu1 %v6083_v49  ;;  %v9446_v48 = vld [vmem:[#allocation62_spill] sm:$0xff]  ;;  %v9447_v49 = vld [vmem:[#allocation63_spill] sm:$0xff] }
 0x3fc   :  { %1822 = vmatpush1.msra.mxu0 %v6086_v50  ;;  %1893 = vmatpush1.msra.mxu1 %v6089_v51  ;;  %v9448_v50 = vld [vmem:[#allocation64_spill] sm:$0xff]  ;;  %v9449_v51 = vld [vmem:[#allocation65_spill] sm:$0xff] }
 0x3fd   :  { %1823 = vmatprep.subr.mxu0 %v6092_v53  ;;  %1894 = vmatprep.subr.mxu1 %v6095_v54  ;;  %v9450_v53 = vld [vmem:[#allocation66_spill] sm:$0xff]  ;;  %v9451_v54 = vld [vmem:[#allocation67_spill] sm:$0xff] }
 0x3fe   :  { %1824 = vmatpush1.msra.mxu0 %v6098_v55  ;;  %1857 = vmatprep.mubr.f32.mxu0 %v9412_v15  ;;  %v9452_v55 = vld [vmem:[#allocation68_spill] sm:$0xff] }
 0x3ff   :  { %1895 = vmatpush1.msra.mxu1 %v9413_v23  ;;  %1928 = vmatprep.mubr.f32.mxu1 %v9412_v15  ;;  %v9454_v23 = vld [vmem:[#allocation70_spill] sm:$0xff] }
 0x400   :  { %1858 = vmatmul.mubr.f32.vlgmr.msra.gmra.mxu0 %v6516_v1  ;;  %1929 = vmatmul.mubr.f32.vlgmr.msra.gmra.mxu1 %v6516_v1  ;;  %v9453_v1 = vld [vmem:[#allocation69_spill] sm:$0xff] }
 0x401   :  { %1963 = vmatprep.subr.mxu0 %v9414_v22  ;;  %2034 = vmatprep.subr.mxu1 %v9415_v14  ;;  %v9455_v22 = vld [vmem:[#allocation71_spill] sm:$0xff]  ;;  %v9456_v14 = vld [vmem:[#allocation72_spill] sm:$0xff] }
 0x402   :  { %1964 = vmatpush1.msra.mxu0 %v9416_v24  ;;  %2035 = vmatpush1.msra.mxu1 %v9417_v0  ;;  %v9457_v24 = vld [vmem:[#allocation73_spill] sm:$0xff]  ;;  %v9458_v0 = vld [vmem:[#allocation74_spill] sm:$0xff] }
 0x403   :  { %1965 = vmatprep.subr.mxu0 %v9418_v56  ;;  %2036 = vmatprep.subr.mxu1 %v9419_v2  ;;  %v9459_v56 = vld [vmem:[#allocation75_spill] sm:$0xff]  ;;  %v9460_v2 = vld [vmem:[#allocation76_spill] sm:$0xff] }
 0x404   :  { %1966 = vmatpush1.msra.mxu0 %v9420_v21  ;;  %2037 = vmatpush1.msra.mxu1 %v9421_v29  ;;  %v9461_v21 = vld [vmem:[#allocation77_spill] sm:$0xff]  ;;  %v9462_v29 = vld [vmem:[#allocation78_spill] sm:$0xff] }
 0x405   :  { %1967 = vmatprep.subr.mxu0 %v9422_v12  ;;  %2038 = vmatprep.subr.mxu1 %v9423_v19  ;;  %v9463_v12 = vld [vmem:[#allocation79_spill] sm:$0xff]  ;;  %v9464_v19 = vld [vmem:[#allocation80_spill] sm:$0xff] }
 0x406   :  { %1968 = vmatpush1.msra.mxu0 %v9424_v18  ;;  %2039 = vmatpush1.msra.mxu1 %v9425_v13  ;;  %v9465_v18 = vld [vmem:[#allocation81_spill] sm:$0xff]  ;;  %v9466_v13 = vld [vmem:[#allocation82_spill] sm:$0xff] }
 0x407   :  { %1969 = vmatprep.subr.mxu0 %v9426_v17  ;;  %2040 = vmatprep.subr.mxu1 %v9427_v25  ;;  %v9467_v17 = vld [vmem:[#allocation83_spill] sm:$0xff]  ;;  %v9468_v25 = vld [vmem:[#allocation84_spill] sm:$0xff] }
 0x408   :  { %1970 = vmatpush1.msra.mxu0 %v9428_v20  ;;  %2041 = vmatpush1.msra.mxu1 %v9429_v3  ;;  %v9469_v20 = vld [vmem:[#allocation85_spill] sm:$0xff]  ;;  %v9470_v3 = vld [vmem:[#allocation86_spill] sm:$0xff] }
 0x409   :  { %1971 = vmatprep.subr.mxu0 %v9430_v4  ;;  %2042 = vmatprep.subr.mxu1 %v9431_v16  ;;  %v9471_v4 = vld [vmem:[#allocation87_spill] sm:$0xff]  ;;  %v9472_v16 = vld [vmem:[#allocation88_spill] sm:$0xff] }
 0x40a   :  { %1972 = vmatpush1.msra.mxu0 %v9432_v38  ;;  %2043 = vmatpush1.msra.mxu1 %v9433_v47  ;;  %v9473_v38 = vld [vmem:[#allocation89_spill] sm:$0xff]  ;;  %v9474_v47 = vld [vmem:[#allocation90_spill] sm:$0xff] }
 0x40b   :  { %1973 = vmatprep.subr.mxu0 %v9434_v28  ;;  %2044 = vmatprep.subr.mxu1 %v9435_v30  ;;  %v9475_v28 = vld [vmem:[#allocation91_spill] sm:$0xff]  ;;  %v9476_v30 = vld [vmem:[#allocation92_spill] sm:$0xff] }
 0x40c   :  { %1974 = vmatpush1.msra.mxu0 %v9436_v31  ;;  %2045 = vmatpush1.msra.mxu1 %v9437_v32  ;;  %v9477_v31 = vld [vmem:[#allocation93_spill] sm:$0xff]  ;;  %v9478_v32 = vld [vmem:[#allocation94_spill] sm:$0xff] }
 0x40d   :  { %1975 = vmatprep.subr.mxu0 %v9438_v33  ;;  %2046 = vmatprep.subr.mxu1 %v9439_v34  ;;  %v9479_v33 = vld [vmem:[#allocation95_spill] sm:$0xff]  ;;  %v9480_v34 = vld [vmem:[#allocation96_spill] sm:$0xff] }
 0x40e   :  { %1976 = vmatpush1.msra.mxu0 %v9440_v37  ;;  %2047 = vmatpush1.msra.mxu1 %v9441_v41  ;;  %v9481_v37 = vld [vmem:[#allocation97_spill] sm:$0xff]  ;;  %v9482_v41 = vld [vmem:[#allocation98_spill] sm:$0xff] }
 0x40f   :  { %1977 = vmatprep.subr.mxu0 %v9442_v43  ;;  %2048 = vmatprep.subr.mxu1 %v9443_v44  ;;  %v9483_v43 = vld [vmem:[#allocation99_spill] sm:$0xff]  ;;  %v9484_v44 = vld [vmem:[#allocation100_spill] sm:$0xff] }
 0x410   :  { %1978 = vmatpush1.msra.mxu0 %v9444_v45  ;;  %2049 = vmatpush1.msra.mxu1 %v9445_v46  ;;  %v9485_v45 = vld [vmem:[#allocation101_spill] sm:$0xff]  ;;  %v9486_v46 = vld [vmem:[#allocation102_spill] sm:$0xff] }
 0x411   :  { %1979 = vmatprep.subr.mxu0 %v9446_v48  ;;  %2050 = vmatprep.subr.mxu1 %v9447_v49  ;;  %v9487_v48 = vld [vmem:[#allocation103_spill] sm:$0xff]  ;;  %v9488_v49 = vld [vmem:[#allocation104_spill] sm:$0xff] }
 0x412   :  { %1980 = vmatpush1.msra.mxu0 %v9448_v50  ;;  %2051 = vmatpush1.msra.mxu1 %v9449_v51  ;;  %v9489_v50 = vld [vmem:[#allocation105_spill] sm:$0xff]  ;;  %v9490_v51 = vld [vmem:[#allocation106_spill] sm:$0xff] }
 0x413   :  { %1981 = vmatprep.subr.mxu0 %v9450_v53  ;;  %2052 = vmatprep.subr.mxu1 %v9451_v54  ;;  %v9491_v53 = vld [vmem:[#allocation107_spill] sm:$0xff]  ;;  %v9492_v54 = vld [vmem:[#allocation108_spill] sm:$0xff] }
 0x414   :  { %1982 = vmatpush1.msra.mxu0 %v9452_v55  ;;  %2053 = vmatpush1.msra.mxu1 %v9453_v1  ;;  %v9493_v55 = vld [vmem:[#allocation109_spill] sm:$0xff]  ;;  %v9494_v1 = vld [vmem:[#allocation110_spill] sm:$0xff] }
 0x415   :  { %1983 = vmatprep.subr.mxu0 %v9454_v23  ;;  %2054 = vmatprep.subr.mxu1 %v9455_v22  ;;  %v9495_v23 = vld [vmem:[#allocation111_spill] sm:$0xff]  ;;  %v9496_v22 = vld [vmem:[#allocation112_spill] sm:$0xff] }
 0x416   :  { %1984 = vmatpush1.msra.mxu0 %v9456_v14  ;;  %2055 = vmatpush1.msra.mxu1 %v9457_v24  ;;  %v9497_v14 = vld [vmem:[#allocation113_spill] sm:$0xff]  ;;  %v9498_v24 = vld [vmem:[#allocation114_spill] sm:$0xff] }
 0x417   :  { %1985 = vmatprep.subr.mxu0 %v9458_v0  ;;  %2056 = vmatprep.subr.mxu1 %v9459_v56  ;;  %v9499_v0 = vld [vmem:[#allocation115_spill] sm:$0xff]  ;;  %v9500_v56 = vld [vmem:[#allocation116_spill] sm:$0xff] }
 0x418   :  { %1986 = vmatpush1.msra.mxu0 %v9460_v2  ;;  %2057 = vmatpush1.msra.mxu1 %v9461_v21  ;;  %v9501_v2 = vld [vmem:[#allocation117_spill] sm:$0xff]  ;;  %v9502_v21 = vld [vmem:[#allocation118_spill] sm:$0xff] }
 0x419   :  { %1987 = vmatprep.subr.mxu0 %v9462_v29  ;;  %2058 = vmatprep.subr.mxu1 %v9463_v12  ;;  %v9503_v29 = vld [vmem:[#allocation119_spill] sm:$0xff]  ;;  %v9504_v12 = vld [vmem:[#allocation120_spill] sm:$0xff] }
 0x41a   :  { %1988 = vmatpush1.msra.mxu0 %v9464_v19  ;;  %2059 = vmatpush1.msra.mxu1 %v9465_v18  ;;  %v9505_v19 = vld [vmem:[#allocation121_spill] sm:$0xff]  ;;  %v9506_v18 = vld [vmem:[#allocation122_spill] sm:$0xff] }
 0x41b   :  { %1989 = vmatprep.subr.mxu0 %v9466_v13  ;;  %2060 = vmatprep.subr.mxu1 %v9467_v17  ;;  %v9507_v13 = vld [vmem:[#allocation123_spill] sm:$0xff]  ;;  %v9508_v17 = vld [vmem:[#allocation124_spill] sm:$0xff] }
 0x41c   :  { %1990 = vmatpush1.msra.mxu0 %v9468_v25  ;;  %2061 = vmatpush1.msra.mxu1 %v9469_v20  ;;  %v9509_v25 = vld [vmem:[#allocation125_spill] sm:$0xff]  ;;  %v9510_v20 = vld [vmem:[#allocation126_spill] sm:$0xff] }
 0x41d   :  { %1991 = vmatprep.subr.mxu0 %v9470_v3  ;;  %2062 = vmatprep.subr.mxu1 %v9471_v4  ;;  %v9511_v3 = vld [vmem:[#allocation127_spill] sm:$0xff]  ;;  %v9512_v4 = vld [vmem:[#allocation128_spill] sm:$0xff] }
 0x41e   :  { %1992 = vmatpush1.msra.mxu0 %v9472_v16  ;;  %2063 = vmatpush1.msra.mxu1 %v9473_v38  ;;  %v9513_v16 = vld [vmem:[#allocation129_spill] sm:$0xff]  ;;  %v9514_v38 = vld [vmem:[#allocation130_spill] sm:$0xff] }
 0x41f   :  { %1993 = vmatprep.subr.mxu0 %v9474_v47  ;;  %2064 = vmatprep.subr.mxu1 %v9475_v28  ;;  %v9515_v47 = vld [vmem:[#allocation131_spill] sm:$0xff]  ;;  %v9516_v28 = vld [vmem:[#allocation132_spill] sm:$0xff] }
 0x420   :  { %1994 = vmatpush1.msra.mxu0 %v9476_v30  ;;  %2065 = vmatpush1.msra.mxu1 %v9477_v31  ;;  %v9517_v30 = vld [vmem:[#allocation133_spill] sm:$0xff]  ;;  %v9518_v31 = vld [vmem:[#allocation134_spill] sm:$0xff] }
 0x421   :  { %1995 = vmatprep.subr.mxu0 %v9478_v32  ;;  %2066 = vmatprep.subr.mxu1 %v9479_v33  ;;  %v9519_v32 = vld [vmem:[#allocation135_spill] sm:$0xff]  ;;  %v9520_v33 = vld [vmem:[#allocation136_spill] sm:$0xff] }
 0x422   :  { %1996 = vmatpush2.msra.mxu0 %v9480_v34  ;;  %2067 = vmatpush2.msra.mxu1 %v9481_v37  ;;  %v9521_v34 = vld [vmem:[#allocation137_spill] sm:$0xff]  ;;  %v9522_v37 = vld [vmem:[#allocation138_spill] sm:$0xff] }
 0x423   :  { %1997 = vmatprep.subr.mxu0 %v9482_v41  ;;  %2068 = vmatprep.subr.mxu1 %v9483_v43  ;;  %v9523_v41 = vld [vmem:[#allocation139_spill] sm:$0xff]  ;;  %v9524_v43 = vld [vmem:[#allocation140_spill] sm:$0xff] }
 0x424   :  { %1998 = vmatpush2.msra.mxu0 %v9484_v44  ;;  %2069 = vmatpush2.msra.mxu1 %v9485_v45  ;;  %v9525_v44 = vld [vmem:[#allocation141_spill] sm:$0xff]  ;;  %v9526_v45 = vld [vmem:[#allocation142_spill] sm:$0xff] }
 0x425   :  { %1999 = vmatprep.subr.mxu0 %v9486_v46  ;;  %2070 = vmatprep.subr.mxu1 %v9487_v48  ;;  %v9527_v46 = vld [vmem:[#allocation143_spill] sm:$0xff]  ;;  %v9528_v48 = vld [vmem:[#allocation144_spill] sm:$0xff] }
 0x426   :  { %2000 = vmatpush2.msra.mxu0 %v9488_v49  ;;  %2071 = vmatpush2.msra.mxu1 %v9489_v50  ;;  %v9529_v49 = vld [vmem:[#allocation145_spill] sm:$0xff]  ;;  %v9530_v50 = vld [vmem:[#allocation146_spill] sm:$0xff] }
 0x427   :  { %2001 = vmatprep.subr.mxu0 %v9490_v51  ;;  %2072 = vmatprep.subr.mxu1 %v9491_v53  ;;  %v9531_v51 = vld [vmem:[#allocation147_spill] sm:$0xff]  ;;  %v9532_v53 = vld [vmem:[#allocation148_spill] sm:$0xff] }
 0x428   :  { %2002 = vmatpush2.msra.mxu0 %v9492_v54  ;;  %2073 = vmatpush2.msra.mxu1 %v9493_v55  ;;  %v9533_v54 = vld [vmem:[#allocation149_spill] sm:$0xff]  ;;  %v9534_v55 = vld [vmem:[#allocation150_spill] sm:$0xff] }
 0x429   :  { %2003 = vmatprep.subr.mxu0 %v9494_v1  ;;  %2074 = vmatprep.subr.mxu1 %v9495_v23  ;;  %v9535_v1 = vld [vmem:[#allocation151_spill] sm:$0xff]  ;;  %v9536_v23 = vld [vmem:[#allocation152_spill] sm:$0xff] }
 0x42a   :  { %2004 = vmatpush2.msra.mxu0 %v9496_v22  ;;  %2075 = vmatpush2.msra.mxu1 %v9497_v14  ;;  %v9537_v22 = vld [vmem:[#allocation153_spill] sm:$0xff]  ;;  %v9538_v14 = vld [vmem:[#allocation155_spill] sm:$0xff] }
 0x42b   :  { %2005 = vmatprep.subr.mxu0 %v9498_v24  ;;  %2076 = vmatprep.subr.mxu1 %v9499_v0  ;;  %v9539_v24 = vld [vmem:[#allocation156_spill] sm:$0xff]  ;;  %v9540_v0 = vld [vmem:[#allocation154_spill] sm:$0xff] }
 0x42c   :  { %2006 = vmatpush2.msra.mxu0 %v9500_v56  ;;  %2077 = vmatpush2.msra.mxu1 %v9501_v2  ;;  %v9541_v56 = vld [vmem:[#allocation181_spill] sm:$0xff]  ;;  %v6754_v2 = vld [vmem:[#allocation11 + $0x1e8] sm:$0xff] }
 0x42d   :  { %2007 = vmatprep.subr.mxu0 %v9502_v21  ;;  %2078 = vmatprep.subr.mxu1 %v9503_v29  ;;  %v6757_v21 = vld [vmem:[#allocation11 + $0x1f8] sm:$0xff] }
 0x42e   :  { %2008 = vmatpush2.msra.mxu0 %v9504_v12  ;;  %2079 = vmatpush2.msra.mxu1 %v9505_v19  ;;  %v9542_v12 = vld [vmem:[#allocation24_spill] sm:$0xff] }
 0x42f   :  { %2009 = vmatprep.subr.mxu0 %v9506_v18  ;;  %2080 = vmatprep.subr.mxu1 %v9507_v13 }
 0x430   :  { %2010 = vmatpush2.msra.mxu0 %v9508_v17  ;;  %2081 = vmatpush2.msra.mxu1 %v9509_v25  ;;  %v9543_v17 = vld [vmem:[#allocation25_spill] sm:$0xff] }
 0x431   :  { %2011 = vmatprep.subr.mxu0 %v9510_v20  ;;  %2082 = vmatprep.subr.mxu1 %v9511_v3 }
 0x432   :  { %2012 = vmatpush2.msra.mxu0 %v9512_v4  ;;  %2083 = vmatpush2.msra.mxu1 %v9513_v16  ;;  %v9544_v16 = vld [vmem:[#allocation26_spill] sm:$0xff] }
 0x433   :  { %2013 = vmatprep.subr.mxu0 %v9514_v38  ;;  %2084 = vmatprep.subr.mxu1 %v9515_v47 }
 0x434   :  { %2014 = vmatpush2.msra.mxu0 %v9516_v28  ;;  %2085 = vmatpush2.msra.mxu1 %v9517_v30  ;;  %v9545_v30 = vld [vmem:[#allocation27_spill] sm:$0xff] }
 0x435   :  { %2015 = vmatprep.subr.mxu0 %v9518_v31  ;;  %2086 = vmatprep.subr.mxu1 %v9519_v32 }
 0x436   :  { %2016 = vmatpush2.msra.mxu0 %v9520_v33  ;;  %2087 = vmatpush2.msra.mxu1 %v9521_v34 }
 0x437   :  { %2017 = vmatprep.subr.mxu0 %v9522_v37  ;;  %2088 = vmatprep.subr.mxu1 %v9523_v41 }
 0x438   :  { %2018 = vmatpush2.msra.mxu0 %v9524_v43  ;;  %2089 = vmatpush2.msra.mxu1 %v9525_v44  ;;  %v9546_v44 = vld [vmem:[#allocation161_spill] sm:$0xff] }
 0x439   :  { %2019 = vmatprep.subr.mxu0 %v9526_v45  ;;  %2090 = vmatprep.subr.mxu1 %v9527_v46 }
 0x43a   :  { %2020 = vmatpush2.msra.mxu0 %v9528_v48  ;;  %2091 = vmatpush2.msra.mxu1 %v9529_v49 }
 0x43b   :  { %2021 = vmatprep.subr.mxu0 %v9530_v50  ;;  %2092 = vmatprep.subr.mxu1 %v9531_v51  ;;  %v9547_v51 = vld [vmem:[#allocation163_spill] sm:$0xff] }
 0x43c   :  { %2022 = vmatpush2.msra.mxu0 %v9532_v53  ;;  %2093 = vmatpush2.msra.mxu1 %v9533_v54 }
 0x43d   :  { %2023 = vmatprep.subr.mxu0 %v9534_v55  ;;  %2094 = vmatprep.subr.mxu1 %v9535_v1 }
 0x43e   :  { %2024 = vmatpush2.msra.mxu0 %v9536_v23  ;;  %2095 = vmatpush2.msra.mxu1 %v9537_v22 }
 0x43f   :  { %2025 = vmatprep.subr.mxu0 %v9538_v14  ;;  %2096 = vmatprep.subr.mxu1 %v9539_v24 }
 0x440   :  { %2026 = vmatpush2.msra.mxu0 %v9540_v0  ;;  %2097 = vmatpush2.msra.mxu1 %v9541_v56  ;;  %v9548_v0 = vld [vmem:[#allocation164_spill] sm:$0xff] }
 0x441   :  { %2150 = vmatprep.subr.mxu0 %v6754_v2  ;;  %2221 = vmatprep.subr.mxu1 %v6757_v21 }
 0x49f   :  { %v1672_v29 = vpop.f32.mrf.mxu0  ;;  %v1743_v20 = vpop.f32.mrf.mxu1 }
 0x4a0   :  { %v1673_v19 = vadd.f32 %v1672_v29, %v9542_v12  ;;  %v1744_v31 = vadd.f32 %v1743_v20, %v9545_v30  ;;  %v9549_v29 = vld [vmem:[#allocation162_spill] sm:$0xff] }
 0x4a1   :  { %v1674_v18 = vpop.f32.mrf.mxu0  ;;  %v1745_v4 = vpop.f32.mrf.mxu1 }
 0x4a2   :  { %v3704_v13 = vmul.f32 -1.442695, %v1673_v19  ;;  %v1675_v25 = vadd.f32 %v1674_v18, %v9543_v17  ;;  %v1746_v38 = vadd.f32 %v1745_v4, %v9544_v16 }
 0x4a4   :  { %3889 = vpow2.f32 %v3704_v13  ;;  %v3705_v3 = vmul.f32 -1.442695, %v1675_v25  ;;  %v3706_v47 = vmul.f32 -1.442695, %v1746_v38 }
 0x4a6   :  { %3891 = vpow2.f32 %v3705_v3 }
 0x4a7   :  { %3893 = vpow2.f32 %v3706_v47 }
 0x4b1   :  { %v3890_v28 = vpop.eup %3889 }
 0x4b2   :  { %v1751_v32 = vadd.f32 1.0, %v3890_v28 }
 0x4b3   :  { %v3892_v33 = vpop.eup %3891 }
 0x4b4   :  { %3895 = vrcp.f32 %v1751_v32  ;;  %v1757_v34 = vadd.f32 1.0, %v3892_v33  ;;  %v3894_v37 = vpop.eup %3893 }
 0x4b5   :  { %3897 = vtanh.f32 %v1744_v31  ;;  %v1764_v1 = vadd.f32 1.0, %v3894_v37 }
 0x4b6   :  { %3899 = vrcp.f32 %v1757_v34 }
 0x4c0   :  { %v1859_v41 = vpop.f32.mrf.mxu0  ;;  %v1930_v23 = vpop.f32.mrf.mxu1 }
 0x4c1   :  { %v3896_v43 = vpop.eup %3895  ;;  %v1935_v45 = vadd.f32 %v1859_v41, %v9546_v44  ;;  %v1937_v19 = vadd.f32 %v1930_v23, %v9549_v29  ;;  %v6783_v44 = vld [vmem:[%s8428_s8] sm:$0xff]  ;;  %v6892_v23 = vld [vmem:[#allocation11 + $0x78] sm:$0xff] }
 0x4c2   :  { %v3898_v46 = vpop.eup %3897  ;;  %v1861_v48 = vpop.f32.mrf.mxu0  ;;  %v6907_v29 = vld [vmem:[#allocation11 + $0x40] sm:$0xff] }
 0x4c3   :  { %v3900_v49 = vpop.eup %3899  ;;  %v3707_v50 = vmul.f32 -1.442695, %v1935_v45  ;;  %v1936_v53 = vadd.f32 %v1861_v48, %v9547_v51  ;;  %v1768_v54 = vmul.f32 %v3898_v46, %v3896_v43  ;;  %v1932_v24 = vpop.f32.mrf.mxu1  ;;  %v6877_v51 = vld [vmem:[#allocation11 + $0x88] sm:$0xff] }
 0x4c4   :  { %v1767_v55 = vmul.f32 %v3900_v49, %v6501_v35  ;;  %v1938_v56 = vadd.f32 %v1932_v24, %v9548_v0  ;;  %v6898_v24 = vld [vmem:[#allocation11 + $0x70] sm:$0xff]  ;;  %v6901_v0 = vld [vmem:[#allocation11 + $0x48] sm:$0xff] }
 0x4c5   :  { %3901 = vpow2.f32 %v3707_v50  ;;  %v3708_v22 = vmul.f32 -1.442695, %v1936_v53  ;;  %v6874_v50 = vld [vmem:[#allocation11 + $0xb0] sm:$0xff]  ;;  %v6880_v53 = vld [vmem:[#allocation11 + $0x98] sm:$0xff] }
 0x4c6   :  { %v6767_v14 = vadd.f32 %v1768_v54, %v1767_v55  ;;  %v3709_v18 = vmul.f32 -1.442695, %v1938_v56  ;;  %v6883_v54 = vld [vmem:[#allocation11 + $0x80] sm:$0xff]  ;;  %v6886_v55 = vld [vmem:[#allocation11 + $0x90] sm:$0xff]  ;;  %v6904_v56 = vld [vmem:[#allocation11 + $0x58] sm:$0xff] }
 0x4c7   :  { %3903 = vpow2.f32 %v3708_v22  ;;  %v6895_v22 = vld [vmem:[#allocation11 + $0x60] sm:$0xff] }
 0x4c8   :  { %3905 = vrcp.f32 %v1764_v1  ;;  %v6889_v1 = vld [vmem:[#allocation11 + $0x68] sm:$0xff] }
 0x4c9   :  { %3907 = vtanh.f32 %v6767_v14 }
 0x4ca   :  { %3909 = vtanh.f32 %v1937_v19  ;;  %v6910_v19 = vld [vmem:[#allocation11 + $0x50] sm:$0xff] }
 0x4cb   :  { %3911 = vpow2.f32 %v3709_v18  ;;  %v6913_v18 = vld [vmem:[#allocation11 + $0x28] sm:$0xff] }
 0x4d2   :  { %v3902_v13 = vpop.eup %3901 }
 0x4d3   :  { %v1942_v25 = vadd.f32 1.0, %v3902_v13  ;;  %v6916_v13 = vld [vmem:[#allocation11 + $0x38] sm:$0xff] }
 0x4d4   :  { %v3904_v35 = vpop.eup %3903 }
 0x4d5   :  { %v3906_v20 = vpop.eup %3905  ;;  %3913 = vrcp.f32 %v1942_v25  ;;  %v1948_v3 = vadd.f32 1.0, %v3904_v35  ;;  %v6919_v25 = vld [vmem:[#allocation11 + $0x20] sm:$0xff]  ;;  %v6922_v35 = vld [vmem:[#allocation11 + $0x30] sm:$0xff] }
 0x4d6   :  { %v3908_v4 = vpop.eup %3907 }
 0x4d7   :  { %3915 = vrcp.f32 %v1948_v3  ;;  %v6772_v38 = vmul.f32 %v3908_v4, %v3906_v20  ;;  %v3910_v47 = vpop.eup %3909  ;;  %v6925_v20 = vld [vmem:[#allocation11 + $0x8] sm:$0xff]  ;;  %v6928_v3 = vld [vmem:[#allocation11 + $0x18] sm:$0xff]  ;;  %v6931_v4 = vld [vmem:[#allocation11] sm:$0xff] }
 0x4d8   :  { %v3912_v28 = vpop.eup %3911 }
 0x4d9   :  { %9550 = vst [vmem:[#allocation159_spill] sm:$0xff] %v6772_v38  ;;  %2027 = vmatprep.mubr.f32.mxu0 %v6772_v38  ;;  %2098 = vmatprep.mubr.f32.mxu1 %v6772_v38  ;;  %3917 = vtanh.f32 %v6772_v38  ;;  %v1955_v34 = vadd.f32 1.0, %v3912_v28  ;;  %v6941_v28 = vld [vmem:[#allocation12 + $0x1e8] sm:$0xff]  ;;  %v6974_v38 = vld [vmem:[#allocation12 + $0x1b0] sm:$0xff] }
 0x4da   :  { %9552 = vst [vmem:[#allocation158_spill] sm:$0xff] %v6941_v28  ;;  %9563 = vst [vmem:[#allocation39_spill] sm:$0xff] %v6974_v38 }
 0x4db   :  { %3919 = vrcp.f32 %v1955_v34  ;;  %v6953_v34 = vld [vmem:[#allocation12 + $0x1c8] sm:$0xff] }
 0x4dc   :  { %9556 = vst [vmem:[#allocation32_spill] sm:$0xff] %v6953_v34 }
 0x4e2   :  { %v3914_v31 = vpop.eup %3913 }
 0x4e3   :  { %v1959_v32 = vmul.f32 %v3914_v31, %v3910_v47  ;;  %v6935_v47 = vld [vmem:[#allocation11 + $0x10] sm:$0xff]  ;;  %v6944_v31 = vld [vmem:[#allocation12 + $0x1f8] sm:$0xff] }
 0x4e4   :  { %v3916_v33 = vpop.eup %3915  ;;  %9551 = vst [vmem:[#allocation160_spill] sm:$0xff] %v6935_v47  ;;  %9553 = vst [vmem:[#allocation29_spill] sm:$0xff] %v6944_v31 }
 0x4e5   :  { %v1958_v37 = vmul.f32 %v3916_v33, %v6512_v36  ;;  %v6811_v36 = vld [vmem:[#allocation11 + $0x140] sm:$0xff]  ;;  %v6950_v33 = vld [vmem:[#allocation12 + $0x1f0] sm:$0xff] }
 0x4e6   :  { %v3918_v41 = vpop.eup %3917  ;;  %9555 = vst [vmem:[#allocation31_spill] sm:$0xff] %v6950_v33 }
 0x4e7   :  { %v6778_v43 = vadd.f32 %v1959_v32, %v1958_v37  ;;  %v1773_v45 = vmul.f32 %v6783_v44, %v3918_v41  ;;  %v6947_v32 = vld [vmem:[#allocation12 + $0x1e0] sm:$0xff]  ;;  %v6956_v37 = vld [vmem:[#allocation12 + $0x1d8] sm:$0xff] }
 0x4e8   :  { %v3920_v46 = vpop.eup %3919  ;;  %9554 = vst [vmem:[#allocation30_spill] sm:$0xff] %v6947_v32  ;;  %9557 = vst [vmem:[#allocation33_spill] sm:$0xff] %v6956_v37  ;;  %v6959_v41 = vld [vmem:[#allocation12 + $0x1c0] sm:$0xff] }
 0x4e9   :  { %1774 = vadd.xlane.f32.xlu1 %v1773_v45  ;;  %3921 = vtanh.f32 %v6778_v43  ;;  %9558 = vst [vmem:[#allocation34_spill] sm:$0xff] %v6959_v41  ;;  %v6962_v45 = vld [vmem:[#allocation12 + $0x1d0] sm:$0xff] }
 0x4ea   :  { %9559 = vst [vmem:[#allocation35_spill] sm:$0xff] %v6962_v45 }
 0x4f6   :  { %v3922_v48 = vpop.eup %3921 }
 0x4f7   :  { %v6787_v49 = vmul.f32 %v3922_v48, %v3920_v46  ;;  %v6965_v46 = vld [vmem:[#allocation12 + $0x1a8] sm:$0xff]  ;;  %v6968_v48 = vld [vmem:[#allocation12 + $0x1b8] sm:$0xff] }
 0x4f8   :  { %9560 = vst [vmem:[#allocation36_spill] sm:$0xff] %v6965_v46  ;;  %9561 = vst [vmem:[#allocation37_spill] sm:$0xff] %v6968_v48 }
 0x4f9   :  { %2028 = vmatmul.mubr.f32.vlgmr.msra.gmra.mxu0 %v6787_v49  ;;  %2099 = vmatmul.mubr.f32.vlgmr.msra.gmra.mxu1 %v6787_v49 }
 0x4fa   :  { %2151 = vmatpush1.msra.mxu0 %v6520_v40  ;;  %2222 = vmatpush1.msra.mxu1 %v6523_v8  ;;  %v6814_v40 = vld [vmem:[#allocation11 + $0x150] sm:$0xff]  ;;  %v6817_v8 = vld [vmem:[#allocation11 + $0x128] sm:$0xff] }
 0x4fb   :  { %2152 = vmatprep.subr.mxu0 %v6526_v5  ;;  %2223 = vmatprep.subr.mxu1 %v6529_v6  ;;  %v6820_v5 = vld [vmem:[#allocation11 + $0x138] sm:$0xff]  ;;  %v6823_v6 = vld [vmem:[#allocation11 + $0x120] sm:$0xff] }
 0x4fc   :  { %2153 = vmatpush1.msra.mxu0 %v6532_v39  ;;  %2224 = vmatpush1.msra.mxu1 %v6535_v59  ;;  %v6829_v39 = vld [vmem:[#allocation11 + $0x108] sm:$0xff]  ;;  %v6832_v59 = vld [vmem:[#allocation11 + $0x118] sm:$0xff] }
 0x4fd   :  { %2154 = vmatprep.subr.mxu0 %v6538_v52  ;;  %2225 = vmatprep.subr.mxu1 %v6541_v27  ;;  %v6835_v52 = vld [vmem:[#allocation11 + $0x100] sm:$0xff]  ;;  %v6838_v27 = vld [vmem:[#allocation11 + $0x110] sm:$0xff] }
 0x4fe   :  { %2155 = vmatpush1.msra.mxu0 %v6544_v63  ;;  %2226 = vmatpush1.msra.mxu1 %v6547_v7  ;;  %v6841_v63 = vld [vmem:[#allocation11 + $0xe8] sm:$0xff]  ;;  %v6844_v7 = vld [vmem:[#allocation11 + $0xf8] sm:$0xff] }
 0x4ff   :  { %2156 = vmatprep.subr.mxu0 %v6550_v62  ;;  %2227 = vmatprep.subr.mxu1 %v6553_v58  ;;  %v6847_v62 = vld [vmem:[#allocation11 + $0xe0] sm:$0xff]  ;;  %v6850_v58 = vld [vmem:[#allocation11 + $0xf0] sm:$0xff] }
 0x500   :  { %2157 = vmatpush1.msra.mxu0 %v6556_v9  ;;  %2228 = vmatpush1.msra.mxu1 %v6559_v60  ;;  %v6853_v9 = vld [vmem:[#allocation11 + $0xc8] sm:$0xff]  ;;  %v6856_v60 = vld [vmem:[#allocation11 + $0xd8] sm:$0xff] }
 0x501   :  { %2158 = vmatprep.subr.mxu0 %v6562_v57  ;;  %2229 = vmatprep.subr.mxu1 %v6565_v61  ;;  %v6859_v57 = vld [vmem:[#allocation11 + $0xc0] sm:$0xff]  ;;  %v6862_v61 = vld [vmem:[#allocation11 + $0xd0] sm:$0xff] }
 0x502   :  { %2159 = vmatpush1.msra.mxu0 %v6568_v42  ;;  %2230 = vmatpush1.msra.mxu1 %v6571_v10  ;;  %v6865_v42 = vld [vmem:[#allocation11 + $0xa8] sm:$0xff]  ;;  %v6868_v10 = vld [vmem:[#allocation11 + $0xb8] sm:$0xff] }
 0x503   :  { %2160 = vmatprep.subr.mxu0 %v6574_v11  ;;  %2231 = vmatprep.subr.mxu1 %v6577_v26  ;;  %v6826_v26 = vld [vmem:[#allocation11 + $0x130] sm:$0xff]  ;;  %v6871_v11 = vld [vmem:[#allocation11 + $0xa0] sm:$0xff] }
 0x504   :  { %2161 = vmatpush1.msra.mxu0 %v6811_v36  ;;  %2232 = vmatpush1.msra.mxu1 %v6814_v40 }
 0x505   :  { %2162 = vmatprep.subr.mxu0 %v6817_v8  ;;  %2233 = vmatprep.subr.mxu1 %v6820_v5 }
 0x506   :  { %2163 = vmatpush1.msra.mxu0 %v6823_v6  ;;  %2234 = vmatpush1.msra.mxu1 %v6826_v26 }
 0x507   :  { %2164 = vmatprep.subr.mxu0 %v6829_v39  ;;  %2235 = vmatprep.subr.mxu1 %v6832_v59 }
 0x508   :  { %2165 = vmatpush1.msra.mxu0 %v6835_v52  ;;  %2236 = vmatpush1.msra.mxu1 %v6838_v27 }
 0x509   :  { %2166 = vmatprep.subr.mxu0 %v6841_v63  ;;  %2237 = vmatprep.subr.mxu1 %v6844_v7 }
 0x50a   :  { %2167 = vmatpush1.msra.mxu0 %v6847_v62  ;;  %2238 = vmatpush1.msra.mxu1 %v6850_v58 }
 0x50b   :  { %2168 = vmatprep.subr.mxu0 %v6853_v9  ;;  %2239 = vmatprep.subr.mxu1 %v6856_v60 }
 0x50c   :  { %2169 = vmatpush1.msra.mxu0 %v6859_v57  ;;  %2240 = vmatpush1.msra.mxu1 %v6862_v61 }
 0x50d   :  { %2170 = vmatprep.subr.mxu0 %v6865_v42  ;;  %2241 = vmatprep.subr.mxu1 %v6868_v10 }
 0x50e   :  { %2171 = vmatpush1.msra.mxu0 %v6871_v11  ;;  %2242 = vmatpush1.msra.mxu1 %v6874_v50 }
 0x50f   :  { %2172 = vmatprep.subr.mxu0 %v6877_v51  ;;  %2243 = vmatprep.subr.mxu1 %v6880_v53 }
 0x510   :  { %2173 = vmatpush1.msra.mxu0 %v6883_v54  ;;  %2244 = vmatpush1.msra.mxu1 %v6886_v55 }
 0x511   :  { %2174 = vmatprep.subr.mxu0 %v6889_v1  ;;  %2245 = vmatprep.subr.mxu1 %v6892_v23 }
 0x512   :  { %2175 = vmatpush1.msra.mxu0 %v6895_v22  ;;  %2246 = vmatpush1.msra.mxu1 %v6898_v24 }
 0x513   :  { %2176 = vmatprep.subr.mxu0 %v6901_v0  ;;  %2247 = vmatprep.subr.mxu1 %v6904_v56 }
 0x514   :  { %2177 = vmatpush1.msra.mxu0 %v6907_v29  ;;  %2248 = vmatpush1.msra.mxu1 %v6910_v19 }
 0x515   :  { %2178 = vmatprep.subr.mxu0 %v6913_v18  ;;  %2249 = vmatprep.subr.mxu1 %v6916_v13 }
 0x516   :  { %2179 = vmatpush1.msra.mxu0 %v6919_v25  ;;  %2250 = vmatpush1.msra.mxu1 %v6922_v35 }
 0x517   :  { %2180 = vmatprep.subr.mxu0 %v6925_v20  ;;  %2251 = vmatprep.subr.mxu1 %v6928_v3 }
 0x518   :  { %2181 = vmatpush1.msra.mxu0 %v6931_v4  ;;  %2214 = vmatprep.mubr.f32.mxu0 %v9412_v15 }
 0x519   :  { %2252 = vmatpush1.msra.mxu1 %v6935_v47  ;;  %2285 = vmatprep.mubr.f32.mxu1 %v9412_v15 }
 0x51a   :  { %2215 = vmatmul.mubr.f32.vlgmr.msra.gmra.mxu0 %v6787_v49  ;;  %2286 = vmatmul.mubr.f32.vlgmr.msra.gmra.mxu1 %v6787_v49  ;;  %v6971_v49 = vld [vmem:[#allocation12 + $0x1a0] sm:$0xff] }
 0x51b   :  { %2320 = vmatprep.subr.mxu0 %v6941_v28  ;;  %2391 = vmatprep.subr.mxu1 %v6944_v31  ;;  %9562 = vst [vmem:[#allocation38_spill] sm:$0xff] %v6971_v49 }
 0x51c   :  { %2321 = vmatpush1.msra.mxu0 %v6947_v32  ;;  %2392 = vmatpush1.msra.mxu1 %v6950_v33 }
 0x51d   :  { %2322 = vmatprep.subr.mxu0 %v6953_v34  ;;  %2393 = vmatprep.subr.mxu1 %v6956_v37 }
 0x51e   :  { %2323 = vmatpush1.msra.mxu0 %v6959_v41  ;;  %2394 = vmatpush1.msra.mxu1 %v6962_v45  ;;  %v6977_v41 = vld [vmem:[#allocation12 + $0x188] sm:$0xff]  ;;  %v6980_v45 = vld [vmem:[#allocation12 + $0x198] sm:$0xff] }
 0x51f   :  { %2324 = vmatprep.subr.mxu0 %v6965_v46  ;;  %2395 = vmatprep.subr.mxu1 %v6968_v48  ;;  %9564 = vst [vmem:[#allocation40_spill] sm:$0xff] %v6977_v41  ;;  %9565 = vst [vmem:[#allocation41_spill] sm:$0xff] %v6980_v45  ;;  %v6983_v46 = vld [vmem:[#allocation12 + $0x180] sm:$0xff]  ;;  %v6986_v48 = vld [vmem:[#allocation12 + $0x190] sm:$0xff] }
 0x520   :  { %2325 = vmatpush1.msra.mxu0 %v6971_v49  ;;  %2396 = vmatpush1.msra.mxu1 %v6974_v38  ;;  %9566 = vst [vmem:[#allocation42_spill] sm:$0xff] %v6983_v46  ;;  %9567 = vst [vmem:[#allocation43_spill] sm:$0xff] %v6986_v48  ;;  %v6989_v49 = vld [vmem:[#allocation12 + $0x168] sm:$0xff]  ;;  %v6992_v38 = vld [vmem:[#allocation12 + $0x178] sm:$0xff] }
 0x521   :  { %2326 = vmatprep.subr.mxu0 %v6977_v41  ;;  %2397 = vmatprep.subr.mxu1 %v6980_v45  ;;  %9568 = vst [vmem:[#allocation44_spill] sm:$0xff] %v6989_v49  ;;  %9569 = vst [vmem:[#allocation45_spill] sm:$0xff] %v6992_v38  ;;  %v6995_v41 = vld [vmem:[#allocation12 + $0x160] sm:$0xff]  ;;  %v6998_v45 = vld [vmem:[#allocation12 + $0x170] sm:$0xff] }
 0x522   :  { %2327 = vmatpush1.msra.mxu0 %v6983_v46  ;;  %2398 = vmatpush1.msra.mxu1 %v6986_v48  ;;  %9570 = vst [vmem:[#allocation46_spill] sm:$0xff] %v6995_v41  ;;  %9571 = vst [vmem:[#allocation47_spill] sm:$0xff] %v6998_v45  ;;  %v7001_v46 = vld [vmem:[#allocation12 + $0x148] sm:$0xff]  ;;  %v7004_v48 = vld [vmem:[#allocation12 + $0x158] sm:$0xff] }
 0x523   :  { %2328 = vmatprep.subr.mxu0 %v6989_v49  ;;  %2399 = vmatprep.subr.mxu1 %v6992_v38  ;;  %9572 = vst [vmem:[#allocation48_spill] sm:$0xff] %v7001_v46  ;;  %9573 = vst [vmem:[#allocation49_spill] sm:$0xff] %v7004_v48  ;;  %v7007_v49 = vld [vmem:[#allocation12 + $0x140] sm:$0xff]  ;;  %v7010_v38 = vld [vmem:[#allocation12 + $0x150] sm:$0xff] }
 0x524   :  { %2329 = vmatpush1.msra.mxu0 %v6995_v41  ;;  %2400 = vmatpush1.msra.mxu1 %v6998_v45  ;;  %9574 = vst [vmem:[#allocation50_spill] sm:$0xff] %v7007_v49  ;;  %9575 = vst [vmem:[#allocation51_spill] sm:$0xff] %v7010_v38  ;;  %v7013_v41 = vld [vmem:[#allocation12 + $0x128] sm:$0xff]  ;;  %v7016_v45 = vld [vmem:[#allocation12 + $0x138] sm:$0xff] }
 0x525   :  { %2330 = vmatprep.subr.mxu0 %v7001_v46  ;;  %2401 = vmatprep.subr.mxu1 %v7004_v48  ;;  %9576 = vst [vmem:[#allocation52_spill] sm:$0xff] %v7013_v41  ;;  %9577 = vst [vmem:[#allocation53_spill] sm:$0xff] %v7016_v45  ;;  %v7019_v46 = vld [vmem:[#allocation12 + $0x120] sm:$0xff]  ;;  %v7022_v48 = vld [vmem:[#allocation12 + $0x130] sm:$0xff] }
 0x526   :  { %2331 = vmatpush1.msra.mxu0 %v7007_v49  ;;  %2402 = vmatpush1.msra.mxu1 %v7010_v38  ;;  %9578 = vst [vmem:[#allocation54_spill] sm:$0xff] %v7019_v46  ;;  %9579 = vst [vmem:[#allocation55_spill] sm:$0xff] %v7022_v48  ;;  %v7025_v49 = vld [vmem:[#allocation12 + $0x108] sm:$0xff]  ;;  %v7028_v38 = vld [vmem:[#allocation12 + $0x118] sm:$0xff] }
 0x527   :  { %2332 = vmatprep.subr.mxu0 %v7013_v41  ;;  %2403 = vmatprep.subr.mxu1 %v7016_v45  ;;  %9580 = vst [vmem:[#allocation56_spill] sm:$0xff] %v7025_v49  ;;  %9581 = vst [vmem:[#allocation57_spill] sm:$0xff] %v7028_v38  ;;  %v7031_v41 = vld [vmem:[#allocation12 + $0x100] sm:$0xff]  ;;  %v7034_v45 = vld [vmem:[#allocation12 + $0x110] sm:$0xff] }
 0x528   :  { %2333 = vmatpush1.msra.mxu0 %v7019_v46  ;;  %2404 = vmatpush1.msra.mxu1 %v7022_v48  ;;  %9582 = vst [vmem:[#allocation58_spill] sm:$0xff] %v7031_v41  ;;  %9583 = vst [vmem:[#allocation59_spill] sm:$0xff] %v7034_v45  ;;  %v7037_v46 = vld [vmem:[#allocation12 + $0xe8] sm:$0xff]  ;;  %v7040_v48 = vld [vmem:[#allocation12 + $0xf8] sm:$0xff] }
 0x529   :  { %2334 = vmatprep.subr.mxu0 %v7025_v49  ;;  %2405 = vmatprep.subr.mxu1 %v7028_v38  ;;  %9584 = vst [vmem:[#allocation60_spill] sm:$0xff] %v7037_v46  ;;  %9585 = vst [vmem:[#allocation61_spill] sm:$0xff] %v7040_v48  ;;  %v7043_v49 = vld [vmem:[#allocation12 + $0xe0] sm:$0xff]  ;;  %v7046_v38 = vld [vmem:[#allocation12 + $0xf0] sm:$0xff] }
 0x52a   :  { %2335 = vmatpush1.msra.mxu0 %v7031_v41  ;;  %2406 = vmatpush1.msra.mxu1 %v7034_v45  ;;  %9586 = vst [vmem:[#allocation62_spill] sm:$0xff] %v7043_v49  ;;  %9587 = vst [vmem:[#allocation63_spill] sm:$0xff] %v7046_v38  ;;  %v7049_v41 = vld [vmem:[#allocation12 + $0xc8] sm:$0xff]  ;;  %v7052_v45 = vld [vmem:[#allocation12 + $0xd8] sm:$0xff] }
 0x52b   :  { %2336 = vmatprep.subr.mxu0 %v7037_v46  ;;  %2407 = vmatprep.subr.mxu1 %v7040_v48  ;;  %9588 = vst [vmem:[#allocation64_spill] sm:$0xff] %v7049_v41  ;;  %9589 = vst [vmem:[#allocation65_spill] sm:$0xff] %v7052_v45  ;;  %v7055_v46 = vld [vmem:[#allocation12 + $0xc0] sm:$0xff]  ;;  %v7058_v48 = vld [vmem:[#allocation12 + $0xd0] sm:$0xff] }
 0x52c   :  { %2337 = vmatpush1.msra.mxu0 %v7043_v49  ;;  %2408 = vmatpush1.msra.mxu1 %v7046_v38  ;;  %9590 = vst [vmem:[#allocation66_spill] sm:$0xff] %v7055_v46  ;;  %9591 = vst [vmem:[#allocation67_spill] sm:$0xff] %v7058_v48  ;;  %v7061_v49 = vld [vmem:[#allocation12 + $0xa8] sm:$0xff]  ;;  %v7064_v38 = vld [vmem:[#allocation12 + $0xb8] sm:$0xff] }
 0x52d   :  { %2338 = vmatprep.subr.mxu0 %v7049_v41  ;;  %2409 = vmatprep.subr.mxu1 %v7052_v45  ;;  %9592 = vst [vmem:[#allocation68_spill] sm:$0xff] %v7061_v49  ;;  %9593 = vst [vmem:[#allocation69_spill] sm:$0xff] %v7064_v38  ;;  %v7067_v41 = vld [vmem:[#allocation12 + $0xa0] sm:$0xff]  ;;  %v7070_v45 = vld [vmem:[#allocation12 + $0xb0] sm:$0xff] }
 0x52e   :  { %2339 = vmatpush1.msra.mxu0 %v7055_v46  ;;  %2410 = vmatpush1.msra.mxu1 %v7058_v48  ;;  %9594 = vst [vmem:[#allocation70_spill] sm:$0xff] %v7067_v41  ;;  %9595 = vst [vmem:[#allocation71_spill] sm:$0xff] %v7070_v45  ;;  %v7073_v46 = vld [vmem:[#allocation12 + $0x88] sm:$0xff]  ;;  %v7076_v48 = vld [vmem:[#allocation12 + $0x98] sm:$0xff] }
 0x52f   :  { %2340 = vmatprep.subr.mxu0 %v7061_v49  ;;  %2411 = vmatprep.subr.mxu1 %v7064_v38  ;;  %9596 = vst [vmem:[#allocation72_spill] sm:$0xff] %v7073_v46  ;;  %9597 = vst [vmem:[#allocation73_spill] sm:$0xff] %v7076_v48  ;;  %v7079_v49 = vld [vmem:[#allocation12 + $0x80] sm:$0xff]  ;;  %v7082_v38 = vld [vmem:[#allocation12 + $0x90] sm:$0xff] }
 0x530   :  { %2341 = vmatpush1.msra.mxu0 %v7067_v41  ;;  %2412 = vmatpush1.msra.mxu1 %v7070_v45  ;;  %9598 = vst [vmem:[#allocation74_spill] sm:$0xff] %v7079_v49  ;;  %9599 = vst [vmem:[#allocation75_spill] sm:$0xff] %v7082_v38  ;;  %v7085_v41 = vld [vmem:[#allocation12 + $0x68] sm:$0xff]  ;;  %v7088_v45 = vld [vmem:[#allocation12 + $0x78] sm:$0xff] }
 0x531   :  { %2342 = vmatprep.subr.mxu0 %v7073_v46  ;;  %2413 = vmatprep.subr.mxu1 %v7076_v48  ;;  %9600 = vst [vmem:[#allocation76_spill] sm:$0xff] %v7085_v41  ;;  %9601 = vst [vmem:[#allocation77_spill] sm:$0xff] %v7088_v45  ;;  %v7091_v46 = vld [vmem:[#allocation12 + $0x60] sm:$0xff]  ;;  %v7094_v48 = vld [vmem:[#allocation12 + $0x70] sm:$0xff] }
 0x532   :  { %2343 = vmatpush1.msra.mxu0 %v7079_v49  ;;  %2414 = vmatpush1.msra.mxu1 %v7082_v38  ;;  %9602 = vst [vmem:[#allocation78_spill] sm:$0xff] %v7091_v46  ;;  %9603 = vst [vmem:[#allocation79_spill] sm:$0xff] %v7094_v48  ;;  %v7097_v49 = vld [vmem:[#allocation12 + $0x48] sm:$0xff]  ;;  %v7100_v38 = vld [vmem:[#allocation12 + $0x58] sm:$0xff] }
 0x533   :  { %2344 = vmatprep.subr.mxu0 %v7085_v41  ;;  %2415 = vmatprep.subr.mxu1 %v7088_v45  ;;  %9604 = vst [vmem:[#allocation80_spill] sm:$0xff] %v7097_v49  ;;  %9605 = vst [vmem:[#allocation81_spill] sm:$0xff] %v7100_v38  ;;  %v7103_v41 = vld [vmem:[#allocation12 + $0x40] sm:$0xff]  ;;  %v7106_v45 = vld [vmem:[#allocation12 + $0x50] sm:$0xff] }
 0x534   :  { %2345 = vmatpush1.msra.mxu0 %v7091_v46  ;;  %2416 = vmatpush1.msra.mxu1 %v7094_v48  ;;  %9606 = vst [vmem:[#allocation82_spill] sm:$0xff] %v7103_v41  ;;  %9607 = vst [vmem:[#allocation83_spill] sm:$0xff] %v7106_v45  ;;  %v7109_v46 = vld [vmem:[#allocation12 + $0x28] sm:$0xff]  ;;  %v7112_v48 = vld [vmem:[#allocation12 + $0x38] sm:$0xff] }
 0x535   :  { %2346 = vmatprep.subr.mxu0 %v7097_v49  ;;  %2417 = vmatprep.subr.mxu1 %v7100_v38  ;;  %9608 = vst [vmem:[#allocation84_spill] sm:$0xff] %v7109_v46  ;;  %9609 = vst [vmem:[#allocation85_spill] sm:$0xff] %v7112_v48  ;;  %v7115_v49 = vld [vmem:[#allocation12 + $0x20] sm:$0xff]  ;;  %v7118_v38 = vld [vmem:[#allocation12 + $0x30] sm:$0xff] }
 0x536   :  { %2347 = vmatpush1.msra.mxu0 %v7103_v41  ;;  %2418 = vmatpush1.msra.mxu1 %v7106_v45  ;;  %9610 = vst [vmem:[#allocation86_spill] sm:$0xff] %v7115_v49  ;;  %9611 = vst [vmem:[#allocation87_spill] sm:$0xff] %v7118_v38  ;;  %v7121_v41 = vld [vmem:[#allocation12 + $0x8] sm:$0xff]  ;;  %v7124_v45 = vld [vmem:[#allocation12 + $0x18] sm:$0xff] }
 0x537   :  { %2348 = vmatprep.subr.mxu0 %v7109_v46  ;;  %2419 = vmatprep.subr.mxu1 %v7112_v48  ;;  %9612 = vst [vmem:[#allocation88_spill] sm:$0xff] %v7121_v41  ;;  %9613 = vst [vmem:[#allocation89_spill] sm:$0xff] %v7124_v45  ;;  %v7127_v46 = vld [vmem:[#allocation12] sm:$0xff]  ;;  %v7130_v48 = vld [vmem:[#allocation12 + $0x10] sm:$0xff] }
 0x538   :  { %2349 = vmatpush1.msra.mxu0 %v7115_v49  ;;  %2420 = vmatpush1.msra.mxu1 %v7118_v38  ;;  %9614 = vst [vmem:[#allocation90_spill] sm:$0xff] %v7127_v46  ;;  %9615 = vst [vmem:[#allocation91_spill] sm:$0xff] %v7130_v48  ;;  %v7133_v49 = vld [vmem:[#allocation12 + $0x3e8] sm:$0xff]  ;;  %v7136_v38 = vld [vmem:[#allocation12 + $0x3f8] sm:$0xff] }
 0x539   :  { %2350 = vmatprep.subr.mxu0 %v7121_v41  ;;  %2421 = vmatprep.subr.mxu1 %v7124_v45  ;;  %9616 = vst [vmem:[#allocation92_spill] sm:$0xff] %v7133_v49  ;;  %9617 = vst [vmem:[#allocation93_spill] sm:$0xff] %v7136_v38  ;;  %v7139_v41 = vld [vmem:[#allocation12 + $0x3e0] sm:$0xff]  ;;  %v7142_v45 = vld [vmem:[#allocation12 + $0x3f0] sm:$0xff] }
 0x53a   :  { %2351 = vmatpush1.msra.mxu0 %v7127_v46  ;;  %2422 = vmatpush1.msra.mxu1 %v7130_v48  ;;  %9618 = vst [vmem:[#allocation94_spill] sm:$0xff] %v7139_v41  ;;  %9619 = vst [vmem:[#allocation95_spill] sm:$0xff] %v7142_v45  ;;  %v7145_v46 = vld [vmem:[#allocation12 + $0x3c8] sm:$0xff]  ;;  %v7148_v48 = vld [vmem:[#allocation12 + $0x3d8] sm:$0xff] }
 0x53b   :  { %2352 = vmatprep.subr.mxu0 %v7133_v49  ;;  %2423 = vmatprep.subr.mxu1 %v7136_v38  ;;  %9620 = vst [vmem:[#allocation96_spill] sm:$0xff] %v7145_v46  ;;  %9621 = vst [vmem:[#allocation97_spill] sm:$0xff] %v7148_v48  ;;  %v7151_v49 = vld [vmem:[#allocation12 + $0x3c0] sm:$0xff]  ;;  %v7154_v38 = vld [vmem:[#allocation12 + $0x3d0] sm:$0xff] }
 0x53c   :  { %2353 = vmatpush2.msra.mxu0 %v7139_v41  ;;  %2424 = vmatpush2.msra.mxu1 %v7142_v45  ;;  %9622 = vst [vmem:[#allocation98_spill] sm:$0xff] %v7151_v49  ;;  %9623 = vst [vmem:[#allocation99_spill] sm:$0xff] %v7154_v38  ;;  %v7157_v41 = vld [vmem:[#allocation12 + $0x3a8] sm:$0xff]  ;;  %v7160_v45 = vld [vmem:[#allocation12 + $0x3b8] sm:$0xff] }
 0x53d   :  { %2354 = vmatprep.subr.mxu0 %v7145_v46  ;;  %2425 = vmatprep.subr.mxu1 %v7148_v48  ;;  %9624 = vst [vmem:[#allocation100_spill] sm:$0xff] %v7157_v41  ;;  %9625 = vst [vmem:[#allocation101_spill] sm:$0xff] %v7160_v45  ;;  %v7163_v46 = vld [vmem:[#allocation12 + $0x3a0] sm:$0xff]  ;;  %v7166_v48 = vld [vmem:[#allocation12 + $0x3b0] sm:$0xff] }
 0x53e   :  { %2355 = vmatpush2.msra.mxu0 %v7151_v49  ;;  %2426 = vmatpush2.msra.mxu1 %v7154_v38  ;;  %9626 = vst [vmem:[#allocation102_spill] sm:$0xff] %v7163_v46  ;;  %9627 = vst [vmem:[#allocation103_spill] sm:$0xff] %v7166_v48  ;;  %v7169_v49 = vld [vmem:[#allocation12 + $0x388] sm:$0xff]  ;;  %v7172_v38 = vld [vmem:[#allocation12 + $0x398] sm:$0xff] }
 0x53f   :  { %2356 = vmatprep.subr.mxu0 %v7157_v41  ;;  %2427 = vmatprep.subr.mxu1 %v7160_v45  ;;  %9628 = vst [vmem:[#allocation104_spill] sm:$0xff] %v7169_v49  ;;  %9629 = vst [vmem:[#allocation105_spill] sm:$0xff] %v7172_v38  ;;  %v7175_v41 = vld [vmem:[#allocation12 + $0x380] sm:$0xff]  ;;  %v7178_v45 = vld [vmem:[#allocation12 + $0x390] sm:$0xff] }
 0x540   :  { %2357 = vmatpush2.msra.mxu0 %v7163_v46  ;;  %2428 = vmatpush2.msra.mxu1 %v7166_v48  ;;  %9630 = vst [vmem:[#allocation106_spill] sm:$0xff] %v7175_v41  ;;  %9631 = vst [vmem:[#allocation107_spill] sm:$0xff] %v7178_v45  ;;  %v7181_v46 = vld [vmem:[#allocation12 + $0x368] sm:$0xff]  ;;  %v7184_v48 = vld [vmem:[#allocation12 + $0x378] sm:$0xff] }
 0x541   :  { %2358 = vmatprep.subr.mxu0 %v7169_v49  ;;  %2429 = vmatprep.subr.mxu1 %v7172_v38  ;;  %9632 = vst [vmem:[#allocation108_spill] sm:$0xff] %v7181_v46  ;;  %9633 = vst [vmem:[#allocation109_spill] sm:$0xff] %v7184_v48  ;;  %v7187_v49 = vld [vmem:[#allocation12 + $0x360] sm:$0xff]  ;;  %v7190_v38 = vld [vmem:[#allocation12 + $0x370] sm:$0xff] }
 0x542   :  { %2359 = vmatpush2.msra.mxu0 %v7175_v41  ;;  %2430 = vmatpush2.msra.mxu1 %v7178_v45  ;;  %9634 = vst [vmem:[#allocation110_spill] sm:$0xff] %v7187_v49  ;;  %9635 = vst [vmem:[#allocation111_spill] sm:$0xff] %v7190_v38  ;;  %v7193_v41 = vld [vmem:[#allocation12 + $0x348] sm:$0xff]  ;;  %v7196_v45 = vld [vmem:[#allocation12 + $0x358] sm:$0xff] }
 0x543   :  { %2360 = vmatprep.subr.mxu0 %v7181_v46  ;;  %2431 = vmatprep.subr.mxu1 %v7184_v48  ;;  %9636 = vst [vmem:[#allocation112_spill] sm:$0xff] %v7193_v41  ;;  %9637 = vst [vmem:[#allocation113_spill] sm:$0xff] %v7196_v45  ;;  %v7199_v46 = vld [vmem:[#allocation12 + $0x340] sm:$0xff]  ;;  %v7202_v48 = vld [vmem:[#allocation12 + $0x350] sm:$0xff] }
 0x544   :  { %2361 = vmatpush2.msra.mxu0 %v7187_v49  ;;  %2432 = vmatpush2.msra.mxu1 %v7190_v38  ;;  %9638 = vst [vmem:[#allocation114_spill] sm:$0xff] %v7199_v46  ;;  %9639 = vst [vmem:[#allocation115_spill] sm:$0xff] %v7202_v48  ;;  %v7205_v49 = vld [vmem:[#allocation12 + $0x328] sm:$0xff]  ;;  %v7208_v38 = vld [vmem:[#allocation12 + $0x338] sm:$0xff] }
 0x545   :  { %2362 = vmatprep.subr.mxu0 %v7193_v41  ;;  %2433 = vmatprep.subr.mxu1 %v7196_v45  ;;  %9640 = vst [vmem:[#allocation116_spill] sm:$0xff] %v7205_v49  ;;  %9641 = vst [vmem:[#allocation117_spill] sm:$0xff] %v7208_v38  ;;  %v7211_v41 = vld [vmem:[#allocation12 + $0x320] sm:$0xff]  ;;  %v7214_v45 = vld [vmem:[#allocation12 + $0x330] sm:$0xff] }
 0x546   :  { %2363 = vmatpush2.msra.mxu0 %v7199_v46  ;;  %2434 = vmatpush2.msra.mxu1 %v7202_v48  ;;  %9642 = vst [vmem:[#allocation118_spill] sm:$0xff] %v7211_v41  ;;  %9643 = vst [vmem:[#allocation119_spill] sm:$0xff] %v7214_v45  ;;  %v7217_v46 = vld [vmem:[#allocation12 + $0x308] sm:$0xff]  ;;  %v7220_v48 = vld [vmem:[#allocation12 + $0x318] sm:$0xff] }
 0x547   :  { %2364 = vmatprep.subr.mxu0 %v7205_v49  ;;  %2435 = vmatprep.subr.mxu1 %v7208_v38  ;;  %9644 = vst [vmem:[#allocation120_spill] sm:$0xff] %v7217_v46  ;;  %9645 = vst [vmem:[#allocation121_spill] sm:$0xff] %v7220_v48  ;;  %v7223_v49 = vld [vmem:[#allocation12 + $0x300] sm:$0xff]  ;;  %v7226_v38 = vld [vmem:[#allocation12 + $0x310] sm:$0xff] }
 0x548   :  { %2365 = vmatpush2.msra.mxu0 %v7211_v41  ;;  %2436 = vmatpush2.msra.mxu1 %v7214_v45  ;;  %9646 = vst [vmem:[#allocation122_spill] sm:$0xff] %v7223_v49  ;;  %9647 = vst [vmem:[#allocation123_spill] sm:$0xff] %v7226_v38  ;;  %v7229_v41 = vld [vmem:[#allocation12 + $0x2e8] sm:$0xff]  ;;  %v7232_v45 = vld [vmem:[#allocation12 + $0x2f8] sm:$0xff] }
 0x549   :  { %2366 = vmatprep.subr.mxu0 %v7217_v46  ;;  %2437 = vmatprep.subr.mxu1 %v7220_v48  ;;  %9648 = vst [vmem:[#allocation124_spill] sm:$0xff] %v7229_v41  ;;  %9649 = vst [vmem:[#allocation125_spill] sm:$0xff] %v7232_v45  ;;  %v7235_v46 = vld [vmem:[#allocation12 + $0x2e0] sm:$0xff]  ;;  %v7238_v48 = vld [vmem:[#allocation12 + $0x2f0] sm:$0xff] }
 0x54a   :  { %2367 = vmatpush2.msra.mxu0 %v7223_v49  ;;  %2438 = vmatpush2.msra.mxu1 %v7226_v38  ;;  %9650 = vst [vmem:[#allocation126_spill] sm:$0xff] %v7235_v46  ;;  %9651 = vst [vmem:[#allocation127_spill] sm:$0xff] %v7238_v48  ;;  %v7241_v49 = vld [vmem:[#allocation12 + $0x2c8] sm:$0xff]  ;;  %v7244_v38 = vld [vmem:[#allocation12 + $0x2d8] sm:$0xff] }
 0x54b   :  { %2368 = vmatprep.subr.mxu0 %v7229_v41  ;;  %2439 = vmatprep.subr.mxu1 %v7232_v45  ;;  %9652 = vst [vmem:[#allocation128_spill] sm:$0xff] %v7241_v49  ;;  %9653 = vst [vmem:[#allocation129_spill] sm:$0xff] %v7244_v38  ;;  %v7247_v41 = vld [vmem:[#allocation12 + $0x2c0] sm:$0xff]  ;;  %v7250_v45 = vld [vmem:[#allocation12 + $0x2d0] sm:$0xff] }
 0x54c   :  { %2369 = vmatpush2.msra.mxu0 %v7235_v46  ;;  %2440 = vmatpush2.msra.mxu1 %v7238_v48  ;;  %9654 = vst [vmem:[#allocation130_spill] sm:$0xff] %v7247_v41  ;;  %9655 = vst [vmem:[#allocation131_spill] sm:$0xff] %v7250_v45  ;;  %v7253_v46 = vld [vmem:[#allocation12 + $0x2a8] sm:$0xff]  ;;  %v7256_v48 = vld [vmem:[#allocation12 + $0x2b8] sm:$0xff] }
 0x54d   :  { %2370 = vmatprep.subr.mxu0 %v7241_v49  ;;  %2441 = vmatprep.subr.mxu1 %v7244_v38  ;;  %9656 = vst [vmem:[#allocation132_spill] sm:$0xff] %v7253_v46  ;;  %9657 = vst [vmem:[#allocation133_spill] sm:$0xff] %v7256_v48  ;;  %v7259_v49 = vld [vmem:[#allocation12 + $0x2a0] sm:$0xff]  ;;  %v7262_v38 = vld [vmem:[#allocation12 + $0x2b0] sm:$0xff] }
 0x54e   :  { %2371 = vmatpush2.msra.mxu0 %v7247_v41  ;;  %2442 = vmatpush2.msra.mxu1 %v7250_v45  ;;  %9658 = vst [vmem:[#allocation134_spill] sm:$0xff] %v7259_v49  ;;  %9659 = vst [vmem:[#allocation135_spill] sm:$0xff] %v7262_v38  ;;  %v7265_v41 = vld [vmem:[#allocation12 + $0x288] sm:$0xff]  ;;  %v7268_v45 = vld [vmem:[#allocation12 + $0x298] sm:$0xff] }
 0x54f   :  { %2372 = vmatprep.subr.mxu0 %v7253_v46  ;;  %2443 = vmatprep.subr.mxu1 %v7256_v48  ;;  %9660 = vst [vmem:[#allocation136_spill] sm:$0xff] %v7265_v41  ;;  %9661 = vst [vmem:[#allocation137_spill] sm:$0xff] %v7268_v45  ;;  %v7271_v46 = vld [vmem:[#allocation12 + $0x280] sm:$0xff]  ;;  %v7274_v48 = vld [vmem:[#allocation12 + $0x290] sm:$0xff] }
 0x550   :  { %2373 = vmatpush2.msra.mxu0 %v7259_v49  ;;  %2444 = vmatpush2.msra.mxu1 %v7262_v38  ;;  %9662 = vst [vmem:[#allocation138_spill] sm:$0xff] %v7271_v46  ;;  %9663 = vst [vmem:[#allocation139_spill] sm:$0xff] %v7274_v48  ;;  %v7277_v49 = vld [vmem:[#allocation12 + $0x268] sm:$0xff]  ;;  %v7280_v38 = vld [vmem:[#allocation12 + $0x278] sm:$0xff] }
 0x551   :  { %2374 = vmatprep.subr.mxu0 %v7265_v41  ;;  %2445 = vmatprep.subr.mxu1 %v7268_v45  ;;  %9664 = vst [vmem:[#allocation140_spill] sm:$0xff] %v7277_v49  ;;  %9665 = vst [vmem:[#allocation141_spill] sm:$0xff] %v7280_v38  ;;  %v7283_v41 = vld [vmem:[#allocation12 + $0x260] sm:$0xff]  ;;  %v7286_v45 = vld [vmem:[#allocation12 + $0x270] sm:$0xff] }
 0x552   :  { %2375 = vmatpush2.msra.mxu0 %v7271_v46  ;;  %2446 = vmatpush2.msra.mxu1 %v7274_v48  ;;  %9666 = vst [vmem:[#allocation142_spill] sm:$0xff] %v7283_v41  ;;  %9667 = vst [vmem:[#allocation143_spill] sm:$0xff] %v7286_v45  ;;  %v7289_v46 = vld [vmem:[#allocation12 + $0x248] sm:$0xff]  ;;  %v7292_v48 = vld [vmem:[#allocation12 + $0x258] sm:$0xff] }
 0x553   :  { %2376 = vmatprep.subr.mxu0 %v7277_v49  ;;  %2447 = vmatprep.subr.mxu1 %v7280_v38  ;;  %9668 = vst [vmem:[#allocation144_spill] sm:$0xff] %v7289_v46  ;;  %9669 = vst [vmem:[#allocation145_spill] sm:$0xff] %v7292_v48  ;;  %v7295_v49 = vld [vmem:[#allocation12 + $0x240] sm:$0xff]  ;;  %v7298_v38 = vld [vmem:[#allocation12 + $0x250] sm:$0xff] }
 0x554   :  { %2377 = vmatpush2.msra.mxu0 %v7283_v41  ;;  %2448 = vmatpush2.msra.mxu1 %v7286_v45  ;;  %9670 = vst [vmem:[#allocation146_spill] sm:$0xff] %v7295_v49  ;;  %9671 = vst [vmem:[#allocation147_spill] sm:$0xff] %v7298_v38  ;;  %v7301_v41 = vld [vmem:[#allocation12 + $0x228] sm:$0xff]  ;;  %v7304_v45 = vld [vmem:[#allocation12 + $0x238] sm:$0xff] }
 0x555   :  { %2378 = vmatprep.subr.mxu0 %v7289_v46  ;;  %2449 = vmatprep.subr.mxu1 %v7292_v48  ;;  %9672 = vst [vmem:[#allocation148_spill] sm:$0xff] %v7301_v41  ;;  %9673 = vst [vmem:[#allocation149_spill] sm:$0xff] %v7304_v45  ;;  %v7307_v46 = vld [vmem:[#allocation12 + $0x220] sm:$0xff]  ;;  %v7310_v48 = vld [vmem:[#allocation12 + $0x230] sm:$0xff] }
 0x556   :  { %2379 = vmatpush2.msra.mxu0 %v7295_v49  ;;  %2450 = vmatpush2.msra.mxu1 %v7298_v38  ;;  %9674 = vst [vmem:[#allocation150_spill] sm:$0xff] %v7307_v46  ;;  %9675 = vst [vmem:[#allocation151_spill] sm:$0xff] %v7310_v48  ;;  %v7313_v49 = vld [vmem:[#allocation12 + $0x208] sm:$0xff]  ;;  %v7316_v38 = vld [vmem:[#allocation12 + $0x218] sm:$0xff] }
 0x557   :  { %2380 = vmatprep.subr.mxu0 %v7301_v41  ;;  %2451 = vmatprep.subr.mxu1 %v7304_v45  ;;  %9676 = vst [vmem:[#allocation152_spill] sm:$0xff] %v7313_v49  ;;  %9677 = vst [vmem:[#allocation153_spill] sm:$0xff] %v7316_v38  ;;  %v7319_v41 = vld [vmem:[#allocation12 + $0x200] sm:$0xff]  ;;  %v7322_v45 = vld [vmem:[#allocation12 + $0x210] sm:$0xff] }
 0x558   :  { %2381 = vmatpush2.msra.mxu0 %v7307_v46  ;;  %2452 = vmatpush2.msra.mxu1 %v7310_v48  ;;  %9678 = vst [vmem:[#allocation155_spill] sm:$0xff] %v7319_v41  ;;  %9679 = vst [vmem:[#allocation156_spill] sm:$0xff] %v7322_v45 }
 0x559   :  { %2382 = vmatprep.subr.mxu0 %v7313_v49  ;;  %2453 = vmatprep.subr.mxu1 %v7316_v38 }
 0x55a   :  { %2383 = vmatpush2.msra.mxu0 %v7319_v41  ;;  %2454 = vmatpush2.msra.mxu1 %v7322_v45 }
 0x55b   :  { %2507 = vmatprep.subr.mxu0 %v6754_v2  ;;  %2578 = vmatprep.subr.mxu1 %v6757_v21 }
 0x5b9   :  { %v2029_v48 = vpop.f32.mrf.mxu0  ;;  %v2100_v38 = vpop.f32.mrf.mxu1 }
 0x5ba   :  { %v2030_v46 = vadd.f32 %v2029_v48, %v9542_v12  ;;  %v2101_v2 = vadd.f32 %v2100_v38, %v9545_v30 }
 0x5bb   :  { %v2031_v49 = vpop.f32.mrf.mxu0  ;;  %v2102_v41 = vpop.f32.mrf.mxu1 }
 0x5bc   :  { %v3710_v37 = vmul.f32 -1.442695, %v2030_v46  ;;  %v2032_v34 = vadd.f32 %v2031_v49, %v9543_v17  ;;  %v2103_v32 = vadd.f32 %v2102_v41, %v9544_v16  ;;  %v9680_v17 = vld [vmem:[#allocation165_spill] sm:$0xff] }
 0x5be   :  { %3923 = vpow2.f32 %v3710_v37  ;;  %v3711_v33 = vmul.f32 -1.442695, %v2032_v34  ;;  %v3712_v31 = vmul.f32 -1.442695, %v2103_v32  ;;  %v9681_v32 = vld [vmem:[#allocation167_spill] sm:$0xff] }
 0x5c0   :  { %3925 = vpow2.f32 %v3711_v33 }
 0x5c1   :  { %3927 = vpow2.f32 %v3712_v31 }
 0x5cb   :  { %v3924_v45 = vpop.eup %3923 }
 0x5cc   :  { %v2108_v28 = vadd.f32 1.0, %v3924_v45 }
 0x5cd   :  { %v3926_v21 = vpop.eup %3925 }
 0x5ce   :  { %3929 = vrcp.f32 %v2108_v28  ;;  %v2114_v48 = vadd.f32 1.0, %v3926_v21  ;;  %v3928_v46 = vpop.eup %3927 }
 0x5cf   :  { %3931 = vtanh.f32 %v2101_v2  ;;  %v2121_v45 = vadd.f32 1.0, %v3928_v46 }
 0x5d0   :  { %3933 = vrcp.f32 %v2114_v48 }
 0x5da   :  { %v2216_v49 = vpop.f32.mrf.mxu0  ;;  %v2287_v28 = vpop.f32.mrf.mxu1 }
 0x5db   :  { %v3930_v37 = vpop.eup %3929  ;;  %v2292_v34 = vadd.f32 %v2216_v49, %v9680_v17  ;;  %v9682_v17 = vld [vmem:[#allocation168_spill] sm:$0xff]  ;;  %v9683_v49 = vld [vmem:[#allocation166_spill] sm:$0xff] }
 0x5dc   :  { %v3932_v33 = vpop.eup %3931  ;;  %v2218_v12 = vpop.f32.mrf.mxu0 }
 0x5dd   :  { %v3934_v47 = vpop.eup %3933  ;;  %v3713_v41 = vmul.f32 -1.442695, %v2292_v34  ;;  %v2293_v16 = vadd.f32 %v2218_v12, %v9681_v32  ;;  %v2125_v15 = vmul.f32 %v3932_v33, %v3930_v37  ;;  %v2289_v21 = vpop.f32.mrf.mxu1  ;;  %v2294_v34 = vadd.f32 %v2287_v28, %v9683_v49 }
 0x5de   :  { %v2124_v38 = vmul.f32 %v3934_v47, %v6767_v14  ;;  %v2295_v48 = vadd.f32 %v2289_v21, %v9682_v17 }
 0x5df   :  { %3935 = vpow2.f32 %v3713_v41  ;;  %v3714_v31 = vmul.f32 -1.442695, %v2293_v16 }
 0x5e0   :  { %v7334_v2 = vadd.f32 %v2125_v15, %v2124_v38  ;;  %v3715_v30 = vmul.f32 -1.442695, %v2295_v48 }
 0x5e1   :  { %3937 = vpow2.f32 %v3714_v31 }
 0x5e2   :  { %3939 = vrcp.f32 %v2121_v45 }
 0x5e3   :  { %3941 = vtanh.f32 %v7334_v2 }
 0x5e4   :  { %3943 = vtanh.f32 %v2294_v34 }
 0x5e5   :  { %3945 = vpow2.f32 %v3715_v30 }
 0x5ec   :  { %v3936_v12 = vpop.eup %3935 }
 0x5ed   :  { %v2299_v37 = vadd.f32 1.0, %v3936_v12  ;;  %v7353_v12 = vld [vmem:[#allocation11 + $0x1e0] sm:$0xff] }
 0x5ee   :  { %v3938_v14 = vpop.eup %3937 }
 0x5ef   :  { %v3940_v47 = vpop.eup %3939  ;;  %3947 = vrcp.f32 %v2299_v37  ;;  %v2305_v16 = vadd.f32 1.0, %v3938_v14  ;;  %v7362_v37 = vld [vmem:[#allocation11 + $0x1d8] sm:$0xff]  ;;  %v7365_v14 = vld [vmem:[#allocation11 + $0x1c0] sm:$0xff] }
 0x5f0   :  { %v3942_v15 = vpop.eup %3941 }
 0x5f1   :  { %3949 = vrcp.f32 %v2305_v16  ;;  %v7339_v46 = vmul.f32 %v3942_v15, %v3940_v47  ;;  %v3944_v33 = vpop.eup %3943  ;;  %v7368_v47 = vld [vmem:[#allocation11 + $0x1d0] sm:$0xff]  ;;  %v7371_v16 = vld [vmem:[#allocation11 + $0x1a8] sm:$0xff]  ;;  %v7374_v15 = vld [vmem:[#allocation11 + $0x1b8] sm:$0xff] }
 0x5f2   :  { %v3946_v41 = vpop.eup %3945 }
 0x5f3   :  { %9684 = vst [vmem:[#allocation154_spill] sm:$0xff] %v7339_v46  ;;  %2384 = vmatprep.mubr.f32.mxu0 %v7339_v46  ;;  %2455 = vmatprep.mubr.f32.mxu1 %v7339_v46  ;;  %3951 = vtanh.f32 %v7339_v46  ;;  %v2312_v28 = vadd.f32 1.0, %v3946_v41  ;;  %v7380_v41 = vld [vmem:[#allocation11 + $0x1b0] sm:$0xff]  ;;  %v7410_v46 = vld [vmem:[#allocation11 + $0x158] sm:$0xff] }
 0x5f5   :  { %3953 = vrcp.f32 %v2312_v28  ;;  %v7392_v28 = vld [vmem:[#allocation11 + $0x190] sm:$0xff] }
 0x5fc   :  { %v3948_v32 = vpop.eup %3947 }
 0x5fd   :  { %v2316_v38 = vmul.f32 %v3948_v32, %v3944_v33  ;;  %v7377_v33 = vld [vmem:[#allocation11 + $0x1a0] sm:$0xff]  ;;  %v7383_v32 = vld [vmem:[#allocation11 + $0x188] sm:$0xff] }
 0x5fe   :  { %v3950_v45 = vpop.eup %3949 }
 0x5ff   :  { %v2315_v30 = vmul.f32 %v3950_v45, %v6778_v43  ;;  %v7356_v43 = vld [vmem:[#allocation11 + $0x1f0] sm:$0xff]  ;;  %v7389_v45 = vld [vmem:[#allocation11 + $0x180] sm:$0xff] }
 0x600   :  { %v3952_v31 = vpop.eup %3951 }
 0x601   :  { %v7345_v21 = vadd.f32 %v2316_v38, %v2315_v30  ;;  %v2130_v17 = vmul.f32 %v6783_v44, %v3952_v31  ;;  %v7359_v44 = vld [vmem:[#allocation11 + $0x1c8] sm:$0xff]  ;;  %v7386_v38 = vld [vmem:[#allocation11 + $0x198] sm:$0xff] }
 0x602   :  { %v3954_v48 = vpop.eup %3953  ;;  %v7395_v30 = vld [vmem:[#allocation11 + $0x168] sm:$0xff]  ;;  %v7398_v31 = vld [vmem:[#allocation11 + $0x178] sm:$0xff] }
 0x603   :  { %2131 = vadd.xlane.f32.xlu1 %v2130_v17  ;;  %3955 = vtanh.f32 %v7345_v21  ;;  %v7401_v17 = vld [vmem:[#allocation11 + $0x160] sm:$0xff] }
 0x610   :  { %v3956_v49 = vpop.eup %3955 }
 0x611   :  { %v7349_v34 = vmul.f32 %v3956_v49, %v3954_v48  ;;  %v7404_v48 = vld [vmem:[#allocation11 + $0x170] sm:$0xff]  ;;  %v7407_v49 = vld [vmem:[#allocation11 + $0x148] sm:$0xff] }
 0x613   :  { %2385 = vmatmul.mubr.f32.vlgmr.msra.gmra.mxu0 %v7349_v34  ;;  %2456 = vmatmul.mubr.f32.vlgmr.msra.gmra.mxu1 %v7349_v34 }
 0x614   :  { %2508 = vmatpush1.msra.mxu0 %v7353_v12  ;;  %2579 = vmatpush1.msra.mxu1 %v7356_v43 }
 0x615   :  { %2509 = vmatprep.subr.mxu0 %v7359_v44  ;;  %2580 = vmatprep.subr.mxu1 %v7362_v37 }
 0x616   :  { %2510 = vmatpush1.msra.mxu0 %v7365_v14  ;;  %2581 = vmatpush1.msra.mxu1 %v7368_v47 }
 0x617   :  { %2511 = vmatprep.subr.mxu0 %v7371_v16  ;;  %2582 = vmatprep.subr.mxu1 %v7374_v15 }
 0x618   :  { %2512 = vmatpush1.msra.mxu0 %v7377_v33  ;;  %2583 = vmatpush1.msra.mxu1 %v7380_v41 }
 0x619   :  { %2513 = vmatprep.subr.mxu0 %v7383_v32  ;;  %2584 = vmatprep.subr.mxu1 %v7386_v38 }
 0x61a   :  { %2514 = vmatpush1.msra.mxu0 %v7389_v45  ;;  %2585 = vmatpush1.msra.mxu1 %v7392_v28 }
 0x61b   :  { %2515 = vmatprep.subr.mxu0 %v7395_v30  ;;  %2586 = vmatprep.subr.mxu1 %v7398_v31 }
 0x61c   :  { %2516 = vmatpush1.msra.mxu0 %v7401_v17  ;;  %2587 = vmatpush1.msra.mxu1 %v7404_v48 }
 0x61d   :  { %2517 = vmatprep.subr.mxu0 %v7407_v49  ;;  %2588 = vmatprep.subr.mxu1 %v7410_v46 }
 0x61e   :  { %2518 = vmatpush1.msra.mxu0 %v6811_v36  ;;  %2589 = vmatpush1.msra.mxu1 %v6814_v40  ;;  %v9685_v36 = vmov 0.0   ;;  %v9686_v40 = vld [vmem:[#allocation160_spill] sm:$0xff] }
 0x61f   :  { %2519 = vmatprep.subr.mxu0 %v6817_v8  ;;  %2590 = vmatprep.subr.mxu1 %v6820_v5  ;;  %v9687_v8 = vld [vmem:[#allocation158_spill] sm:$0xff]  ;;  %v9688_v5 = vld [vmem:[#allocation29_spill] sm:$0xff] }
 0x620   :  { %2520 = vmatpush1.msra.mxu0 %v6823_v6  ;;  %2591 = vmatpush1.msra.mxu1 %v6826_v26  ;;  %v9689_v6 = vld [vmem:[#allocation30_spill] sm:$0xff]  ;;  %v9690_v26 = vld [vmem:[#allocation31_spill] sm:$0xff] }
 0x621   :  { %2521 = vmatprep.subr.mxu0 %v6829_v39  ;;  %2592 = vmatprep.subr.mxu1 %v6832_v59  ;;  %v9691_v39 = vld [vmem:[#allocation32_spill] sm:$0xff]  ;;  %v9692_v59 = vld [vmem:[#allocation33_spill] sm:$0xff] }
 0x622   :  { %2522 = vmatpush1.msra.mxu0 %v6835_v52  ;;  %2593 = vmatpush1.msra.mxu1 %v6838_v27  ;;  %v9693_v52 = vld [vmem:[#allocation34_spill] sm:$0xff]  ;;  %v9694_v27 = vld [vmem:[#allocation35_spill] sm:$0xff] }
 0x623   :  { %2523 = vmatprep.subr.mxu0 %v6841_v63  ;;  %2594 = vmatprep.subr.mxu1 %v6844_v7  ;;  %v9695_v63 = vld [vmem:[#allocation36_spill] sm:$0xff]  ;;  %v9696_v7 = vld [vmem:[#allocation37_spill] sm:$0xff] }
 0x624   :  { %2524 = vmatpush1.msra.mxu0 %v6847_v62  ;;  %2595 = vmatpush1.msra.mxu1 %v6850_v58  ;;  %v9697_v62 = vld [vmem:[#allocation38_spill] sm:$0xff]  ;;  %v9698_v58 = vld [vmem:[#allocation39_spill] sm:$0xff] }
 0x625   :  { %2525 = vmatprep.subr.mxu0 %v6853_v9  ;;  %2596 = vmatprep.subr.mxu1 %v6856_v60  ;;  %v9699_v9 = vld [vmem:[#allocation40_spill] sm:$0xff]  ;;  %v9700_v60 = vld [vmem:[#allocation41_spill] sm:$0xff] }
 0x626   :  { %2526 = vmatpush1.msra.mxu0 %v6859_v57  ;;  %2597 = vmatpush1.msra.mxu1 %v6862_v61  ;;  %v9701_v57 = vld [vmem:[#allocation42_spill] sm:$0xff]  ;;  %v9702_v61 = vld [vmem:[#allocation43_spill] sm:$0xff] }
 0x627   :  { %2527 = vmatprep.subr.mxu0 %v6865_v42  ;;  %2598 = vmatprep.subr.mxu1 %v6868_v10  ;;  %v9703_v42 = vld [vmem:[#allocation44_spill] sm:$0xff]  ;;  %v9704_v10 = vld [vmem:[#allocation45_spill] sm:$0xff] }
 0x628   :  { %2528 = vmatpush1.msra.mxu0 %v6871_v11  ;;  %2599 = vmatpush1.msra.mxu1 %v6874_v50  ;;  %v9705_v11 = vld [vmem:[#allocation46_spill] sm:$0xff]  ;;  %v9706_v50 = vld [vmem:[#allocation47_spill] sm:$0xff] }
 0x629   :  { %2529 = vmatprep.subr.mxu0 %v6877_v51  ;;  %2600 = vmatprep.subr.mxu1 %v6880_v53  ;;  %v9707_v51 = vld [vmem:[#allocation48_spill] sm:$0xff]  ;;  %v9708_v53 = vld [vmem:[#allocation49_spill] sm:$0xff] }
 0x62a   :  { %2530 = vmatpush1.msra.mxu0 %v6883_v54  ;;  %2601 = vmatpush1.msra.mxu1 %v6886_v55  ;;  %v9709_v54 = vld [vmem:[#allocation50_spill] sm:$0xff]  ;;  %v9710_v55 = vld [vmem:[#allocation51_spill] sm:$0xff] }
 0x62b   :  { %2531 = vmatprep.subr.mxu0 %v6889_v1  ;;  %2602 = vmatprep.subr.mxu1 %v6892_v23  ;;  %v9711_v1 = vld [vmem:[#allocation52_spill] sm:$0xff]  ;;  %v9712_v23 = vld [vmem:[#allocation53_spill] sm:$0xff] }
 0x62c   :  { %2532 = vmatpush1.msra.mxu0 %v6895_v22  ;;  %2603 = vmatpush1.msra.mxu1 %v6898_v24  ;;  %v9713_v22 = vld [vmem:[#allocation54_spill] sm:$0xff]  ;;  %v9714_v24 = vld [vmem:[#allocation55_spill] sm:$0xff] }
 0x62d   :  { %2533 = vmatprep.subr.mxu0 %v6901_v0  ;;  %2604 = vmatprep.subr.mxu1 %v6904_v56  ;;  %v9715_v0 = vld [vmem:[#allocation56_spill] sm:$0xff]  ;;  %v9716_v56 = vld [vmem:[#allocation57_spill] sm:$0xff] }
 0x62e   :  { %2534 = vmatpush1.msra.mxu0 %v6907_v29  ;;  %2605 = vmatpush1.msra.mxu1 %v6910_v19  ;;  %v9717_v29 = vld [vmem:[#allocation58_spill] sm:$0xff]  ;;  %v9718_v19 = vld [vmem:[#allocation59_spill] sm:$0xff] }
 0x62f   :  { %2535 = vmatprep.subr.mxu0 %v6913_v18  ;;  %2606 = vmatprep.subr.mxu1 %v6916_v13  ;;  %v9719_v18 = vld [vmem:[#allocation60_spill] sm:$0xff]  ;;  %v9720_v13 = vld [vmem:[#allocation61_spill] sm:$0xff] }
 0x630   :  { %2536 = vmatpush1.msra.mxu0 %v6919_v25  ;;  %2607 = vmatpush1.msra.mxu1 %v6922_v35  ;;  %v9721_v25 = vld [vmem:[#allocation62_spill] sm:$0xff]  ;;  %v9722_v35 = vld [vmem:[#allocation63_spill] sm:$0xff] }
 0x631   :  { %2537 = vmatprep.subr.mxu0 %v6925_v20  ;;  %2608 = vmatprep.subr.mxu1 %v6928_v3  ;;  %v9723_v20 = vld [vmem:[#allocation64_spill] sm:$0xff]  ;;  %v9724_v3 = vld [vmem:[#allocation65_spill] sm:$0xff] }
 0x632   :  { %2538 = vmatpush1.msra.mxu0 %v6931_v4  ;;  %2571 = vmatprep.mubr.f32.mxu0 %v9685_v36  ;;  %v9725_v4 = vld [vmem:[#allocation66_spill] sm:$0xff] }
 0x633   :  { %2609 = vmatpush1.msra.mxu1 %v9686_v40  ;;  %2642 = vmatprep.mubr.f32.mxu1 %v9685_v36  ;;  %v9727_v40 = vld [vmem:[#allocation68_spill] sm:$0xff] }
 0x634   :  { %2572 = vmatmul.mubr.f32.vlgmr.msra.gmra.mxu0 %v7349_v34  ;;  %2643 = vmatmul.mubr.f32.vlgmr.msra.gmra.mxu1 %v7349_v34  ;;  %v9726_v34 = vld [vmem:[#allocation67_spill] sm:$0xff] }
 0x635   :  { %2677 = vmatprep.subr.mxu0 %v9687_v8  ;;  %2748 = vmatprep.subr.mxu1 %v9688_v5  ;;  %v9728_v8 = vld [vmem:[#allocation69_spill] sm:$0xff]  ;;  %v9729_v5 = vld [vmem:[#allocation70_spill] sm:$0xff] }
 0x636   :  { %2678 = vmatpush1.msra.mxu0 %v9689_v6  ;;  %2749 = vmatpush1.msra.mxu1 %v9690_v26  ;;  %v9730_v6 = vld [vmem:[#allocation71_spill] sm:$0xff]  ;;  %v9731_v26 = vld [vmem:[#allocation72_spill] sm:$0xff] }
 0x637   :  { %2679 = vmatprep.subr.mxu0 %v9691_v39  ;;  %2750 = vmatprep.subr.mxu1 %v9692_v59  ;;  %v9732_v39 = vld [vmem:[#allocation73_spill] sm:$0xff]  ;;  %v9733_v59 = vld [vmem:[#allocation74_spill] sm:$0xff] }
 0x638   :  { %2680 = vmatpush1.msra.mxu0 %v9693_v52  ;;  %2751 = vmatpush1.msra.mxu1 %v9694_v27  ;;  %v9734_v52 = vld [vmem:[#allocation75_spill] sm:$0xff]  ;;  %v9735_v27 = vld [vmem:[#allocation76_spill] sm:$0xff] }
 0x639   :  { %2681 = vmatprep.subr.mxu0 %v9695_v63  ;;  %2752 = vmatprep.subr.mxu1 %v9696_v7  ;;  %v9736_v63 = vld [vmem:[#allocation77_spill] sm:$0xff]  ;;  %v9737_v7 = vld [vmem:[#allocation78_spill] sm:$0xff] }
 0x63a   :  { %2682 = vmatpush1.msra.mxu0 %v9697_v62  ;;  %2753 = vmatpush1.msra.mxu1 %v9698_v58  ;;  %v9738_v62 = vld [vmem:[#allocation79_spill] sm:$0xff]  ;;  %v9739_v58 = vld [vmem:[#allocation80_spill] sm:$0xff] }
 0x63b   :  { %2683 = vmatprep.subr.mxu0 %v9699_v9  ;;  %2754 = vmatprep.subr.mxu1 %v9700_v60  ;;  %v9740_v9 = vld [vmem:[#allocation81_spill] sm:$0xff]  ;;  %v9741_v60 = vld [vmem:[#allocation82_spill] sm:$0xff] }
 0x63c   :  { %2684 = vmatpush1.msra.mxu0 %v9701_v57  ;;  %2755 = vmatpush1.msra.mxu1 %v9702_v61  ;;  %v9742_v57 = vld [vmem:[#allocation83_spill] sm:$0xff]  ;;  %v9743_v61 = vld [vmem:[#allocation84_spill] sm:$0xff] }
 0x63d   :  { %2685 = vmatprep.subr.mxu0 %v9703_v42  ;;  %2756 = vmatprep.subr.mxu1 %v9704_v10  ;;  %v9744_v42 = vld [vmem:[#allocation85_spill] sm:$0xff]  ;;  %v9745_v10 = vld [vmem:[#allocation86_spill] sm:$0xff] }
 0x63e   :  { %2686 = vmatpush1.msra.mxu0 %v9705_v11  ;;  %2757 = vmatpush1.msra.mxu1 %v9706_v50  ;;  %v9746_v11 = vld [vmem:[#allocation87_spill] sm:$0xff]  ;;  %v9747_v50 = vld [vmem:[#allocation88_spill] sm:$0xff] }
 0x63f   :  { %2687 = vmatprep.subr.mxu0 %v9707_v51  ;;  %2758 = vmatprep.subr.mxu1 %v9708_v53  ;;  %v9748_v51 = vld [vmem:[#allocation89_spill] sm:$0xff]  ;;  %v9749_v53 = vld [vmem:[#allocation90_spill] sm:$0xff] }
 0x640   :  { %2688 = vmatpush1.msra.mxu0 %v9709_v54  ;;  %2759 = vmatpush1.msra.mxu1 %v9710_v55  ;;  %v9750_v54 = vld [vmem:[#allocation91_spill] sm:$0xff]  ;;  %v9751_v55 = vld [vmem:[#allocation92_spill] sm:$0xff] }
 0x641   :  { %2689 = vmatprep.subr.mxu0 %v9711_v1  ;;  %2760 = vmatprep.subr.mxu1 %v9712_v23  ;;  %v9752_v1 = vld [vmem:[#allocation93_spill] sm:$0xff]  ;;  %v9753_v23 = vld [vmem:[#allocation94_spill] sm:$0xff] }
 0x642   :  { %2690 = vmatpush1.msra.mxu0 %v9713_v22  ;;  %2761 = vmatpush1.msra.mxu1 %v9714_v24  ;;  %v9754_v22 = vld [vmem:[#allocation95_spill] sm:$0xff]  ;;  %v9755_v24 = vld [vmem:[#allocation96_spill] sm:$0xff] }
 0x643   :  { %2691 = vmatprep.subr.mxu0 %v9715_v0  ;;  %2762 = vmatprep.subr.mxu1 %v9716_v56  ;;  %v9756_v0 = vld [vmem:[#allocation97_spill] sm:$0xff]  ;;  %v9757_v56 = vld [vmem:[#allocation98_spill] sm:$0xff] }
 0x644   :  { %2692 = vmatpush1.msra.mxu0 %v9717_v29  ;;  %2763 = vmatpush1.msra.mxu1 %v9718_v19  ;;  %v9758_v29 = vld [vmem:[#allocation99_spill] sm:$0xff]  ;;  %v9759_v19 = vld [vmem:[#allocation100_spill] sm:$0xff] }
 0x645   :  { %2693 = vmatprep.subr.mxu0 %v9719_v18  ;;  %2764 = vmatprep.subr.mxu1 %v9720_v13  ;;  %v9760_v18 = vld [vmem:[#allocation101_spill] sm:$0xff]  ;;  %v9761_v13 = vld [vmem:[#allocation102_spill] sm:$0xff] }
 0x646   :  { %2694 = vmatpush1.msra.mxu0 %v9721_v25  ;;  %2765 = vmatpush1.msra.mxu1 %v9722_v35  ;;  %v9762_v25 = vld [vmem:[#allocation103_spill] sm:$0xff]  ;;  %v9763_v35 = vld [vmem:[#allocation104_spill] sm:$0xff] }
 0x647   :  { %2695 = vmatprep.subr.mxu0 %v9723_v20  ;;  %2766 = vmatprep.subr.mxu1 %v9724_v3  ;;  %v9764_v20 = vld [vmem:[#allocation105_spill] sm:$0xff]  ;;  %v9765_v3 = vld [vmem:[#allocation106_spill] sm:$0xff] }
 0x648   :  { %2696 = vmatpush1.msra.mxu0 %v9725_v4  ;;  %2767 = vmatpush1.msra.mxu1 %v9726_v34  ;;  %v9766_v4 = vld [vmem:[#allocation107_spill] sm:$0xff]  ;;  %v9767_v34 = vld [vmem:[#allocation108_spill] sm:$0xff] }
 0x649   :  { %2697 = vmatprep.subr.mxu0 %v9727_v40  ;;  %2768 = vmatprep.subr.mxu1 %v9728_v8  ;;  %v9768_v40 = vld [vmem:[#allocation109_spill] sm:$0xff]  ;;  %v9769_v8 = vld [vmem:[#allocation110_spill] sm:$0xff] }
 0x64a   :  { %2698 = vmatpush1.msra.mxu0 %v9729_v5  ;;  %2769 = vmatpush1.msra.mxu1 %v9730_v6  ;;  %v9770_v5 = vld [vmem:[#allocation111_spill] sm:$0xff]  ;;  %v9771_v6 = vld [vmem:[#allocation112_spill] sm:$0xff] }
 0x64b   :  { %2699 = vmatprep.subr.mxu0 %v9731_v26  ;;  %2770 = vmatprep.subr.mxu1 %v9732_v39  ;;  %v9772_v26 = vld [vmem:[#allocation113_spill] sm:$0xff]  ;;  %v9773_v39 = vld [vmem:[#allocation114_spill] sm:$0xff] }
 0x64c   :  { %2700 = vmatpush1.msra.mxu0 %v9733_v59  ;;  %2771 = vmatpush1.msra.mxu1 %v9734_v52  ;;  %v9774_v59 = vld [vmem:[#allocation115_spill] sm:$0xff]  ;;  %v9775_v52 = vld [vmem:[#allocation116_spill] sm:$0xff] }
 0x64d   :  { %2701 = vmatprep.subr.mxu0 %v9735_v27  ;;  %2772 = vmatprep.subr.mxu1 %v9736_v63  ;;  %v9776_v27 = vld [vmem:[#allocation117_spill] sm:$0xff]  ;;  %v9777_v63 = vld [vmem:[#allocation118_spill] sm:$0xff] }
 0x64e   :  { %2702 = vmatpush1.msra.mxu0 %v9737_v7  ;;  %2773 = vmatpush1.msra.mxu1 %v9738_v62  ;;  %v9778_v7 = vld [vmem:[#allocation119_spill] sm:$0xff]  ;;  %v9779_v62 = vld [vmem:[#allocation120_spill] sm:$0xff] }
 0x64f   :  { %2703 = vmatprep.subr.mxu0 %v9739_v58  ;;  %2774 = vmatprep.subr.mxu1 %v9740_v9  ;;  %v9780_v58 = vld [vmem:[#allocation121_spill] sm:$0xff]  ;;  %v9781_v9 = vld [vmem:[#allocation122_spill] sm:$0xff] }
 0x650   :  { %2704 = vmatpush1.msra.mxu0 %v9741_v60  ;;  %2775 = vmatpush1.msra.mxu1 %v9742_v57  ;;  %v9782_v60 = vld [vmem:[#allocation123_spill] sm:$0xff]  ;;  %v9783_v57 = vld [vmem:[#allocation124_spill] sm:$0xff] }
 0x651   :  { %2705 = vmatprep.subr.mxu0 %v9743_v61  ;;  %2776 = vmatprep.subr.mxu1 %v9744_v42  ;;  %v9784_v61 = vld [vmem:[#allocation125_spill] sm:$0xff]  ;;  %v9785_v42 = vld [vmem:[#allocation126_spill] sm:$0xff] }
 0x652   :  { %2706 = vmatpush1.msra.mxu0 %v9745_v10  ;;  %2777 = vmatpush1.msra.mxu1 %v9746_v11  ;;  %v9786_v10 = vld [vmem:[#allocation127_spill] sm:$0xff]  ;;  %v9787_v11 = vld [vmem:[#allocation128_spill] sm:$0xff] }
 0x653   :  { %2707 = vmatprep.subr.mxu0 %v9747_v50  ;;  %2778 = vmatprep.subr.mxu1 %v9748_v51  ;;  %v9788_v50 = vld [vmem:[#allocation129_spill] sm:$0xff]  ;;  %v9789_v51 = vld [vmem:[#allocation130_spill] sm:$0xff] }
 0x654   :  { %2708 = vmatpush1.msra.mxu0 %v9749_v53  ;;  %2779 = vmatpush1.msra.mxu1 %v9750_v54  ;;  %v9790_v53 = vld [vmem:[#allocation131_spill] sm:$0xff]  ;;  %v9791_v54 = vld [vmem:[#allocation132_spill] sm:$0xff] }
 0x655   :  { %2709 = vmatprep.subr.mxu0 %v9751_v55  ;;  %2780 = vmatprep.subr.mxu1 %v9752_v1  ;;  %v9792_v55 = vld [vmem:[#allocation133_spill] sm:$0xff]  ;;  %v9793_v1 = vld [vmem:[#allocation134_spill] sm:$0xff] }
 0x656   :  { %2710 = vmatpush2.msra.mxu0 %v9753_v23  ;;  %2781 = vmatpush2.msra.mxu1 %v9754_v22  ;;  %v9794_v23 = vld [vmem:[#allocation135_spill] sm:$0xff]  ;;  %v9795_v22 = vld [vmem:[#allocation136_spill] sm:$0xff] }
 0x657   :  { %2711 = vmatprep.subr.mxu0 %v9755_v24  ;;  %2782 = vmatprep.subr.mxu1 %v9756_v0  ;;  %v9796_v24 = vld [vmem:[#allocation137_spill] sm:$0xff]  ;;  %v9797_v0 = vld [vmem:[#allocation138_spill] sm:$0xff] }
 0x658   :  { %2712 = vmatpush2.msra.mxu0 %v9757_v56  ;;  %2783 = vmatpush2.msra.mxu1 %v9758_v29  ;;  %v9798_v56 = vld [vmem:[#allocation139_spill] sm:$0xff]  ;;  %v9799_v29 = vld [vmem:[#allocation140_spill] sm:$0xff] }
 0x659   :  { %2713 = vmatprep.subr.mxu0 %v9759_v19  ;;  %2784 = vmatprep.subr.mxu1 %v9760_v18  ;;  %v9800_v19 = vld [vmem:[#allocation141_spill] sm:$0xff]  ;;  %v9801_v18 = vld [vmem:[#allocation142_spill] sm:$0xff] }
 0x65a   :  { %2714 = vmatpush2.msra.mxu0 %v9761_v13  ;;  %2785 = vmatpush2.msra.mxu1 %v9762_v25  ;;  %v9802_v13 = vld [vmem:[#allocation143_spill] sm:$0xff]  ;;  %v9803_v25 = vld [vmem:[#allocation144_spill] sm:$0xff] }
 0x65b   :  { %2715 = vmatprep.subr.mxu0 %v9763_v35  ;;  %2786 = vmatprep.subr.mxu1 %v9764_v20  ;;  %v9804_v35 = vld [vmem:[#allocation145_spill] sm:$0xff]  ;;  %v9805_v20 = vld [vmem:[#allocation146_spill] sm:$0xff] }
 0x65c   :  { %2716 = vmatpush2.msra.mxu0 %v9765_v3  ;;  %2787 = vmatpush2.msra.mxu1 %v9766_v4  ;;  %v9806_v3 = vld [vmem:[#allocation147_spill] sm:$0xff]  ;;  %v9807_v4 = vld [vmem:[#allocation148_spill] sm:$0xff] }
 0x65d   :  { %2717 = vmatprep.subr.mxu0 %v9767_v34  ;;  %2788 = vmatprep.subr.mxu1 %v9768_v40  ;;  %v9808_v34 = vld [vmem:[#allocation149_spill] sm:$0xff]  ;;  %v9809_v40 = vld [vmem:[#allocation150_spill] sm:$0xff] }
 0x65e   :  { %2718 = vmatpush2.msra.mxu0 %v9769_v8  ;;  %2789 = vmatpush2.msra.mxu1 %v9770_v5  ;;  %v9810_v8 = vld [vmem:[#allocation151_spill] sm:$0xff]  ;;  %v9811_v5 = vld [vmem:[#allocation152_spill] sm:$0xff] }
 0x65f   :  { %2719 = vmatprep.subr.mxu0 %v9771_v6  ;;  %2790 = vmatprep.subr.mxu1 %v9772_v26  ;;  %v9812_v6 = vld [vmem:[#allocation153_spill] sm:$0xff]  ;;  %v9813_v26 = vld [vmem:[#allocation155_spill] sm:$0xff] }
 0x660   :  { %2720 = vmatpush2.msra.mxu0 %v9773_v39  ;;  %2791 = vmatpush2.msra.mxu1 %v9774_v59  ;;  %v9814_v39 = vld [vmem:[#allocation156_spill] sm:$0xff] }
 0x661   :  { %2721 = vmatprep.subr.mxu0 %v9775_v52  ;;  %2792 = vmatprep.subr.mxu1 %v9776_v27  ;;  %v7587_v59 = vld [vmem:[#allocation11 + $0x1e8] sm:$0xff]  ;;  %v7590_v52 = vld [vmem:[#allocation11 + $0x1f8] sm:$0xff] }
 0x662   :  { %2722 = vmatpush2.msra.mxu0 %v9777_v63  ;;  %2793 = vmatpush2.msra.mxu1 %v9778_v7  ;;  %v9815_v63 = vld [vmem:[#allocation24_spill] sm:$0xff] }
 0x663   :  { %2723 = vmatprep.subr.mxu0 %v9779_v62  ;;  %2794 = vmatprep.subr.mxu1 %v9780_v58 }
 0x664   :  { %2724 = vmatpush2.msra.mxu0 %v9781_v9  ;;  %2795 = vmatpush2.msra.mxu1 %v9782_v60  ;;  %v9816_v9 = vld [vmem:[#allocation25_spill] sm:$0xff] }
 0x665   :  { %2725 = vmatprep.subr.mxu0 %v9783_v57  ;;  %2796 = vmatprep.subr.mxu1 %v9784_v61 }
 0x666   :  { %2726 = vmatpush2.msra.mxu0 %v9785_v42  ;;  %2797 = vmatpush2.msra.mxu1 %v9786_v10  ;;  %v9817_v10 = vld [vmem:[#allocation26_spill] sm:$0xff] }
 0x667   :  { %2727 = vmatprep.subr.mxu0 %v9787_v11  ;;  %2798 = vmatprep.subr.mxu1 %v9788_v50 }
 0x668   :  { %2728 = vmatpush2.msra.mxu0 %v9789_v51  ;;  %2799 = vmatpush2.msra.mxu1 %v9790_v53  ;;  %v9818_v53 = vld [vmem:[#allocation27_spill] sm:$0xff] }
 0x669   :  { %2729 = vmatprep.subr.mxu0 %v9791_v54  ;;  %2800 = vmatprep.subr.mxu1 %v9792_v55 }
 0x66a   :  { %2730 = vmatpush2.msra.mxu0 %v9793_v1  ;;  %2801 = vmatpush2.msra.mxu1 %v9794_v23 }
 0x66b   :  { %2731 = vmatprep.subr.mxu0 %v9795_v22  ;;  %2802 = vmatprep.subr.mxu1 %v9796_v24 }
 0x66c   :  { %2732 = vmatpush2.msra.mxu0 %v9797_v0  ;;  %2803 = vmatpush2.msra.mxu1 %v9798_v56  ;;  %v9819_v56 = vld [vmem:[#allocation169_spill] sm:$0xff] }
 0x66d   :  { %2733 = vmatprep.subr.mxu0 %v9799_v29  ;;  %2804 = vmatprep.subr.mxu1 %v9800_v19 }
 0x66e   :  { %2734 = vmatpush2.msra.mxu0 %v9801_v18  ;;  %2805 = vmatpush2.msra.mxu1 %v9802_v13 }
 0x66f   :  { %2735 = vmatprep.subr.mxu0 %v9803_v25  ;;  %2806 = vmatprep.subr.mxu1 %v9804_v35  ;;  %v9820_v35 = vld [vmem:[#allocation171_spill] sm:$0xff] }
 0x670   :  { %2736 = vmatpush2.msra.mxu0 %v9805_v20  ;;  %2807 = vmatpush2.msra.mxu1 %v9806_v3 }
 0x671   :  { %2737 = vmatprep.subr.mxu0 %v9807_v4  ;;  %2808 = vmatprep.subr.mxu1 %v9808_v34 }
 0x672   :  { %2738 = vmatpush2.msra.mxu0 %v9809_v40  ;;  %2809 = vmatpush2.msra.mxu1 %v9810_v8 }
 0x673   :  { %2739 = vmatprep.subr.mxu0 %v9811_v5  ;;  %2810 = vmatprep.subr.mxu1 %v9812_v6 }
 0x674   :  { %2740 = vmatpush2.msra.mxu0 %v9813_v26  ;;  %2811 = vmatpush2.msra.mxu1 %v9814_v39  ;;  %v9821_v26 = vld [vmem:[#allocation172_spill] sm:$0xff] }
 0x675   :  { %2864 = vmatprep.subr.mxu0 %v7587_v59  ;;  %2935 = vmatprep.subr.mxu1 %v7590_v52 }
 0x6d3   :  { %v2386_v27 = vpop.f32.mrf.mxu0  ;;  %v2457_v57 = vpop.f32.mrf.mxu1 }
 0x6d4   :  { %v2387_v7 = vadd.f32 %v2386_v27, %v9815_v63  ;;  %v2458_v54 = vadd.f32 %v2457_v57, %v9818_v53  ;;  %v9822_v27 = vld [vmem:[#allocation170_spill] sm:$0xff] }
 0x6d5   :  { %v2388_v62 = vpop.f32.mrf.mxu0  ;;  %v2459_v42 = vpop.f32.mrf.mxu1 }
 0x6d6   :  { %v3716_v58 = vmul.f32 -1.442695, %v2387_v7  ;;  %v2389_v60 = vadd.f32 %v2388_v62, %v9816_v9  ;;  %v2460_v11 = vadd.f32 %v2459_v42, %v9817_v10 }
 0x6d8   :  { %3957 = vpow2.f32 %v3716_v58  ;;  %v3717_v61 = vmul.f32 -1.442695, %v2389_v60  ;;  %v3718_v50 = vmul.f32 -1.442695, %v2460_v11 }
 0x6da   :  { %3959 = vpow2.f32 %v3717_v61 }
 0x6db   :  { %3961 = vpow2.f32 %v3718_v50 }
 0x6e5   :  { %v3958_v51 = vpop.eup %3957 }
 0x6e6   :  { %v2465_v55 = vadd.f32 1.0, %v3958_v51 }
 0x6e7   :  { %v3960_v1 = vpop.eup %3959 }
 0x6e8   :  { %3963 = vrcp.f32 %v2465_v55  ;;  %v2471_v23 = vadd.f32 1.0, %v3960_v1  ;;  %v3962_v22 = vpop.eup %3961 }
 0x6e9   :  { %3965 = vtanh.f32 %v2458_v54  ;;  %v2478_v34 = vadd.f32 1.0, %v3962_v22 }
 0x6ea   :  { %3967 = vrcp.f32 %v2471_v23 }
 0x6f4   :  { %v2573_v24 = vpop.f32.mrf.mxu0  ;;  %v2644_v40 = vpop.f32.mrf.mxu1 }
 0x6f5   :  { %v3964_v0 = vpop.eup %3963  ;;  %v2649_v29 = vadd.f32 %v2573_v24, %v9819_v56  ;;  %v2651_v7 = vadd.f32 %v2644_v40, %v9822_v27  ;;  %v7616_v56 = vld [vmem:[%s8428_s8] sm:$0xff]  ;;  %v7725_v40 = vld [vmem:[#allocation11 + $0x78] sm:$0xff] }
 0x6f6   :  { %v3966_v19 = vpop.eup %3965  ;;  %v2575_v18 = vpop.f32.mrf.mxu0  ;;  %v7740_v27 = vld [vmem:[#allocation11 + $0x40] sm:$0xff] }
 0x6f7   :  { %v3968_v13 = vpop.eup %3967  ;;  %v3719_v25 = vmul.f32 -1.442695, %v2649_v29  ;;  %v2650_v20 = vadd.f32 %v2575_v18, %v9820_v35  ;;  %v2482_v3 = vmul.f32 %v3966_v19, %v3964_v0  ;;  %v2646_v6 = vpop.f32.mrf.mxu1  ;;  %v7710_v35 = vld [vmem:[#allocation11 + $0x88] sm:$0xff] }
 0x6f8   :  { %v2481_v4 = vmul.f32 %v3968_v13, %v7334_v2  ;;  %v2652_v39 = vadd.f32 %v2646_v6, %v9821_v26  ;;  %v7731_v6 = vld [vmem:[#allocation11 + $0x70] sm:$0xff]  ;;  %v7734_v26 = vld [vmem:[#allocation11 + $0x48] sm:$0xff] }
 0x6f9   :  { %3969 = vpow2.f32 %v3719_v25  ;;  %v3720_v8 = vmul.f32 -1.442695, %v2650_v20  ;;  %v7707_v25 = vld [vmem:[#allocation11 + $0xb0] sm:$0xff]  ;;  %v7713_v20 = vld [vmem:[#allocation11 + $0x98] sm:$0xff] }
 0x6fa   :  { %v7600_v5 = vadd.f32 %v2482_v3, %v2481_v4  ;;  %v3721_v62 = vmul.f32 -1.442695, %v2652_v39  ;;  %v7716_v3 = vld [vmem:[#allocation11 + $0x80] sm:$0xff]  ;;  %v7719_v4 = vld [vmem:[#allocation11 + $0x90] sm:$0xff]  ;;  %v7737_v39 = vld [vmem:[#allocation11 + $0x58] sm:$0xff] }
 0x6fb   :  { %3971 = vpow2.f32 %v3720_v8  ;;  %v7728_v8 = vld [vmem:[#allocation11 + $0x60] sm:$0xff] }
 0x6fc   :  { %3973 = vrcp.f32 %v2478_v34  ;;  %v7722_v34 = vld [vmem:[#allocation11 + $0x68] sm:$0xff] }
 0x6fd   :  { %3975 = vtanh.f32 %v7600_v5 }
 0x6fe   :  { %3977 = vtanh.f32 %v2651_v7  ;;  %v7743_v7 = vld [vmem:[#allocation11 + $0x50] sm:$0xff] }
 0x6ff   :  { %3979 = vpow2.f32 %v3721_v62  ;;  %v7746_v62 = vld [vmem:[#allocation11 + $0x28] sm:$0xff] }
 0x706   :  { %v3970_v58 = vpop.eup %3969 }
 0x707   :  { %v2656_v60 = vadd.f32 1.0, %v3970_v58  ;;  %v7749_v58 = vld [vmem:[#allocation11 + $0x38] sm:$0xff] }
 0x708   :  { %v3972_v2 = vpop.eup %3971 }
 0x709   :  { %v3974_v57 = vpop.eup %3973  ;;  %3981 = vrcp.f32 %v2656_v60  ;;  %v2662_v61 = vadd.f32 1.0, %v3972_v2  ;;  %v7752_v60 = vld [vmem:[#allocation11 + $0x20] sm:$0xff]  ;;  %v7755_v2 = vld [vmem:[#allocation11 + $0x30] sm:$0xff] }
 0x70a   :  { %v3976_v42 = vpop.eup %3975 }
 0x70b   :  { %3983 = vrcp.f32 %v2662_v61  ;;  %v7605_v11 = vmul.f32 %v3976_v42, %v3974_v57  ;;  %v3978_v50 = vpop.eup %3977  ;;  %v7758_v57 = vld [vmem:[#allocation11 + $0x8] sm:$0xff]  ;;  %v7761_v61 = vld [vmem:[#allocation11 + $0x18] sm:$0xff]  ;;  %v7764_v42 = vld [vmem:[#allocation11] sm:$0xff] }
 0x70c   :  { %v3980_v51 = vpop.eup %3979 }
 0x70d   :  { %9823 = vst [vmem:[#allocation181_spill] sm:$0xff] %v7605_v11  ;;  %2741 = vmatprep.mubr.f32.mxu0 %v7605_v11  ;;  %2812 = vmatprep.mubr.f32.mxu1 %v7605_v11  ;;  %3985 = vtanh.f32 %v7605_v11  ;;  %v2669_v23 = vadd.f32 1.0, %v3980_v51  ;;  %v7774_v51 = vld [vmem:[#allocation12 + $0x1e8] sm:$0xff]  ;;  %v7807_v11 = vld [vmem:[#allocation12 + $0x1b0] sm:$0xff] }
 0x70e   :  { %9825 = vst [vmem:[#allocation163_spill] sm:$0xff] %v7774_v51  ;;  %9836 = vst [vmem:[#allocation31_spill] sm:$0xff] %v7807_v11 }
 0x70f   :  { %3987 = vrcp.f32 %v2669_v23  ;;  %v7786_v23 = vld [vmem:[#allocation12 + $0x1c8] sm:$0xff] }
 0x710   :  { %9829 = vst [vmem:[#allocation167_spill] sm:$0xff] %v7786_v23 }
 0x716   :  { %v3982_v54 = vpop.eup %3981 }
 0x717   :  { %v2673_v55 = vmul.f32 %v3982_v54, %v3978_v50  ;;  %v7768_v50 = vld [vmem:[#allocation11 + $0x10] sm:$0xff]  ;;  %v7777_v54 = vld [vmem:[#allocation12 + $0x1f8] sm:$0xff] }
 0x718   :  { %v3984_v1 = vpop.eup %3983  ;;  %9824 = vst [vmem:[#allocation161_spill] sm:$0xff] %v7768_v50  ;;  %9826 = vst [vmem:[#allocation164_spill] sm:$0xff] %v7777_v54 }
 0x719   :  { %v2672_v22 = vmul.f32 %v3984_v1, %v7345_v21  ;;  %v7644_v21 = vld [vmem:[#allocation11 + $0x140] sm:$0xff]  ;;  %v7783_v1 = vld [vmem:[#allocation12 + $0x1f0] sm:$0xff] }
 0x71a   :  { %v3986_v24 = vpop.eup %3985  ;;  %9828 = vst [vmem:[#allocation165_spill] sm:$0xff] %v7783_v1 }
 0x71b   :  { %v7611_v0 = vadd.f32 %v2673_v55, %v2672_v22  ;;  %v2487_v29 = vmul.f32 %v7616_v56, %v3986_v24  ;;  %v7780_v55 = vld [vmem:[#allocation12 + $0x1e0] sm:$0xff]  ;;  %v7789_v22 = vld [vmem:[#allocation12 + $0x1d8] sm:$0xff] }
 0x71c   :  { %v3988_v19 = vpop.eup %3987  ;;  %9827 = vst [vmem:[#allocation162_spill] sm:$0xff] %v7780_v55  ;;  %9830 = vst [vmem:[#allocation168_spill] sm:$0xff] %v7789_v22  ;;  %v7792_v24 = vld [vmem:[#allocation12 + $0x1c0] sm:$0xff] }
 0x71d   :  { %2488 = vadd.xlane.f32.xlu0 %v2487_v29  ;;  %3989 = vtanh.f32 %v7611_v0  ;;  %9831 = vst [vmem:[#allocation166_spill] sm:$0xff] %v7792_v24  ;;  %v7795_v29 = vld [vmem:[#allocation12 + $0x1d0] sm:$0xff] }
 0x71e   :  { %9832 = vst [vmem:[#allocation160_spill] sm:$0xff] %v7795_v29 }
 0x72a   :  { %v3990_v18 = vpop.eup %3989 }
 0x72b   :  { %v7620_v13 = vmul.f32 %v3990_v18, %v3988_v19  ;;  %v7798_v19 = vld [vmem:[#allocation12 + $0x1a8] sm:$0xff]  ;;  %v7801_v18 = vld [vmem:[#allocation12 + $0x1b8] sm:$0xff] }
 0x72c   :  { %9833 = vst [vmem:[#allocation158_spill] sm:$0xff] %v7798_v19  ;;  %9834 = vst [vmem:[#allocation29_spill] sm:$0xff] %v7801_v18 }
 0x72d   :  { %2742 = vmatmul.mubr.f32.vlgmr.msra.gmra.mxu0 %v7620_v13  ;;  %2813 = vmatmul.mubr.f32.vlgmr.msra.gmra.mxu1 %v7620_v13 }
 0x72e   :  { %2865 = vmatpush1.msra.mxu0 %v7353_v12  ;;  %2936 = vmatpush1.msra.mxu1 %v7356_v43  ;;  %v7647_v12 = vld [vmem:[#allocation11 + $0x150] sm:$0xff]  ;;  %v7650_v43 = vld [vmem:[#allocation11 + $0x128] sm:$0xff] }
 0x72f   :  { %2866 = vmatprep.subr.mxu0 %v7359_v44  ;;  %2937 = vmatprep.subr.mxu1 %v7362_v37  ;;  %v7653_v44 = vld [vmem:[#allocation11 + $0x138] sm:$0xff]  ;;  %v7656_v37 = vld [vmem:[#allocation11 + $0x120] sm:$0xff] }
 0x730   :  { %2867 = vmatpush1.msra.mxu0 %v7365_v14  ;;  %2938 = vmatpush1.msra.mxu1 %v7368_v47  ;;  %v7662_v14 = vld [vmem:[#allocation11 + $0x108] sm:$0xff]  ;;  %v7665_v47 = vld [vmem:[#allocation11 + $0x118] sm:$0xff] }
 0x731   :  { %2868 = vmatprep.subr.mxu0 %v7371_v16  ;;  %2939 = vmatprep.subr.mxu1 %v7374_v15  ;;  %v7668_v16 = vld [vmem:[#allocation11 + $0x100] sm:$0xff]  ;;  %v7671_v15 = vld [vmem:[#allocation11 + $0x110] sm:$0xff] }
 0x732   :  { %2869 = vmatpush1.msra.mxu0 %v7377_v33  ;;  %2940 = vmatpush1.msra.mxu1 %v7380_v41  ;;  %v7674_v33 = vld [vmem:[#allocation11 + $0xe8] sm:$0xff]  ;;  %v7677_v41 = vld [vmem:[#allocation11 + $0xf8] sm:$0xff] }
 0x733   :  { %2870 = vmatprep.subr.mxu0 %v7383_v32  ;;  %2941 = vmatprep.subr.mxu1 %v7386_v38  ;;  %v7680_v32 = vld [vmem:[#allocation11 + $0xe0] sm:$0xff]  ;;  %v7683_v38 = vld [vmem:[#allocation11 + $0xf0] sm:$0xff] }
 0x734   :  { %2871 = vmatpush1.msra.mxu0 %v7389_v45  ;;  %2942 = vmatpush1.msra.mxu1 %v7392_v28  ;;  %v7686_v45 = vld [vmem:[#allocation11 + $0xc8] sm:$0xff]  ;;  %v7689_v28 = vld [vmem:[#allocation11 + $0xd8] sm:$0xff] }
 0x735   :  { %2872 = vmatprep.subr.mxu0 %v7395_v30  ;;  %2943 = vmatprep.subr.mxu1 %v7398_v31  ;;  %v7692_v30 = vld [vmem:[#allocation11 + $0xc0] sm:$0xff]  ;;  %v7695_v31 = vld [vmem:[#allocation11 + $0xd0] sm:$0xff] }
 0x736   :  { %2873 = vmatpush1.msra.mxu0 %v7401_v17  ;;  %2944 = vmatpush1.msra.mxu1 %v7404_v48  ;;  %v7698_v17 = vld [vmem:[#allocation11 + $0xa8] sm:$0xff]  ;;  %v7701_v48 = vld [vmem:[#allocation11 + $0xb8] sm:$0xff] }
 0x737   :  { %2874 = vmatprep.subr.mxu0 %v7407_v49  ;;  %2945 = vmatprep.subr.mxu1 %v7410_v46  ;;  %v7659_v46 = vld [vmem:[#allocation11 + $0x130] sm:$0xff]  ;;  %v7704_v49 = vld [vmem:[#allocation11 + $0xa0] sm:$0xff] }
 0x738   :  { %2875 = vmatpush1.msra.mxu0 %v7644_v21  ;;  %2946 = vmatpush1.msra.mxu1 %v7647_v12 }
 0x739   :  { %2876 = vmatprep.subr.mxu0 %v7650_v43  ;;  %2947 = vmatprep.subr.mxu1 %v7653_v44 }
 0x73a   :  { %2877 = vmatpush1.msra.mxu0 %v7656_v37  ;;  %2948 = vmatpush1.msra.mxu1 %v7659_v46 }
 0x73b   :  { %2878 = vmatprep.subr.mxu0 %v7662_v14  ;;  %2949 = vmatprep.subr.mxu1 %v7665_v47 }
 0x73c   :  { %2879 = vmatpush1.msra.mxu0 %v7668_v16  ;;  %2950 = vmatpush1.msra.mxu1 %v7671_v15 }
 0x73d   :  { %2880 = vmatprep.subr.mxu0 %v7674_v33  ;;  %2951 = vmatprep.subr.mxu1 %v7677_v41 }
 0x73e   :  { %2881 = vmatpush1.msra.mxu0 %v7680_v32  ;;  %2952 = vmatpush1.msra.mxu1 %v7683_v38 }
 0x73f   :  { %2882 = vmatprep.subr.mxu0 %v7686_v45  ;;  %2953 = vmatprep.subr.mxu1 %v7689_v28 }
 0x740   :  { %2883 = vmatpush1.msra.mxu0 %v7692_v30  ;;  %2954 = vmatpush1.msra.mxu1 %v7695_v31 }
 0x741   :  { %2884 = vmatprep.subr.mxu0 %v7698_v17  ;;  %2955 = vmatprep.subr.mxu1 %v7701_v48 }
 0x742   :  { %2885 = vmatpush1.msra.mxu0 %v7704_v49  ;;  %2956 = vmatpush1.msra.mxu1 %v7707_v25 }
 0x743   :  { %2886 = vmatprep.subr.mxu0 %v7710_v35  ;;  %2957 = vmatprep.subr.mxu1 %v7713_v20 }
 0x744   :  { %2887 = vmatpush1.msra.mxu0 %v7716_v3  ;;  %2958 = vmatpush1.msra.mxu1 %v7719_v4 }
 0x745   :  { %2888 = vmatprep.subr.mxu0 %v7722_v34  ;;  %2959 = vmatprep.subr.mxu1 %v7725_v40 }
 0x746   :  { %2889 = vmatpush1.msra.mxu0 %v7728_v8  ;;  %2960 = vmatpush1.msra.mxu1 %v7731_v6 }
 0x747   :  { %2890 = vmatprep.subr.mxu0 %v7734_v26  ;;  %2961 = vmatprep.subr.mxu1 %v7737_v39 }
 0x748   :  { %2891 = vmatpush1.msra.mxu0 %v7740_v27  ;;  %2962 = vmatpush1.msra.mxu1 %v7743_v7 }
 0x749   :  { %2892 = vmatprep.subr.mxu0 %v7746_v62  ;;  %2963 = vmatprep.subr.mxu1 %v7749_v58 }
 0x74a   :  { %2893 = vmatpush1.msra.mxu0 %v7752_v60  ;;  %2964 = vmatpush1.msra.mxu1 %v7755_v2 }
 0x74b   :  { %2894 = vmatprep.subr.mxu0 %v7758_v57  ;;  %2965 = vmatprep.subr.mxu1 %v7761_v61 }
 0x74c   :  { %2895 = vmatpush1.msra.mxu0 %v7764_v42  ;;  %2928 = vmatprep.mubr.f32.mxu0 %v9685_v36 }
 0x74d   :  { %2966 = vmatpush1.msra.mxu1 %v7768_v50  ;;  %2999 = vmatprep.mubr.f32.mxu1 %v9685_v36 }
 0x74e   :  { %2929 = vmatmul.mubr.f32.vlgmr.msra.gmra.mxu0 %v7620_v13  ;;  %3000 = vmatmul.mubr.f32.vlgmr.msra.gmra.mxu1 %v7620_v13  ;;  %v7804_v13 = vld [vmem:[#allocation12 + $0x1a0] sm:$0xff] }
 0x74f   :  { %3034 = vmatprep.subr.mxu0 %v7774_v51  ;;  %3105 = vmatprep.subr.mxu1 %v7777_v54  ;;  %9835 = vst [vmem:[#allocation30_spill] sm:$0xff] %v7804_v13 }
 0x750   :  { %3035 = vmatpush1.msra.mxu0 %v7780_v55  ;;  %3106 = vmatpush1.msra.mxu1 %v7783_v1 }
 0x751   :  { %3036 = vmatprep.subr.mxu0 %v7786_v23  ;;  %3107 = vmatprep.subr.mxu1 %v7789_v22 }
 0x752   :  { %3037 = vmatpush1.msra.mxu0 %v7792_v24  ;;  %3108 = vmatpush1.msra.mxu1 %v7795_v29  ;;  %v7810_v24 = vld [vmem:[#allocation12 + $0x188] sm:$0xff]  ;;  %v7813_v29 = vld [vmem:[#allocation12 + $0x198] sm:$0xff] }
 0x753   :  { %3038 = vmatprep.subr.mxu0 %v7798_v19  ;;  %3109 = vmatprep.subr.mxu1 %v7801_v18  ;;  %9837 = vst [vmem:[#allocation32_spill] sm:$0xff] %v7810_v24  ;;  %9838 = vst [vmem:[#allocation33_spill] sm:$0xff] %v7813_v29  ;;  %v7816_v19 = vld [vmem:[#allocation12 + $0x180] sm:$0xff]  ;;  %v7819_v18 = vld [vmem:[#allocation12 + $0x190] sm:$0xff] }
 0x754   :  { %3039 = vmatpush1.msra.mxu0 %v7804_v13  ;;  %3110 = vmatpush1.msra.mxu1 %v7807_v11  ;;  %9839 = vst [vmem:[#allocation34_spill] sm:$0xff] %v7816_v19  ;;  %9840 = vst [vmem:[#allocation35_spill] sm:$0xff] %v7819_v18  ;;  %v7822_v13 = vld [vmem:[#allocation12 + $0x168] sm:$0xff]  ;;  %v7825_v11 = vld [vmem:[#allocation12 + $0x178] sm:$0xff] }
 0x755   :  { %3040 = vmatprep.subr.mxu0 %v7810_v24  ;;  %3111 = vmatprep.subr.mxu1 %v7813_v29  ;;  %9841 = vst [vmem:[#allocation36_spill] sm:$0xff] %v7822_v13  ;;  %9842 = vst [vmem:[#allocation37_spill] sm:$0xff] %v7825_v11  ;;  %v7828_v24 = vld [vmem:[#allocation12 + $0x160] sm:$0xff]  ;;  %v7831_v29 = vld [vmem:[#allocation12 + $0x170] sm:$0xff] }
 0x756   :  { %3041 = vmatpush1.msra.mxu0 %v7816_v19  ;;  %3112 = vmatpush1.msra.mxu1 %v7819_v18  ;;  %9843 = vst [vmem:[#allocation38_spill] sm:$0xff] %v7828_v24  ;;  %9844 = vst [vmem:[#allocation39_spill] sm:$0xff] %v7831_v29  ;;  %v7834_v19 = vld [vmem:[#allocation12 + $0x148] sm:$0xff]  ;;  %v7837_v18 = vld [vmem:[#allocation12 + $0x158] sm:$0xff] }
 0x757   :  { %3042 = vmatprep.subr.mxu0 %v7822_v13  ;;  %3113 = vmatprep.subr.mxu1 %v7825_v11  ;;  %9845 = vst [vmem:[#allocation40_spill] sm:$0xff] %v7834_v19  ;;  %9846 = vst [vmem:[#allocation41_spill] sm:$0xff] %v7837_v18  ;;  %v7840_v13 = vld [vmem:[#allocation12 + $0x140] sm:$0xff]  ;;  %v7843_v11 = vld [vmem:[#allocation12 + $0x150] sm:$0xff] }
 0x758   :  { %3043 = vmatpush1.msra.mxu0 %v7828_v24  ;;  %3114 = vmatpush1.msra.mxu1 %v7831_v29  ;;  %9847 = vst [vmem:[#allocation42_spill] sm:$0xff] %v7840_v13  ;;  %9848 = vst [vmem:[#allocation43_spill] sm:$0xff] %v7843_v11  ;;  %v7846_v24 = vld [vmem:[#allocation12 + $0x128] sm:$0xff]  ;;  %v7849_v29 = vld [vmem:[#allocation12 + $0x138] sm:$0xff] }
 0x759   :  { %3044 = vmatprep.subr.mxu0 %v7834_v19  ;;  %3115 = vmatprep.subr.mxu1 %v7837_v18  ;;  %9849 = vst [vmem:[#allocation44_spill] sm:$0xff] %v7846_v24  ;;  %9850 = vst [vmem:[#allocation45_spill] sm:$0xff] %v7849_v29  ;;  %v7852_v19 = vld [vmem:[#allocation12 + $0x120] sm:$0xff]  ;;  %v7855_v18 = vld [vmem:[#allocation12 + $0x130] sm:$0xff] }
 0x75a   :  { %3045 = vmatpush1.msra.mxu0 %v7840_v13  ;;  %3116 = vmatpush1.msra.mxu1 %v7843_v11  ;;  %9851 = vst [vmem:[#allocation46_spill] sm:$0xff] %v7852_v19  ;;  %9852 = vst [vmem:[#allocation47_spill] sm:$0xff] %v7855_v18  ;;  %v7858_v13 = vld [vmem:[#allocation12 + $0x108] sm:$0xff]  ;;  %v7861_v11 = vld [vmem:[#allocation12 + $0x118] sm:$0xff] }
 0x75b   :  { %3046 = vmatprep.subr.mxu0 %v7846_v24  ;;  %3117 = vmatprep.subr.mxu1 %v7849_v29  ;;  %9853 = vst [vmem:[#allocation48_spill] sm:$0xff] %v7858_v13  ;;  %9854 = vst [vmem:[#allocation49_spill] sm:$0xff] %v7861_v11  ;;  %v7864_v24 = vld [vmem:[#allocation12 + $0x100] sm:$0xff]  ;;  %v7867_v29 = vld [vmem:[#allocation12 + $0x110] sm:$0xff] }
 0x75c   :  { %3047 = vmatpush1.msra.mxu0 %v7852_v19  ;;  %3118 = vmatpush1.msra.mxu1 %v7855_v18  ;;  %9855 = vst [vmem:[#allocation50_spill] sm:$0xff] %v7864_v24  ;;  %9856 = vst [vmem:[#allocation51_spill] sm:$0xff] %v7867_v29  ;;  %v7870_v19 = vld [vmem:[#allocation12 + $0xe8] sm:$0xff]  ;;  %v7873_v18 = vld [vmem:[#allocation12 + $0xf8] sm:$0xff] }
 0x75d   :  { %3048 = vmatprep.subr.mxu0 %v7858_v13  ;;  %3119 = vmatprep.subr.mxu1 %v7861_v11  ;;  %9857 = vst [vmem:[#allocation52_spill] sm:$0xff] %v7870_v19  ;;  %9858 = vst [vmem:[#allocation53_spill] sm:$0xff] %v7873_v18  ;;  %v7876_v13 = vld [vmem:[#allocation12 + $0xe0] sm:$0xff]  ;;  %v7879_v11 = vld [vmem:[#allocation12 + $0xf0] sm:$0xff] }
 0x75e   :  { %3049 = vmatpush1.msra.mxu0 %v7864_v24  ;;  %3120 = vmatpush1.msra.mxu1 %v7867_v29  ;;  %9859 = vst [vmem:[#allocation54_spill] sm:$0xff] %v7876_v13  ;;  %9860 = vst [vmem:[#allocation55_spill] sm:$0xff] %v7879_v11  ;;  %v7882_v24 = vld [vmem:[#allocation12 + $0xc8] sm:$0xff]  ;;  %v7885_v29 = vld [vmem:[#allocation12 + $0xd8] sm:$0xff] }
 0x75f   :  { %3050 = vmatprep.subr.mxu0 %v7870_v19  ;;  %3121 = vmatprep.subr.mxu1 %v7873_v18  ;;  %9861 = vst [vmem:[#allocation56_spill] sm:$0xff] %v7882_v24  ;;  %9862 = vst [vmem:[#allocation57_spill] sm:$0xff] %v7885_v29  ;;  %v7888_v19 = vld [vmem:[#allocation12 + $0xc0] sm:$0xff]  ;;  %v7891_v18 = vld [vmem:[#allocation12 + $0xd0] sm:$0xff] }
 0x760   :  { %3051 = vmatpush1.msra.mxu0 %v7876_v13  ;;  %3122 = vmatpush1.msra.mxu1 %v7879_v11  ;;  %9863 = vst [vmem:[#allocation58_spill] sm:$0xff] %v7888_v19  ;;  %9864 = vst [vmem:[#allocation59_spill] sm:$0xff] %v7891_v18  ;;  %v7894_v13 = vld [vmem:[#allocation12 + $0xa8] sm:$0xff]  ;;  %v7897_v11 = vld [vmem:[#allocation12 + $0xb8] sm:$0xff] }
 0x761   :  { %3052 = vmatprep.subr.mxu0 %v7882_v24  ;;  %3123 = vmatprep.subr.mxu1 %v7885_v29  ;;  %9865 = vst [vmem:[#allocation60_spill] sm:$0xff] %v7894_v13  ;;  %9866 = vst [vmem:[#allocation61_spill] sm:$0xff] %v7897_v11  ;;  %v7900_v24 = vld [vmem:[#allocation12 + $0xa0] sm:$0xff]  ;;  %v7903_v29 = vld [vmem:[#allocation12 + $0xb0] sm:$0xff] }
 0x762   :  { %3053 = vmatpush1.msra.mxu0 %v7888_v19  ;;  %3124 = vmatpush1.msra.mxu1 %v7891_v18  ;;  %9867 = vst [vmem:[#allocation62_spill] sm:$0xff] %v7900_v24  ;;  %9868 = vst [vmem:[#allocation63_spill] sm:$0xff] %v7903_v29  ;;  %v7906_v19 = vld [vmem:[#allocation12 + $0x88] sm:$0xff]  ;;  %v7909_v18 = vld [vmem:[#allocation12 + $0x98] sm:$0xff] }
 0x763   :  { %3054 = vmatprep.subr.mxu0 %v7894_v13  ;;  %3125 = vmatprep.subr.mxu1 %v7897_v11  ;;  %9869 = vst [vmem:[#allocation64_spill] sm:$0xff] %v7906_v19  ;;  %9870 = vst [vmem:[#allocation65_spill] sm:$0xff] %v7909_v18  ;;  %v7912_v13 = vld [vmem:[#allocation12 + $0x80] sm:$0xff]  ;;  %v7915_v11 = vld [vmem:[#allocation12 + $0x90] sm:$0xff] }
 0x764   :  { %3055 = vmatpush1.msra.mxu0 %v7900_v24  ;;  %3126 = vmatpush1.msra.mxu1 %v7903_v29  ;;  %9871 = vst [vmem:[#allocation66_spill] sm:$0xff] %v7912_v13  ;;  %9872 = vst [vmem:[#allocation67_spill] sm:$0xff] %v7915_v11  ;;  %v7918_v24 = vld [vmem:[#allocation12 + $0x68] sm:$0xff]  ;;  %v7921_v29 = vld [vmem:[#allocation12 + $0x78] sm:$0xff] }
 0x765   :  { %3056 = vmatprep.subr.mxu0 %v7906_v19  ;;  %3127 = vmatprep.subr.mxu1 %v7909_v18  ;;  %9873 = vst [vmem:[#allocation68_spill] sm:$0xff] %v7918_v24  ;;  %9874 = vst [vmem:[#allocation69_spill] sm:$0xff] %v7921_v29  ;;  %v7924_v19 = vld [vmem:[#allocation12 + $0x60] sm:$0xff]  ;;  %v7927_v18 = vld [vmem:[#allocation12 + $0x70] sm:$0xff] }
 0x766   :  { %3057 = vmatpush1.msra.mxu0 %v7912_v13  ;;  %3128 = vmatpush1.msra.mxu1 %v7915_v11  ;;  %9875 = vst [vmem:[#allocation70_spill] sm:$0xff] %v7924_v19  ;;  %9876 = vst [vmem:[#allocation71_spill] sm:$0xff] %v7927_v18  ;;  %v7930_v13 = vld [vmem:[#allocation12 + $0x48] sm:$0xff]  ;;  %v7933_v11 = vld [vmem:[#allocation12 + $0x58] sm:$0xff] }
 0x767   :  { %3058 = vmatprep.subr.mxu0 %v7918_v24  ;;  %3129 = vmatprep.subr.mxu1 %v7921_v29  ;;  %9877 = vst [vmem:[#allocation72_spill] sm:$0xff] %v7930_v13  ;;  %9878 = vst [vmem:[#allocation73_spill] sm:$0xff] %v7933_v11  ;;  %v7936_v24 = vld [vmem:[#allocation12 + $0x40] sm:$0xff]  ;;  %v7939_v29 = vld [vmem:[#allocation12 + $0x50] sm:$0xff] }
 0x768   :  { %3059 = vmatpush1.msra.mxu0 %v7924_v19  ;;  %3130 = vmatpush1.msra.mxu1 %v7927_v18  ;;  %9879 = vst [vmem:[#allocation74_spill] sm:$0xff] %v7936_v24  ;;  %9880 = vst [vmem:[#allocation75_spill] sm:$0xff] %v7939_v29  ;;  %v7942_v19 = vld [vmem:[#allocation12 + $0x28] sm:$0xff]  ;;  %v7945_v18 = vld [vmem:[#allocation12 + $0x38] sm:$0xff] }
 0x769   :  { %3060 = vmatprep.subr.mxu0 %v7930_v13  ;;  %3131 = vmatprep.subr.mxu1 %v7933_v11  ;;  %9881 = vst [vmem:[#allocation76_spill] sm:$0xff] %v7942_v19  ;;  %9882 = vst [vmem:[#allocation77_spill] sm:$0xff] %v7945_v18  ;;  %v7948_v13 = vld [vmem:[#allocation12 + $0x20] sm:$0xff]  ;;  %v7951_v11 = vld [vmem:[#allocation12 + $0x30] sm:$0xff] }
 0x76a   :  { %3061 = vmatpush1.msra.mxu0 %v7936_v24  ;;  %3132 = vmatpush1.msra.mxu1 %v7939_v29  ;;  %9883 = vst [vmem:[#allocation78_spill] sm:$0xff] %v7948_v13  ;;  %9884 = vst [vmem:[#allocation79_spill] sm:$0xff] %v7951_v11  ;;  %v7954_v24 = vld [vmem:[#allocation12 + $0x8] sm:$0xff]  ;;  %v7957_v29 = vld [vmem:[#allocation12 + $0x18] sm:$0xff] }
 0x76b   :  { %3062 = vmatprep.subr.mxu0 %v7942_v19  ;;  %3133 = vmatprep.subr.mxu1 %v7945_v18  ;;  %9885 = vst [vmem:[#allocation80_spill] sm:$0xff] %v7954_v24  ;;  %9886 = vst [vmem:[#allocation81_spill] sm:$0xff] %v7957_v29  ;;  %v7960_v19 = vld [vmem:[#allocation12] sm:$0xff]  ;;  %v7963_v18 = vld [vmem:[#allocation12 + $0x10] sm:$0xff] }
 0x76c   :  { %3063 = vmatpush1.msra.mxu0 %v7948_v13  ;;  %3134 = vmatpush1.msra.mxu1 %v7951_v11  ;;  %9887 = vst [vmem:[#allocation82_spill] sm:$0xff] %v7960_v19  ;;  %9888 = vst [vmem:[#allocation83_spill] sm:$0xff] %v7963_v18  ;;  %v7966_v13 = vld [vmem:[#allocation12 + $0x3e8] sm:$0xff]  ;;  %v7969_v11 = vld [vmem:[#allocation12 + $0x3f8] sm:$0xff] }
 0x76d   :  { %3064 = vmatprep.subr.mxu0 %v7954_v24  ;;  %3135 = vmatprep.subr.mxu1 %v7957_v29  ;;  %9889 = vst [vmem:[#allocation84_spill] sm:$0xff] %v7966_v13  ;;  %9890 = vst [vmem:[#allocation85_spill] sm:$0xff] %v7969_v11  ;;  %v7972_v24 = vld [vmem:[#allocation12 + $0x3e0] sm:$0xff]  ;;  %v7975_v29 = vld [vmem:[#allocation12 + $0x3f0] sm:$0xff] }
 0x76e   :  { %3065 = vmatpush1.msra.mxu0 %v7960_v19  ;;  %3136 = vmatpush1.msra.mxu1 %v7963_v18  ;;  %9891 = vst [vmem:[#allocation86_spill] sm:$0xff] %v7972_v24  ;;  %9892 = vst [vmem:[#allocation87_spill] sm:$0xff] %v7975_v29  ;;  %v7978_v19 = vld [vmem:[#allocation12 + $0x3c8] sm:$0xff]  ;;  %v7981_v18 = vld [vmem:[#allocation12 + $0x3d8] sm:$0xff] }
 0x76f   :  { %3066 = vmatprep.subr.mxu0 %v7966_v13  ;;  %3137 = vmatprep.subr.mxu1 %v7969_v11  ;;  %9893 = vst [vmem:[#allocation88_spill] sm:$0xff] %v7978_v19  ;;  %9894 = vst [vmem:[#allocation89_spill] sm:$0xff] %v7981_v18  ;;  %v7984_v13 = vld [vmem:[#allocation12 + $0x3c0] sm:$0xff]  ;;  %v7987_v11 = vld [vmem:[#allocation12 + $0x3d0] sm:$0xff] }
 0x770   :  { %3067 = vmatpush2.msra.mxu0 %v7972_v24  ;;  %3138 = vmatpush2.msra.mxu1 %v7975_v29  ;;  %9895 = vst [vmem:[#allocation90_spill] sm:$0xff] %v7984_v13  ;;  %9896 = vst [vmem:[#allocation91_spill] sm:$0xff] %v7987_v11  ;;  %v7990_v24 = vld [vmem:[#allocation12 + $0x3a8] sm:$0xff]  ;;  %v7993_v29 = vld [vmem:[#allocation12 + $0x3b8] sm:$0xff] }
 0x771   :  { %3068 = vmatprep.subr.mxu0 %v7978_v19  ;;  %3139 = vmatprep.subr.mxu1 %v7981_v18  ;;  %9897 = vst [vmem:[#allocation92_spill] sm:$0xff] %v7990_v24  ;;  %9898 = vst [vmem:[#allocation93_spill] sm:$0xff] %v7993_v29  ;;  %v7996_v19 = vld [vmem:[#allocation12 + $0x3a0] sm:$0xff]  ;;  %v7999_v18 = vld [vmem:[#allocation12 + $0x3b0] sm:$0xff] }
 0x772   :  { %3069 = vmatpush2.msra.mxu0 %v7984_v13  ;;  %3140 = vmatpush2.msra.mxu1 %v7987_v11  ;;  %9899 = vst [vmem:[#allocation94_spill] sm:$0xff] %v7996_v19  ;;  %9900 = vst [vmem:[#allocation95_spill] sm:$0xff] %v7999_v18  ;;  %v8002_v13 = vld [vmem:[#allocation12 + $0x388] sm:$0xff]  ;;  %v8005_v11 = vld [vmem:[#allocation12 + $0x398] sm:$0xff] }
 0x773   :  { %3070 = vmatprep.subr.mxu0 %v7990_v24  ;;  %3141 = vmatprep.subr.mxu1 %v7993_v29  ;;  %9901 = vst [vmem:[#allocation96_spill] sm:$0xff] %v8002_v13  ;;  %9902 = vst [vmem:[#allocation97_spill] sm:$0xff] %v8005_v11  ;;  %v8008_v24 = vld [vmem:[#allocation12 + $0x380] sm:$0xff]  ;;  %v8011_v29 = vld [vmem:[#allocation12 + $0x390] sm:$0xff] }
 0x774   :  { %3071 = vmatpush2.msra.mxu0 %v7996_v19  ;;  %3142 = vmatpush2.msra.mxu1 %v7999_v18  ;;  %9903 = vst [vmem:[#allocation98_spill] sm:$0xff] %v8008_v24  ;;  %9904 = vst [vmem:[#allocation99_spill] sm:$0xff] %v8011_v29  ;;  %v8014_v19 = vld [vmem:[#allocation12 + $0x368] sm:$0xff]  ;;  %v8017_v18 = vld [vmem:[#allocation12 + $0x378] sm:$0xff] }
 0x775   :  { %3072 = vmatprep.subr.mxu0 %v8002_v13  ;;  %3143 = vmatprep.subr.mxu1 %v8005_v11  ;;  %9905 = vst [vmem:[#allocation100_spill] sm:$0xff] %v8014_v19  ;;  %9906 = vst [vmem:[#allocation101_spill] sm:$0xff] %v8017_v18  ;;  %v8020_v13 = vld [vmem:[#allocation12 + $0x360] sm:$0xff]  ;;  %v8023_v11 = vld [vmem:[#allocation12 + $0x370] sm:$0xff] }
 0x776   :  { %3073 = vmatpush2.msra.mxu0 %v8008_v24  ;;  %3144 = vmatpush2.msra.mxu1 %v8011_v29  ;;  %9907 = vst [vmem:[#allocation102_spill] sm:$0xff] %v8020_v13  ;;  %9908 = vst [vmem:[#allocation103_spill] sm:$0xff] %v8023_v11  ;;  %v8026_v24 = vld [vmem:[#allocation12 + $0x348] sm:$0xff]  ;;  %v8029_v29 = vld [vmem:[#allocation12 + $0x358] sm:$0xff] }
 0x777   :  { %3074 = vmatprep.subr.mxu0 %v8014_v19  ;;  %3145 = vmatprep.subr.mxu1 %v8017_v18  ;;  %9909 = vst [vmem:[#allocation104_spill] sm:$0xff] %v8026_v24  ;;  %9910 = vst [vmem:[#allocation105_spill] sm:$0xff] %v8029_v29  ;;  %v8032_v19 = vld [vmem:[#allocation12 + $0x340] sm:$0xff]  ;;  %v8035_v18 = vld [vmem:[#allocation12 + $0x350] sm:$0xff] }
 0x778   :  { %3075 = vmatpush2.msra.mxu0 %v8020_v13  ;;  %3146 = vmatpush2.msra.mxu1 %v8023_v11  ;;  %9911 = vst [vmem:[#allocation106_spill] sm:$0xff] %v8032_v19  ;;  %9912 = vst [vmem:[#allocation107_spill] sm:$0xff] %v8035_v18  ;;  %v8038_v13 = vld [vmem:[#allocation12 + $0x328] sm:$0xff]  ;;  %v8041_v11 = vld [vmem:[#allocation12 + $0x338] sm:$0xff] }
 0x779   :  { %3076 = vmatprep.subr.mxu0 %v8026_v24  ;;  %3147 = vmatprep.subr.mxu1 %v8029_v29  ;;  %9913 = vst [vmem:[#allocation108_spill] sm:$0xff] %v8038_v13  ;;  %9914 = vst [vmem:[#allocation109_spill] sm:$0xff] %v8041_v11  ;;  %v8044_v24 = vld [vmem:[#allocation12 + $0x320] sm:$0xff]  ;;  %v8047_v29 = vld [vmem:[#allocation12 + $0x330] sm:$0xff] }
 0x77a   :  { %3077 = vmatpush2.msra.mxu0 %v8032_v19  ;;  %3148 = vmatpush2.msra.mxu1 %v8035_v18  ;;  %9915 = vst [vmem:[#allocation110_spill] sm:$0xff] %v8044_v24  ;;  %9916 = vst [vmem:[#allocation111_spill] sm:$0xff] %v8047_v29  ;;  %v8050_v19 = vld [vmem:[#allocation12 + $0x308] sm:$0xff]  ;;  %v8053_v18 = vld [vmem:[#allocation12 + $0x318] sm:$0xff] }
 0x77b   :  { %3078 = vmatprep.subr.mxu0 %v8038_v13  ;;  %3149 = vmatprep.subr.mxu1 %v8041_v11  ;;  %9917 = vst [vmem:[#allocation112_spill] sm:$0xff] %v8050_v19  ;;  %9918 = vst [vmem:[#allocation113_spill] sm:$0xff] %v8053_v18  ;;  %v8056_v13 = vld [vmem:[#allocation12 + $0x300] sm:$0xff]  ;;  %v8059_v11 = vld [vmem:[#allocation12 + $0x310] sm:$0xff] }
 0x77c   :  { %3079 = vmatpush2.msra.mxu0 %v8044_v24  ;;  %3150 = vmatpush2.msra.mxu1 %v8047_v29  ;;  %9919 = vst [vmem:[#allocation114_spill] sm:$0xff] %v8056_v13  ;;  %9920 = vst [vmem:[#allocation115_spill] sm:$0xff] %v8059_v11  ;;  %v8062_v24 = vld [vmem:[#allocation12 + $0x2e8] sm:$0xff]  ;;  %v8065_v29 = vld [vmem:[#allocation12 + $0x2f8] sm:$0xff] }
 0x77d   :  { %3080 = vmatprep.subr.mxu0 %v8050_v19  ;;  %3151 = vmatprep.subr.mxu1 %v8053_v18  ;;  %9921 = vst [vmem:[#allocation116_spill] sm:$0xff] %v8062_v24  ;;  %9922 = vst [vmem:[#allocation117_spill] sm:$0xff] %v8065_v29  ;;  %v8068_v19 = vld [vmem:[#allocation12 + $0x2e0] sm:$0xff]  ;;  %v8071_v18 = vld [vmem:[#allocation12 + $0x2f0] sm:$0xff] }
 0x77e   :  { %3081 = vmatpush2.msra.mxu0 %v8056_v13  ;;  %3152 = vmatpush2.msra.mxu1 %v8059_v11  ;;  %9923 = vst [vmem:[#allocation118_spill] sm:$0xff] %v8068_v19  ;;  %9924 = vst [vmem:[#allocation119_spill] sm:$0xff] %v8071_v18  ;;  %v8074_v13 = vld [vmem:[#allocation12 + $0x2c8] sm:$0xff]  ;;  %v8077_v11 = vld [vmem:[#allocation12 + $0x2d8] sm:$0xff] }
 0x77f   :  { %3082 = vmatprep.subr.mxu0 %v8062_v24  ;;  %3153 = vmatprep.subr.mxu1 %v8065_v29  ;;  %9925 = vst [vmem:[#allocation120_spill] sm:$0xff] %v8074_v13  ;;  %9926 = vst [vmem:[#allocation121_spill] sm:$0xff] %v8077_v11  ;;  %v8080_v24 = vld [vmem:[#allocation12 + $0x2c0] sm:$0xff]  ;;  %v8083_v29 = vld [vmem:[#allocation12 + $0x2d0] sm:$0xff] }
 0x780   :  { %3083 = vmatpush2.msra.mxu0 %v8068_v19  ;;  %3154 = vmatpush2.msra.mxu1 %v8071_v18  ;;  %9927 = vst [vmem:[#allocation122_spill] sm:$0xff] %v8080_v24  ;;  %9928 = vst [vmem:[#allocation123_spill] sm:$0xff] %v8083_v29  ;;  %v8086_v19 = vld [vmem:[#allocation12 + $0x2a8] sm:$0xff]  ;;  %v8089_v18 = vld [vmem:[#allocation12 + $0x2b8] sm:$0xff] }
 0x781   :  { %3084 = vmatprep.subr.mxu0 %v8074_v13  ;;  %3155 = vmatprep.subr.mxu1 %v8077_v11  ;;  %9929 = vst [vmem:[#allocation124_spill] sm:$0xff] %v8086_v19  ;;  %9930 = vst [vmem:[#allocation125_spill] sm:$0xff] %v8089_v18  ;;  %v8092_v13 = vld [vmem:[#allocation12 + $0x2a0] sm:$0xff]  ;;  %v8095_v11 = vld [vmem:[#allocation12 + $0x2b0] sm:$0xff] }
 0x782   :  { %3085 = vmatpush2.msra.mxu0 %v8080_v24  ;;  %3156 = vmatpush2.msra.mxu1 %v8083_v29  ;;  %9931 = vst [vmem:[#allocation126_spill] sm:$0xff] %v8092_v13  ;;  %9932 = vst [vmem:[#allocation127_spill] sm:$0xff] %v8095_v11  ;;  %v8098_v24 = vld [vmem:[#allocation12 + $0x288] sm:$0xff]  ;;  %v8101_v29 = vld [vmem:[#allocation12 + $0x298] sm:$0xff] }
 0x783   :  { %3086 = vmatprep.subr.mxu0 %v8086_v19  ;;  %3157 = vmatprep.subr.mxu1 %v8089_v18  ;;  %9933 = vst [vmem:[#allocation128_spill] sm:$0xff] %v8098_v24  ;;  %9934 = vst [vmem:[#allocation129_spill] sm:$0xff] %v8101_v29  ;;  %v8104_v19 = vld [vmem:[#allocation12 + $0x280] sm:$0xff]  ;;  %v8107_v18 = vld [vmem:[#allocation12 + $0x290] sm:$0xff] }
 0x784   :  { %3087 = vmatpush2.msra.mxu0 %v8092_v13  ;;  %3158 = vmatpush2.msra.mxu1 %v8095_v11  ;;  %9935 = vst [vmem:[#allocation130_spill] sm:$0xff] %v8104_v19  ;;  %9936 = vst [vmem:[#allocation131_spill] sm:$0xff] %v8107_v18  ;;  %v8110_v13 = vld [vmem:[#allocation12 + $0x268] sm:$0xff]  ;;  %v8113_v11 = vld [vmem:[#allocation12 + $0x278] sm:$0xff] }
 0x785   :  { %3088 = vmatprep.subr.mxu0 %v8098_v24  ;;  %3159 = vmatprep.subr.mxu1 %v8101_v29  ;;  %9937 = vst [vmem:[#allocation132_spill] sm:$0xff] %v8110_v13  ;;  %9938 = vst [vmem:[#allocation133_spill] sm:$0xff] %v8113_v11  ;;  %v8116_v24 = vld [vmem:[#allocation12 + $0x260] sm:$0xff]  ;;  %v8119_v29 = vld [vmem:[#allocation12 + $0x270] sm:$0xff] }
 0x786   :  { %3089 = vmatpush2.msra.mxu0 %v8104_v19  ;;  %3160 = vmatpush2.msra.mxu1 %v8107_v18  ;;  %9939 = vst [vmem:[#allocation134_spill] sm:$0xff] %v8116_v24  ;;  %9940 = vst [vmem:[#allocation135_spill] sm:$0xff] %v8119_v29  ;;  %v8122_v19 = vld [vmem:[#allocation12 + $0x248] sm:$0xff]  ;;  %v8125_v18 = vld [vmem:[#allocation12 + $0x258] sm:$0xff] }
 0x787   :  { %3090 = vmatprep.subr.mxu0 %v8110_v13  ;;  %3161 = vmatprep.subr.mxu1 %v8113_v11  ;;  %9941 = vst [vmem:[#allocation136_spill] sm:$0xff] %v8122_v19  ;;  %9942 = vst [vmem:[#allocation137_spill] sm:$0xff] %v8125_v18  ;;  %v8128_v13 = vld [vmem:[#allocation12 + $0x240] sm:$0xff]  ;;  %v8131_v11 = vld [vmem:[#allocation12 + $0x250] sm:$0xff] }
 0x788   :  { %3091 = vmatpush2.msra.mxu0 %v8116_v24  ;;  %3162 = vmatpush2.msra.mxu1 %v8119_v29  ;;  %9943 = vst [vmem:[#allocation138_spill] sm:$0xff] %v8128_v13  ;;  %9944 = vst [vmem:[#allocation139_spill] sm:$0xff] %v8131_v11  ;;  %v8134_v24 = vld [vmem:[#allocation12 + $0x228] sm:$0xff]  ;;  %v8137_v29 = vld [vmem:[#allocation12 + $0x238] sm:$0xff] }
 0x789   :  { %3092 = vmatprep.subr.mxu0 %v8122_v19  ;;  %3163 = vmatprep.subr.mxu1 %v8125_v18  ;;  %9945 = vst [vmem:[#allocation140_spill] sm:$0xff] %v8134_v24  ;;  %9946 = vst [vmem:[#allocation141_spill] sm:$0xff] %v8137_v29  ;;  %v8140_v19 = vld [vmem:[#allocation12 + $0x220] sm:$0xff]  ;;  %v8143_v18 = vld [vmem:[#allocation12 + $0x230] sm:$0xff] }
 0x78a   :  { %3093 = vmatpush2.msra.mxu0 %v8128_v13  ;;  %3164 = vmatpush2.msra.mxu1 %v8131_v11  ;;  %9947 = vst [vmem:[#allocation142_spill] sm:$0xff] %v8140_v19  ;;  %9948 = vst [vmem:[#allocation143_spill] sm:$0xff] %v8143_v18  ;;  %v8146_v13 = vld [vmem:[#allocation12 + $0x208] sm:$0xff]  ;;  %v8149_v11 = vld [vmem:[#allocation12 + $0x218] sm:$0xff] }
 0x78b   :  { %3094 = vmatprep.subr.mxu0 %v8134_v24  ;;  %3165 = vmatprep.subr.mxu1 %v8137_v29  ;;  %9949 = vst [vmem:[#allocation144_spill] sm:$0xff] %v8146_v13  ;;  %9950 = vst [vmem:[#allocation145_spill] sm:$0xff] %v8149_v11  ;;  %v8152_v24 = vld [vmem:[#allocation12 + $0x200] sm:$0xff]  ;;  %v8155_v29 = vld [vmem:[#allocation12 + $0x210] sm:$0xff] }
 0x78c   :  { %3095 = vmatpush2.msra.mxu0 %v8140_v19  ;;  %3166 = vmatpush2.msra.mxu1 %v8143_v18  ;;  %9951 = vst [vmem:[#allocation146_spill] sm:$0xff] %v8152_v24  ;;  %9952 = vst [vmem:[#allocation147_spill] sm:$0xff] %v8155_v29 }
 0x78d   :  { %3096 = vmatprep.subr.mxu0 %v8146_v13  ;;  %3167 = vmatprep.subr.mxu1 %v8149_v11 }
 0x78e   :  { %3097 = vmatpush2.msra.mxu0 %v8152_v24  ;;  %3168 = vmatpush2.msra.mxu1 %v8155_v29 }
 0x78f   :  { %3221 = vmatprep.subr.mxu0 %v7587_v59  ;;  %3292 = vmatprep.subr.mxu1 %v7590_v52 }
 0x7ed   :  { %v2743_v18 = vpop.f32.mrf.mxu0  ;;  %v2814_v11 = vpop.f32.mrf.mxu1 }
 0x7ee   :  { %v2744_v19 = vadd.f32 %v2743_v18, %v9815_v63  ;;  %v2815_v59 = vadd.f32 %v2814_v11, %v9818_v53 }
 0x7ef   :  { %v2745_v13 = vpop.f32.mrf.mxu0  ;;  %v2816_v24 = vpop.f32.mrf.mxu1 }
 0x7f0   :  { %v3722_v22 = vmul.f32 -1.442695, %v2744_v19  ;;  %v2746_v23 = vadd.f32 %v2745_v13, %v9816_v9  ;;  %v2817_v55 = vadd.f32 %v2816_v24, %v9817_v10  ;;  %v9953_v9 = vld [vmem:[#allocation173_spill] sm:$0xff] }
 0x7f2   :  { %3991 = vpow2.f32 %v3722_v22  ;;  %v3723_v1 = vmul.f32 -1.442695, %v2746_v23  ;;  %v3724_v54 = vmul.f32 -1.442695, %v2817_v55  ;;  %v9954_v55 = vld [vmem:[#allocation175_spill] sm:$0xff] }
 0x7f4   :  { %3993 = vpow2.f32 %v3723_v1 }
 0x7f5   :  { %3995 = vpow2.f32 %v3724_v54 }
 0x7ff   :  { %v3992_v29 = vpop.eup %3991 }
 0x800   :  { %v2822_v51 = vadd.f32 1.0, %v3992_v29 }
 0x801   :  { %v3994_v52 = vpop.eup %3993 }
 0x802   :  { %3997 = vrcp.f32 %v2822_v51  ;;  %v2828_v18 = vadd.f32 1.0, %v3994_v52  ;;  %v3996_v19 = vpop.eup %3995 }
 0x803   :  { %3999 = vtanh.f32 %v2815_v59  ;;  %v2835_v29 = vadd.f32 1.0, %v3996_v19 }
 0x804   :  { %4001 = vrcp.f32 %v2828_v18 }
 0x80e   :  { %v2930_v13 = vpop.f32.mrf.mxu0  ;;  %v3001_v51 = vpop.f32.mrf.mxu1 }
 0x80f   :  { %v3998_v22 = vpop.eup %3997  ;;  %v3006_v23 = vadd.f32 %v2930_v13, %v9953_v9  ;;  %v9955_v9 = vld [vmem:[#allocation176_spill] sm:$0xff]  ;;  %v9956_v13 = vld [vmem:[#allocation174_spill] sm:$0xff] }
 0x810   :  { %v4000_v1 = vpop.eup %3999  ;;  %v2932_v63 = vpop.f32.mrf.mxu0 }
 0x811   :  { %v4002_v50 = vpop.eup %4001  ;;  %v3725_v24 = vmul.f32 -1.442695, %v3006_v23  ;;  %v3007_v10 = vadd.f32 %v2932_v63, %v9954_v55  ;;  %v2839_v36 = vmul.f32 %v4000_v1, %v3998_v22  ;;  %v3003_v52 = vpop.f32.mrf.mxu1  ;;  %v3008_v23 = vadd.f32 %v3001_v51, %v9956_v13 }
 0x812   :  { %v2838_v11 = vmul.f32 %v4002_v50, %v7600_v5  ;;  %v3009_v18 = vadd.f32 %v3003_v52, %v9955_v9 }
 0x813   :  { %4003 = vpow2.f32 %v3725_v24  ;;  %v3726_v54 = vmul.f32 -1.442695, %v3007_v10 }
 0x814   :  { %v8167_v59 = vadd.f32 %v2839_v36, %v2838_v11  ;;  %v3727_v53 = vmul.f32 -1.442695, %v3009_v18 }
 0x815   :  { %4005 = vpow2.f32 %v3726_v54 }
 0x816   :  { %4007 = vrcp.f32 %v2835_v29 }
 0x817   :  { %4009 = vtanh.f32 %v8167_v59 }
 0x818   :  { %4011 = vtanh.f32 %v3008_v23 }
 0x819   :  { %4013 = vpow2.f32 %v3727_v53 }
 0x820   :  { %v4004_v63 = vpop.eup %4003 }
 0x821   :  { %v3013_v22 = vadd.f32 1.0, %v4004_v63  ;;  %v4691_v63 = vld [vmem:[#allocation11 + $0x1e0] sm:$0xff] }
 0x822   :  { %v4006_v5 = vpop.eup %4005 }
 0x823   :  { %v4008_v50 = vpop.eup %4007  ;;  %4015 = vrcp.f32 %v3013_v22  ;;  %v3019_v10 = vadd.f32 1.0, %v4006_v5  ;;  %v4693_v22 = vld [vmem:[#allocation11 + $0x1c8] sm:$0xff]  ;;  %v4694_v5 = vld [vmem:[#allocation11 + $0x1d8] sm:$0xff] }
 0x824   :  { %v4010_v36 = vpop.eup %4009 }
 0x825   :  { %4017 = vrcp.f32 %v3019_v10  ;;  %v8172_v19 = vmul.f32 %v4010_v36, %v4008_v50  ;;  %v4012_v1 = vpop.eup %4011  ;;  %v4696_v50 = vld [vmem:[#allocation11 + $0x1d0] sm:$0xff]  ;;  %v4697_v10 = vld [vmem:[#allocation11 + $0x1a8] sm:$0xff]  ;;  %v4698_v36 = vld [vmem:[#allocation11 + $0x1b8] sm:$0xff] }
 0x826   :  { %v4014_v24 = vpop.eup %4013 }
 0x827   :  { %3098 = vmatprep.mubr.f32.mxu0 %v8172_v19  ;;  %3169 = vmatprep.mubr.f32.mxu1 %v8172_v19  ;;  %4019 = vtanh.f32 %v8172_v19  ;;  %v3026_v51 = vadd.f32 1.0, %v4014_v24  ;;  %v4700_v24 = vld [vmem:[#allocation11 + $0x1b0] sm:$0xff] }
 0x829   :  { %4021 = vrcp.f32 %v3026_v51  ;;  %v4704_v51 = vld [vmem:[#allocation11 + $0x190] sm:$0xff] }
 0x830   :  { %v4016_v55 = vpop.eup %4015 }
 0x831   :  { %v3030_v11 = vmul.f32 %v4016_v55, %v4012_v1  ;;  %v4699_v1 = vld [vmem:[#allocation11 + $0x1a0] sm:$0xff]  ;;  %v4701_v55 = vld [vmem:[#allocation11 + $0x188] sm:$0xff] }
 0x832   :  { %v4018_v29 = vpop.eup %4017 }
 0x833   :  { %v3029_v53 = vmul.f32 %v4018_v29, %v7611_v0  ;;  %v4692_v0 = vld [vmem:[#allocation11 + $0x1f0] sm:$0xff]  ;;  %v4703_v29 = vld [vmem:[#allocation11 + $0x180] sm:$0xff] }
 0x834   :  { %v4020_v54 = vpop.eup %4019 }
 0x835   :  { %v8178_v52 = vadd.f32 %v3030_v11, %v3029_v53  ;;  %v2844_v9 = vmul.f32 %v7616_v56, %v4020_v54  ;;  %v4695_v56 = vld [vmem:[#allocation11 + $0x1c0] sm:$0xff]  ;;  %v4702_v11 = vld [vmem:[#allocation11 + $0x198] sm:$0xff]  ;;  %v4705_v53 = vld [vmem:[#allocation11 + $0x168] sm:$0xff] }
 0x836   :  { %v4022_v18 = vpop.eup %4021  ;;  %v4706_v54 = vld [vmem:[#allocation11 + $0x178] sm:$0xff] }
 0x837   :  { %2845 = vadd.xlane.f32.xlu1 %v2844_v9  ;;  %4023 = vtanh.f32 %v8178_v52  ;;  %v4707_v9 = vld [vmem:[#allocation11 + $0x160] sm:$0xff] }
 0x844   :  { %v4024_v13 = vpop.eup %4023 }
 0x845   :  { %v8182_v23 = vmul.f32 %v4024_v13, %v4022_v18  ;;  %v4708_v18 = vld [vmem:[#allocation11 + $0x170] sm:$0xff]  ;;  %v4709_v13 = vld [vmem:[#allocation11 + $0x148] sm:$0xff] }
 0x847   :  { %3099 = vmatmul.mubr.f32.vlgmr.msra.gmra.mxu0 %v8182_v23  ;;  %3170 = vmatmul.mubr.f32.vlgmr.msra.gmra.mxu1 %v8182_v23 }
 0x848   :  { %3222 = vmatpush1.msra.mxu0 %v4691_v63  ;;  %3293 = vmatpush1.msra.mxu1 %v4692_v0  ;;  %v4710_v63 = vld [vmem:[#allocation11 + $0x158] sm:$0xff]  ;;  %v9999_v0 = vld [vmem:[#allocation60_spill] sm:$0xff] }
 0x849   :  { %3223 = vmatprep.subr.mxu0 %v4693_v22  ;;  %3294 = vmatprep.subr.mxu1 %v4694_v5  ;;  %v10000_v22 = vld [vmem:[#allocation61_spill] sm:$0xff]  ;;  %v10001_v5 = vld [vmem:[#allocation62_spill] sm:$0xff] }
 0x84a   :  { %3224 = vmatpush1.msra.mxu0 %v4695_v56  ;;  %3295 = vmatpush1.msra.mxu1 %v4696_v50  ;;  %v10002_v56 = vld [vmem:[#allocation63_spill] sm:$0xff]  ;;  %v10003_v50 = vld [vmem:[#allocation64_spill] sm:$0xff] }
 0x84b   :  { %3225 = vmatprep.subr.mxu0 %v4697_v10  ;;  %3296 = vmatprep.subr.mxu1 %v4698_v36  ;;  %v10004_v10 = vld [vmem:[#allocation65_spill] sm:$0xff]  ;;  %v10005_v36 = vld [vmem:[#allocation66_spill] sm:$0xff] }
 0x84c   :  { %3226 = vmatpush1.msra.mxu0 %v4699_v1  ;;  %3297 = vmatpush1.msra.mxu1 %v4700_v24  ;;  %v10006_v1 = vld [vmem:[#allocation67_spill] sm:$0xff]  ;;  %v10007_v24 = vld [vmem:[#allocation68_spill] sm:$0xff] }
 0x84d   :  { %3227 = vmatprep.subr.mxu0 %v4701_v55  ;;  %3298 = vmatprep.subr.mxu1 %v4702_v11  ;;  %v10008_v55 = vld [vmem:[#allocation69_spill] sm:$0xff]  ;;  %v10009_v11 = vld [vmem:[#allocation70_spill] sm:$0xff] }
 0x84e   :  { %3228 = vmatpush1.msra.mxu0 %v4703_v29  ;;  %3299 = vmatpush1.msra.mxu1 %v4704_v51  ;;  %v10010_v29 = vld [vmem:[#allocation71_spill] sm:$0xff]  ;;  %v10011_v51 = vld [vmem:[#allocation72_spill] sm:$0xff] }
 0x84f   :  { %3229 = vmatprep.subr.mxu0 %v4705_v53  ;;  %3300 = vmatprep.subr.mxu1 %v4706_v54  ;;  %v10012_v53 = vld [vmem:[#allocation73_spill] sm:$0xff]  ;;  %v10013_v54 = vld [vmem:[#allocation74_spill] sm:$0xff] }
 0x850   :  { %3230 = vmatpush1.msra.mxu0 %v4707_v9  ;;  %3301 = vmatpush1.msra.mxu1 %v4708_v18  ;;  %v10014_v9 = vld [vmem:[#allocation75_spill] sm:$0xff]  ;;  %v10015_v18 = vld [vmem:[#allocation76_spill] sm:$0xff] }
 0x851   :  { %3231 = vmatprep.subr.mxu0 %v4709_v13  ;;  %3302 = vmatprep.subr.mxu1 %v4710_v63  ;;  %v10016_v13 = vld [vmem:[#allocation77_spill] sm:$0xff]  ;;  %v10017_v63 = vld [vmem:[#allocation78_spill] sm:$0xff] }
 0x852   :  { %3232 = vmatpush1.msra.mxu0 %v7644_v21  ;;  %3303 = vmatpush1.msra.mxu1 %v7647_v12  ;;  %v9957_v21 = vmov 0.0   ;;  %v9958_v12 = vld [vmem:[#allocation161_spill] sm:$0xff] }
 0x853   :  { %3233 = vmatprep.subr.mxu0 %v7650_v43  ;;  %3304 = vmatprep.subr.mxu1 %v7653_v44  ;;  %v9959_v43 = vld [vmem:[#allocation163_spill] sm:$0xff]  ;;  %v9960_v44 = vld [vmem:[#allocation164_spill] sm:$0xff] }
 0x854   :  { %3234 = vmatpush1.msra.mxu0 %v7656_v37  ;;  %3305 = vmatpush1.msra.mxu1 %v7659_v46  ;;  %v9961_v37 = vld [vmem:[#allocation162_spill] sm:$0xff]  ;;  %v9962_v46 = vld [vmem:[#allocation165_spill] sm:$0xff] }
 0x855   :  { %3235 = vmatprep.subr.mxu0 %v7662_v14  ;;  %3306 = vmatprep.subr.mxu1 %v7665_v47  ;;  %v9963_v14 = vld [vmem:[#allocation167_spill] sm:$0xff]  ;;  %v9964_v47 = vld [vmem:[#allocation168_spill] sm:$0xff] }
 0x856   :  { %3236 = vmatpush1.msra.mxu0 %v7668_v16  ;;  %3307 = vmatpush1.msra.mxu1 %v7671_v15  ;;  %v9965_v16 = vld [vmem:[#allocation166_spill] sm:$0xff]  ;;  %v9966_v15 = vld [vmem:[#allocation160_spill] sm:$0xff] }
 0x857   :  { %3237 = vmatprep.subr.mxu0 %v7674_v33  ;;  %3308 = vmatprep.subr.mxu1 %v7677_v41  ;;  %v9967_v33 = vld [vmem:[#allocation158_spill] sm:$0xff]  ;;  %v9968_v41 = vld [vmem:[#allocation29_spill] sm:$0xff] }
 0x858   :  { %3238 = vmatpush1.msra.mxu0 %v7680_v32  ;;  %3309 = vmatpush1.msra.mxu1 %v7683_v38  ;;  %v9969_v32 = vld [vmem:[#allocation30_spill] sm:$0xff]  ;;  %v9970_v38 = vld [vmem:[#allocation31_spill] sm:$0xff] }
 0x859   :  { %3239 = vmatprep.subr.mxu0 %v7686_v45  ;;  %3310 = vmatprep.subr.mxu1 %v7689_v28  ;;  %v9971_v45 = vld [vmem:[#allocation32_spill] sm:$0xff]  ;;  %v9972_v28 = vld [vmem:[#allocation33_spill] sm:$0xff] }
 0x85a   :  { %3240 = vmatpush1.msra.mxu0 %v7692_v30  ;;  %3311 = vmatpush1.msra.mxu1 %v7695_v31  ;;  %v9973_v30 = vld [vmem:[#allocation34_spill] sm:$0xff]  ;;  %v9974_v31 = vld [vmem:[#allocation35_spill] sm:$0xff] }
 0x85b   :  { %3241 = vmatprep.subr.mxu0 %v7698_v17  ;;  %3312 = vmatprep.subr.mxu1 %v7701_v48  ;;  %v9975_v17 = vld [vmem:[#allocation36_spill] sm:$0xff]  ;;  %v9976_v48 = vld [vmem:[#allocation37_spill] sm:$0xff] }
 0x85c   :  { %3242 = vmatpush1.msra.mxu0 %v7704_v49  ;;  %3313 = vmatpush1.msra.mxu1 %v7707_v25  ;;  %v9977_v49 = vld [vmem:[#allocation38_spill] sm:$0xff]  ;;  %v9978_v25 = vld [vmem:[#allocation39_spill] sm:$0xff] }
 0x85d   :  { %3243 = vmatprep.subr.mxu0 %v7710_v35  ;;  %3314 = vmatprep.subr.mxu1 %v7713_v20  ;;  %v9979_v35 = vld [vmem:[#allocation40_spill] sm:$0xff]  ;;  %v9980_v20 = vld [vmem:[#allocation41_spill] sm:$0xff] }
 0x85e   :  { %3244 = vmatpush1.msra.mxu0 %v7716_v3  ;;  %3315 = vmatpush1.msra.mxu1 %v7719_v4  ;;  %v9981_v3 = vld [vmem:[#allocation42_spill] sm:$0xff]  ;;  %v9982_v4 = vld [vmem:[#allocation43_spill] sm:$0xff] }
 0x85f   :  { %3245 = vmatprep.subr.mxu0 %v7722_v34  ;;  %3316 = vmatprep.subr.mxu1 %v7725_v40  ;;  %v9983_v34 = vld [vmem:[#allocation44_spill] sm:$0xff]  ;;  %v9984_v40 = vld [vmem:[#allocation45_spill] sm:$0xff] }
 0x860   :  { %3246 = vmatpush1.msra.mxu0 %v7728_v8  ;;  %3317 = vmatpush1.msra.mxu1 %v7731_v6  ;;  %v9985_v8 = vld [vmem:[#allocation46_spill] sm:$0xff]  ;;  %v9986_v6 = vld [vmem:[#allocation47_spill] sm:$0xff] }
 0x861   :  { %3247 = vmatprep.subr.mxu0 %v7734_v26  ;;  %3318 = vmatprep.subr.mxu1 %v7737_v39  ;;  %v9987_v26 = vld [vmem:[#allocation48_spill] sm:$0xff]  ;;  %v9988_v39 = vld [vmem:[#allocation49_spill] sm:$0xff] }
 0x862   :  { %3248 = vmatpush1.msra.mxu0 %v7740_v27  ;;  %3319 = vmatpush1.msra.mxu1 %v7743_v7  ;;  %v9989_v27 = vld [vmem:[#allocation50_spill] sm:$0xff]  ;;  %v9990_v7 = vld [vmem:[#allocation51_spill] sm:$0xff] }
 0x863   :  { %3249 = vmatprep.subr.mxu0 %v7746_v62  ;;  %3320 = vmatprep.subr.mxu1 %v7749_v58  ;;  %v9991_v62 = vld [vmem:[#allocation52_spill] sm:$0xff]  ;;  %v9992_v58 = vld [vmem:[#allocation53_spill] sm:$0xff] }
 0x864   :  { %3250 = vmatpush1.msra.mxu0 %v7752_v60  ;;  %3321 = vmatpush1.msra.mxu1 %v7755_v2  ;;  %v9993_v60 = vld [vmem:[#allocation54_spill] sm:$0xff]  ;;  %v9994_v2 = vld [vmem:[#allocation55_spill] sm:$0xff] }
 0x865   :  { %3251 = vmatprep.subr.mxu0 %v7758_v57  ;;  %3322 = vmatprep.subr.mxu1 %v7761_v61  ;;  %v9995_v57 = vld [vmem:[#allocation56_spill] sm:$0xff]  ;;  %v9996_v61 = vld [vmem:[#allocation57_spill] sm:$0xff] }
 0x866   :  { %3252 = vmatpush1.msra.mxu0 %v7764_v42  ;;  %3285 = vmatprep.mubr.f32.mxu0 %v9957_v21  ;;  %v9997_v42 = vld [vmem:[#allocation58_spill] sm:$0xff] }
 0x867   :  { %3323 = vmatpush1.msra.mxu1 %v9958_v12  ;;  %3356 = vmatprep.mubr.f32.mxu1 %v9957_v21  ;;  %v10018_v12 = vld [vmem:[#allocation79_spill] sm:$0xff] }
 0x868   :  { %3286 = vmatmul.mubr.f32.vlgmr.msra.gmra.mxu0 %v8182_v23  ;;  %3357 = vmatmul.mubr.f32.vlgmr.msra.gmra.mxu1 %v8182_v23  ;;  %v9998_v23 = vld [vmem:[#allocation59_spill] sm:$0xff] }
 0x869   :  { %3391 = vmatprep.subr.mxu0 %v9959_v43  ;;  %3462 = vmatprep.subr.mxu1 %v9960_v44  ;;  %v10019_v43 = vld [vmem:[#allocation80_spill] sm:$0xff]  ;;  %v10020_v44 = vld [vmem:[#allocation81_spill] sm:$0xff] }
 0x86a   :  { %3392 = vmatpush1.msra.mxu0 %v9961_v37  ;;  %3463 = vmatpush1.msra.mxu1 %v9962_v46  ;;  %v10021_v37 = vld [vmem:[#allocation82_spill] sm:$0xff]  ;;  %v10022_v46 = vld [vmem:[#allocation83_spill] sm:$0xff] }
 0x86b   :  { %3393 = vmatprep.subr.mxu0 %v9963_v14  ;;  %3464 = vmatprep.subr.mxu1 %v9964_v47  ;;  %v10023_v14 = vld [vmem:[#allocation84_spill] sm:$0xff]  ;;  %v10024_v47 = vld [vmem:[#allocation85_spill] sm:$0xff] }
 0x86c   :  { %3394 = vmatpush1.msra.mxu0 %v9965_v16  ;;  %3465 = vmatpush1.msra.mxu1 %v9966_v15  ;;  %v10025_v16 = vld [vmem:[#allocation86_spill] sm:$0xff]  ;;  %v10026_v15 = vld [vmem:[#allocation87_spill] sm:$0xff] }
 0x86d   :  { %3395 = vmatprep.subr.mxu0 %v9967_v33  ;;  %3466 = vmatprep.subr.mxu1 %v9968_v41  ;;  %v10027_v33 = vld [vmem:[#allocation88_spill] sm:$0xff]  ;;  %v10028_v41 = vld [vmem:[#allocation89_spill] sm:$0xff] }
 0x86e   :  { %3396 = vmatpush1.msra.mxu0 %v9969_v32  ;;  %3467 = vmatpush1.msra.mxu1 %v9970_v38  ;;  %v10029_v32 = vld [vmem:[#allocation90_spill] sm:$0xff]  ;;  %v10030_v38 = vld [vmem:[#allocation91_spill] sm:$0xff] }
 0x86f   :  { %3397 = vmatprep.subr.mxu0 %v9971_v45  ;;  %3468 = vmatprep.subr.mxu1 %v9972_v28  ;;  %v10031_v45 = vld [vmem:[#allocation92_spill] sm:$0xff]  ;;  %v10032_v28 = vld [vmem:[#allocation93_spill] sm:$0xff] }
 0x870   :  { %3398 = vmatpush1.msra.mxu0 %v9973_v30  ;;  %3469 = vmatpush1.msra.mxu1 %v9974_v31  ;;  %v10033_v30 = vld [vmem:[#allocation94_spill] sm:$0xff]  ;;  %v10034_v31 = vld [vmem:[#allocation95_spill] sm:$0xff] }
 0x871   :  { %3399 = vmatprep.subr.mxu0 %v9975_v17  ;;  %3470 = vmatprep.subr.mxu1 %v9976_v48  ;;  %v10035_v17 = vld [vmem:[#allocation96_spill] sm:$0xff]  ;;  %v10036_v48 = vld [vmem:[#allocation97_spill] sm:$0xff] }
 0x872   :  { %3400 = vmatpush1.msra.mxu0 %v9977_v49  ;;  %3471 = vmatpush1.msra.mxu1 %v9978_v25  ;;  %v10037_v49 = vld [vmem:[#allocation98_spill] sm:$0xff]  ;;  %v10038_v25 = vld [vmem:[#allocation99_spill] sm:$0xff] }
 0x873   :  { %3401 = vmatprep.subr.mxu0 %v9979_v35  ;;  %3472 = vmatprep.subr.mxu1 %v9980_v20  ;;  %v10039_v35 = vld [vmem:[#allocation100_spill] sm:$0xff]  ;;  %v10040_v20 = vld [vmem:[#allocation101_spill] sm:$0xff] }
 0x874   :  { %3402 = vmatpush1.msra.mxu0 %v9981_v3  ;;  %3473 = vmatpush1.msra.mxu1 %v9982_v4  ;;  %v10041_v3 = vld [vmem:[#allocation102_spill] sm:$0xff]  ;;  %v10042_v4 = vld [vmem:[#allocation103_spill] sm:$0xff] }
 0x875   :  { %3403 = vmatprep.subr.mxu0 %v9983_v34  ;;  %3474 = vmatprep.subr.mxu1 %v9984_v40  ;;  %v10043_v34 = vld [vmem:[#allocation104_spill] sm:$0xff]  ;;  %v10044_v40 = vld [vmem:[#allocation105_spill] sm:$0xff] }
 0x876   :  { %3404 = vmatpush1.msra.mxu0 %v9985_v8  ;;  %3475 = vmatpush1.msra.mxu1 %v9986_v6  ;;  %v10045_v8 = vld [vmem:[#allocation106_spill] sm:$0xff]  ;;  %v10046_v6 = vld [vmem:[#allocation107_spill] sm:$0xff] }
 0x877   :  { %3405 = vmatprep.subr.mxu0 %v9987_v26  ;;  %3476 = vmatprep.subr.mxu1 %v9988_v39  ;;  %v10047_v26 = vld [vmem:[#allocation108_spill] sm:$0xff]  ;;  %v10048_v39 = vld [vmem:[#allocation109_spill] sm:$0xff] }
 0x878   :  { %3406 = vmatpush1.msra.mxu0 %v9989_v27  ;;  %3477 = vmatpush1.msra.mxu1 %v9990_v7  ;;  %v10049_v27 = vld [vmem:[#allocation110_spill] sm:$0xff]  ;;  %v10050_v7 = vld [vmem:[#allocation111_spill] sm:$0xff] }
 0x879   :  { %3407 = vmatprep.subr.mxu0 %v9991_v62  ;;  %3478 = vmatprep.subr.mxu1 %v9992_v58  ;;  %v10051_v62 = vld [vmem:[#allocation112_spill] sm:$0xff]  ;;  %v10052_v58 = vld [vmem:[#allocation113_spill] sm:$0xff] }
 0x87a   :  { %3408 = vmatpush1.msra.mxu0 %v9993_v60  ;;  %3479 = vmatpush1.msra.mxu1 %v9994_v2  ;;  %v10053_v60 = vld [vmem:[#allocation114_spill] sm:$0xff]  ;;  %v10054_v2 = vld [vmem:[#allocation115_spill] sm:$0xff] }
 0x87b   :  { %3409 = vmatprep.subr.mxu0 %v9995_v57  ;;  %3480 = vmatprep.subr.mxu1 %v9996_v61  ;;  %v10055_v57 = vld [vmem:[#allocation116_spill] sm:$0xff]  ;;  %v10056_v61 = vld [vmem:[#allocation117_spill] sm:$0xff] }
 0x87c   :  { %3410 = vmatpush1.msra.mxu0 %v9997_v42  ;;  %3481 = vmatpush1.msra.mxu1 %v9998_v23  ;;  %v10057_v42 = vld [vmem:[#allocation118_spill] sm:$0xff]  ;;  %v10058_v23 = vld [vmem:[#allocation119_spill] sm:$0xff] }
 0x87d   :  { %3411 = vmatprep.subr.mxu0 %v9999_v0  ;;  %3482 = vmatprep.subr.mxu1 %v10000_v22  ;;  %v10059_v0 = vld [vmem:[#allocation120_spill] sm:$0xff]  ;;  %v10060_v22 = vld [vmem:[#allocation121_spill] sm:$0xff] }
 0x87e   :  { %3412 = vmatpush1.msra.mxu0 %v10001_v5  ;;  %3483 = vmatpush1.msra.mxu1 %v10002_v56  ;;  %v10061_v5 = vld [vmem:[#allocation122_spill] sm:$0xff]  ;;  %v10062_v56 = vld [vmem:[#allocation123_spill] sm:$0xff] }
 0x87f   :  { %3413 = vmatprep.subr.mxu0 %v10003_v50  ;;  %3484 = vmatprep.subr.mxu1 %v10004_v10  ;;  %v10063_v50 = vld [vmem:[#allocation124_spill] sm:$0xff]  ;;  %v10064_v10 = vld [vmem:[#allocation125_spill] sm:$0xff] }
 0x880   :  { %3414 = vmatpush1.msra.mxu0 %v10005_v36  ;;  %3485 = vmatpush1.msra.mxu1 %v10006_v1  ;;  %v10065_v36 = vld [vmem:[#allocation126_spill] sm:$0xff]  ;;  %v10066_v1 = vld [vmem:[#allocation127_spill] sm:$0xff] }
 0x881   :  { %3415 = vmatprep.subr.mxu0 %v10007_v24  ;;  %3486 = vmatprep.subr.mxu1 %v10008_v55  ;;  %v10067_v24 = vld [vmem:[#allocation128_spill] sm:$0xff]  ;;  %v10068_v55 = vld [vmem:[#allocation129_spill] sm:$0xff] }
 0x882   :  { %3416 = vmatpush1.msra.mxu0 %v10009_v11  ;;  %3487 = vmatpush1.msra.mxu1 %v10010_v29  ;;  %v10069_v11 = vld [vmem:[#allocation130_spill] sm:$0xff]  ;;  %v10070_v29 = vld [vmem:[#allocation131_spill] sm:$0xff] }
 0x883   :  { %3417 = vmatprep.subr.mxu0 %v10011_v51  ;;  %3488 = vmatprep.subr.mxu1 %v10012_v53  ;;  %v10071_v51 = vld [vmem:[#allocation132_spill] sm:$0xff]  ;;  %v10072_v53 = vld [vmem:[#allocation133_spill] sm:$0xff] }
 0x884   :  { %3418 = vmatpush1.msra.mxu0 %v10013_v54  ;;  %3489 = vmatpush1.msra.mxu1 %v10014_v9  ;;  %v10073_v54 = vld [vmem:[#allocation134_spill] sm:$0xff]  ;;  %v10074_v9 = vld [vmem:[#allocation135_spill] sm:$0xff] }
 0x885   :  { %3419 = vmatprep.subr.mxu0 %v10015_v18  ;;  %3490 = vmatprep.subr.mxu1 %v10016_v13  ;;  %v10075_v18 = vld [vmem:[#allocation136_spill] sm:$0xff]  ;;  %v10076_v13 = vld [vmem:[#allocation137_spill] sm:$0xff] }
 0x886   :  { %3420 = vmatpush1.msra.mxu0 %v10017_v63  ;;  %3491 = vmatpush1.msra.mxu1 %v10018_v12  ;;  %v10077_v63 = vld [vmem:[#allocation138_spill] sm:$0xff]  ;;  %v10078_v12 = vld [vmem:[#allocation139_spill] sm:$0xff] }
 0x887   :  { %3421 = vmatprep.subr.mxu0 %v10019_v43  ;;  %3492 = vmatprep.subr.mxu1 %v10020_v44  ;;  %v10079_v43 = vld [vmem:[#allocation140_spill] sm:$0xff]  ;;  %v10080_v44 = vld [vmem:[#allocation141_spill] sm:$0xff] }
 0x888   :  { %3422 = vmatpush1.msra.mxu0 %v10021_v37  ;;  %3493 = vmatpush1.msra.mxu1 %v10022_v46  ;;  %v10081_v37 = vld [vmem:[#allocation142_spill] sm:$0xff]  ;;  %v10082_v46 = vld [vmem:[#allocation143_spill] sm:$0xff] }
 0x889   :  { %3423 = vmatprep.subr.mxu0 %v10023_v14  ;;  %3494 = vmatprep.subr.mxu1 %v10024_v47  ;;  %v10083_v14 = vld [vmem:[#allocation144_spill] sm:$0xff]  ;;  %v10084_v47 = vld [vmem:[#allocation145_spill] sm:$0xff] }
 0x88a   :  { %3424 = vmatpush2.msra.mxu0 %v10025_v16  ;;  %3495 = vmatpush2.msra.mxu1 %v10026_v15  ;;  %v10085_v16 = vld [vmem:[#allocation146_spill] sm:$0xff]  ;;  %v10086_v15 = vld [vmem:[#allocation147_spill] sm:$0xff] }
 0x88b   :  { %3425 = vmatprep.subr.mxu0 %v10027_v33  ;;  %3496 = vmatprep.subr.mxu1 %v10028_v41  ;;  %v10087_v41 = vld [vmem:[#allocation24_spill] sm:$0xff] }
 0x88c   :  { %3426 = vmatpush2.msra.mxu0 %v10029_v32  ;;  %3497 = vmatpush2.msra.mxu1 %v10030_v38 }
 0x88d   :  { %3427 = vmatprep.subr.mxu0 %v10031_v45  ;;  %3498 = vmatprep.subr.mxu1 %v10032_v28  ;;  %v10088_v28 = vld [vmem:[#allocation25_spill] sm:$0xff] }
 0x88e   :  { %3428 = vmatpush2.msra.mxu0 %v10033_v30  ;;  %3499 = vmatpush2.msra.mxu1 %v10034_v31 }
 0x88f   :  { %3429 = vmatprep.subr.mxu0 %v10035_v17  ;;  %3500 = vmatprep.subr.mxu1 %v10036_v48 }
 0x890   :  { %3430 = vmatpush2.msra.mxu0 %v10037_v49  ;;  %3501 = vmatpush2.msra.mxu1 %v10038_v25  ;;  %v10089_v49 = vld [vmem:[#allocation26_spill] sm:$0xff] }
 0x891   :  { %3431 = vmatprep.subr.mxu0 %v10039_v35  ;;  %3502 = vmatprep.subr.mxu1 %v10040_v20 }
 0x892   :  { %3432 = vmatpush2.msra.mxu0 %v10041_v3  ;;  %3503 = vmatpush2.msra.mxu1 %v10042_v4  ;;  %v10090_v3 = vld [vmem:[#allocation27_spill] sm:$0xff] }
 0x893   :  { %3433 = vmatprep.subr.mxu0 %v10043_v34  ;;  %3504 = vmatprep.subr.mxu1 %v10044_v40 }
 0x894   :  { %3434 = vmatpush2.msra.mxu0 %v10045_v8  ;;  %3505 = vmatpush2.msra.mxu1 %v10046_v6 }
 0x895   :  { %3435 = vmatprep.subr.mxu0 %v10047_v26  ;;  %3506 = vmatprep.subr.mxu1 %v10048_v39 }
 0x896   :  { %3436 = vmatpush2.msra.mxu0 %v10049_v27  ;;  %3507 = vmatpush2.msra.mxu1 %v10050_v7  ;;  %v10091_v27 = vld [vmem:[#allocation177_spill] sm:$0xff] }
 0x897   :  { %3437 = vmatprep.subr.mxu0 %v10051_v62  ;;  %3508 = vmatprep.subr.mxu1 %v10052_v58 }
 0x898   :  { %3438 = vmatpush2.msra.mxu0 %v10053_v60  ;;  %3509 = vmatpush2.msra.mxu1 %v10054_v2 }
 0x899   :  { %3439 = vmatprep.subr.mxu0 %v10055_v57  ;;  %3510 = vmatprep.subr.mxu1 %v10056_v61  ;;  %v10092_v57 = vld [vmem:[#allocation179_spill] sm:$0xff] }
 0x89a   :  { %3440 = vmatpush2.msra.mxu0 %v10057_v42  ;;  %3511 = vmatpush2.msra.mxu1 %v10058_v23 }
 0x89b   :  { %3441 = vmatprep.subr.mxu0 %v10059_v0  ;;  %3512 = vmatprep.subr.mxu1 %v10060_v22 }
 0x89c   :  { %3442 = vmatpush2.msra.mxu0 %v10061_v5  ;;  %3513 = vmatpush2.msra.mxu1 %v10062_v56 }
 0x89d   :  { %3443 = vmatprep.subr.mxu0 %v10063_v50  ;;  %3514 = vmatprep.subr.mxu1 %v10064_v10  ;;  %v10093_v10 = vld [vmem:[#allocation180_spill] sm:$0xff] }
 0x89e   :  { %3444 = vmatpush2.msra.mxu0 %v10065_v36  ;;  %3515 = vmatpush2.msra.mxu1 %v10066_v1  ;;  %v10094_v1 = vld [vmem:[#allocation178_spill] sm:$0xff] }
 0x89f   :  { %3445 = vmatprep.subr.mxu0 %v10067_v24  ;;  %3516 = vmatprep.subr.mxu1 %v10068_v55 }
 0x8a0   :  { %3446 = vmatpush2.msra.mxu0 %v10069_v11  ;;  %3517 = vmatpush2.msra.mxu1 %v10070_v29 }
 0x8a1   :  { %3447 = vmatprep.subr.mxu0 %v10071_v51  ;;  %3518 = vmatprep.subr.mxu1 %v10072_v53 }
 0x8a2   :  { %3448 = vmatpush2.msra.mxu0 %v10073_v54  ;;  %3519 = vmatpush2.msra.mxu1 %v10074_v9 }
 0x8a3   :  { %3449 = vmatprep.subr.mxu0 %v10075_v18  ;;  %3520 = vmatprep.subr.mxu1 %v10076_v13 }
 0x8a4   :  { %3450 = vmatpush2.msra.mxu0 %v10077_v63  ;;  %3521 = vmatpush2.msra.mxu1 %v10078_v12 }
 0x8a5   :  { %3451 = vmatprep.subr.mxu0 %v10079_v43  ;;  %3522 = vmatprep.subr.mxu1 %v10080_v44 }
 0x8a6   :  { %3452 = vmatpush2.msra.mxu0 %v10081_v37  ;;  %3523 = vmatpush2.msra.mxu1 %v10082_v46 }
 0x8a7   :  { %3453 = vmatprep.subr.mxu0 %v10083_v14  ;;  %3524 = vmatprep.subr.mxu1 %v10084_v47  ;;  %v4711_v47 = vld [vmem:[%s8428_s8] sm:$0xff] }
 0x8a8   :  { %3454 = vmatpush2.msra.mxu0 %v10085_v16  ;;  %3525 = vmatpush2.msra.mxu1 %v10086_v15 }
 0x8a9   :  { %3755 = vmatprep.subr.mxu0 %v9957_v21 }
 0x907   :  { %v3100_v33 = vpop.f32.mrf.mxu0  ;;  %v3171_v31 = vpop.f32.mrf.mxu1 }
 0x908   :  { %v3101_v32 = vadd.f32 %v3100_v33, %v10087_v41  ;;  %v3172_v4 = vadd.f32 %v3171_v31, %v10090_v3 }
 0x909   :  { %v3102_v38 = vpop.f32.mrf.mxu0  ;;  %v3173_v48 = vpop.f32.mrf.mxu1 }
 0x90a   :  { %v3728_v45 = vmul.f32 -1.442695, %v3101_v32  ;;  %v3103_v30 = vadd.f32 %v3102_v38, %v10088_v28  ;;  %v3174_v25 = vadd.f32 %v3173_v48, %v10089_v49 }
 0x90c   :  { %4025 = vpow2.f32 %v3728_v45  ;;  %v3729_v17 = vmul.f32 -1.442695, %v3103_v30  ;;  %v3730_v35 = vmul.f32 -1.442695, %v3174_v25 }
 0x90e   :  { %4027 = vpow2.f32 %v3729_v17 }
 0x90f   :  { %4029 = vpow2.f32 %v3730_v35 }
 0x919   :  { %v4026_v20 = vpop.eup %4025 }
 0x91a   :  { %v3179_v34 = vadd.f32 1.0, %v4026_v20 }
 0x91b   :  { %v4028_v40 = vpop.eup %4027 }
 0x91c   :  { %4031 = vrcp.f32 %v3179_v34  ;;  %v3185_v8 = vadd.f32 1.0, %v4028_v40  ;;  %v4030_v6 = vpop.eup %4029 }
 0x91d   :  { %4033 = vtanh.f32 %v3172_v4  ;;  %v3192_v0 = vadd.f32 1.0, %v4030_v6 }
 0x91e   :  { %4035 = vrcp.f32 %v3185_v8 }
 0x928   :  { %v3287_v26 = vpop.f32.mrf.mxu0  ;;  %v3358_v22 = vpop.f32.mrf.mxu1 }
 0x929   :  { %v4032_v39 = vpop.eup %4031  ;;  %v3363_v7 = vadd.f32 %v3287_v26, %v10091_v27  ;;  %v3365_v24 = vadd.f32 %v3358_v22, %v10094_v1  ;;  %v3587_v22 = vld [vmem:[#allocation15 + $0x58] sm:$0xff]  ;;  %v3581_v1 = vld [vmem:[#allocation15 + $0x28] sm:$0xff] }
 0x92a   :  { %v4034_v62 = vpop.eup %4033  ;;  %v3289_v58 = vpop.f32.mrf.mxu0 }
 0x92b   :  { %v4036_v60 = vpop.eup %4035  ;;  %v3731_v2 = vmul.f32 -1.442695, %v3363_v7  ;;  %v3364_v61 = vadd.f32 %v3289_v58, %v10092_v57  ;;  %v3196_v42 = vmul.f32 %v4034_v62, %v4032_v39  ;;  %v3360_v50 = vpop.f32.mrf.mxu1 }
 0x92c   :  { %v3195_v23 = vmul.f32 %v4036_v60, %v8167_v59  ;;  %v3366_v36 = vadd.f32 %v3360_v50, %v10093_v10  ;;  %v3584_v50 = vld [vmem:[#allocation15 + $0x40] sm:$0xff]  ;;  %v3583_v10 = vld [vmem:[#allocation15 + $0x38] sm:$0xff] }
 0x92d   :  { %4037 = vpow2.f32 %v3731_v2  ;;  %v3732_v5 = vmul.f32 -1.442695, %v3364_v61  ;;  %v3591_v61 = vld [vmem:[#allocation15 + $0x78] sm:$0xff] }
 0x92e   :  { %v8368_v56 = vadd.f32 %v3196_v42, %v3195_v23  ;;  %v3733_v55 = vmul.f32 -1.442695, %v3366_v36  ;;  %v3590_v42 = vld [vmem:[#allocation15 + $0x70] sm:$0xff]  ;;  %v3589_v23 = vld [vmem:[#allocation15 + $0x68] sm:$0xff] }
 0x92f   :  { %4039 = vpow2.f32 %v3732_v5  ;;  %v3586_v5 = vld [vmem:[#allocation15 + $0x50] sm:$0xff] }
 0x930   :  { %4041 = vrcp.f32 %v3192_v0  ;;  %v3588_v0 = vld [vmem:[#allocation15 + $0x60] sm:$0xff]  ;;  %v3582_v36 = vld [vmem:[#allocation15 + $0x30] sm:$0xff] }
 0x931   :  { %4043 = vtanh.f32 %v8368_v56 }
 0x932   :  { %4045 = vtanh.f32 %v3365_v24  ;;  %v3580_v24 = vld [vmem:[#allocation15 + $0x20] sm:$0xff] }
 0x933   :  { %4047 = vpow2.f32 %v3733_v55  ;;  %v3579_v55 = vld [vmem:[#allocation15 + $0x18] sm:$0xff] }
 0x93a   :  { %v4038_v11 = vpop.eup %4037 }
 0x93b   :  { %v3370_v29 = vadd.f32 1.0, %v4038_v11  ;;  %v3578_v11 = vld [vmem:[#allocation15 + $0x10] sm:$0xff] }
 0x93c   :  { %v4040_v59 = vpop.eup %4039 }
 0x93d   :  { %v4042_v51 = vpop.eup %4041  ;;  %4049 = vrcp.f32 %v3370_v29  ;;  %v3376_v53 = vadd.f32 1.0, %v4040_v59  ;;  %v3577_v29 = vld [vmem:[#allocation15 + $0x8] sm:$0xff]  ;;  %v3576_v59 = vld [vmem:[#allocation15] sm:$0xff] }
 0x93e   :  { %v4044_v54 = vpop.eup %4043 }
 0x93f   :  { %4051 = vrcp.f32 %v3376_v53  ;;  %v8373_v9 = vmul.f32 %v4044_v54, %v4042_v51  ;;  %v4046_v18 = vpop.eup %4045  ;;  %v1062_v51 = vpop.xlane.xlu0 %1061 }
 0x940   :  { %v4048_v13 = vpop.eup %4047  ;;  %v1063_v53 = vmax.f32 %v1062_v51, -1e+30 }
 0x941   :  { %3455 = vmatprep.mubr.f32.mxu0 %v8373_v9  ;;  %3526 = vmatprep.mubr.f32.mxu1 %v8373_v9  ;;  %4053 = vtanh.f32 %v8373_v9  ;;  %v3383_v44 = vadd.f32 1.0, %v4048_v13 }
 0x943   :  { %4055 = vrcp.f32 %v3383_v44  ;;  %v1418_v54 = vpop.xlane.xlu0 %1417 }
 0x944   :  { %v1419_v13 = vmax.f32 %v1063_v53, %v1418_v54 }
 0x946   :  { %v1420_v44 = vsub.f32 %v1063_v53, %v1419_v13 }
 0x94a   :  { %v4050_v63 = vpop.eup %4049 }
 0x94b   :  { %v3387_v12 = vmul.f32 %v4050_v63, %v4046_v18  ;;  %v1064_v18 = vsub.f32 -1e+30, %v1063_v53 }
 0x94c   :  { %v4052_v43 = vpop.eup %4051 }
 0x94d   :  { %v3386_v37 = vmul.f32 %v4052_v43, %v8178_v52  ;;  %v1065_v63 = vmul.f32 1.442695, %v1064_v18  ;;  %v1775_v43 = vpop.xlane.xlu1 %1774 }
 0x94e   :  { %v4054_v46 = vpop.eup %4053 }
 0x94f   :  { %v3388_v14 = vadd.f32 %v3387_v12, %v3386_v37  ;;  %v3201_v16 = vmul.f32 %v4711_v47, %v4054_v46  ;;  %v1067_v12 = vsub.f32 %v1062_v51, %v1063_v53  ;;  %v1776_v37 = vmax.f32 %v1419_v13, %v1775_v43 }
 0x950   :  { %v4056_v15 = vpop.eup %4055 }
 0x951   :  { %3202 = vadd.xlane.f32.xlu0 %v3201_v16  ;;  %4057 = vtanh.f32 %v3388_v14  ;;  %v1068_v46 = vmul.f32 1.442695, %v1067_v12  ;;  %v1421_v14 = vmul.f32 1.442695, %v1420_v44  ;;  %v2132_v16 = vpop.xlane.xlu1 %2131  ;;  %v10097_v44 = vld [vmem:[#allocation159_spill] sm:$0xff] }
 0x95e   :  { %v4058_v33 = vpop.eup %4057 }
 0x95f   :  { %v3390_v32 = vmul.f32 %v4058_v33, %v4056_v15  ;;  %v1777_v15 = vsub.f32 %v1419_v13, %v1776_v37 }
 0x961   :  { %3456 = vmatmul.mubr.f32.vlgmr.msra.gmra.mxu0 %v3390_v32  ;;  %3527 = vmatmul.mubr.f32.vlgmr.msra.gmra.mxu1 %v3390_v32  ;;  %v1778_v32 = vmul.f32 1.442695, %v1777_v15 }
 0x962   :  { %3756 = vmatpush3.msra.mxu0 %v3591_v61  ;;  %3787 = vmatprep.mubr.msk.f32.mxu0 %vm4917_vm0, %v9957_v21  ;;  %v10095_v61 = vld [vmem:[#allocation28_spill] sm:$0xff] }
 0x963   :  { %3757 = vmatprep.subr.mxu0 %v9957_v21 }
 0x964   :  { %3758 = vmatpush3.msra.mxu0 %v3590_v42 }
 0x965   :  { %3759 = vmatprep.subr.mxu0 %v9957_v21 }
 0x966   :  { %3760 = vmatpush3.msra.mxu0 %v3589_v23 }
 0x967   :  { %3761 = vmatprep.subr.mxu0 %v9957_v21 }
 0x968   :  { %3762 = vmatpush3.msra.mxu0 %v3588_v0 }
 0x969   :  { %3763 = vmatprep.subr.mxu0 %v9957_v21 }
 0x96a   :  { %3764 = vmatpush3.msra.mxu0 %v3587_v22 }
 0x96b   :  { %3765 = vmatprep.subr.mxu0 %v9957_v21 }
 0x96c   :  { %3766 = vmatpush3.msra.mxu0 %v3586_v5 }
 0x96d   :  { %3767 = vmatprep.subr.mxu0 %v9957_v21 }
 0xa21   :  { %v3457_v38 = vpop.f32.mrf.mxu0  ;;  %v3528_v17 = vpop.f32.mrf.mxu1 }
 0xa22   :  { %v3458_v45 = vadd.f32 %v3457_v38, %v10087_v41  ;;  %v3529_v34 = vadd.f32 %v3528_v17, %v10090_v3  ;;  %v1780_v38 = vsub.f32 %v1775_v43, %v1776_v37 }
 0xa23   :  { %v3459_v30 = vpop.f32.mrf.mxu0  ;;  %v3530_v25 = vpop.f32.mrf.mxu1 }
 0xa24   :  { %v3734_v52 = vmul.f32 -1.442695, %v3458_v45  ;;  %v3460_v31 = vadd.f32 %v3459_v30, %v10088_v28  ;;  %v3531_v35 = vadd.f32 %v3530_v25, %v10089_v49  ;;  %v2489_v45 = vpop.xlane.xlu0 %2488  ;;  %v1781_v17 = vmul.f32 1.442695, %v1780_v38 }
 0xa26   :  { %4059 = vpow2.f32 %v3734_v52  ;;  %v3735_v48 = vmul.f32 -1.442695, %v3460_v31  ;;  %v3736_v20 = vmul.f32 -1.442695, %v3531_v35  ;;  %v2846_v35 = vpop.xlane.xlu1 %2845 }
 0xa28   :  { %4061 = vpow2.f32 %v3735_v48 }
 0xa29   :  { %4063 = vpow2.f32 %v3736_v20 }
 0xa33   :  { %v4060_v4 = vpop.eup %4059 }
 0xa34   :  { %v3536_v40 = vadd.f32 1.0, %v4060_v4 }
 0xa35   :  { %v4062_v8 = vpop.eup %4061 }
 0xa36   :  { %4065 = vrcp.f32 %v3536_v40  ;;  %v3542_v41 = vadd.f32 1.0, %v4062_v8  ;;  %v4064_v6 = vpop.eup %4063 }
 0xa37   :  { %4067 = vtanh.f32 %v3529_v34  ;;  %v3549_v27 = vadd.f32 1.0, %v4064_v6 }
 0xa38   :  { %4069 = vrcp.f32 %v3542_v41 }
 0xa39   :  { %4071 = vrcp.f32 %v3549_v27 }
 0xa43   :  { %v4066_v28 = vpop.eup %4065 }
 0xa44   :  { %v4068_v26 = vpop.eup %4067 }
 0xa45   :  { %v4070_v39 = vpop.eup %4069  ;;  %v3553_v7 = vmul.f32 %v4068_v26, %v4066_v28 }
 0xa46   :  { %v3552_v62 = vmul.f32 %v4070_v39, %v8368_v56  ;;  %v4072_v58 = vpop.eup %4071  ;;  %v3585_v56 = vld [vmem:[#allocation15 + $0x48] sm:$0xff]  ;;  %v3203_v39 = vpop.xlane.xlu0 %3202 }
 0xa47   :  { %3768 = vmatpush3.msra.mxu0 %v3585_v56 }
 0xa48   :  { %v3554_v49 = vadd.f32 %v3553_v7, %v3552_v62  ;;  %3769 = vmatprep.subr.mxu0 %v9957_v21 }
 0xa49   :  { %3770 = vmatpush3.msra.mxu0 %v3584_v50 }
 0xa4a   :  { %4073 = vtanh.f32 %v3554_v49  ;;  %3771 = vmatprep.subr.mxu0 %v9957_v21 }
 0xa4b   :  { %3772 = vmatpush3.msra.mxu0 %v3583_v10 }
 0xa4c   :  { %3773 = vmatprep.subr.mxu0 %v9957_v21 }
 0xa4d   :  { %3774 = vmatpush3.msra.mxu0 %v3582_v36 }
 0xa4e   :  { %3775 = vmatprep.subr.mxu0 %v9957_v21 }
 0xa4f   :  { %3776 = vmatpush3.msra.mxu0 %v3581_v1 }
 0xa50   :  { %3777 = vmatprep.subr.mxu0 %v9957_v21 }
 0xa51   :  { %3778 = vmatpush3.msra.mxu0 %v3580_v24 }
 0xa52   :  { %3779 = vmatprep.subr.mxu0 %v9957_v21 }
 0xa53   :  { %3780 = vmatpush3.msra.mxu0 %v3579_v55  ;;  %v10096_v55 = vld [vmem:[#allocation157_spill] sm:$0xff] }
 0xa54   :  { %3781 = vmatprep.subr.mxu0 %v9957_v21 }
 0xa55   :  { %3782 = vmatpush3.msra.mxu0 %v3578_v11 }
 0xa56   :  { %3783 = vmatprep.subr.mxu0 %v9957_v21 }
 0xa57   :  { %v4074_v3 = vpop.eup %4073  ;;  %3784 = vmatpush3.msra.mxu0 %v3577_v29 }
 0xa58   :  { %v8387_v60 = vmul.f32 %v4074_v3, %v4072_v58  ;;  %3785 = vmatprep.subr.mxu0 %v9957_v21  ;;  %v2133_v21 = vmax.f32 %v1776_v37, %v2132_v16 }
 0xa59   :  { %3786 = vmatpush3.msra.mxu0 %v3576_v59 }
 0xa5a   :  { %4075 = vtanh.f32 %v8387_v60  ;;  %v2134_v30 = vsub.f32 %v1776_v37, %v2133_v21  ;;  %v2490_v52 = vmax.f32 %v2133_v21, %v2489_v45  ;;  %v2137_v25 = vsub.f32 %v2132_v16, %v2133_v21 }
 0xa5b   :  { %4077 = vpow2.f32 %v1065_v63 }
 0xa5c   :  { %4079 = vpow2.f32 %v1068_v46  ;;  %v2135_v48 = vmul.f32 1.442695, %v2134_v30  ;;  %v2491_v4 = vsub.f32 %v2133_v21, %v2490_v52  ;;  %v2847_v40 = vmax.f32 %v2490_v52, %v2846_v35  ;;  %v10098_v30 = vld [vmem:[#allocation154_spill] sm:$0xff] }
 0xa5d   :  { %4081 = vpow2.f32 %v1421_v14  ;;  %v2138_v41 = vmul.f32 1.442695, %v2137_v25  ;;  %v2494_v26 = vsub.f32 %v2489_v45, %v2490_v52 }
 0xa5e   :  { %v2492_v28 = vmul.f32 1.442695, %v2491_v4  ;;  %v2848_v7 = vsub.f32 %v2490_v52, %v2847_v40  ;;  %v3204_v49 = vmax.f32 %v2847_v40, %v3203_v39  ;;  %v2851_v23 = vsub.f32 %v2846_v35, %v2847_v40  ;;  %v10099_v4 = vld [vmem:[#allocation181_spill] sm:$0xff] }
 0xa5f   :  { %v2495_v3 = vmul.f32 1.442695, %v2494_v26 }
 0xa60   :  { %v3205_v22 = vsub.f32 %v2847_v40, %v3204_v49  ;;  %v2852_v10 = vmul.f32 1.442695, %v2851_v23  ;;  %v3208_v59 = vsub.f32 %v3203_v39, %v3204_v49 }
 0xa62   :  { %v3206_v1 = vmul.f32 1.442695, %v3205_v22  ;;  %v3209_v63 = vmul.f32 1.442695, %v3208_v59 }
 0xa67   :  { %v4076_v2 = vpop.eup %4075 }
 0xa68   :  { %v3558_v57 = vmul.f32 %v4711_v47, %v4076_v2  ;;  %v1423_v47 = vsub.f32 %v1418_v54, %v1419_v13  ;;  %v4078_v31 = vpop.eup %4077 }
 0xa69   :  { %v1070_v20 = vmul.f32 0.0, %v4078_v31  ;;  %v4080_v34 = vpop.eup %4079 }
 0xa6a   :  { %3559 = vadd.xlane.f32.xlu1 %v3558_v57  ;;  %v1424_v33 = vmul.f32 1.442695, %v1423_v47  ;;  %v4082_v8 = vpop.eup %4081  ;;  %v2849_v57 = vmul.f32 1.442695, %v2848_v7  ;;  %v1072_v42 = vmul.f32 %v4080_v34, %v10095_v61 }
 0xa6b   :  { %v1071_v6 = vadd.f32 %v4080_v34, %v1070_v20 }
 0xa6c   :  { %4083 = vpow2.f32 %v1424_v33  ;;  %v1073_v50 = vadd.f32 %v1072_v42, %v1070_v20 }
 0xa6d   :  { %4085 = vpow2.f32 %v1778_v32  ;;  %v1426_v27 = vmul.f32 %v4082_v8, %v1071_v6 }
 0xa6e   :  { %4087 = vpow2.f32 %v1781_v17  ;;  %v1428_v24 = vmul.f32 %v4082_v8, %v1073_v50 }
 0xa6f   :  { %4089 = vpow2.f32 %v2135_v48 }
 0xa70   :  { %4091 = vpow2.f32 %v2138_v41 }
 0xa71   :  { %4093 = vpow2.f32 %v2492_v28 }
 0xa72   :  { %4095 = vpow2.f32 %v2495_v3 }
 0xa73   :  { %4097 = vpow2.f32 %v2849_v57 }
 0xa74   :  { %4099 = vpow2.f32 %v2852_v10 }
 0xa75   :  { %4101 = vpow2.f32 %v3206_v1 }
 0xa76   :  { %4103 = vpow2.f32 %v3209_v63 }
 0xa79   :  { %v4084_v62 = vpop.eup %4083 }
 0xa7a   :  { %v4086_v58 = vpop.eup %4085  ;;  %v1427_v2 = vadd.f32 %v4084_v62, %v1426_v27  ;;  %v1429_v11 = vmul.f32 %v4084_v62, %v10096_v55 }
 0xa7b   :  { %v4088_v5 = vpop.eup %4087 }
 0xa7c   :  { %v1783_v0 = vmul.f32 %v4086_v58, %v1427_v2  ;;  %v4090_v56 = vpop.eup %4089  ;;  %v1430_v54 = vadd.f32 %v1429_v11, %v1428_v24  ;;  %v1786_v37 = vmul.f32 %v4088_v5, %v10097_v44 }
 0xa7d   :  { %v4092_v51 = vpop.eup %4091 }
 0xa7e   :  { %v1784_v36 = vadd.f32 %v4088_v5, %v1783_v0  ;;  %v4094_v53 = vpop.eup %4093  ;;  %v1785_v43 = vmul.f32 %v4086_v58, %v1430_v54  ;;  %v2143_v52 = vmul.f32 %v4092_v51, %v10098_v30 }
 0xa7f   :  { %v4096_v16 = vpop.eup %4095 }
 0xa80   :  { %v2140_v29 = vmul.f32 %v4090_v56, %v1784_v36  ;;  %v4098_v33 = vpop.eup %4097  ;;  %v1787_v32 = vadd.f32 %v1786_v37, %v1785_v43  ;;  %v2500_v34 = vmul.f32 %v4096_v16, %v10099_v4 }
 0xa81   :  { %v4100_v17 = vpop.eup %4099 }
 0xa82   :  { %v2141_v13 = vadd.f32 %v4092_v51, %v2140_v29  ;;  %v2142_v45 = vmul.f32 %v4090_v56, %v1787_v32  ;;  %v4102_v48 = vpop.eup %4101  ;;  %v2857_v39 = vmul.f32 %v4100_v17, %v8172_v19  ;;  %v3737_v19 = vld [vmem:[%s8430_s10] ss:$0 sm:$0xff] }
 0xa83   :  { %v4104_v8 = vpop.eup %4103 }
 0xa84   :  { %v2497_v46 = vmul.f32 %v4094_v53, %v2141_v13  ;;  %v2144_v25 = vadd.f32 %v2143_v52, %v2142_v45  ;;  %v3214_v3 = vmul.f32 %v4104_v8, %v8373_v9 }
 0xa86   :  { %v2498_v38 = vadd.f32 %v4096_v16, %v2497_v46  ;;  %v2499_v20 = vmul.f32 %v4094_v53, %v2144_v25 }
 0xa88   :  { %v2854_v31 = vmul.f32 %v4098_v33, %v2498_v38  ;;  %v2501_v41 = vadd.f32 %v2500_v34, %v2499_v20 }
 0xa8a   :  { %v2855_v35 = vadd.f32 %v4100_v17, %v2854_v31  ;;  %v2856_v26 = vmul.f32 %v4098_v33, %v2501_v41 }
 0xa8c   :  { %v3211_v40 = vmul.f32 %v4102_v48, %v2855_v35 }
 0xa8e   :  { %v3212_v6 = vadd.f32 %v4104_v8, %v3211_v40 }
 0xaf3   :  { %v3560_v18 = vpop.xlane.xlu1 %3559 }
 0xaf4   :  { %v3561_v12 = vmax.f32 %v3204_v49, %v3560_v18 }
 0xaf6   :  { %v3562_v14 = vsub.f32 %v3204_v49, %v3561_v12  ;;  %v3565_v47 = vsub.f32 %v3560_v18, %v3561_v12  ;;  %v2858_v49 = vadd.f32 %v2857_v39, %v2856_v26 }
 0xaf8   :  { %v3563_v15 = vmul.f32 1.442695, %v3562_v14  ;;  %v3566_v21 = vmul.f32 1.442695, %v3565_v47  ;;  %v3213_v58 = vmul.f32 %v4102_v48, %v2858_v49 }
 0xafa   :  { %4105 = vpow2.f32 %v3563_v15  ;;  %v3215_v2 = vadd.f32 %v3214_v3, %v3213_v58 }
 0xafb   :  { %4107 = vpow2.f32 %v3566_v21 }
 0xb07   :  { %v4106_v28 = vpop.eup %4105 }
 0xb08   :  { %v3568_v27 = vmul.f32 %v4106_v28, %v3212_v6  ;;  %v4108_v7 = vpop.eup %4107  ;;  %v3570_v57 = vmul.f32 %v4106_v28, %v3215_v2 }
 0xb09   :  { %v3571_v61 = vmul.f32 %v4108_v7, %v8387_v60 }
 0xb0a   :  { %v3569_v62 = vadd.f32 %v4108_v7, %v3568_v27 }
 0xb0b   :  { %v3572_v42 = vadd.f32 %v3571_v61, %v3570_v57 }
 0xb0c   :  { %4109 = vrcp.f32 %v3569_v62 }
 0xb19   :  { %v4110_v23 = vpop.eup %4109 }
 0xb1a   :  { %v3574_v0 = vmul.f32 %v4110_v23, %v3572_v42 }
 0xb1c   :  { %4111 = vtanh.f32 %v3574_v0 }
 0xb29   :  { %v4112_v22 = vpop.eup %4111 }
 0xb2a   :  { %3788 = vmatmul.mubr.f32.vlgmr.msra.gmra.mxu0 %v4112_v22 }
 0xbea   :  { %v3665_v5 = vpop.f32.mrf.mxu0 }
 0xbeb   :  { %v3666_v56 = vadd.f32 %v3737_v19, %v3665_v5 }
 0xbec   :  { %v3789_v9 = vpop.f32.mrf.mxu0 }
 0xbed   :  { %3669 = vst [vmem:[#allocation17] sm:$0xff] %v3666_v56 }
 0xbee   :  { %4883 = shalt.err (!%p4880_p2)
}
 0xbef   :  { %3679 = dma.vmem_to_hbm [thread:$0]  %s3677_s6, 128, %s8431_s11, [#allocation5]  }
 0xbf0   :  { %4902 = dma.done.wait [#allocation5], 128  }
 0xbf1   :  { %4903 = vsyncadd [#allocation5], 4294967168 }
 0xbf2   :  { %3683 = vsyncpa [#allocation4], 1 }
 0xbf3   :  { %3684 = vsyncpa [#allocation7], 1 }
 0xbf4   :  { %3685 = vsyncpa [#allocation10], 1 }
 0xbf5   :  { %3686 = vsyncpa [#allocation13], 1 }
 0xbf6   :  { %3687 = vsyncpa [#allocation16], 1 }
 0xbf7   :  { %3688 = vsyncpa [#allocation5], 1 }

</bundles_post_ra>
